<compile_context>
chip_gen: v7x
topology: tpu7x:2x2x1
jax: 0.10.0
libtpu: 0.0.40
codegen_flags: <defaults>
</compile_context>

<pallas_src>
import math
import numpy as np
import jax
import jax.numpy as jnp
from jax.experimental import pallas as pl
from jax.experimental.pallas import tpu as pltpu

# ----------------------------- configuration -------------------------------
IMG_CHANNELS = 4
PATCH = 2
HIDDEN = 32
DEPTH = 2
HEADS = 2
HEAD_DIM = HIDDEN // HEADS
MLP_RATIO = 4
CAPTION_DIM = 32
FREQ_DIM = 256
OUT_CHANNELS = 2 * IMG_CHANNELS          # pred_sigma=True in PixArt
M = 1000
C_1 = 0.001
BETA_START = 1e-4
BETA_END = 0.02
LN_EPS = 1e-6


# ------------------------- plain-JAX / numpy helpers ------------------------
def timestep_embedding(t, dim=FREQ_DIM, max_period=10000.0):
    half = dim // 2
    freqs = jnp.exp(-math.log(max_period) *
                    jnp.arange(half, dtype=jnp.float32) / half)
    args = t.astype(jnp.float32)[:, None] * freqs[None]
    return jnp.concatenate([jnp.cos(args), jnp.sin(args)], axis=-1)


def sincos_2d_pos_embed(dim, grid_size):
    def sincos_1d(d, pos):
        omega = 1.0 / (10000.0 ** (np.arange(d // 2, dtype=np.float64) / (d / 2.0)))
        out = np.outer(pos, omega)
        return np.concatenate([np.sin(out), np.cos(out)], axis=1)
    gh = np.arange(grid_size, dtype=np.float64)
    gw = np.arange(grid_size, dtype=np.float64)
    grid_w, grid_h = np.meshgrid(gw, gh)
    emb_h = sincos_1d(dim // 2, grid_h.reshape(-1))
    emb_w = sincos_1d(dim // 2, grid_w.reshape(-1))
    return np.concatenate([emb_h, emb_w], axis=1).astype(np.float32)


def compute_u():
    """The DDIM sigma table `u` (same recursion as the PyTorch module)."""
    u = np.zeros(M + 1, dtype=np.float64)
    for j in range(M, 0, -1):
        beta = BETA_END + (BETA_START - BETA_END) * j / M
        u[j - 1] = math.sqrt((u[j] ** 2 + 1.0) / max(1.0 - beta, C_1) - 1.0)
    return jnp.asarray(u.astype(np.float32))


def build_unpatchify_perm():
    """(P*P*OUT_CHANNELS, IMG_CHANNELS*P*P) 0/1 matrix mapping the final-layer
    (pi, pj, c)-ordered channels to im2col (c, pi, pj) order while dropping the
    sigma-prediction channels (== F_x[:, :img_channels] of the unpatchify)."""
    perm = np.zeros((PATCH * PATCH * OUT_CHANNELS, IMG_CHANNELS * PATCH * PATCH),
                    np.float32)
    for c in range(IMG_CHANNELS):
        for pi in range(PATCH):
            for pj in range(PATCH):
                perm[pi * PATCH * OUT_CHANNELS + pj * OUT_CHANNELS + c,
                     c * PATCH * PATCH + pi * PATCH + pj] = 1.0
    return jnp.asarray(perm)


# ------------------------------ parameter init ------------------------------
def init_params(key, grid_size=16 // PATCH):
    keys = jax.random.split(key, 64)
    kit = iter(keys)

    def w(shape, scale=0.02, dtype=jnp.bfloat16):
        # weight matrices are stored in bf16 (MXU operands); scale/shift tables,
        # biases and pos-embed stay fp32.
        return (jax.random.normal(next(kit), shape, jnp.float32) * scale).astype(dtype)

    def brow(n):
        return jnp.zeros((1, n), jnp.float32)

    p = {}
    p['patch_w'] = w((IMG_CHANNELS * PATCH * PATCH, HIDDEN))
    p['patch_b'] = brow(HIDDEN)
    p['pos_embed'] = jnp.asarray(sincos_2d_pos_embed(HIDDEN, grid_size))   # (N, HIDDEN)
    p['t_mlp1_w'] = w((FREQ_DIM, HIDDEN)); p['t_mlp1_b'] = brow(HIDDEN)
    p['t_mlp2_w'] = w((HIDDEN, HIDDEN));   p['t_mlp2_b'] = brow(HIDDEN)
    p['t_block_w'] = w((HIDDEN, 6 * HIDDEN)); p['t_block_b'] = brow(6 * HIDDEN)
    p['y_fc1_w'] = w((CAPTION_DIM, HIDDEN)); p['y_fc1_b'] = brow(HIDDEN)
    p['y_fc2_w'] = w((HIDDEN, HIDDEN));      p['y_fc2_b'] = brow(HIDDEN)

    # per-block params stacked along DEPTH so the whole network is ONE pallas_call
    def wstack(shape, scale=0.02):
        return jnp.stack([w(shape, scale) for _ in range(DEPTH)])          # bf16

    def bstack(n):
        return jnp.zeros((DEPTH, 1, n), jnp.float32)

    p['sst'] = jnp.stack([w((6, HIDDEN), 1.0 / math.sqrt(HIDDEN), jnp.float32)
                          for _ in range(DEPTH)])                           # (DEPTH, 6, HIDDEN)
    p['qkv_w'] = wstack((HIDDEN, 3 * HIDDEN));         p['qkv_b'] = bstack(3 * HIDDEN)
    p['proj_w'] = wstack((HIDDEN, HIDDEN));            p['proj_b'] = bstack(HIDDEN)
    p['cq_w'] = wstack((HIDDEN, HIDDEN));              p['cq_b'] = bstack(HIDDEN)
    p['ckv_w'] = wstack((HIDDEN, 2 * HIDDEN));         p['ckv_b'] = bstack(2 * HIDDEN)
    p['cproj_w'] = wstack((HIDDEN, HIDDEN));           p['cproj_b'] = bstack(HIDDEN)
    p['fc1_w'] = wstack((HIDDEN, MLP_RATIO * HIDDEN)); p['fc1_b'] = bstack(MLP_RATIO * HIDDEN)
    p['fc2_w'] = wstack((MLP_RATIO * HIDDEN, HIDDEN)); p['fc2_b'] = bstack(HIDDEN)

    p['final_sst'] = w((2, HIDDEN), 1.0 / math.sqrt(HIDDEN), jnp.float32)
    p['final_w'] = w((HIDDEN, PATCH * PATCH * OUT_CHANNELS))
    p['final_b'] = brow(PATCH * PATCH * OUT_CHANNELS)

    p['u'] = compute_u()
    p['perm'] = build_unpatchify_perm()
    return p


# --------------------------- fused DDIM forward ------------------------------
def ddim_forward(params, x, encoder_hidden_states, sigma, mask, return_eps=False):
    """Mirrors PixArt_alpha_DDIM.forward: D_x = latents + c_out * eps(c_in*latents, c_noise, y)."""
    B, C, H, W = x.shape
    ph, pw = H // PATCH, W // PATCH
    N = ph * pw
    CPP = C * PATCH * PATCH
    L = encoder_hidden_states.shape[-2]

    x = x.astype(jnp.float32)

    # --- DDIM / EDM preconditioning scalars (tiny; plain XLA per perf review) ---
    sigma_flat = sigma.reshape(-1).astype(jnp.float32)                         # (B,)
    rnd_idx = jnp.argmin(jnp.abs(sigma_flat[:, None] - params['u'][None, :]), axis=1)
    c_in = 1.0 / jnp.sqrt(sigma_flat ** 2 + 1.0)
    c_out = -sigma_flat
    c_noise = (M - 1 - rnd_idx).astype(jnp.float32)
    temb = timestep_embedding(c_noise).reshape(B, 1, FREQ_DIM)

    # --- im2col of the stride-2 patch-embed conv + per-batch small tensors ---
    xp = x.reshape(B, C, ph, PATCH, pw, PATCH).transpose(0, 2, 4, 1, 3, 5).reshape(B, N, CPP)
    y_flat = encoder_hidden_states.reshape(B, L, CAPTION_DIM).astype(jnp.float32)
    # TODO(synk): PixArt's xformers BlockDiagonalMask varlen path is approximated by an additive mask.
    cbias_in = jnp.where(mask.astype(jnp.float32) > 0, 0.0, -1e9).reshape(B, 1, L)
    cin_b = c_in.reshape(B, 1, 1)
    cout_b = c_out.reshape(B, 1, 1)

    per_batch = [xp, cin_b, cout_b, temb, y_flat, cbias_in]
    shared = [params['perm'], params['pos_embed'],
              params['patch_w'], params['patch_b'],
              params['t_mlp1_w'], params['t_mlp1_b'],
              params['t_mlp2_w'], params['t_mlp2_b'],
              params['t_block_w'], params['t_block_b'],
              params['y_fc1_w'], params['y_fc1_b'],
              params['y_fc2_w'], params['y_fc2_b'],
              params['sst'],
              params['qkv_w'], params['qkv_b'],
              params['proj_w'], params['proj_b'],
              params['cq_w'], params['cq_b'],
              params['ckv_w'], params['ckv_b'],
              params['cproj_w'], params['cproj_b'],
              params['fc1_w'], params['fc1_b'],
              params['fc2_w'], params['fc2_b'],
              params['final_sst'], params['final_w'], params['final_b']]

    def bspec(shape):                          # per-batch blocked along leading dim
        nd = len(shape)
        return pl.BlockSpec((1,) + tuple(shape[1:]),
                            lambda b: (b,) + (0,) * (nd - 1))

    def sspec(shape):                          # whole array every grid step (weights)
        nd = len(shape)
        return pl.BlockSpec(tuple(shape), lambda b: (0,) * nd)

    attn_scale = 1.0 / math.sqrt(HEAD_DIM)

    def kernel(xp_ref, cin_ref, cout_ref, temb_ref, y_ref, cbias_ref,
               perm_ref, pos_ref, patch_w_ref, patch_b_ref,
               t1w_ref, t1b_ref, t2w_ref, t2b_ref, tbw_ref, tbb_ref,
               y1w_ref, y1b_ref, y2w_ref, y2b_ref,
               sst_ref, qkvw_ref, qkvb_ref, projw_ref, projb_ref,
               cqw_ref, cqb_ref, ckvw_ref, ckvb_ref, cprojw_ref, cprojb_ref,
               fc1w_ref, fc1b_ref, fc2w_ref, fc2b_ref,
               fsst_ref, fw_ref, fb_ref,
               dx_ref, eps_ref):
        f32 = jnp.float32
        bf16 = jnp.bfloat16

        def mm(a, w):                          # a @ w, bf16 MXU operands, fp32 accumulate
            return jax.lax.dot_general(a.astype(bf16), w.astype(bf16),
                                       (((1,), (0,)), ((), ())),
                                       preferred_element_type=f32)

        def mm_nt(a, w):                       # a @ w.T
            return jax.lax.dot_general(a.astype(bf16), w.astype(bf16),
                                       (((1,), (1,)), ((), ())),
                                       preferred_element_type=f32)

        def layer_norm(v):                     # no-affine LayerNorm, fp32
            mu = jnp.mean(v, axis=-1, keepdims=True)
            vc = v - mu
            var = jnp.mean(vc * vc, axis=-1, keepdims=True)
            return vc * jax.lax.rsqrt(var + LN_EPS)

        def softmax(s):                        # fp32, max-subtracted
            mx = jnp.max(s, axis=-1, keepdims=True)
            p = jnp.exp(s - mx)
            return p / jnp.sum(p, axis=-1, keepdims=True)

        xp_b = xp_ref[0]                                   # (N, CPP)  fp32
        c_in_s = cin_ref[0]                                # (1, 1)
        c_out_s = cout_ref[0]                              # (1, 1)

        # ---- patch embed (c_in preconditioning folded in) + positional embedding ----
        tokens = mm(xp_b * c_in_s, patch_w_ref[...]) + patch_b_ref[...] + pos_ref[...]

        # ---- timestep embedder + adaLN-single t_block ----
        t_hid = jax.nn.silu(mm(temb_ref[0], t1w_ref[...]) + t1b_ref[...])
        t_vec = mm(t_hid, t2w_ref[...]) + t2b_ref[...]                   # (1, HIDDEN)
        t0 = mm(jax.nn.silu(t_vec), tbw_ref[...]) + tbb_ref[...]         # (1, 6*HIDDEN)

        # ---- caption embedder ----
        y_hid = jax.nn.gelu(mm(y_ref[0], y1w_ref[...]) + y1b_ref[...], approximate=True)
        y_emb = mm(y_hid, y2w_ref[...]) + y2b_ref[...]                   # (L, HIDDEN)
        cbias = cbias_ref[0]                                             # (1, L)

        for d in range(DEPTH):                 # static unroll; everything stays in VMEM
            sst_d = sst_ref[d]                                           # (6, HIDDEN)
            shift_msa = t0[:, 0 * HIDDEN:1 * HIDDEN] + sst_d[0:1, :]
            scale_msa = t0[:, 1 * HIDDEN:2 * HIDDEN] + sst_d[1:2, :]
            gate_msa = t0[:, 2 * HIDDEN:3 * HIDDEN] + sst_d[2:3, :]
            shift_mlp = t0[:, 3 * HIDDEN:4 * HIDDEN] + sst_d[3:4, :]
            scale_mlp = t0[:, 4 * HIDDEN:5 * HIDDEN] + sst_d[4:5, :]
            gate_mlp = t0[:, 5 * HIDDEN:6 * HIDDEN] + sst_d[5:6, :]

            # ---- self attention (heads via static lane slices of the fused QKV) ----
            hmod = layer_norm(tokens) * (1.0 + scale_msa) + shift_msa
            qkv = mm(hmod, qkvw_ref[d]) + qkvb_ref[d]                    # (N, 3*HIDDEN)
            heads = []
            for hh in range(HEADS):
                lo = hh * HEAD_DIM
                q = qkv[:, lo:lo + HEAD_DIM]
                k = qkv[:, HIDDEN + lo:HIDDEN + lo + HEAD_DIM]
                v = qkv[:, 2 * HIDDEN + lo:2 * HIDDEN + lo + HEAD_DIM]
                s = mm_nt(q, k) * attn_scale                             # (N, N)
                heads.append(mm(softmax(s), v))                          # (N, HEAD_DIM)
            attn = mm(jnp.concatenate(heads, axis=1), projw_ref[d]) + projb_ref[d]
            tokens = tokens + gate_msa * attn

            # ---- cross attention (no pre-norm / no gate in PixArt-alpha blocks) ----
            q_all = mm(tokens, cqw_ref[d]) + cqb_ref[d]                  # (N, HIDDEN)
            kv = mm(y_emb, ckvw_ref[d]) + ckvb_ref[d]                    # (L, 2*HIDDEN)
            cheads = []
            for hh in range(HEADS):
                lo = hh * HEAD_DIM
                q = q_all[:, lo:lo + HEAD_DIM]
                k = kv[:, lo:lo + HEAD_DIM]
                v = kv[:, HIDDEN + lo:HIDDEN + lo + HEAD_DIM]
                s = mm_nt(q, k) * attn_scale + cbias                     # (N, L)
                cheads.append(mm(softmax(s), v))
            cattn = mm(jnp.concatenate(cheads, axis=1), cprojw_ref[d]) + cprojb_ref[d]
            tokens = tokens + cattn

            # ---- MLP ----
            hmod = layer_norm(tokens) * (1.0 + scale_mlp) + shift_mlp
            hmid = jax.nn.gelu(mm(hmod, fc1w_ref[d]) + fc1b_ref[d], approximate=True)
            tokens = tokens + gate_mlp * (mm(hmid, fc2w_ref[d]) + fc2b_ref[d])

        # ---- final layer, eps extraction, and c_out output preconditioning ----
        f_shift = t_vec + fsst_ref[0:1, :]
        f_scale = t_vec + fsst_ref[1:2, :]
        hmod = layer_norm(tokens) * (1.0 + f_scale) + f_shift
        outf = mm(hmod, fw_ref[...]) + fb_ref[...]                       # (N, P*P*OUT_CHANNELS)
        # exact 0/1 permutation matmul (fp32): (pi,pj,c) channel order -> im2col
        # (c,pi,pj) order, keeping only the first IMG_CHANNELS channels.
        eps = jax.lax.dot_general(outf, perm_ref[...], (((1,), (0,)), ((), ())),
                                  preferred_element_type=f32)            # (N, CPP)
        eps_ref[0] = eps
        dx_ref[0] = xp_b + c_out_s * eps                                 # D_x in im2col layout

    dx_tok, eps_tok = pl.pallas_call(
        kernel,
        grid=(B,),
        in_specs=[bspec(a.shape) for a in per_batch] + [sspec(a.shape) for a in shared],
        out_specs=(pl.BlockSpec((1, N, CPP), lambda b: (b, 0, 0)),
                   pl.BlockSpec((1, N, CPP), lambda b: (b, 0, 0))),
        out_shape=(jax.ShapeDtypeStruct((B, N, CPP), jnp.float32),
                   jax.ShapeDtypeStruct((B, N, CPP), jnp.float32)),
        compiler_params=pltpu.CompilerParams(dimension_semantics=("parallel",)),
    )(*(per_batch + shared))

    def un_im2col(tok):    # (B, N, C*P*P) -> (B, C, H, W)
        return tok.reshape(B, ph, pw, C, PATCH, PATCH) \
                  .transpose(0, 3, 1, 4, 2, 5).reshape(B, C, H, W)

    if return_eps:
        return un_im2col(eps_tok)
    return un_im2col(dx_tok)


# ----------------------------------- main -----------------------------------
if __name__ == "__main__":
    key = jax.random.PRNGKey(0)
    k_param, k_x, k_y, k_sig = jax.random.split(key, 4)

    params = init_params(k_param)

    B, Hs, Ws, Ltxt = 2, 16, 16, 8
    x = jax.random.normal(k_x, (B, IMG_CHANNELS, Hs, Ws), jnp.float32)
    encoder_hidden_states = jax.random.normal(k_y, (B, 1, Ltxt, CAPTION_DIM), jnp.float32)
    sigma = jnp.abs(jax.random.normal(k_sig, (B,), jnp.float32)) * 5.0 + 0.5
    mask = jnp.concatenate(
        [jnp.ones((B, Ltxt - 3), jnp.float32), jnp.zeros((B, 3), jnp.float32)], axis=1)

    fwd = jax.jit(lambda p, xx, yy, ss, mm: ddim_forward(p, xx, yy, ss, mm))
    D_x = fwd(params, x, encoder_hidden_states, sigma, mask)
    D_x = jax.block_until_ready(D_x)

    assert D_x.shape == (B, IMG_CHANNELS, Hs, Ws)
    assert bool(jnp.all(jnp.isfinite(D_x)))
    print("KERNEL_OK")
</pallas_src>

<mosaic_0001>
module attributes {stable_mosaic.version = 11 : i64} {
  func.func @kernel(%arg0: i32, %arg1: memref<1x64x16xf32, #tpu.memory_space<vmem>>, %arg2: memref<1x1x1xf32, #tpu.memory_space<vmem>>, %arg3: memref<1x1x1xf32, #tpu.memory_space<vmem>>, %arg4: memref<1x1x256xf32, #tpu.memory_space<vmem>>, %arg5: memref<1x8x32xf32, #tpu.memory_space<vmem>>, %arg6: memref<1x1x8xf32, #tpu.memory_space<vmem>>, %arg7: memref<32x16xf32, #tpu.memory_space<vmem>>, %arg8: memref<64x32xf32, #tpu.memory_space<vmem>>, %arg9: memref<16x32xbf16, #tpu.memory_space<vmem>>, %arg10: memref<1x32xf32, #tpu.memory_space<vmem>>, %arg11: memref<256x32xbf16, #tpu.memory_space<vmem>>, %arg12: memref<1x32xf32, #tpu.memory_space<vmem>>, %arg13: memref<32x32xbf16, #tpu.memory_space<vmem>>, %arg14: memref<1x32xf32, #tpu.memory_space<vmem>>, %arg15: memref<32x192xbf16, #tpu.memory_space<vmem>>, %arg16: memref<1x192xf32, #tpu.memory_space<vmem>>, %arg17: memref<32x32xbf16, #tpu.memory_space<vmem>>, %arg18: memref<1x32xf32, #tpu.memory_space<vmem>>, %arg19: memref<32x32xbf16, #tpu.memory_space<vmem>>, %arg20: memref<1x32xf32, #tpu.memory_space<vmem>>, %arg21: memref<2x6x32xf32, #tpu.memory_space<vmem>>, %arg22: memref<2x32x96xbf16, #tpu.memory_space<vmem>>, %arg23: memref<2x1x96xf32, #tpu.memory_space<vmem>>, %arg24: memref<2x32x32xbf16, #tpu.memory_space<vmem>>, %arg25: memref<2x1x32xf32, #tpu.memory_space<vmem>>, %arg26: memref<2x32x32xbf16, #tpu.memory_space<vmem>>, %arg27: memref<2x1x32xf32, #tpu.memory_space<vmem>>, %arg28: memref<2x32x64xbf16, #tpu.memory_space<vmem>>, %arg29: memref<2x1x64xf32, #tpu.memory_space<vmem>>, %arg30: memref<2x32x32xbf16, #tpu.memory_space<vmem>>, %arg31: memref<2x1x32xf32, #tpu.memory_space<vmem>>, %arg32: memref<2x32x128xbf16, #tpu.memory_space<vmem>>, %arg33: memref<2x1x128xf32, #tpu.memory_space<vmem>>, %arg34: memref<2x128x32xbf16, #tpu.memory_space<vmem>>, %arg35: memref<2x1x32xf32, #tpu.memory_space<vmem>>, %arg36: memref<2x32xf32, #tpu.memory_space<vmem>>, %arg37: memref<32x32xbf16, #tpu.memory_space<vmem>>, %arg38: memref<1x32xf32, #tpu.memory_space<vmem>>, %arg39: memref<1x64x16xf32, #tpu.memory_space<vmem>>, %arg40: memref<1x64x16xf32, #tpu.memory_space<vmem>>) attributes {dimension_semantics = [#tpu.dimension_semantics<parallel>], iteration_bounds = array<i64: 2>, scalar_prefetch = 0 : i64, scratch_operands = 0 : i64, tpu.core_type = #tpu.core_type<tc>, window_params = [{transform_indices = @transform_0, window_bounds = array<i64: 1, 64, 16>}, {transform_indices = @transform_1, window_bounds = array<i64: 1, 1, 1>}, {transform_indices = @transform_2, window_bounds = array<i64: 1, 1, 1>}, {transform_indices = @transform_3, window_bounds = array<i64: 1, 1, 256>}, {transform_indices = @transform_4, window_bounds = array<i64: 1, 8, 32>}, {transform_indices = @transform_5, window_bounds = array<i64: 1, 1, 8>}, {pipeline_mode = #tpu.pipeline_mode<synchronous>, transform_indices = @transform_6, window_bounds = array<i64: 32, 16>}, {pipeline_mode = #tpu.pipeline_mode<synchronous>, transform_indices = @transform_7, window_bounds = array<i64: 64, 32>}, {pipeline_mode = #tpu.pipeline_mode<synchronous>, transform_indices = @transform_8, window_bounds = array<i64: 16, 32>}, {pipeline_mode = #tpu.pipeline_mode<synchronous>, transform_indices = @transform_9, window_bounds = array<i64: 1, 32>}, {pipeline_mode = #tpu.pipeline_mode<synchronous>, transform_indices = @transform_10, window_bounds = array<i64: 256, 32>}, {pipeline_mode = #tpu.pipeline_mode<synchronous>, transform_indices = @transform_11, window_bounds = array<i64: 1, 32>}, {pipeline_mode = #tpu.pipeline_mode<synchronous>, transform_indices = @transform_12, window_bounds = array<i64: 32, 32>}, {pipeline_mode = #tpu.pipeline_mode<synchronous>, transform_indices = @transform_13, window_bounds = array<i64: 1, 32>}, {pipeline_mode = #tpu.pipeline_mode<synchronous>, transform_indices = @transform_14, window_bounds = array<i64: 32, 192>}, {pipeline_mode = #tpu.pipeline_mode<synchronous>, transform_indices = @transform_15, window_bounds = array<i64: 1, 192>}, {pipeline_mode = #tpu.pipeline_mode<synchronous>, transform_indices = @transform_16, window_bounds = array<i64: 32, 32>}, {pipeline_mode = #tpu.pipeline_mode<synchronous>, transform_indices = @transform_17, window_bounds = array<i64: 1, 32>}, {pipeline_mode = #tpu.pipeline_mode<synchronous>, transform_indices = @transform_18, window_bounds = array<i64: 32, 32>}, {pipeline_mode = #tpu.pipeline_mode<synchronous>, transform_indices = @transform_19, window_bounds = array<i64: 1, 32>}, {pipeline_mode = #tpu.pipeline_mode<synchronous>, transform_indices = @transform_20, window_bounds = array<i64: 2, 6, 32>}, {pipeline_mode = #tpu.pipeline_mode<synchronous>, transform_indices = @transform_21, window_bounds = array<i64: 2, 32, 96>}, {pipeline_mode = #tpu.pipeline_mode<synchronous>, transform_indices = @transform_22, window_bounds = array<i64: 2, 1, 96>}, {pipeline_mode = #tpu.pipeline_mode<synchronous>, transform_indices = @transform_23, window_bounds = array<i64: 2, 32, 32>}, {pipeline_mode = #tpu.pipeline_mode<synchronous>, transform_indices = @transform_24, window_bounds = array<i64: 2, 1, 32>}, {pipeline_mode = #tpu.pipeline_mode<synchronous>, transform_indices = @transform_25, window_bounds = array<i64: 2, 32, 32>}, {pipeline_mode = #tpu.pipeline_mode<synchronous>, transform_indices = @transform_26, window_bounds = array<i64: 2, 1, 32>}, {pipeline_mode = #tpu.pipeline_mode<synchronous>, transform_indices = @transform_27, window_bounds = array<i64: 2, 32, 64>}, {pipeline_mode = #tpu.pipeline_mode<synchronous>, transform_indices = @transform_28, window_bounds = array<i64: 2, 1, 64>}, {pipeline_mode = #tpu.pipeline_mode<synchronous>, transform_indices = @transform_29, window_bounds = array<i64: 2, 32, 32>}, {pipeline_mode = #tpu.pipeline_mode<synchronous>, transform_indices = @transform_30, window_bounds = array<i64: 2, 1, 32>}, {pipeline_mode = #tpu.pipeline_mode<synchronous>, transform_indices = @transform_31, window_bounds = array<i64: 2, 32, 128>}, {pipeline_mode = #tpu.pipeline_mode<synchronous>, transform_indices = @transform_32, window_bounds = array<i64: 2, 1, 128>}, {pipeline_mode = #tpu.pipeline_mode<synchronous>, transform_indices = @transform_33, window_bounds = array<i64: 2, 128, 32>}, {pipeline_mode = #tpu.pipeline_mode<synchronous>, transform_indices = @transform_34, window_bounds = array<i64: 2, 1, 32>}, {pipeline_mode = #tpu.pipeline_mode<synchronous>, transform_indices = @transform_35, window_bounds = array<i64: 2, 32>}, {pipeline_mode = #tpu.pipeline_mode<synchronous>, transform_indices = @transform_36, window_bounds = array<i64: 32, 32>}, {pipeline_mode = #tpu.pipeline_mode<synchronous>, transform_indices = @transform_37, window_bounds = array<i64: 1, 32>}, {transform_indices = @transform_38, window_bounds = array<i64: 1, 64, 16>}, {transform_indices = @transform_39, window_bounds = array<i64: 1, 64, 16>}]} {
    %c0 = arith.constant 0 : index
    %c0_0 = arith.constant 0 : index
    %c0_1 = arith.constant 0 : index
    %0 = vector.load %arg1[%c0, %c0_0, %c0_1] : memref<1x64x16xf32, #tpu.memory_space<vmem>>, vector<1x64x16xf32>
    %1 = vector.shape_cast %0 : vector<1x64x16xf32> to vector<64x16xf32>
    %c0_2 = arith.constant 0 : index
    %c0_3 = arith.constant 0 : index
    %c0_4 = arith.constant 0 : index
    %2 = vector.load %arg2[%c0_2, %c0_3, %c0_4] : memref<1x1x1xf32, #tpu.memory_space<vmem>>, vector<1x1x1xf32>
    %3 = vector.shape_cast %2 : vector<1x1x1xf32> to vector<1x1xf32>
    %c0_5 = arith.constant 0 : index
    %c0_6 = arith.constant 0 : index
    %c0_7 = arith.constant 0 : index
    %4 = vector.load %arg3[%c0_5, %c0_6, %c0_7] : memref<1x1x1xf32, #tpu.memory_space<vmem>>, vector<1x1x1xf32>
    %5 = vector.shape_cast %4 : vector<1x1x1xf32> to vector<1x1xf32>
    %6 = vector.broadcast %3 : vector<1x1xf32> to vector<64x16xf32>
    %7 = arith.mulf %1, %6 : vector<64x16xf32>
    %c0_8 = arith.constant 0 : index
    %c0_9 = arith.constant 0 : index
    %8 = vector.load %arg9[%c0_8, %c0_9] : memref<16x32xbf16, #tpu.memory_space<vmem>>, vector<16x32xbf16>
    %9 = arith.truncf %7 : vector<64x16xf32> to vector<64x16xbf16>
    %cst = arith.constant dense<0.000000e+00> : vector<64x32xf32>
    %10 = tpu.matmul %9, %8, %cst {dimension_numbers = #tpu.dot_dimension_numbers<[1], [0], [0], [1], [0, 0, 1, 1], [], []>} : vector<64x16xbf16>, vector<16x32xbf16>, vector<64x32xf32> -> vector<64x32xf32>
    %c0_10 = arith.constant 0 : index
    %c0_11 = arith.constant 0 : index
    %11 = vector.load %arg10[%c0_10, %c0_11] : memref<1x32xf32, #tpu.memory_space<vmem>>, vector<1x32xf32>
    %12 = vector.broadcast %11 : vector<1x32xf32> to vector<64x32xf32>
    %13 = arith.addf %10, %12 : vector<64x32xf32>
    %c0_12 = arith.constant 0 : index
    %c0_13 = arith.constant 0 : index
    %14 = vector.load %arg8[%c0_12, %c0_13] : memref<64x32xf32, #tpu.memory_space<vmem>>, vector<64x32xf32>
    %15 = arith.addf %13, %14 : vector<64x32xf32>
    %c0_14 = arith.constant 0 : index
    %c0_15 = arith.constant 0 : index
    %c0_16 = arith.constant 0 : index
    %16 = vector.load %arg4[%c0_14, %c0_15, %c0_16] : memref<1x1x256xf32, #tpu.memory_space<vmem>>, vector<1x1x256xf32>
    %17 = vector.shape_cast %16 : vector<1x1x256xf32> to vector<1x256xf32>
    %c0_17 = arith.constant 0 : index
    %c0_18 = arith.constant 0 : index
    %18 = vector.load %arg11[%c0_17, %c0_18] : memref<256x32xbf16, #tpu.memory_space<vmem>>, vector<256x32xbf16>
    %19 = arith.truncf %17 : vector<1x256xf32> to vector<1x256xbf16>
    %cst_19 = arith.constant dense<0.000000e+00> : vector<1x32xf32>
    %20 = tpu.matmul %19, %18, %cst_19 {dimension_numbers = #tpu.dot_dimension_numbers<[1], [0], [0], [1], [0, 0, 1, 1], [], []>} : vector<1x256xbf16>, vector<256x32xbf16>, vector<1x32xf32> -> vector<1x32xf32>
    %c0_20 = arith.constant 0 : index
    %c0_21 = arith.constant 0 : index
    %21 = vector.load %arg12[%c0_20, %c0_21] : memref<1x32xf32, #tpu.memory_space<vmem>>, vector<1x32xf32>
    %22 = arith.addf %20, %21 : vector<1x32xf32>
    %23 = arith.negf %22 : vector<1x32xf32>
    %24 = math.exp %23 : vector<1x32xf32>
    %cst_22 = arith.constant 1.000000e+00 : f32
    %25 = vector.broadcast %cst_22 : f32 to vector<1x32xf32>
    %26 = arith.addf %25, %24 : vector<1x32xf32>
    %27 = arith.divf %25, %26 : vector<1x32xf32>
    %28 = arith.mulf %22, %27 : vector<1x32xf32>
    %c0_23 = arith.constant 0 : index
    %c0_24 = arith.constant 0 : index
    %29 = vector.load %arg13[%c0_23, %c0_24] : memref<32x32xbf16, #tpu.memory_space<vmem>>, vector<32x32xbf16>
    %30 = arith.truncf %28 : vector<1x32xf32> to vector<1x32xbf16>
    %cst_25 = arith.constant dense<0.000000e+00> : vector<1x32xf32>
    %31 = tpu.matmul %30, %29, %cst_25 {dimension_numbers = #tpu.dot_dimension_numbers<[1], [0], [0], [1], [0, 0, 1, 1], [], []>} : vector<1x32xbf16>, vector<32x32xbf16>, vector<1x32xf32> -> vector<1x32xf32>
    %c0_26 = arith.constant 0 : index
    %c0_27 = arith.constant 0 : index
    %32 = vector.load %arg14[%c0_26, %c0_27] : memref<1x32xf32, #tpu.memory_space<vmem>>, vector<1x32xf32>
    %33 = arith.addf %31, %32 : vector<1x32xf32>
    %34 = arith.negf %33 : vector<1x32xf32>
    %35 = math.exp %34 : vector<1x32xf32>
    %cst_28 = arith.constant 1.000000e+00 : f32
    %36 = vector.broadcast %cst_28 : f32 to vector<1x32xf32>
    %37 = arith.addf %36, %35 : vector<1x32xf32>
    %38 = arith.divf %36, %37 : vector<1x32xf32>
    %39 = arith.mulf %33, %38 : vector<1x32xf32>
    %c0_29 = arith.constant 0 : index
    %c0_30 = arith.constant 0 : index
    %40 = vector.load %arg15[%c0_29, %c0_30] : memref<32x192xbf16, #tpu.memory_space<vmem>>, vector<32x192xbf16>
    %41 = arith.truncf %39 : vector<1x32xf32> to vector<1x32xbf16>
    %cst_31 = arith.constant dense<0.000000e+00> : vector<1x192xf32>
    %42 = tpu.matmul %41, %40, %cst_31 {dimension_numbers = #tpu.dot_dimension_numbers<[1], [0], [0], [1], [0, 0, 1, 1], [], []>} : vector<1x32xbf16>, vector<32x192xbf16>, vector<1x192xf32> -> vector<1x192xf32>
    %c0_32 = arith.constant 0 : index
    %c0_33 = arith.constant 0 : index
    %43 = vector.load %arg16[%c0_32, %c0_33] : memref<1x192xf32, #tpu.memory_space<vmem>>, vector<1x192xf32>
    %44 = arith.addf %42, %43 : vector<1x192xf32>
    %c0_34 = arith.constant 0 : index
    %c0_35 = arith.constant 0 : index
    %c0_36 = arith.constant 0 : index
    %45 = vector.load %arg5[%c0_34, %c0_35, %c0_36] : memref<1x8x32xf32, #tpu.memory_space<vmem>>, vector<1x8x32xf32>
    %46 = vector.shape_cast %45 : vector<1x8x32xf32> to vector<8x32xf32>
    %c0_37 = arith.constant 0 : index
    %c0_38 = arith.constant 0 : index
    %47 = vector.load %arg17[%c0_37, %c0_38] : memref<32x32xbf16, #tpu.memory_space<vmem>>, vector<32x32xbf16>
    %48 = arith.truncf %46 : vector<8x32xf32> to vector<8x32xbf16>
    %cst_39 = arith.constant dense<0.000000e+00> : vector<8x32xf32>
    %49 = tpu.matmul %48, %47, %cst_39 {dimension_numbers = #tpu.dot_dimension_numbers<[1], [0], [0], [1], [0, 0, 1, 1], [], []>} : vector<8x32xbf16>, vector<32x32xbf16>, vector<8x32xf32> -> vector<8x32xf32>
    %c0_40 = arith.constant 0 : index
    %c0_41 = arith.constant 0 : index
    %50 = vector.load %arg18[%c0_40, %c0_41] : memref<1x32xf32, #tpu.memory_space<vmem>>, vector<1x32xf32>
    %51 = vector.broadcast %50 : vector<1x32xf32> to vector<8x32xf32>
    %52 = arith.addf %49, %51 : vector<8x32xf32>
    %53 = arith.mulf %52, %52 : vector<8x32xf32>
    %54 = arith.mulf %52, %53 : vector<8x32xf32>
    %cst_42 = arith.constant 4.471500e-02 : f32
    %55 = vector.broadcast %cst_42 : f32 to vector<8x32xf32>
    %56 = arith.mulf %55, %54 : vector<8x32xf32>
    %57 = arith.addf %52, %56 : vector<8x32xf32>
    %cst_43 = arith.constant 0.797884583 : f32
    %58 = vector.broadcast %cst_43 : f32 to vector<8x32xf32>
    %59 = arith.mulf %58, %57 : vector<8x32xf32>
    %60 = math.tanh %59 : vector<8x32xf32>
    %cst_44 = arith.constant 1.000000e+00 : f32
    %61 = vector.broadcast %cst_44 : f32 to vector<8x32xf32>
    %62 = arith.addf %61, %60 : vector<8x32xf32>
    %cst_45 = arith.constant 5.000000e-01 : f32
    %63 = vector.broadcast %cst_45 : f32 to vector<8x32xf32>
    %64 = arith.mulf %63, %62 : vector<8x32xf32>
    %65 = arith.mulf %52, %64 : vector<8x32xf32>
    %c0_46 = arith.constant 0 : index
    %c0_47 = arith.constant 0 : index
    %66 = vector.load %arg19[%c0_46, %c0_47] : memref<32x32xbf16, #tpu.memory_space<vmem>>, vector<32x32xbf16>
    %67 = arith.truncf %65 : vector<8x32xf32> to vector<8x32xbf16>
    %cst_48 = arith.constant dense<0.000000e+00> : vector<8x32xf32>
    %68 = tpu.matmul %67, %66, %cst_48 {dimension_numbers = #tpu.dot_dimension_numbers<[1], [0], [0], [1], [0, 0, 1, 1], [], []>} : vector<8x32xbf16>, vector<32x32xbf16>, vector<8x32xf32> -> vector<8x32xf32>
    %c0_49 = arith.constant 0 : index
    %c0_50 = arith.constant 0 : index
    %69 = vector.load %arg20[%c0_49, %c0_50] : memref<1x32xf32, #tpu.memory_space<vmem>>, vector<1x32xf32>
    %70 = vector.broadcast %69 : vector<1x32xf32> to vector<8x32xf32>
    %71 = arith.addf %68, %70 : vector<8x32xf32>
    %c0_51 = arith.constant 0 : index
    %c0_52 = arith.constant 0 : index
    %c0_53 = arith.constant 0 : index
    %72 = vector.load %arg6[%c0_51, %c0_52, %c0_53] : memref<1x1x8xf32, #tpu.memory_space<vmem>>, vector<1x1x8xf32>
    %73 = vector.shape_cast %72 : vector<1x1x8xf32> to vector<1x8xf32>
    %c0_54 = arith.constant 0 : index
    %c0_55 = arith.constant 0 : index
    %c0_56 = arith.constant 0 : index
    %74 = vector.load %arg21[%c0_54, %c0_55, %c0_56] : memref<2x6x32xf32, #tpu.memory_space<vmem>>, vector<1x6x32xf32>
    %75 = vector.shape_cast %74 : vector<1x6x32xf32> to vector<6x32xf32>
    %76 = vector.extract_strided_slice %44 {offsets = [0, 0], sizes = [1, 32], strides = [1, 1]} : vector<1x192xf32> to vector<1x32xf32>
    %77 = vector.extract_strided_slice %75 {offsets = [0, 0], sizes = [1, 32], strides = [1, 1]} : vector<6x32xf32> to vector<1x32xf32>
    %78 = arith.addf %76, %77 : vector<1x32xf32>
    %79 = vector.extract_strided_slice %44 {offsets = [0, 32], sizes = [1, 32], strides = [1, 1]} : vector<1x192xf32> to vector<1x32xf32>
    %80 = vector.extract_strided_slice %75 {offsets = [1, 0], sizes = [1, 32], strides = [1, 1]} : vector<6x32xf32> to vector<1x32xf32>
    %81 = arith.addf %79, %80 : vector<1x32xf32>
    %82 = vector.extract_strided_slice %44 {offsets = [0, 64], sizes = [1, 32], strides = [1, 1]} : vector<1x192xf32> to vector<1x32xf32>
    %83 = vector.extract_strided_slice %75 {offsets = [2, 0], sizes = [1, 32], strides = [1, 1]} : vector<6x32xf32> to vector<1x32xf32>
    %84 = arith.addf %82, %83 : vector<1x32xf32>
    %85 = vector.extract_strided_slice %44 {offsets = [0, 96], sizes = [1, 32], strides = [1, 1]} : vector<1x192xf32> to vector<1x32xf32>
    %86 = vector.extract_strided_slice %75 {offsets = [3, 0], sizes = [1, 32], strides = [1, 1]} : vector<6x32xf32> to vector<1x32xf32>
    %87 = arith.addf %85, %86 : vector<1x32xf32>
    %88 = vector.extract_strided_slice %44 {offsets = [0, 128], sizes = [1, 32], strides = [1, 1]} : vector<1x192xf32> to vector<1x32xf32>
    %89 = vector.extract_strided_slice %75 {offsets = [4, 0], sizes = [1, 32], strides = [1, 1]} : vector<6x32xf32> to vector<1x32xf32>
    %90 = arith.addf %88, %89 : vector<1x32xf32>
    %91 = vector.extract_strided_slice %44 {offsets = [0, 160], sizes = [1, 32], strides = [1, 1]} : vector<1x192xf32> to vector<1x32xf32>
    %92 = vector.extract_strided_slice %75 {offsets = [5, 0], sizes = [1, 32], strides = [1, 1]} : vector<6x32xf32> to vector<1x32xf32>
    %93 = arith.addf %91, %92 : vector<1x32xf32>
    %cst_57 = arith.constant dense<0.000000e+00> : vector<64xf32>
    %94 = vector.multi_reduction <add>, %15, %cst_57 [1] : vector<64x32xf32> to vector<64xf32>
    %95 = vector.shape_cast %94 : vector<64xf32> to vector<64x1xf32>
    %cst_58 = arith.constant 3.200000e+01 : f32
    %96 = vector.broadcast %cst_58 : f32 to vector<64x1xf32>
    %97 = arith.divf %95, %96 : vector<64x1xf32>
    %98 = vector.broadcast %97 : vector<64x1xf32> to vector<64x32xf32>
    %99 = arith.subf %15, %98 : vector<64x32xf32>
    %100 = arith.mulf %99, %99 : vector<64x32xf32>
    %cst_59 = arith.constant dense<0.000000e+00> : vector<64xf32>
    %101 = vector.multi_reduction <add>, %100, %cst_59 [1] : vector<64x32xf32> to vector<64xf32>
    %102 = vector.shape_cast %101 : vector<64xf32> to vector<64x1xf32>
    %cst_60 = arith.constant 3.200000e+01 : f32
    %103 = vector.broadcast %cst_60 : f32 to vector<64x1xf32>
    %104 = arith.divf %102, %103 : vector<64x1xf32>
    %cst_61 = arith.constant 9.99999997E-7 : f32
    %105 = vector.broadcast %cst_61 : f32 to vector<64x1xf32>
    %106 = arith.addf %104, %105 : vector<64x1xf32>
    %107 = math.rsqrt %106 : vector<64x1xf32>
    %108 = vector.broadcast %107 : vector<64x1xf32> to vector<64x32xf32>
    %109 = arith.mulf %99, %108 : vector<64x32xf32>
    %cst_62 = arith.constant 1.000000e+00 : f32
    %110 = vector.broadcast %cst_62 : f32 to vector<1x32xf32>
    %111 = arith.addf %110, %81 : vector<1x32xf32>
    %112 = vector.broadcast %111 : vector<1x32xf32> to vector<64x32xf32>
    %113 = arith.mulf %109, %112 : vector<64x32xf32>
    %114 = vector.broadcast %78 : vector<1x32xf32> to vector<64x32xf32>
    %115 = arith.addf %113, %114 : vector<64x32xf32>
    %c0_63 = arith.constant 0 : index
    %c0_64 = arith.constant 0 : index
    %c0_65 = arith.constant 0 : index
    %116 = vector.load %arg22[%c0_63, %c0_64, %c0_65] : memref<2x32x96xbf16, #tpu.memory_space<vmem>>, vector<1x32x96xbf16>
    %117 = vector.shape_cast %116 : vector<1x32x96xbf16> to vector<32x96xbf16>
    %118 = arith.truncf %115 : vector<64x32xf32> to vector<64x32xbf16>
    %cst_66 = arith.constant dense<0.000000e+00> : vector<64x96xf32>
    %119 = tpu.matmul %118, %117, %cst_66 {dimension_numbers = #tpu.dot_dimension_numbers<[1], [0], [0], [1], [0, 0, 1, 1], [], []>} : vector<64x32xbf16>, vector<32x96xbf16>, vector<64x96xf32> -> vector<64x96xf32>
    %c0_67 = arith.constant 0 : index
    %c0_68 = arith.constant 0 : index
    %c0_69 = arith.constant 0 : index
    %120 = vector.load %arg23[%c0_67, %c0_68, %c0_69] : memref<2x1x96xf32, #tpu.memory_space<vmem>>, vector<1x1x96xf32>
    %121 = vector.shape_cast %120 : vector<1x1x96xf32> to vector<1x96xf32>
    %122 = vector.broadcast %121 : vector<1x96xf32> to vector<64x96xf32>
    %123 = arith.addf %119, %122 : vector<64x96xf32>
    %124 = vector.extract_strided_slice %123 {offsets = [0, 0], sizes = [64, 16], strides = [1, 1]} : vector<64x96xf32> to vector<64x16xf32>
    %125 = vector.extract_strided_slice %123 {offsets = [0, 32], sizes = [64, 16], strides = [1, 1]} : vector<64x96xf32> to vector<64x16xf32>
    %126 = vector.extract_strided_slice %123 {offsets = [0, 64], sizes = [64, 16], strides = [1, 1]} : vector<64x96xf32> to vector<64x16xf32>
    %127 = arith.truncf %124 : vector<64x16xf32> to vector<64x16xbf16>
    %128 = arith.truncf %125 : vector<64x16xf32> to vector<64x16xbf16>
    %cst_70 = arith.constant dense<0.000000e+00> : vector<64x64xf32>
    %129 = tpu.matmul %127, %128, %cst_70 {dimension_numbers = #tpu.dot_dimension_numbers<[1], [1], [0], [0], [0, 0, 1, 0], [], []>} : vector<64x16xbf16>, vector<64x16xbf16>, vector<64x64xf32> -> vector<64x64xf32>
    %cst_71 = arith.constant 2.500000e-01 : f32
    %130 = vector.broadcast %cst_71 : f32 to vector<64x64xf32>
    %131 = arith.mulf %129, %130 : vector<64x64xf32>
    %cst_72 = arith.constant dense<0xFF800000> : vector<64xf32>
    %132 = vector.multi_reduction <maximumf>, %131, %cst_72 [1] : vector<64x64xf32> to vector<64xf32>
    %133 = vector.shape_cast %132 : vector<64xf32> to vector<64x1xf32>
    %134 = vector.broadcast %133 : vector<64x1xf32> to vector<64x64xf32>
    %135 = arith.subf %131, %134 : vector<64x64xf32>
    %136 = math.exp %135 : vector<64x64xf32>
    %cst_73 = arith.constant dense<0.000000e+00> : vector<64xf32>
    %137 = vector.multi_reduction <add>, %136, %cst_73 [1] : vector<64x64xf32> to vector<64xf32>
    %138 = vector.shape_cast %137 : vector<64xf32> to vector<64x1xf32>
    %139 = vector.broadcast %138 : vector<64x1xf32> to vector<64x64xf32>
    %140 = arith.divf %136, %139 : vector<64x64xf32>
    %141 = arith.truncf %140 : vector<64x64xf32> to vector<64x64xbf16>
    %142 = arith.truncf %126 : vector<64x16xf32> to vector<64x16xbf16>
    %cst_74 = arith.constant dense<0.000000e+00> : vector<64x16xf32>
    %143 = tpu.matmul %141, %142, %cst_74 {dimension_numbers = #tpu.dot_dimension_numbers<[1], [0], [0], [1], [0, 0, 1, 1], [], []>} : vector<64x64xbf16>, vector<64x16xbf16>, vector<64x16xf32> -> vector<64x16xf32>
    %144 = vector.extract_strided_slice %123 {offsets = [0, 16], sizes = [64, 16], strides = [1, 1]} : vector<64x96xf32> to vector<64x16xf32>
    %145 = vector.extract_strided_slice %123 {offsets = [0, 48], sizes = [64, 16], strides = [1, 1]} : vector<64x96xf32> to vector<64x16xf32>
    %146 = vector.extract_strided_slice %123 {offsets = [0, 80], sizes = [64, 16], strides = [1, 1]} : vector<64x96xf32> to vector<64x16xf32>
    %147 = arith.truncf %144 : vector<64x16xf32> to vector<64x16xbf16>
    %148 = arith.truncf %145 : vector<64x16xf32> to vector<64x16xbf16>
    %cst_75 = arith.constant dense<0.000000e+00> : vector<64x64xf32>
    %149 = tpu.matmul %147, %148, %cst_75 {dimension_numbers = #tpu.dot_dimension_numbers<[1], [1], [0], [0], [0, 0, 1, 0], [], []>} : vector<64x16xbf16>, vector<64x16xbf16>, vector<64x64xf32> -> vector<64x64xf32>
    %cst_76 = arith.constant 2.500000e-01 : f32
    %150 = vector.broadcast %cst_76 : f32 to vector<64x64xf32>
    %151 = arith.mulf %149, %150 : vector<64x64xf32>
    %cst_77 = arith.constant dense<0xFF800000> : vector<64xf32>
    %152 = vector.multi_reduction <maximumf>, %151, %cst_77 [1] : vector<64x64xf32> to vector<64xf32>
    %153 = vector.shape_cast %152 : vector<64xf32> to vector<64x1xf32>
    %154 = vector.broadcast %153 : vector<64x1xf32> to vector<64x64xf32>
    %155 = arith.subf %151, %154 : vector<64x64xf32>
    %156 = math.exp %155 : vector<64x64xf32>
    %cst_78 = arith.constant dense<0.000000e+00> : vector<64xf32>
    %157 = vector.multi_reduction <add>, %156, %cst_78 [1] : vector<64x64xf32> to vector<64xf32>
    %158 = vector.shape_cast %157 : vector<64xf32> to vector<64x1xf32>
    %159 = vector.broadcast %158 : vector<64x1xf32> to vector<64x64xf32>
    %160 = arith.divf %156, %159 : vector<64x64xf32>
    %161 = arith.truncf %160 : vector<64x64xf32> to vector<64x64xbf16>
    %162 = arith.truncf %146 : vector<64x16xf32> to vector<64x16xbf16>
    %cst_79 = arith.constant dense<0.000000e+00> : vector<64x16xf32>
    %163 = tpu.matmul %161, %162, %cst_79 {dimension_numbers = #tpu.dot_dimension_numbers<[1], [0], [0], [1], [0, 0, 1, 1], [], []>} : vector<64x64xbf16>, vector<64x16xbf16>, vector<64x16xf32> -> vector<64x16xf32>
    %164 = tpu.concatenate %143, %163 in 1 : vector<64x16xf32>, vector<64x16xf32> -> vector<64x32xf32>
    %c0_80 = arith.constant 0 : index
    %c0_81 = arith.constant 0 : index
    %c0_82 = arith.constant 0 : index
    %165 = vector.load %arg24[%c0_80, %c0_81, %c0_82] : memref<2x32x32xbf16, #tpu.memory_space<vmem>>, vector<1x32x32xbf16>
    %166 = vector.shape_cast %165 : vector<1x32x32xbf16> to vector<32x32xbf16>
    %167 = arith.truncf %164 : vector<64x32xf32> to vector<64x32xbf16>
    %cst_83 = arith.constant dense<0.000000e+00> : vector<64x32xf32>
    %168 = tpu.matmul %167, %166, %cst_83 {dimension_numbers = #tpu.dot_dimension_numbers<[1], [0], [0], [1], [0, 0, 1, 1], [], []>} : vector<64x32xbf16>, vector<32x32xbf16>, vector<64x32xf32> -> vector<64x32xf32>
    %c0_84 = arith.constant 0 : index
    %c0_85 = arith.constant 0 : index
    %c0_86 = arith.constant 0 : index
    %169 = vector.load %arg25[%c0_84, %c0_85, %c0_86] : memref<2x1x32xf32, #tpu.memory_space<vmem>>, vector<1x1x32xf32>
    %170 = vector.shape_cast %169 : vector<1x1x32xf32> to vector<1x32xf32>
    %171 = vector.broadcast %170 : vector<1x32xf32> to vector<64x32xf32>
    %172 = arith.addf %168, %171 : vector<64x32xf32>
    %173 = vector.broadcast %84 : vector<1x32xf32> to vector<64x32xf32>
    %174 = arith.mulf %173, %172 : vector<64x32xf32>
    %175 = arith.addf %15, %174 : vector<64x32xf32>
    %c0_87 = arith.constant 0 : index
    %c0_88 = arith.constant 0 : index
    %c0_89 = arith.constant 0 : index
    %176 = vector.load %arg26[%c0_87, %c0_88, %c0_89] : memref<2x32x32xbf16, #tpu.memory_space<vmem>>, vector<1x32x32xbf16>
    %177 = vector.shape_cast %176 : vector<1x32x32xbf16> to vector<32x32xbf16>
    %178 = arith.truncf %175 : vector<64x32xf32> to vector<64x32xbf16>
    %cst_90 = arith.constant dense<0.000000e+00> : vector<64x32xf32>
    %179 = tpu.matmul %178, %177, %cst_90 {dimension_numbers = #tpu.dot_dimension_numbers<[1], [0], [0], [1], [0, 0, 1, 1], [], []>} : vector<64x32xbf16>, vector<32x32xbf16>, vector<64x32xf32> -> vector<64x32xf32>
    %c0_91 = arith.constant 0 : index
    %c0_92 = arith.constant 0 : index
    %c0_93 = arith.constant 0 : index
    %180 = vector.load %arg27[%c0_91, %c0_92, %c0_93] : memref<2x1x32xf32, #tpu.memory_space<vmem>>, vector<1x1x32xf32>
    %181 = vector.shape_cast %180 : vector<1x1x32xf32> to vector<1x32xf32>
    %182 = vector.broadcast %181 : vector<1x32xf32> to vector<64x32xf32>
    %183 = arith.addf %179, %182 : vector<64x32xf32>
    %c0_94 = arith.constant 0 : index
    %c0_95 = arith.constant 0 : index
    %c0_96 = arith.constant 0 : index
    %184 = vector.load %arg28[%c0_94, %c0_95, %c0_96] : memref<2x32x64xbf16, #tpu.memory_space<vmem>>, vector<1x32x64xbf16>
    %185 = vector.shape_cast %184 : vector<1x32x64xbf16> to vector<32x64xbf16>
    %186 = arith.truncf %71 : vector<8x32xf32> to vector<8x32xbf16>
    %cst_97 = arith.constant dense<0.000000e+00> : vector<8x64xf32>
    %187 = tpu.matmul %186, %185, %cst_97 {dimension_numbers = #tpu.dot_dimension_numbers<[1], [0], [0], [1], [0, 0, 1, 1], [], []>} : vector<8x32xbf16>, vector<32x64xbf16>, vector<8x64xf32> -> vector<8x64xf32>
    %c0_98 = arith.constant 0 : index
    %c0_99 = arith.constant 0 : index
    %c0_100 = arith.constant 0 : index
    %188 = vector.load %arg29[%c0_98, %c0_99, %c0_100] : memref<2x1x64xf32, #tpu.memory_space<vmem>>, vector<1x1x64xf32>
    %189 = vector.shape_cast %188 : vector<1x1x64xf32> to vector<1x64xf32>
    %190 = vector.broadcast %189 : vector<1x64xf32> to vector<8x64xf32>
    %191 = arith.addf %187, %190 : vector<8x64xf32>
    %192 = vector.extract_strided_slice %183 {offsets = [0, 0], sizes = [64, 16], strides = [1, 1]} : vector<64x32xf32> to vector<64x16xf32>
    %193 = vector.extract_strided_slice %191 {offsets = [0, 0], sizes = [8, 16], strides = [1, 1]} : vector<8x64xf32> to vector<8x16xf32>
    %194 = vector.extract_strided_slice %191 {offsets = [0, 32], sizes = [8, 16], strides = [1, 1]} : vector<8x64xf32> to vector<8x16xf32>
    %195 = arith.truncf %192 : vector<64x16xf32> to vector<64x16xbf16>
    %196 = arith.truncf %193 : vector<8x16xf32> to vector<8x16xbf16>
    %cst_101 = arith.constant dense<0.000000e+00> : vector<64x8xf32>
    %197 = tpu.matmul %195, %196, %cst_101 {dimension_numbers = #tpu.dot_dimension_numbers<[1], [1], [0], [0], [0, 0, 1, 0], [], []>} : vector<64x16xbf16>, vector<8x16xbf16>, vector<64x8xf32> -> vector<64x8xf32>
    %cst_102 = arith.constant 2.500000e-01 : f32
    %198 = vector.broadcast %cst_102 : f32 to vector<64x8xf32>
    %199 = arith.mulf %197, %198 : vector<64x8xf32>
    %200 = vector.broadcast %73 : vector<1x8xf32> to vector<64x8xf32>
    %201 = arith.addf %199, %200 : vector<64x8xf32>
    %cst_103 = arith.constant dense<0xFF800000> : vector<64xf32>
    %202 = vector.multi_reduction <maximumf>, %201, %cst_103 [1] : vector<64x8xf32> to vector<64xf32>
    %203 = vector.shape_cast %202 : vector<64xf32> to vector<64x1xf32>
    %204 = vector.broadcast %203 : vector<64x1xf32> to vector<64x8xf32>
    %205 = arith.subf %201, %204 : vector<64x8xf32>
    %206 = math.exp %205 : vector<64x8xf32>
    %cst_104 = arith.constant dense<0.000000e+00> : vector<64xf32>
    %207 = vector.multi_reduction <add>, %206, %cst_104 [1] : vector<64x8xf32> to vector<64xf32>
    %208 = vector.shape_cast %207 : vector<64xf32> to vector<64x1xf32>
    %209 = vector.broadcast %208 : vector<64x1xf32> to vector<64x8xf32>
    %210 = arith.divf %206, %209 : vector<64x8xf32>
    %211 = arith.truncf %210 : vector<64x8xf32> to vector<64x8xbf16>
    %212 = arith.truncf %194 : vector<8x16xf32> to vector<8x16xbf16>
    %cst_105 = arith.constant dense<0.000000e+00> : vector<64x16xf32>
    %213 = tpu.matmul %211, %212, %cst_105 {dimension_numbers = #tpu.dot_dimension_numbers<[1], [0], [0], [1], [0, 0, 1, 1], [], []>} : vector<64x8xbf16>, vector<8x16xbf16>, vector<64x16xf32> -> vector<64x16xf32>
    %214 = vector.extract_strided_slice %183 {offsets = [0, 16], sizes = [64, 16], strides = [1, 1]} : vector<64x32xf32> to vector<64x16xf32>
    %215 = vector.extract_strided_slice %191 {offsets = [0, 16], sizes = [8, 16], strides = [1, 1]} : vector<8x64xf32> to vector<8x16xf32>
    %216 = vector.extract_strided_slice %191 {offsets = [0, 48], sizes = [8, 16], strides = [1, 1]} : vector<8x64xf32> to vector<8x16xf32>
    %217 = arith.truncf %214 : vector<64x16xf32> to vector<64x16xbf16>
    %218 = arith.truncf %215 : vector<8x16xf32> to vector<8x16xbf16>
    %cst_106 = arith.constant dense<0.000000e+00> : vector<64x8xf32>
    %219 = tpu.matmul %217, %218, %cst_106 {dimension_numbers = #tpu.dot_dimension_numbers<[1], [1], [0], [0], [0, 0, 1, 0], [], []>} : vector<64x16xbf16>, vector<8x16xbf16>, vector<64x8xf32> -> vector<64x8xf32>
    %cst_107 = arith.constant 2.500000e-01 : f32
    %220 = vector.broadcast %cst_107 : f32 to vector<64x8xf32>
    %221 = arith.mulf %219, %220 : vector<64x8xf32>
    %222 = vector.broadcast %73 : vector<1x8xf32> to vector<64x8xf32>
    %223 = arith.addf %221, %222 : vector<64x8xf32>
    %cst_108 = arith.constant dense<0xFF800000> : vector<64xf32>
    %224 = vector.multi_reduction <maximumf>, %223, %cst_108 [1] : vector<64x8xf32> to vector<64xf32>
    %225 = vector.shape_cast %224 : vector<64xf32> to vector<64x1xf32>
    %226 = vector.broadcast %225 : vector<64x1xf32> to vector<64x8xf32>
    %227 = arith.subf %223, %226 : vector<64x8xf32>
    %228 = math.exp %227 : vector<64x8xf32>
    %cst_109 = arith.constant dense<0.000000e+00> : vector<64xf32>
    %229 = vector.multi_reduction <add>, %228, %cst_109 [1] : vector<64x8xf32> to vector<64xf32>
    %230 = vector.shape_cast %229 : vector<64xf32> to vector<64x1xf32>
    %231 = vector.broadcast %230 : vector<64x1xf32> to vector<64x8xf32>
    %232 = arith.divf %228, %231 : vector<64x8xf32>
    %233 = arith.truncf %232 : vector<64x8xf32> to vector<64x8xbf16>
    %234 = arith.truncf %216 : vector<8x16xf32> to vector<8x16xbf16>
    %cst_110 = arith.constant dense<0.000000e+00> : vector<64x16xf32>
    %235 = tpu.matmul %233, %234, %cst_110 {dimension_numbers = #tpu.dot_dimension_numbers<[1], [0], [0], [1], [0, 0, 1, 1], [], []>} : vector<64x8xbf16>, vector<8x16xbf16>, vector<64x16xf32> -> vector<64x16xf32>
    %236 = tpu.concatenate %213, %235 in 1 : vector<64x16xf32>, vector<64x16xf32> -> vector<64x32xf32>
    %c0_111 = arith.constant 0 : index
    %c0_112 = arith.constant 0 : index
    %c0_113 = arith.constant 0 : index
    %237 = vector.load %arg30[%c0_111, %c0_112, %c0_113] : memref<2x32x32xbf16, #tpu.memory_space<vmem>>, vector<1x32x32xbf16>
    %238 = vector.shape_cast %237 : vector<1x32x32xbf16> to vector<32x32xbf16>
    %239 = arith.truncf %236 : vector<64x32xf32> to vector<64x32xbf16>
    %cst_114 = arith.constant dense<0.000000e+00> : vector<64x32xf32>
    %240 = tpu.matmul %239, %238, %cst_114 {dimension_numbers = #tpu.dot_dimension_numbers<[1], [0], [0], [1], [0, 0, 1, 1], [], []>} : vector<64x32xbf16>, vector<32x32xbf16>, vector<64x32xf32> -> vector<64x32xf32>
    %c0_115 = arith.constant 0 : index
    %c0_116 = arith.constant 0 : index
    %c0_117 = arith.constant 0 : index
    %241 = vector.load %arg31[%c0_115, %c0_116, %c0_117] : memref<2x1x32xf32, #tpu.memory_space<vmem>>, vector<1x1x32xf32>
    %242 = vector.shape_cast %241 : vector<1x1x32xf32> to vector<1x32xf32>
    %243 = vector.broadcast %242 : vector<1x32xf32> to vector<64x32xf32>
    %244 = arith.addf %240, %243 : vector<64x32xf32>
    %245 = arith.addf %175, %244 : vector<64x32xf32>
    %cst_118 = arith.constant dense<0.000000e+00> : vector<64xf32>
    %246 = vector.multi_reduction <add>, %245, %cst_118 [1] : vector<64x32xf32> to vector<64xf32>
    %247 = vector.shape_cast %246 : vector<64xf32> to vector<64x1xf32>
    %cst_119 = arith.constant 3.200000e+01 : f32
    %248 = vector.broadcast %cst_119 : f32 to vector<64x1xf32>
    %249 = arith.divf %247, %248 : vector<64x1xf32>
    %250 = vector.broadcast %249 : vector<64x1xf32> to vector<64x32xf32>
    %251 = arith.subf %245, %250 : vector<64x32xf32>
    %252 = arith.mulf %251, %251 : vector<64x32xf32>
    %cst_120 = arith.constant dense<0.000000e+00> : vector<64xf32>
    %253 = vector.multi_reduction <add>, %252, %cst_120 [1] : vector<64x32xf32> to vector<64xf32>
    %254 = vector.shape_cast %253 : vector<64xf32> to vector<64x1xf32>
    %cst_121 = arith.constant 3.200000e+01 : f32
    %255 = vector.broadcast %cst_121 : f32 to vector<64x1xf32>
    %256 = arith.divf %254, %255 : vector<64x1xf32>
    %cst_122 = arith.constant 9.99999997E-7 : f32
    %257 = vector.broadcast %cst_122 : f32 to vector<64x1xf32>
    %258 = arith.addf %256, %257 : vector<64x1xf32>
    %259 = math.rsqrt %258 : vector<64x1xf32>
    %260 = vector.broadcast %259 : vector<64x1xf32> to vector<64x32xf32>
    %261 = arith.mulf %251, %260 : vector<64x32xf32>
    %cst_123 = arith.constant 1.000000e+00 : f32
    %262 = vector.broadcast %cst_123 : f32 to vector<1x32xf32>
    %263 = arith.addf %262, %90 : vector<1x32xf32>
    %264 = vector.broadcast %263 : vector<1x32xf32> to vector<64x32xf32>
    %265 = arith.mulf %261, %264 : vector<64x32xf32>
    %266 = vector.broadcast %87 : vector<1x32xf32> to vector<64x32xf32>
    %267 = arith.addf %265, %266 : vector<64x32xf32>
    %c0_124 = arith.constant 0 : index
    %c0_125 = arith.constant 0 : index
    %c0_126 = arith.constant 0 : index
    %268 = vector.load %arg32[%c0_124, %c0_125, %c0_126] : memref<2x32x128xbf16, #tpu.memory_space<vmem>>, vector<1x32x128xbf16>
    %269 = vector.shape_cast %268 : vector<1x32x128xbf16> to vector<32x128xbf16>
    %270 = arith.truncf %267 : vector<64x32xf32> to vector<64x32xbf16>
    %cst_127 = arith.constant dense<0.000000e+00> : vector<64x128xf32>
    %271 = tpu.matmul %270, %269, %cst_127 {dimension_numbers = #tpu.dot_dimension_numbers<[1], [0], [0], [1], [0, 0, 1, 1], [], []>} : vector<64x32xbf16>, vector<32x128xbf16>, vector<64x128xf32> -> vector<64x128xf32>
    %c0_128 = arith.constant 0 : index
    %c0_129 = arith.constant 0 : index
    %c0_130 = arith.constant 0 : index
    %272 = vector.load %arg33[%c0_128, %c0_129, %c0_130] : memref<2x1x128xf32, #tpu.memory_space<vmem>>, vector<1x1x128xf32>
    %273 = vector.shape_cast %272 : vector<1x1x128xf32> to vector<1x128xf32>
    %274 = vector.broadcast %273 : vector<1x128xf32> to vector<64x128xf32>
    %275 = arith.addf %271, %274 : vector<64x128xf32>
    %276 = arith.mulf %275, %275 : vector<64x128xf32>
    %277 = arith.mulf %275, %276 : vector<64x128xf32>
    %cst_131 = arith.constant 4.471500e-02 : f32
    %278 = vector.broadcast %cst_131 : f32 to vector<64x128xf32>
    %279 = arith.mulf %278, %277 : vector<64x128xf32>
    %280 = arith.addf %275, %279 : vector<64x128xf32>
    %cst_132 = arith.constant 0.797884583 : f32
    %281 = vector.broadcast %cst_132 : f32 to vector<64x128xf32>
    %282 = arith.mulf %281, %280 : vector<64x128xf32>
    %283 = math.tanh %282 : vector<64x128xf32>
    %cst_133 = arith.constant 1.000000e+00 : f32
    %284 = vector.broadcast %cst_133 : f32 to vector<64x128xf32>
    %285 = arith.addf %284, %283 : vector<64x128xf32>
    %cst_134 = arith.constant 5.000000e-01 : f32
    %286 = vector.broadcast %cst_134 : f32 to vector<64x128xf32>
    %287 = arith.mulf %286, %285 : vector<64x128xf32>
    %288 = arith.mulf %275, %287 : vector<64x128xf32>
    %c0_135 = arith.constant 0 : index
    %c0_136 = arith.constant 0 : index
    %c0_137 = arith.constant 0 : index
    %289 = vector.load %arg34[%c0_135, %c0_136, %c0_137] : memref<2x128x32xbf16, #tpu.memory_space<vmem>>, vector<1x128x32xbf16>
    %290 = vector.shape_cast %289 : vector<1x128x32xbf16> to vector<128x32xbf16>
    %291 = arith.truncf %288 : vector<64x128xf32> to vector<64x128xbf16>
    %cst_138 = arith.constant dense<0.000000e+00> : vector<64x32xf32>
    %292 = tpu.matmul %291, %290, %cst_138 {dimension_numbers = #tpu.dot_dimension_numbers<[1], [0], [0], [1], [0, 0, 1, 1], [], []>} : vector<64x128xbf16>, vector<128x32xbf16>, vector<64x32xf32> -> vector<64x32xf32>
    %c0_139 = arith.constant 0 : index
    %c0_140 = arith.constant 0 : index
    %c0_141 = arith.constant 0 : index
    %293 = vector.load %arg35[%c0_139, %c0_140, %c0_141] : memref<2x1x32xf32, #tpu.memory_space<vmem>>, vector<1x1x32xf32>
    %294 = vector.shape_cast %293 : vector<1x1x32xf32> to vector<1x32xf32>
    %295 = vector.broadcast %294 : vector<1x32xf32> to vector<64x32xf32>
    %296 = arith.addf %292, %295 : vector<64x32xf32>
    %297 = vector.broadcast %93 : vector<1x32xf32> to vector<64x32xf32>
    %298 = arith.mulf %297, %296 : vector<64x32xf32>
    %299 = arith.addf %245, %298 : vector<64x32xf32>
    %c1 = arith.constant 1 : index
    %c0_142 = arith.constant 0 : index
    %c0_143 = arith.constant 0 : index
    %300 = vector.load %arg21[%c1, %c0_142, %c0_143] : memref<2x6x32xf32, #tpu.memory_space<vmem>>, vector<1x6x32xf32>
    %301 = vector.shape_cast %300 : vector<1x6x32xf32> to vector<6x32xf32>
    %302 = vector.extract_strided_slice %44 {offsets = [0, 0], sizes = [1, 32], strides = [1, 1]} : vector<1x192xf32> to vector<1x32xf32>
    %303 = vector.extract_strided_slice %301 {offsets = [0, 0], sizes = [1, 32], strides = [1, 1]} : vector<6x32xf32> to vector<1x32xf32>
    %304 = arith.addf %302, %303 : vector<1x32xf32>
    %305 = vector.extract_strided_slice %44 {offsets = [0, 32], sizes = [1, 32], strides = [1, 1]} : vector<1x192xf32> to vector<1x32xf32>
    %306 = vector.extract_strided_slice %301 {offsets = [1, 0], sizes = [1, 32], strides = [1, 1]} : vector<6x32xf32> to vector<1x32xf32>
    %307 = arith.addf %305, %306 : vector<1x32xf32>
    %308 = vector.extract_strided_slice %44 {offsets = [0, 64], sizes = [1, 32], strides = [1, 1]} : vector<1x192xf32> to vector<1x32xf32>
    %309 = vector.extract_strided_slice %301 {offsets = [2, 0], sizes = [1, 32], strides = [1, 1]} : vector<6x32xf32> to vector<1x32xf32>
    %310 = arith.addf %308, %309 : vector<1x32xf32>
    %311 = vector.extract_strided_slice %44 {offsets = [0, 96], sizes = [1, 32], strides = [1, 1]} : vector<1x192xf32> to vector<1x32xf32>
    %312 = vector.extract_strided_slice %301 {offsets = [3, 0], sizes = [1, 32], strides = [1, 1]} : vector<6x32xf32> to vector<1x32xf32>
    %313 = arith.addf %311, %312 : vector<1x32xf32>
    %314 = vector.extract_strided_slice %44 {offsets = [0, 128], sizes = [1, 32], strides = [1, 1]} : vector<1x192xf32> to vector<1x32xf32>
    %315 = vector.extract_strided_slice %301 {offsets = [4, 0], sizes = [1, 32], strides = [1, 1]} : vector<6x32xf32> to vector<1x32xf32>
    %316 = arith.addf %314, %315 : vector<1x32xf32>
    %317 = vector.extract_strided_slice %44 {offsets = [0, 160], sizes = [1, 32], strides = [1, 1]} : vector<1x192xf32> to vector<1x32xf32>
    %318 = vector.extract_strided_slice %301 {offsets = [5, 0], sizes = [1, 32], strides = [1, 1]} : vector<6x32xf32> to vector<1x32xf32>
    %319 = arith.addf %317, %318 : vector<1x32xf32>
    %cst_144 = arith.constant dense<0.000000e+00> : vector<64xf32>
    %320 = vector.multi_reduction <add>, %299, %cst_144 [1] : vector<64x32xf32> to vector<64xf32>
    %321 = vector.shape_cast %320 : vector<64xf32> to vector<64x1xf32>
    %cst_145 = arith.constant 3.200000e+01 : f32
    %322 = vector.broadcast %cst_145 : f32 to vector<64x1xf32>
    %323 = arith.divf %321, %322 : vector<64x1xf32>
    %324 = vector.broadcast %323 : vector<64x1xf32> to vector<64x32xf32>
    %325 = arith.subf %299, %324 : vector<64x32xf32>
    %326 = arith.mulf %325, %325 : vector<64x32xf32>
    %cst_146 = arith.constant dense<0.000000e+00> : vector<64xf32>
    %327 = vector.multi_reduction <add>, %326, %cst_146 [1] : vector<64x32xf32> to vector<64xf32>
    %328 = vector.shape_cast %327 : vector<64xf32> to vector<64x1xf32>
    %cst_147 = arith.constant 3.200000e+01 : f32
    %329 = vector.broadcast %cst_147 : f32 to vector<64x1xf32>
    %330 = arith.divf %328, %329 : vector<64x1xf32>
    %cst_148 = arith.constant 9.99999997E-7 : f32
    %331 = vector.broadcast %cst_148 : f32 to vector<64x1xf32>
    %332 = arith.addf %330, %331 : vector<64x1xf32>
    %333 = math.rsqrt %332 : vector<64x1xf32>
    %334 = vector.broadcast %333 : vector<64x1xf32> to vector<64x32xf32>
    %335 = arith.mulf %325, %334 : vector<64x32xf32>
    %cst_149 = arith.constant 1.000000e+00 : f32
    %336 = vector.broadcast %cst_149 : f32 to vector<1x32xf32>
    %337 = arith.addf %336, %307 : vector<1x32xf32>
    %338 = vector.broadcast %337 : vector<1x32xf32> to vector<64x32xf32>
    %339 = arith.mulf %335, %338 : vector<64x32xf32>
    %340 = vector.broadcast %304 : vector<1x32xf32> to vector<64x32xf32>
    %341 = arith.addf %339, %340 : vector<64x32xf32>
    %c1_150 = arith.constant 1 : index
    %c0_151 = arith.constant 0 : index
    %c0_152 = arith.constant 0 : index
    %342 = vector.load %arg22[%c1_150, %c0_151, %c0_152] : memref<2x32x96xbf16, #tpu.memory_space<vmem>>, vector<1x32x96xbf16>
    %343 = vector.shape_cast %342 : vector<1x32x96xbf16> to vector<32x96xbf16>
    %344 = arith.truncf %341 : vector<64x32xf32> to vector<64x32xbf16>
    %cst_153 = arith.constant dense<0.000000e+00> : vector<64x96xf32>
    %345 = tpu.matmul %344, %343, %cst_153 {dimension_numbers = #tpu.dot_dimension_numbers<[1], [0], [0], [1], [0, 0, 1, 1], [], []>} : vector<64x32xbf16>, vector<32x96xbf16>, vector<64x96xf32> -> vector<64x96xf32>
    %c1_154 = arith.constant 1 : index
    %c0_155 = arith.constant 0 : index
    %c0_156 = arith.constant 0 : index
    %346 = vector.load %arg23[%c1_154, %c0_155, %c0_156] : memref<2x1x96xf32, #tpu.memory_space<vmem>>, vector<1x1x96xf32>
    %347 = vector.shape_cast %346 : vector<1x1x96xf32> to vector<1x96xf32>
    %348 = vector.broadcast %347 : vector<1x96xf32> to vector<64x96xf32>
    %349 = arith.addf %345, %348 : vector<64x96xf32>
    %350 = vector.extract_strided_slice %349 {offsets = [0, 0], sizes = [64, 16], strides = [1, 1]} : vector<64x96xf32> to vector<64x16xf32>
    %351 = vector.extract_strided_slice %349 {offsets = [0, 32], sizes = [64, 16], strides = [1, 1]} : vector<64x96xf32> to vector<64x16xf32>
    %352 = vector.extract_strided_slice %349 {offsets = [0, 64], sizes = [64, 16], strides = [1, 1]} : vector<64x96xf32> to vector<64x16xf32>
    %353 = arith.truncf %350 : vector<64x16xf32> to vector<64x16xbf16>
    %354 = arith.truncf %351 : vector<64x16xf32> to vector<64x16xbf16>
    %cst_157 = arith.constant dense<0.000000e+00> : vector<64x64xf32>
    %355 = tpu.matmul %353, %354, %cst_157 {dimension_numbers = #tpu.dot_dimension_numbers<[1], [1], [0], [0], [0, 0, 1, 0], [], []>} : vector<64x16xbf16>, vector<64x16xbf16>, vector<64x64xf32> -> vector<64x64xf32>
    %cst_158 = arith.constant 2.500000e-01 : f32
    %356 = vector.broadcast %cst_158 : f32 to vector<64x64xf32>
    %357 = arith.mulf %355, %356 : vector<64x64xf32>
    %cst_159 = arith.constant dense<0xFF800000> : vector<64xf32>
    %358 = vector.multi_reduction <maximumf>, %357, %cst_159 [1] : vector<64x64xf32> to vector<64xf32>
    %359 = vector.shape_cast %358 : vector<64xf32> to vector<64x1xf32>
    %360 = vector.broadcast %359 : vector<64x1xf32> to vector<64x64xf32>
    %361 = arith.subf %357, %360 : vector<64x64xf32>
    %362 = math.exp %361 : vector<64x64xf32>
    %cst_160 = arith.constant dense<0.000000e+00> : vector<64xf32>
    %363 = vector.multi_reduction <add>, %362, %cst_160 [1] : vector<64x64xf32> to vector<64xf32>
    %364 = vector.shape_cast %363 : vector<64xf32> to vector<64x1xf32>
    %365 = vector.broadcast %364 : vector<64x1xf32> to vector<64x64xf32>
    %366 = arith.divf %362, %365 : vector<64x64xf32>
    %367 = arith.truncf %366 : vector<64x64xf32> to vector<64x64xbf16>
    %368 = arith.truncf %352 : vector<64x16xf32> to vector<64x16xbf16>
    %cst_161 = arith.constant dense<0.000000e+00> : vector<64x16xf32>
    %369 = tpu.matmul %367, %368, %cst_161 {dimension_numbers = #tpu.dot_dimension_numbers<[1], [0], [0], [1], [0, 0, 1, 1], [], []>} : vector<64x64xbf16>, vector<64x16xbf16>, vector<64x16xf32> -> vector<64x16xf32>
    %370 = vector.extract_strided_slice %349 {offsets = [0, 16], sizes = [64, 16], strides = [1, 1]} : vector<64x96xf32> to vector<64x16xf32>
    %371 = vector.extract_strided_slice %349 {offsets = [0, 48], sizes = [64, 16], strides = [1, 1]} : vector<64x96xf32> to vector<64x16xf32>
    %372 = vector.extract_strided_slice %349 {offsets = [0, 80], sizes = [64, 16], strides = [1, 1]} : vector<64x96xf32> to vector<64x16xf32>
    %373 = arith.truncf %370 : vector<64x16xf32> to vector<64x16xbf16>
    %374 = arith.truncf %371 : vector<64x16xf32> to vector<64x16xbf16>
    %cst_162 = arith.constant dense<0.000000e+00> : vector<64x64xf32>
    %375 = tpu.matmul %373, %374, %cst_162 {dimension_numbers = #tpu.dot_dimension_numbers<[1], [1], [0], [0], [0, 0, 1, 0], [], []>} : vector<64x16xbf16>, vector<64x16xbf16>, vector<64x64xf32> -> vector<64x64xf32>
    %cst_163 = arith.constant 2.500000e-01 : f32
    %376 = vector.broadcast %cst_163 : f32 to vector<64x64xf32>
    %377 = arith.mulf %375, %376 : vector<64x64xf32>
    %cst_164 = arith.constant dense<0xFF800000> : vector<64xf32>
    %378 = vector.multi_reduction <maximumf>, %377, %cst_164 [1] : vector<64x64xf32> to vector<64xf32>
    %379 = vector.shape_cast %378 : vector<64xf32> to vector<64x1xf32>
    %380 = vector.broadcast %379 : vector<64x1xf32> to vector<64x64xf32>
    %381 = arith.subf %377, %380 : vector<64x64xf32>
    %382 = math.exp %381 : vector<64x64xf32>
    %cst_165 = arith.constant dense<0.000000e+00> : vector<64xf32>
    %383 = vector.multi_reduction <add>, %382, %cst_165 [1] : vector<64x64xf32> to vector<64xf32>
    %384 = vector.shape_cast %383 : vector<64xf32> to vector<64x1xf32>
    %385 = vector.broadcast %384 : vector<64x1xf32> to vector<64x64xf32>
    %386 = arith.divf %382, %385 : vector<64x64xf32>
    %387 = arith.truncf %386 : vector<64x64xf32> to vector<64x64xbf16>
    %388 = arith.truncf %372 : vector<64x16xf32> to vector<64x16xbf16>
    %cst_166 = arith.constant dense<0.000000e+00> : vector<64x16xf32>
    %389 = tpu.matmul %387, %388, %cst_166 {dimension_numbers = #tpu.dot_dimension_numbers<[1], [0], [0], [1], [0, 0, 1, 1], [], []>} : vector<64x64xbf16>, vector<64x16xbf16>, vector<64x16xf32> -> vector<64x16xf32>
    %390 = tpu.concatenate %369, %389 in 1 : vector<64x16xf32>, vector<64x16xf32> -> vector<64x32xf32>
    %c1_167 = arith.constant 1 : index
    %c0_168 = arith.constant 0 : index
    %c0_169 = arith.constant 0 : index
    %391 = vector.load %arg24[%c1_167, %c0_168, %c0_169] : memref<2x32x32xbf16, #tpu.memory_space<vmem>>, vector<1x32x32xbf16>
    %392 = vector.shape_cast %391 : vector<1x32x32xbf16> to vector<32x32xbf16>
    %393 = arith.truncf %390 : vector<64x32xf32> to vector<64x32xbf16>
    %cst_170 = arith.constant dense<0.000000e+00> : vector<64x32xf32>
    %394 = tpu.matmul %393, %392, %cst_170 {dimension_numbers = #tpu.dot_dimension_numbers<[1], [0], [0], [1], [0, 0, 1, 1], [], []>} : vector<64x32xbf16>, vector<32x32xbf16>, vector<64x32xf32> -> vector<64x32xf32>
    %c1_171 = arith.constant 1 : index
    %c0_172 = arith.constant 0 : index
    %c0_173 = arith.constant 0 : index
    %395 = vector.load %arg25[%c1_171, %c0_172, %c0_173] : memref<2x1x32xf32, #tpu.memory_space<vmem>>, vector<1x1x32xf32>
    %396 = vector.shape_cast %395 : vector<1x1x32xf32> to vector<1x32xf32>
    %397 = vector.broadcast %396 : vector<1x32xf32> to vector<64x32xf32>
    %398 = arith.addf %394, %397 : vector<64x32xf32>
    %399 = vector.broadcast %310 : vector<1x32xf32> to vector<64x32xf32>
    %400 = arith.mulf %399, %398 : vector<64x32xf32>
    %401 = arith.addf %299, %400 : vector<64x32xf32>
    %c1_174 = arith.constant 1 : index
    %c0_175 = arith.constant 0 : index
    %c0_176 = arith.constant 0 : index
    %402 = vector.load %arg26[%c1_174, %c0_175, %c0_176] : memref<2x32x32xbf16, #tpu.memory_space<vmem>>, vector<1x32x32xbf16>
    %403 = vector.shape_cast %402 : vector<1x32x32xbf16> to vector<32x32xbf16>
    %404 = arith.truncf %401 : vector<64x32xf32> to vector<64x32xbf16>
    %cst_177 = arith.constant dense<0.000000e+00> : vector<64x32xf32>
    %405 = tpu.matmul %404, %403, %cst_177 {dimension_numbers = #tpu.dot_dimension_numbers<[1], [0], [0], [1], [0, 0, 1, 1], [], []>} : vector<64x32xbf16>, vector<32x32xbf16>, vector<64x32xf32> -> vector<64x32xf32>
    %c1_178 = arith.constant 1 : index
    %c0_179 = arith.constant 0 : index
    %c0_180 = arith.constant 0 : index
    %406 = vector.load %arg27[%c1_178, %c0_179, %c0_180] : memref<2x1x32xf32, #tpu.memory_space<vmem>>, vector<1x1x32xf32>
    %407 = vector.shape_cast %406 : vector<1x1x32xf32> to vector<1x32xf32>
    %408 = vector.broadcast %407 : vector<1x32xf32> to vector<64x32xf32>
    %409 = arith.addf %405, %408 : vector<64x32xf32>
    %c1_181 = arith.constant 1 : index
    %c0_182 = arith.constant 0 : index
    %c0_183 = arith.constant 0 : index
    %410 = vector.load %arg28[%c1_181, %c0_182, %c0_183] : memref<2x32x64xbf16, #tpu.memory_space<vmem>>, vector<1x32x64xbf16>
    %411 = vector.shape_cast %410 : vector<1x32x64xbf16> to vector<32x64xbf16>
    %412 = arith.truncf %71 : vector<8x32xf32> to vector<8x32xbf16>
    %cst_184 = arith.constant dense<0.000000e+00> : vector<8x64xf32>
    %413 = tpu.matmul %412, %411, %cst_184 {dimension_numbers = #tpu.dot_dimension_numbers<[1], [0], [0], [1], [0, 0, 1, 1], [], []>} : vector<8x32xbf16>, vector<32x64xbf16>, vector<8x64xf32> -> vector<8x64xf32>
    %c1_185 = arith.constant 1 : index
    %c0_186 = arith.constant 0 : index
    %c0_187 = arith.constant 0 : index
    %414 = vector.load %arg29[%c1_185, %c0_186, %c0_187] : memref<2x1x64xf32, #tpu.memory_space<vmem>>, vector<1x1x64xf32>
    %415 = vector.shape_cast %414 : vector<1x1x64xf32> to vector<1x64xf32>
    %416 = vector.broadcast %415 : vector<1x64xf32> to vector<8x64xf32>
    %417 = arith.addf %413, %416 : vector<8x64xf32>
    %418 = vector.extract_strided_slice %409 {offsets = [0, 0], sizes = [64, 16], strides = [1, 1]} : vector<64x32xf32> to vector<64x16xf32>
    %419 = vector.extract_strided_slice %417 {offsets = [0, 0], sizes = [8, 16], strides = [1, 1]} : vector<8x64xf32> to vector<8x16xf32>
    %420 = vector.extract_strided_slice %417 {offsets = [0, 32], sizes = [8, 16], strides = [1, 1]} : vector<8x64xf32> to vector<8x16xf32>
    %421 = arith.truncf %418 : vector<64x16xf32> to vector<64x16xbf16>
    %422 = arith.truncf %419 : vector<8x16xf32> to vector<8x16xbf16>
    %cst_188 = arith.constant dense<0.000000e+00> : vector<64x8xf32>
    %423 = tpu.matmul %421, %422, %cst_188 {dimension_numbers = #tpu.dot_dimension_numbers<[1], [1], [0], [0], [0, 0, 1, 0], [], []>} : vector<64x16xbf16>, vector<8x16xbf16>, vector<64x8xf32> -> vector<64x8xf32>
    %cst_189 = arith.constant 2.500000e-01 : f32
    %424 = vector.broadcast %cst_189 : f32 to vector<64x8xf32>
    %425 = arith.mulf %423, %424 : vector<64x8xf32>
    %426 = vector.broadcast %73 : vector<1x8xf32> to vector<64x8xf32>
    %427 = arith.addf %425, %426 : vector<64x8xf32>
    %cst_190 = arith.constant dense<0xFF800000> : vector<64xf32>
    %428 = vector.multi_reduction <maximumf>, %427, %cst_190 [1] : vector<64x8xf32> to vector<64xf32>
    %429 = vector.shape_cast %428 : vector<64xf32> to vector<64x1xf32>
    %430 = vector.broadcast %429 : vector<64x1xf32> to vector<64x8xf32>
    %431 = arith.subf %427, %430 : vector<64x8xf32>
    %432 = math.exp %431 : vector<64x8xf32>
    %cst_191 = arith.constant dense<0.000000e+00> : vector<64xf32>
    %433 = vector.multi_reduction <add>, %432, %cst_191 [1] : vector<64x8xf32> to vector<64xf32>
    %434 = vector.shape_cast %433 : vector<64xf32> to vector<64x1xf32>
    %435 = vector.broadcast %434 : vector<64x1xf32> to vector<64x8xf32>
    %436 = arith.divf %432, %435 : vector<64x8xf32>
    %437 = arith.truncf %436 : vector<64x8xf32> to vector<64x8xbf16>
    %438 = arith.truncf %420 : vector<8x16xf32> to vector<8x16xbf16>
    %cst_192 = arith.constant dense<0.000000e+00> : vector<64x16xf32>
    %439 = tpu.matmul %437, %438, %cst_192 {dimension_numbers = #tpu.dot_dimension_numbers<[1], [0], [0], [1], [0, 0, 1, 1], [], []>} : vector<64x8xbf16>, vector<8x16xbf16>, vector<64x16xf32> -> vector<64x16xf32>
    %440 = vector.extract_strided_slice %409 {offsets = [0, 16], sizes = [64, 16], strides = [1, 1]} : vector<64x32xf32> to vector<64x16xf32>
    %441 = vector.extract_strided_slice %417 {offsets = [0, 16], sizes = [8, 16], strides = [1, 1]} : vector<8x64xf32> to vector<8x16xf32>
    %442 = vector.extract_strided_slice %417 {offsets = [0, 48], sizes = [8, 16], strides = [1, 1]} : vector<8x64xf32> to vector<8x16xf32>
    %443 = arith.truncf %440 : vector<64x16xf32> to vector<64x16xbf16>
    %444 = arith.truncf %441 : vector<8x16xf32> to vector<8x16xbf16>
    %cst_193 = arith.constant dense<0.000000e+00> : vector<64x8xf32>
    %445 = tpu.matmul %443, %444, %cst_193 {dimension_numbers = #tpu.dot_dimension_numbers<[1], [1], [0], [0], [0, 0, 1, 0], [], []>} : vector<64x16xbf16>, vector<8x16xbf16>, vector<64x8xf32> -> vector<64x8xf32>
    %cst_194 = arith.constant 2.500000e-01 : f32
    %446 = vector.broadcast %cst_194 : f32 to vector<64x8xf32>
    %447 = arith.mulf %445, %446 : vector<64x8xf32>
    %448 = vector.broadcast %73 : vector<1x8xf32> to vector<64x8xf32>
    %449 = arith.addf %447, %448 : vector<64x8xf32>
    %cst_195 = arith.constant dense<0xFF800000> : vector<64xf32>
    %450 = vector.multi_reduction <maximumf>, %449, %cst_195 [1] : vector<64x8xf32> to vector<64xf32>
    %451 = vector.shape_cast %450 : vector<64xf32> to vector<64x1xf32>
    %452 = vector.broadcast %451 : vector<64x1xf32> to vector<64x8xf32>
    %453 = arith.subf %449, %452 : vector<64x8xf32>
    %454 = math.exp %453 : vector<64x8xf32>
    %cst_196 = arith.constant dense<0.000000e+00> : vector<64xf32>
    %455 = vector.multi_reduction <add>, %454, %cst_196 [1] : vector<64x8xf32> to vector<64xf32>
    %456 = vector.shape_cast %455 : vector<64xf32> to vector<64x1xf32>
    %457 = vector.broadcast %456 : vector<64x1xf32> to vector<64x8xf32>
    %458 = arith.divf %454, %457 : vector<64x8xf32>
    %459 = arith.truncf %458 : vector<64x8xf32> to vector<64x8xbf16>
    %460 = arith.truncf %442 : vector<8x16xf32> to vector<8x16xbf16>
    %cst_197 = arith.constant dense<0.000000e+00> : vector<64x16xf32>
    %461 = tpu.matmul %459, %460, %cst_197 {dimension_numbers = #tpu.dot_dimension_numbers<[1], [0], [0], [1], [0, 0, 1, 1], [], []>} : vector<64x8xbf16>, vector<8x16xbf16>, vector<64x16xf32> -> vector<64x16xf32>
    %462 = tpu.concatenate %439, %461 in 1 : vector<64x16xf32>, vector<64x16xf32> -> vector<64x32xf32>
    %c1_198 = arith.constant 1 : index
    %c0_199 = arith.constant 0 : index
    %c0_200 = arith.constant 0 : index
    %463 = vector.load %arg30[%c1_198, %c0_199, %c0_200] : memref<2x32x32xbf16, #tpu.memory_space<vmem>>, vector<1x32x32xbf16>
    %464 = vector.shape_cast %463 : vector<1x32x32xbf16> to vector<32x32xbf16>
    %465 = arith.truncf %462 : vector<64x32xf32> to vector<64x32xbf16>
    %cst_201 = arith.constant dense<0.000000e+00> : vector<64x32xf32>
    %466 = tpu.matmul %465, %464, %cst_201 {dimension_numbers = #tpu.dot_dimension_numbers<[1], [0], [0], [1], [0, 0, 1, 1], [], []>} : vector<64x32xbf16>, vector<32x32xbf16>, vector<64x32xf32> -> vector<64x32xf32>
    %c1_202 = arith.constant 1 : index
    %c0_203 = arith.constant 0 : index
    %c0_204 = arith.constant 0 : index
    %467 = vector.load %arg31[%c1_202, %c0_203, %c0_204] : memref<2x1x32xf32, #tpu.memory_space<vmem>>, vector<1x1x32xf32>
    %468 = vector.shape_cast %467 : vector<1x1x32xf32> to vector<1x32xf32>
    %469 = vector.broadcast %468 : vector<1x32xf32> to vector<64x32xf32>
    %470 = arith.addf %466, %469 : vector<64x32xf32>
    %471 = arith.addf %401, %470 : vector<64x32xf32>
    %cst_205 = arith.constant dense<0.000000e+00> : vector<64xf32>
    %472 = vector.multi_reduction <add>, %471, %cst_205 [1] : vector<64x32xf32> to vector<64xf32>
    %473 = vector.shape_cast %472 : vector<64xf32> to vector<64x1xf32>
    %cst_206 = arith.constant 3.200000e+01 : f32
    %474 = vector.broadcast %cst_206 : f32 to vector<64x1xf32>
    %475 = arith.divf %473, %474 : vector<64x1xf32>
    %476 = vector.broadcast %475 : vector<64x1xf32> to vector<64x32xf32>
    %477 = arith.subf %471, %476 : vector<64x32xf32>
    %478 = arith.mulf %477, %477 : vector<64x32xf32>
    %cst_207 = arith.constant dense<0.000000e+00> : vector<64xf32>
    %479 = vector.multi_reduction <add>, %478, %cst_207 [1] : vector<64x32xf32> to vector<64xf32>
    %480 = vector.shape_cast %479 : vector<64xf32> to vector<64x1xf32>
    %cst_208 = arith.constant 3.200000e+01 : f32
    %481 = vector.broadcast %cst_208 : f32 to vector<64x1xf32>
    %482 = arith.divf %480, %481 : vector<64x1xf32>
    %cst_209 = arith.constant 9.99999997E-7 : f32
    %483 = vector.broadcast %cst_209 : f32 to vector<64x1xf32>
    %484 = arith.addf %482, %483 : vector<64x1xf32>
    %485 = math.rsqrt %484 : vector<64x1xf32>
    %486 = vector.broadcast %485 : vector<64x1xf32> to vector<64x32xf32>
    %487 = arith.mulf %477, %486 : vector<64x32xf32>
    %cst_210 = arith.constant 1.000000e+00 : f32
    %488 = vector.broadcast %cst_210 : f32 to vector<1x32xf32>
    %489 = arith.addf %488, %316 : vector<1x32xf32>
    %490 = vector.broadcast %489 : vector<1x32xf32> to vector<64x32xf32>
    %491 = arith.mulf %487, %490 : vector<64x32xf32>
    %492 = vector.broadcast %313 : vector<1x32xf32> to vector<64x32xf32>
    %493 = arith.addf %491, %492 : vector<64x32xf32>
    %c1_211 = arith.constant 1 : index
    %c0_212 = arith.constant 0 : index
    %c0_213 = arith.constant 0 : index
    %494 = vector.load %arg32[%c1_211, %c0_212, %c0_213] : memref<2x32x128xbf16, #tpu.memory_space<vmem>>, vector<1x32x128xbf16>
    %495 = vector.shape_cast %494 : vector<1x32x128xbf16> to vector<32x128xbf16>
    %496 = arith.truncf %493 : vector<64x32xf32> to vector<64x32xbf16>
    %cst_214 = arith.constant dense<0.000000e+00> : vector<64x128xf32>
    %497 = tpu.matmul %496, %495, %cst_214 {dimension_numbers = #tpu.dot_dimension_numbers<[1], [0], [0], [1], [0, 0, 1, 1], [], []>} : vector<64x32xbf16>, vector<32x128xbf16>, vector<64x128xf32> -> vector<64x128xf32>
    %c1_215 = arith.constant 1 : index
    %c0_216 = arith.constant 0 : index
    %c0_217 = arith.constant 0 : index
    %498 = vector.load %arg33[%c1_215, %c0_216, %c0_217] : memref<2x1x128xf32, #tpu.memory_space<vmem>>, vector<1x1x128xf32>
    %499 = vector.shape_cast %498 : vector<1x1x128xf32> to vector<1x128xf32>
    %500 = vector.broadcast %499 : vector<1x128xf32> to vector<64x128xf32>
    %501 = arith.addf %497, %500 : vector<64x128xf32>
    %502 = arith.mulf %501, %501 : vector<64x128xf32>
    %503 = arith.mulf %501, %502 : vector<64x128xf32>
    %cst_218 = arith.constant 4.471500e-02 : f32
    %504 = vector.broadcast %cst_218 : f32 to vector<64x128xf32>
    %505 = arith.mulf %504, %503 : vector<64x128xf32>
    %506 = arith.addf %501, %505 : vector<64x128xf32>
    %cst_219 = arith.constant 0.797884583 : f32
    %507 = vector.broadcast %cst_219 : f32 to vector<64x128xf32>
    %508 = arith.mulf %507, %506 : vector<64x128xf32>
    %509 = math.tanh %508 : vector<64x128xf32>
    %cst_220 = arith.constant 1.000000e+00 : f32
    %510 = vector.broadcast %cst_220 : f32 to vector<64x128xf32>
    %511 = arith.addf %510, %509 : vector<64x128xf32>
    %cst_221 = arith.constant 5.000000e-01 : f32
    %512 = vector.broadcast %cst_221 : f32 to vector<64x128xf32>
    %513 = arith.mulf %512, %511 : vector<64x128xf32>
    %514 = arith.mulf %501, %513 : vector<64x128xf32>
    %c1_222 = arith.constant 1 : index
    %c0_223 = arith.constant 0 : index
    %c0_224 = arith.constant 0 : index
    %515 = vector.load %arg34[%c1_222, %c0_223, %c0_224] : memref<2x128x32xbf16, #tpu.memory_space<vmem>>, vector<1x128x32xbf16>
    %516 = vector.shape_cast %515 : vector<1x128x32xbf16> to vector<128x32xbf16>
    %517 = arith.truncf %514 : vector<64x128xf32> to vector<64x128xbf16>
    %cst_225 = arith.constant dense<0.000000e+00> : vector<64x32xf32>
    %518 = tpu.matmul %517, %516, %cst_225 {dimension_numbers = #tpu.dot_dimension_numbers<[1], [0], [0], [1], [0, 0, 1, 1], [], []>} : vector<64x128xbf16>, vector<128x32xbf16>, vector<64x32xf32> -> vector<64x32xf32>
    %c1_226 = arith.constant 1 : index
    %c0_227 = arith.constant 0 : index
    %c0_228 = arith.constant 0 : index
    %519 = vector.load %arg35[%c1_226, %c0_227, %c0_228] : memref<2x1x32xf32, #tpu.memory_space<vmem>>, vector<1x1x32xf32>
    %520 = vector.shape_cast %519 : vector<1x1x32xf32> to vector<1x32xf32>
    %521 = vector.broadcast %520 : vector<1x32xf32> to vector<64x32xf32>
    %522 = arith.addf %518, %521 : vector<64x32xf32>
    %523 = vector.broadcast %319 : vector<1x32xf32> to vector<64x32xf32>
    %524 = arith.mulf %523, %522 : vector<64x32xf32>
    %525 = arith.addf %471, %524 : vector<64x32xf32>
    %c0_229 = arith.constant 0 : index
    %c0_230 = arith.constant 0 : index
    %526 = vector.load %arg36[%c0_229, %c0_230] : memref<2x32xf32, #tpu.memory_space<vmem>>, vector<1x32xf32>
    %527 = arith.addf %33, %526 : vector<1x32xf32>
    %c1_231 = arith.constant 1 : index
    %c0_232 = arith.constant 0 : index
    %528 = vector.load %arg36[%c1_231, %c0_232] : memref<2x32xf32, #tpu.memory_space<vmem>>, vector<1x32xf32>
    %529 = arith.addf %33, %528 : vector<1x32xf32>
    %cst_233 = arith.constant dense<0.000000e+00> : vector<64xf32>
    %530 = vector.multi_reduction <add>, %525, %cst_233 [1] : vector<64x32xf32> to vector<64xf32>
    %531 = vector.shape_cast %530 : vector<64xf32> to vector<64x1xf32>
    %cst_234 = arith.constant 3.200000e+01 : f32
    %532 = vector.broadcast %cst_234 : f32 to vector<64x1xf32>
    %533 = arith.divf %531, %532 : vector<64x1xf32>
    %534 = vector.broadcast %533 : vector<64x1xf32> to vector<64x32xf32>
    %535 = arith.subf %525, %534 : vector<64x32xf32>
    %536 = arith.mulf %535, %535 : vector<64x32xf32>
    %cst_235 = arith.constant dense<0.000000e+00> : vector<64xf32>
    %537 = vector.multi_reduction <add>, %536, %cst_235 [1] : vector<64x32xf32> to vector<64xf32>
    %538 = vector.shape_cast %537 : vector<64xf32> to vector<64x1xf32>
    %cst_236 = arith.constant 3.200000e+01 : f32
    %539 = vector.broadcast %cst_236 : f32 to vector<64x1xf32>
    %540 = arith.divf %538, %539 : vector<64x1xf32>
    %cst_237 = arith.constant 9.99999997E-7 : f32
    %541 = vector.broadcast %cst_237 : f32 to vector<64x1xf32>
    %542 = arith.addf %540, %541 : vector<64x1xf32>
    %543 = math.rsqrt %542 : vector<64x1xf32>
    %544 = vector.broadcast %543 : vector<64x1xf32> to vector<64x32xf32>
    %545 = arith.mulf %535, %544 : vector<64x32xf32>
    %cst_238 = arith.constant 1.000000e+00 : f32
    %546 = vector.broadcast %cst_238 : f32 to vector<1x32xf32>
    %547 = arith.addf %546, %529 : vector<1x32xf32>
    %548 = vector.broadcast %547 : vector<1x32xf32> to vector<64x32xf32>
    %549 = arith.mulf %545, %548 : vector<64x32xf32>
    %550 = vector.broadcast %527 : vector<1x32xf32> to vector<64x32xf32>
    %551 = arith.addf %549, %550 : vector<64x32xf32>
    %c0_239 = arith.constant 0 : index
    %c0_240 = arith.constant 0 : index
    %552 = vector.load %arg37[%c0_239, %c0_240] : memref<32x32xbf16, #tpu.memory_space<vmem>>, vector<32x32xbf16>
    %553 = arith.truncf %551 : vector<64x32xf32> to vector<64x32xbf16>
    %cst_241 = arith.constant dense<0.000000e+00> : vector<64x32xf32>
    %554 = tpu.matmul %553, %552, %cst_241 {dimension_numbers = #tpu.dot_dimension_numbers<[1], [0], [0], [1], [0, 0, 1, 1], [], []>} : vector<64x32xbf16>, vector<32x32xbf16>, vector<64x32xf32> -> vector<64x32xf32>
    %c0_242 = arith.constant 0 : index
    %c0_243 = arith.constant 0 : index
    %555 = vector.load %arg38[%c0_242, %c0_243] : memref<1x32xf32, #tpu.memory_space<vmem>>, vector<1x32xf32>
    %556 = vector.broadcast %555 : vector<1x32xf32> to vector<64x32xf32>
    %557 = arith.addf %554, %556 : vector<64x32xf32>
    %c0_244 = arith.constant 0 : index
    %c0_245 = arith.constant 0 : index
    %558 = vector.load %arg7[%c0_244, %c0_245] : memref<32x16xf32, #tpu.memory_space<vmem>>, vector<32x16xf32>
    %cst_246 = arith.constant dense<0.000000e+00> : vector<64x16xf32>
    %559 = tpu.matmul %557, %558, %cst_246 {dimension_numbers = #tpu.dot_dimension_numbers<[1], [0], [0], [1], [0, 0, 1, 1], [], []>} : vector<64x32xf32>, vector<32x16xf32>, vector<64x16xf32> -> vector<64x16xf32>
    %c0_247 = arith.constant 0 : index
    %c0_248 = arith.constant 0 : index
    %c0_249 = arith.constant 0 : index
    %560 = vector.load %arg40[%c0_247, %c0_248, %c0_249] : memref<1x64x16xf32, #tpu.memory_space<vmem>>, vector<1x64x16xf32>
    %561 = vector.shape_cast %560 : vector<1x64x16xf32> to vector<64x16xf32>
    %562 = vector.shape_cast %559 : vector<64x16xf32> to vector<1x64x16xf32>
    tpu.vector_store %arg40[%c0_247, %c0_248, %c0_249], %562 {strides = array<i32>} : memref<1x64x16xf32, #tpu.memory_space<vmem>>, vector<1x64x16xf32>,
    %563 = vector.broadcast %5 : vector<1x1xf32> to vector<64x16xf32>
    %564 = arith.mulf %563, %559 : vector<64x16xf32>
    %565 = arith.addf %1, %564 : vector<64x16xf32>
    %c0_250 = arith.constant 0 : index
    %c0_251 = arith.constant 0 : index
    %c0_252 = arith.constant 0 : index
    %566 = vector.load %arg39[%c0_250, %c0_251, %c0_252] : memref<1x64x16xf32, #tpu.memory_space<vmem>>, vector<1x64x16xf32>
    %567 = vector.shape_cast %566 : vector<1x64x16xf32> to vector<64x16xf32>
    %568 = vector.shape_cast %565 : vector<64x16xf32> to vector<1x64x16xf32>
    tpu.vector_store %arg39[%c0_250, %c0_251, %c0_252], %568 {strides = array<i32>} : memref<1x64x16xf32, #tpu.memory_space<vmem>>, vector<1x64x16xf32>,
    return
  }
  func.func @transform_0(%arg0: i32) -> (i32, i32, i32) {
    %c0_i32 = arith.constant 0 : i32
    %c0_i32_0 = arith.constant 0 : i32
    %c0_i32_1 = arith.constant 0 : i32
    return %arg0, %c0_i32, %c0_i32_0 : i32, i32, i32
  }
  func.func @transform_1(%arg0: i32) -> (i32, i32, i32) {
    %c0_i32 = arith.constant 0 : i32
    %c0_i32_0 = arith.constant 0 : i32
    %c0_i32_1 = arith.constant 0 : i32
    return %arg0, %c0_i32, %c0_i32_0 : i32, i32, i32
  }
  func.func @transform_2(%arg0: i32) -> (i32, i32, i32) {
    %c0_i32 = arith.constant 0 : i32
    %c0_i32_0 = arith.constant 0 : i32
    %c0_i32_1 = arith.constant 0 : i32
    return %arg0, %c0_i32, %c0_i32_0 : i32, i32, i32
  }
  func.func @transform_3(%arg0: i32) -> (i32, i32, i32) {
    %c0_i32 = arith.constant 0 : i32
    %c0_i32_0 = arith.constant 0 : i32
    %c0_i32_1 = arith.constant 0 : i32
    return %arg0, %c0_i32, %c0_i32_0 : i32, i32, i32
  }
  func.func @transform_4(%arg0: i32) -> (i32, i32, i32) {
    %c0_i32 = arith.constant 0 : i32
    %c0_i32_0 = arith.constant 0 : i32
    %c0_i32_1 = arith.constant 0 : i32
    return %arg0, %c0_i32, %c0_i32_0 : i32, i32, i32
  }
  func.func @transform_5(%arg0: i32) -> (i32, i32, i32) {
    %c0_i32 = arith.constant 0 : i32
    %c0_i32_0 = arith.constant 0 : i32
    %c0_i32_1 = arith.constant 0 : i32
    return %arg0, %c0_i32, %c0_i32_0 : i32, i32, i32
  }
  func.func @transform_6(%arg0: i32) -> (i32, i32) {
    %c0_i32 = arith.constant 0 : i32
    %c0_i32_0 = arith.constant 0 : i32
    %c0_i32_1 = arith.constant 0 : i32
    return %c0_i32, %c0_i32_0 : i32, i32
  }
  func.func @transform_7(%arg0: i32) -> (i32, i32) {
    %c0_i32 = arith.constant 0 : i32
    %c0_i32_0 = arith.constant 0 : i32
    %c0_i32_1 = arith.constant 0 : i32
    return %c0_i32, %c0_i32_0 : i32, i32
  }
  func.func @transform_8(%arg0: i32) -> (i32, i32) {
    %c0_i32 = arith.constant 0 : i32
    %c0_i32_0 = arith.constant 0 : i32
    %c0_i32_1 = arith.constant 0 : i32
    return %c0_i32, %c0_i32_0 : i32, i32
  }
  func.func @transform_9(%arg0: i32) -> (i32, i32) {
    %c0_i32 = arith.constant 0 : i32
    %c0_i32_0 = arith.constant 0 : i32
    %c0_i32_1 = arith.constant 0 : i32
    return %c0_i32, %c0_i32_0 : i32, i32
  }
  func.func @transform_10(%arg0: i32) -> (i32, i32) {
    %c0_i32 = arith.constant 0 : i32
    %c0_i32_0 = arith.constant 0 : i32
    %c0_i32_1 = arith.constant 0 : i32
    return %c0_i32, %c0_i32_0 : i32, i32
  }
  func.func @transform_11(%arg0: i32) -> (i32, i32) {
    %c0_i32 = arith.constant 0 : i32
    %c0_i32_0 = arith.constant 0 : i32
    %c0_i32_1 = arith.constant 0 : i32
    return %c0_i32, %c0_i32_0 : i32, i32
  }
  func.func @transform_12(%arg0: i32) -> (i32, i32) {
    %c0_i32 = arith.constant 0 : i32
    %c0_i32_0 = arith.constant 0 : i32
    %c0_i32_1 = arith.constant 0 : i32
    return %c0_i32, %c0_i32_0 : i32, i32
  }
  func.func @transform_13(%arg0: i32) -> (i32, i32) {
    %c0_i32 = arith.constant 0 : i32
    %c0_i32_0 = arith.constant 0 : i32
    %c0_i32_1 = arith.constant 0 : i32
    return %c0_i32, %c0_i32_0 : i32, i32
  }
  func.func @transform_14(%arg0: i32) -> (i32, i32) {
    %c0_i32 = arith.constant 0 : i32
    %c0_i32_0 = arith.constant 0 : i32
    %c0_i32_1 = arith.constant 0 : i32
    return %c0_i32, %c0_i32_0 : i32, i32
  }
  func.func @transform_15(%arg0: i32) -> (i32, i32) {
    %c0_i32 = arith.constant 0 : i32
    %c0_i32_0 = arith.constant 0 : i32
    %c0_i32_1 = arith.constant 0 : i32
    return %c0_i32, %c0_i32_0 : i32, i32
  }
  func.func @transform_16(%arg0: i32) -> (i32, i32) {
    %c0_i32 = arith.constant 0 : i32
    %c0_i32_0 = arith.constant 0 : i32
    %c0_i32_1 = arith.constant 0 : i32
    return %c0_i32, %c0_i32_0 : i32, i32
  }
  func.func @transform_17(%arg0: i32) -> (i32, i32) {
    %c0_i32 = arith.constant 0 : i32
    %c0_i32_0 = arith.constant 0 : i32
    %c0_i32_1 = arith.constant 0 : i32
    return %c0_i32, %c0_i32_0 : i32, i32
  }
  func.func @transform_18(%arg0: i32) -> (i32, i32) {
    %c0_i32 = arith.constant 0 : i32
    %c0_i32_0 = arith.constant 0 : i32
    %c0_i32_1 = arith.constant 0 : i32
    return %c0_i32, %c0_i32_0 : i32, i32
  }
  func.func @transform_19(%arg0: i32) -> (i32, i32) {
    %c0_i32 = arith.constant 0 : i32
    %c0_i32_0 = arith.constant 0 : i32
    %c0_i32_1 = arith.constant 0 : i32
    return %c0_i32, %c0_i32_0 : i32, i32
  }
  func.func @transform_20(%arg0: i32) -> (i32, i32, i32) {
    %c0_i32 = arith.constant 0 : i32
    %c0_i32_0 = arith.constant 0 : i32
    %c0_i32_1 = arith.constant 0 : i32
    %c0_i32_2 = arith.constant 0 : i32
    return %c0_i32, %c0_i32_0, %c0_i32_1 : i32, i32, i32
  }
  func.func @transform_21(%arg0: i32) -> (i32, i32, i32) {
    %c0_i32 = arith.constant 0 : i32
    %c0_i32_0 = arith.constant 0 : i32
    %c0_i32_1 = arith.constant 0 : i32
    %c0_i32_2 = arith.constant 0 : i32
    return %c0_i32, %c0_i32_0, %c0_i32_1 : i32, i32, i32
  }
  func.func @transform_22(%arg0: i32) -> (i32, i32, i32) {
    %c0_i32 = arith.constant 0 : i32
    %c0_i32_0 = arith.constant 0 : i32
    %c0_i32_1 = arith.constant 0 : i32
    %c0_i32_2 = arith.constant 0 : i32
    return %c0_i32, %c0_i32_0, %c0_i32_1 : i32, i32, i32
  }
  func.func @transform_23(%arg0: i32) -> (i32, i32, i32) {
    %c0_i32 = arith.constant 0 : i32
    %c0_i32_0 = arith.constant 0 : i32
    %c0_i32_1 = arith.constant 0 : i32
    %c0_i32_2 = arith.constant 0 : i32
    return %c0_i32, %c0_i32_0, %c0_i32_1 : i32, i32, i32
  }
  func.func @transform_24(%arg0: i32) -> (i32, i32, i32) {
    %c0_i32 = arith.constant 0 : i32
    %c0_i32_0 = arith.constant 0 : i32
    %c0_i32_1 = arith.constant 0 : i32
    %c0_i32_2 = arith.constant 0 : i32
    return %c0_i32, %c0_i32_0, %c0_i32_1 : i32, i32, i32
  }
  func.func @transform_25(%arg0: i32) -> (i32, i32, i32) {
    %c0_i32 = arith.constant 0 : i32
    %c0_i32_0 = arith.constant 0 : i32
    %c0_i32_1 = arith.constant 0 : i32
    %c0_i32_2 = arith.constant 0 : i32
    return %c0_i32, %c0_i32_0, %c0_i32_1 : i32, i32, i32
  }
  func.func @transform_26(%arg0: i32) -> (i32, i32, i32) {
    %c0_i32 = arith.constant 0 : i32
    %c0_i32_0 = arith.constant 0 : i32
    %c0_i32_1 = arith.constant 0 : i32
    %c0_i32_2 = arith.constant 0 : i32
    return %c0_i32, %c0_i32_0, %c0_i32_1 : i32, i32, i32
  }
  func.func @transform_27(%arg0: i32) -> (i32, i32, i32) {
    %c0_i32 = arith.constant 0 : i32
    %c0_i32_0 = arith.constant 0 : i32
    %c0_i32_1 = arith.constant 0 : i32
    %c0_i32_2 = arith.constant 0 : i32
    return %c0_i32, %c0_i32_0, %c0_i32_1 : i32, i32, i32
  }
  func.func @transform_28(%arg0: i32) -> (i32, i32, i32) {
    %c0_i32 = arith.constant 0 : i32
    %c0_i32_0 = arith.constant 0 : i32
    %c0_i32_1 = arith.constant 0 : i32
    %c0_i32_2 = arith.constant 0 : i32
    return %c0_i32, %c0_i32_0, %c0_i32_1 : i32, i32, i32
  }
  func.func @transform_29(%arg0: i32) -> (i32, i32, i32) {
    %c0_i32 = arith.constant 0 : i32
    %c0_i32_0 = arith.constant 0 : i32
    %c0_i32_1 = arith.constant 0 : i32
    %c0_i32_2 = arith.constant 0 : i32
    return %c0_i32, %c0_i32_0, %c0_i32_1 : i32, i32, i32
  }
  func.func @transform_30(%arg0: i32) -> (i32, i32, i32) {
    %c0_i32 = arith.constant 0 : i32
    %c0_i32_0 = arith.constant 0 : i32
    %c0_i32_1 = arith.constant 0 : i32
    %c0_i32_2 = arith.constant 0 : i32
    return %c0_i32, %c0_i32_0, %c0_i32_1 : i32, i32, i32
  }
  func.func @transform_31(%arg0: i32) -> (i32, i32, i32) {
    %c0_i32 = arith.constant 0 : i32
    %c0_i32_0 = arith.constant 0 : i32
    %c0_i32_1 = arith.constant 0 : i32
    %c0_i32_2 = arith.constant 0 : i32
    return %c0_i32, %c0_i32_0, %c0_i32_1 : i32, i32, i32
  }
  func.func @transform_32(%arg0: i32) -> (i32, i32, i32) {
    %c0_i32 = arith.constant 0 : i32
    %c0_i32_0 = arith.constant 0 : i32
    %c0_i32_1 = arith.constant 0 : i32
    %c0_i32_2 = arith.constant 0 : i32
    return %c0_i32, %c0_i32_0, %c0_i32_1 : i32, i32, i32
  }
  func.func @transform_33(%arg0: i32) -> (i32, i32, i32) {
    %c0_i32 = arith.constant 0 : i32
    %c0_i32_0 = arith.constant 0 : i32
    %c0_i32_1 = arith.constant 0 : i32
    %c0_i32_2 = arith.constant 0 : i32
    return %c0_i32, %c0_i32_0, %c0_i32_1 : i32, i32, i32
  }
  func.func @transform_34(%arg0: i32) -> (i32, i32, i32) {
    %c0_i32 = arith.constant 0 : i32
    %c0_i32_0 = arith.constant 0 : i32
    %c0_i32_1 = arith.constant 0 : i32
    %c0_i32_2 = arith.constant 0 : i32
    return %c0_i32, %c0_i32_0, %c0_i32_1 : i32, i32, i32
  }
  func.func @transform_35(%arg0: i32) -> (i32, i32) {
    %c0_i32 = arith.constant 0 : i32
    %c0_i32_0 = arith.constant 0 : i32
    %c0_i32_1 = arith.constant 0 : i32
    return %c0_i32, %c0_i32_0 : i32, i32
  }
  func.func @transform_36(%arg0: i32) -> (i32, i32) {
    %c0_i32 = arith.constant 0 : i32
    %c0_i32_0 = arith.constant 0 : i32
    %c0_i32_1 = arith.constant 0 : i32
    return %c0_i32, %c0_i32_0 : i32, i32
  }
  func.func @transform_37(%arg0: i32) -> (i32, i32) {
    %c0_i32 = arith.constant 0 : i32
    %c0_i32_0 = arith.constant 0 : i32
    %c0_i32_1 = arith.constant 0 : i32
    return %c0_i32, %c0_i32_0 : i32, i32
  }
  func.func @transform_38(%arg0: i32) -> (i32, i32, i32) {
    %c0_i32 = arith.constant 0 : i32
    %c0_i32_0 = arith.constant 0 : i32
    %c0_i32_1 = arith.constant 0 : i32
    return %arg0, %c0_i32, %c0_i32_0 : i32, i32, i32
  }
  func.func @transform_39(%arg0: i32) -> (i32, i32, i32) {
    %c0_i32 = arith.constant 0 : i32
    %c0_i32_0 = arith.constant 0 : i32
    %c0_i32_1 = arith.constant 0 : i32
    return %arg0, %c0_i32, %c0_i32_0 : i32, i32, i32
  }
}

</mosaic_0001>

<bundles_post_ra>
// kernel: _lambda_.1
= control target key start
LH: loop header
LB: loop body
LE: loop exit
PB: predicated region body
PF: predicated region fallthrough
CT: control target
= control target key end

     0   :  { %s9238_s6 = smov 1   ;;  %s9239_s10 = smov 2   ;;  %s11434_s0 = inlined_call_operand.smem [shape: u32[40], index: -1, kind: input, shape index: {}] }
   0x1   :  { %s9298_s5 = sld [smem:[%s11434_s0]]   ;;  %s9240_s14 = smov 3  }
   0x2   :  { %s9303_s9 = sld [smem:[%s11434_s0 + %s9238_s6]]   ;;  %s9241_s18 = smov 4  }
   0x3   :  { %s9308_s13 = sld [smem:[%s11434_s0 + %s9239_s10]]   ;;  %s9242_s22 = smov 5  }
   0x4   :  { %s9313_s17 = sld [smem:[%s11434_s0 + %s9240_s14]]   ;;  %s9243_s26 = smov 6  }
   0x5   :  { %s9318_s21 = sld [smem:[%s11434_s0 + %s9241_s18]]   ;;  %s9244_s30 = smov 7  }
   0x6   :  { %s9323_s25 = sld [smem:[%s11434_s0 + %s9242_s22]]   ;;  %s9245_s4 = smov 8  }
   0x7   :  { %11485 = sst [smem:[#allocation5_spill]] %s9298_s5  ;;  %s9246_s10 = smov 9  }
   0x8   :  { %11486 = sst [smem:[#allocation6_spill]] %s9303_s9  ;;  %s9247_s15 = smov 10  }
   0x9   :  { %11487 = sst [smem:[#allocation7_spill]] %s9308_s13  ;;  %s9248_s20 = smov 11  }
   0xa   :  { %11488 = sst [smem:[#allocation8_spill]] %s9313_s17  ;;  %s9250_s1 = smov 13  }
   0xb   :  { %11489 = sst [smem:[#allocation9_spill]] %s9318_s21  ;;  %s9251_s7 = smov 14  }
   0xc   :  { %11490 = sst [smem:[#allocation10_spill]] %s9323_s25  ;;  %s9253_s22 = smov 16  }
   0xd   :  { %s9328_s29 = sld [smem:[%s11434_s0 + %s9243_s26]]   ;;  %s9249_s26 = smov 12  }
   0xe   :  { %s9333_s3 = sld [smem:[%s11434_s0 + %s9244_s30]]   ;;  %s9254_s28 = smov 17  }
   0xf   :  { %s9338_s8 = sld [smem:[%s11434_s0 + %s9245_s4]]  }
  0x10   :  { %s9343_s14 = sld [smem:[%s11434_s0 + %s9246_s10]]  }
  0x11   :  { %s9348_s19 = sld [smem:[%s11434_s0 + %s9247_s15]]   ;;  %s9252_s15 = smov 15  }
  0x12   :  { %s9353_s24 = sld [smem:[%s11434_s0 + %s9248_s20]]  }
  0x13   :  { %11491 = sst [smem:[#allocation11_spill]] %s9328_s29 }
  0x14   :  { %11492 = sst [smem:[#allocation12_spill]] %s9333_s3 }
  0x15   :  { %11493 = sst [smem:[#allocation13_spill]] %s9338_s8 }
  0x16   :  { %11494 = sst [smem:[#allocation14_spill]] %s9343_s14 }
  0x17   :  { %11495 = sst [smem:[#allocation15_spill]] %s9348_s19 }
  0x18   :  { %11496 = sst [smem:[#allocation16_spill]] %s9353_s24 }
  0x19   :  { %s9358_s30 = sld [smem:[%s11434_s0 + %s9249_s26]]  }
  0x1a   :  { %s9363_s6 = sld [smem:[%s11434_s0 + %s9250_s1]]  }
  0x1b   :  { %s9368_s12 = sld [smem:[%s11434_s0 + %s9251_s7]]   ;;  %s9255_s7 = smov 18  }
  0x1c   :  { %s9373_s20 = sld [smem:[%s11434_s0 + %s9252_s15]]   ;;  %s9256_s15 = smov 19  }
  0x1d   :  { %s9378_s27 = sld [smem:[%s11434_s0 + %s9253_s22]]   ;;  %s9257_s22 = smov 20  }
  0x1e   :  { %s9383_s4 = sld [smem:[%s11434_s0 + %s9254_s28]]   ;;  %s9258_s28 = smov 21  }
  0x1f   :  { %11497 = sst [smem:[#allocation17_spill]] %s9358_s30 }
  0x20   :  { %11498 = sst [smem:[#allocation18_spill]] %s9363_s6 }
  0x21   :  { %11499 = sst [smem:[#allocation19_spill]] %s9368_s12 }
  0x22   :  { %11500 = sst [smem:[#allocation20_spill]] %s9373_s20 }
  0x23   :  { %11501 = sst [smem:[#allocation21_spill]] %s9378_s27 }
  0x24   :  { %11502 = sst [smem:[#allocation22_spill]] %s9383_s4 }
  0x25   :  { %s9388_s13 = sld [smem:[%s11434_s0 + %s9255_s7]]   ;;  %s9259_s7 = smov 22  }
  0x26   :  { %s9393_s29 = sld [smem:[%s11434_s0 + %s9256_s15]]   ;;  %s9260_s15 = smov 23  }
  0x27   :  { %s9398_s25 = sld [smem:[%s11434_s0 + %s9257_s22]]   ;;  %s9261_s22 = smov 24  }
  0x28   :  { %s9403_s4 = sld [smem:[%s11434_s0 + %s9258_s28]]   ;;  %s9262_s28 = smov 25  }
  0x29   :  { %s9418_s20 = sld [smem:[%s11434_s0 + %s9261_s22]]   ;;  %s9265_s22 = smov 28  }
  0x2b   :  { %11503 = sst [smem:[#allocation23_spill]] %s9388_s13 }
  0x2c   :  { %11504 = sst [smem:[#allocation24_spill]] %s9393_s29 }
  0x2d   :  { %s9408_s13 = sld [smem:[%s11434_s0 + %s9259_s7]]   ;;  %s9263_s7 = smov 26  }
  0x2e   :  { %11505 = sst [smem:[#allocation25_spill]] %s9403_s4 }
  0x2f   :  { %s9413_s29 = sld [smem:[%s11434_s0 + %s9260_s15]]   ;;  %s9264_s15 = smov 27  }
  0x30   :  { %11508 = sst [smem:[#allocation28_spill]] %s9418_s20 }
  0x31   :  { %s9423_s4 = sld [smem:[%s11434_s0 + %s9262_s28]]   ;;  %s9266_s28 = smov 29  }
  0x32   :  { %s9438_s20 = sld [smem:[%s11434_s0 + %s9265_s22]]   ;;  %s9269_s22 = smov 32  }
  0x33   :  { %11506 = sst [smem:[#allocation26_spill]] %s9408_s13 }
  0x34   :  { %s9428_s13 = sld [smem:[%s11434_s0 + %s9263_s7]]   ;;  %s9267_s7 = smov 30  }
  0x35   :  { %11507 = sst [smem:[#allocation27_spill]] %s9413_s29 }
  0x36   :  { %s9433_s29 = sld [smem:[%s11434_s0 + %s9264_s15]]   ;;  %s9268_s15 = smov 31  }
  0x37   :  { %11509 = sst [smem:[#allocation29_spill]] %s9423_s4 }
  0x38   :  { %11512 = sst [smem:[#allocation32_spill]] %s9438_s20 }
  0x39   :  { %s9443_s4 = sld [smem:[%s11434_s0 + %s9266_s28]]   ;;  %s9270_s28 = smov 33  }
  0x3a   :  { %11510 = sst [smem:[#allocation30_spill]] %s9428_s13 }
  0x3b   :  { %s9448_s13 = sld [smem:[%s11434_s0 + %s9267_s7]]   ;;  %s9271_s7 = smov 34  }
  0x3c   :  { %11511 = sst [smem:[#allocation31_spill]] %s9433_s29 }
  0x3d   :  { %s9453_s29 = sld [smem:[%s11434_s0 + %s9268_s15]]   ;;  %s9272_s15 = smov 35  }
  0x3e   :  { %s9458_s20 = sld [smem:[%s11434_s0 + %s9269_s22]]   ;;  %s9273_s22 = smov 36  }
  0x3f   :  { %11513 = sst [smem:[#allocation33_spill]] %s9443_s4 }
  0x40   :  { %s9463_s4 = sld [smem:[%s11434_s0 + %s9270_s28]]   ;;  %s9274_s28 = smov 37  }
  0x41   :  { %11514 = sst [smem:[#allocation34_spill]] %s9448_s13 }
  0x42   :  { %s9468_s13 = sld [smem:[%s11434_s0 + %s9271_s7]]   ;;  %s9275_s7 = smov 38  }
  0x43   :  { %11515 = sst [smem:[#allocation35_spill]] %s9453_s29 }
  0x44   :  { %11516 = sst [smem:[#allocation36_spill]] %s9458_s20 }
  0x45   :  { %s9473_s29 = sld [smem:[%s11434_s0 + %s9272_s15]]   ;;  %s9276_s15 = smov 39  }
  0x46   :  { %11517 = sst [smem:[#allocation37_spill]] %s9463_s4 }
  0x47   :  { %s9478_s20 = sld [smem:[%s11434_s0 + %s9273_s22]]  }
  0x48   :  { %11518 = sst [smem:[#allocation38_spill]] %s9468_s13 }
  0x49   :  { %s9483_s4 = sld [smem:[%s11434_s0 + %s9274_s28]]  }
  0x4a   :  { %s9488_s13 = sld [smem:[%s11434_s0 + %s9275_s7]]  }
  0x4b   :  { %11519 = sst [smem:[#allocation39_spill]] %s9473_s29 }
  0x4c   :  { %s9493_s29 = sld [smem:[%s11434_s0 + %s9276_s15]]  }
  0x4f   :  { %11520 = sst [smem:[#allocation40_spill]] %s9483_s4 }
  0x52   :  { %11521 = sst [smem:[#allocation41_spill]] %s9493_s29 }
  0x53   :  { %85 = vsyncpa [#allocation3], 0 }
  0x54   :  { %87 = vsyncpa [#allocation3 + $0x1], 0  ;;  %s9495_s22 = smov 0   ;;  %s9497_s23 = smov 0  }
  0x55   :  { %s9499_s26 = smov 0   ;;  %s9501_s28 = smov 0  }
  0x56 LB: > { %s11522_s30 = sld [smem:[#allocation17_spill]]  ;;  %s11523_s27 = sld [smem:[#allocation21_spill]]  ;;  %s9224_s22 = sphi %s9495_s22, %s11587_s22   ;;  %s9236_s28 = sphi %s9501_s28, %s11584_s28   ;;  %s9232_s26 = sphi %s9499_s26, %s11586_s26   ;;  %s9228_s23 = sphi %s9497_s23, %s11588_s23  }
  0x57   : > { %s11524_s19 = sld [smem:[#allocation15_spill]]  ;;  %s11525_s12 = sld [smem:[#allocation19_spill]] }
  0x58   : > { %s11526_s3 = sld [smem:[#allocation12_spill]]  ;;  %11527 = sst [smem:[#allocation42_spill]] %s9224_s22 }
  0x59   : > { %11528 = sst [smem:[#allocation43_spill]] %s9232_s26  ;;  %s9516_s0 = sadd.s32 4294967295, %s9236_s28  }
  0x5a   : > { %11529 = sst [smem:[#allocation44_spill]] %s9516_s0  ;;  %s7517_s1 = sadd.s32 4294967294, %s9236_s28  }
  0x5b   : > { %s9520_s2 = sadd.s32 1, %s9236_s28   ;;  %s954_s7 = sadd.s32 1, %s9232_s26 }
  0x5c   : > { %11530 = sst [smem:[#allocation45_spill]] %s9520_s2  ;;  %s951_s10 = ssub.s32 %s9236_s28, %s9520_s2 }
  0x5d   : > { %p964_p0 = scmp.ne.s32.totalorder %s9232_s26, %s9228_s23  ;;  %p952_p1 = scmp.eq.s32.totalorder %s951_s10, 0 }
  0x5e   : > { %p965_p2 = scmp.eq.s32.totalorder %s9516_s0, 1  ;;  %p970_p3 = scmp.ne.s32.totalorder %s9228_s23, %s9224_s22 }
  0x5f   : > { %p971_p4 = scmp.eq.s32.totalorder %s7517_s1, 1  ;;  %p7520_p7 = scmp.ge.s32.totalorder %s9236_s28, 1 }
  0x60   : > { %s9531_s11 = scalar_select %p952_p1, %s9232_s26, %s954_s7  }
  0x61   : > { %p9533_p5 = por %p965_p2, %p964_p0  ;;  %p9537_p6 = por %p971_p4, %p970_p3 }
  0x62   : > { %11531 = sst [smem:[#allocation46_spill]] %s9531_s11  ;;  %p1125_p8 = scmp.lt.s32.totalorder %s9236_s28, 3 }
  0x63   : > { %s11532_s15 = scalar_select %p9533_p5, 1, 0 }
  0x64   : > { %s11534_s16 = scalar_select %p9537_p6, 1, 0 }
  0x65   : > { %11533 = sst [smem:[#allocation47_spill]] %s11532_s15  ;;  %p1126_p9 = pnand %p7520_p7, %p1125_p8 }
  0x66   : > { %11535 = sst [smem:[#allocation48_spill]] %s11534_s16  ;;  %s11536_s9 = sld [smem:[#allocation6_spill]] (!%p1126_p9)  ;;  %v8712_v0 = vld [vmem:[%s11524_s19 + $0x40] sm:$0xff] (!%p1126_p9)   ;;  %v9277_v2 = vmov (!%p1126_p9), 0   ;;  %v8714_v3 = vld [vmem:[%s11524_s19 + $0x48] sm:$0xff] (!%p1126_p9)   ;;  %v8716_v5 = vld [vmem:[%s11524_s19 + $0x50] sm:$0xff] (!%p1126_p9)   ;;  %v1445_v6 = vlaneseq (!%p1126_p9) }
  0x67   : > { %1129 = sbr.rel (%p1126_p9) target bundleno = 11654 (0x2d86), region = 172  ;;  %v8713_v1 = vld [vmem:[%s11524_s19] sm:$0xff] (!%p1126_p9)   ;;  %8630 = vset.pattern.permute.xlu0 (!%p1126_p9), %v9277_v2  ;;  %p1243_p10 = scmp.lt.s32.totalorder (!%p1126_p9), %s9516_s0, 1  ;;  %8711 = vset.pattern.permute.xlu1 (!%p1126_p9), %v9277_v2  ;;  %v8715_v4 = vld [vmem:[%s11524_s19 + $0x8] sm:$0xff] (!%p1126_p9)   ;;  %v8717_v8 = vld [vmem:[%s11524_s19 + $0x10] sm:$0xff] (!%p1126_p9)   ;;  %vm1317_vm0 = vcmask (!%p1126_p9), 130048  }
  0x68   : > { %7807 = vmatprep.subr.bf16.mxu1 (!%p1126_p9), %v8712_v0  ;;  %s11537_s17 = sld [smem:[#allocation8_spill]] (!%p1126_p9)  ;;  %s11538_s8 = sld [smem:[#allocation13_spill]] (!%p1126_p9)  ;;  %v8718_v9 = vld [vmem:[%s11524_s19 + $0x58] sm:$0xff] (!%p1126_p9)   ;;  %v9558_v10 = vshrl.u32 (!%p1126_p9), %v1445_v6, 7  ;;  %v8720_v12 = vld [vmem:[%s11524_s19 + $0x60] sm:$0xff] (!%p1126_p9)   ;;  %v8722_v15 = vld [vmem:[%s11524_s19 + $0x68] sm:$0xff] (!%p1126_p9)  }
  0x69   : > { %7808 = vmatpush3.bf16.msra.mxu1 (!%p1126_p9), %v8713_v1  ;;  %v8719_v11 = vld [vmem:[%s11524_s19 + $0x18] sm:$0xff] (!%p1126_p9)   ;;  %v8721_v14 = vld [vmem:[%s11524_s19 + $0x20] sm:$0xff] (!%p1126_p9)   ;;  %v8723_v19 = vld [vmem:[%s11524_s19 + $0x28] sm:$0xff] (!%p1126_p9)   ;;  %s11539_s5 = sld [smem:[#allocation5_spill]] (!%p1126_p9)  ;;  %s11540_s24 = sld [smem:[#allocation16_spill]] (!%p1126_p9)  ;;  %v9278_v50 = vmov (!%p1126_p9), 0.0  }
  0x6a   : > { %7809 = vmatprep.subr.bf16.mxu1 (!%p1126_p9), %v8714_v3  ;;  %v1451_v13 = vsub.s32 (!%p1126_p9), 1, %v9558_v10  ;;  %v8724_v21 = vld [vmem:[%s11524_s19 + $0x70] sm:$0xff] (!%p1126_p9)   ;;  %v8726_v23 = vld [vmem:[%s11524_s19 + $0x78] sm:$0xff] (!%p1126_p9)   ;;  %v9575_v24 = vsub.s32 (!%p1126_p9), 0, %v9558_v10  ;;  %v8729_v49 = vld [vmem:[%s11522_s30] sm:$0xff] (!%p1126_p9)   ;;  %vm9279_vm1 = vmmov (!%p1126_p9), 0  }
  0x6b   : > { %v8725_v22 = vld [vmem:[%s11524_s19 + $0x30] sm:$0xff] (!%p1126_p9)   ;;  %v8727_v25 = vld [vmem:[%s11524_s19 + $0x38] sm:$0xff] (!%p1126_p9)   ;;  %v8730_v51 = vld [vmem:[%s11522_s30 + $0x8] sm:$0xff] (!%p1126_p9)   ;;  %s11541_s14 = sld [smem:[#allocation14_spill]] (!%p1126_p9)  ;;  %vm1619_vm2 = vcmask (!%p1126_p9), 261120   ;;  %s11542_s6 = sld [smem:[#allocation18_spill]] (!%p1126_p9) }
  0x6c   : > { %s11543_s21 = sld [smem:[#allocation9_spill]] (!%p1126_p9)  ;;  %vm2273_vm3 = vcmask (!%p1126_p9), 523264   ;;  %s11558_s19 = sld [smem:[#allocation10_spill]] (!%p1126_p9)  ;;  %vm3255_vm4 = vcmask (!%p1126_p9), 64512   ;;  %vm3363_vm5 = vcmask (!%p1126_p9), 1043456  }
  0x6d   : > { %7810 = vmatpush3.bf16.msra.mxu1 (!%p1126_p9), %v8715_v4  ;;  %v1397_v4 = vld [vmem:[%s11526_s3 + $0x10] sm:$0xff] (!%p1126_p9)  ;;  %s11562_s30 = smov (!%p1126_p9), 16   ;;  %s11563_s11 = sld [smem:[#allocation34_spill]] (!%p1126_p9) }
  0x6e   : > { %s9550_s18 = scalar_select %p1243_p10, %s9516_s0, 1  ;;  %7811 = vmatprep.subr.bf16.mxu1 %v8716_v5  ;;  %v8728_v18 = vld [vmem:[%s11538_s8] sm:$0xff]  }
  0x6f   : > { %8050 = vmatprep.subr.bf16.mxu0 %v8728_v18  ;;  %v1457_v53 = vld [vmem:[%s11540_s24] sm:$0x1]  ;;  %s11551_s8 = sld [smem:[#allocation31_spill]]  ;;  %s11560_s24 = smov 80  }
  0x70   : > { %s1250_s1 = scalar_lea.vmem %s11536_s9, %s9550_s18  ;;  %s7524_s7 = sshll.u32 %s9550_s18, 1  ;;  %8051 = vmatpush3.bf16.msra.mxu0 %v8728_v18  ;;  %v1396_v18 = vld [vmem:[%s11526_s3 + $0x8] sm:$0xff] }
  0x71   : > { %v7528_v7 = vld [vmem:[%s1250_s1] ss:$0 sm:$0xff]  ;;  %7812 = vmatpush3.bf16.msra.mxu1 %v8717_v8  ;;  %s1257_s10 = scalar_lea.vmem %s11537_s17, %s7524_s7  ;;  %s11452_s1 = sshll.u32 %s9550_s18, 6  ;;  %8060 = vmatprep.subr.bf16.mxu0 %v9278_v50 }
  0x72   : > { %1287 = vperm.xlu0 %8630, %v7528_v7   ;;  %7813 = vmatprep.subr.bf16.mxu1 %v8718_v9  ;;  %v1411_v16 = vld [vmem:[%s1257_s10] sm:$0x3]  ;;  %s9583_s7 = scalar_lea.vmem %s11539_s5, %s11452_s1  ;;  %s11453_s10 = smov 32  }
  0x73   : > { %v1452_v17 = vrot.slane %v1411_v16, %v1451_v13  ;;  %v1448_v26 = vrot.slane %v1411_v16, %v9575_v24  ;;  %v1271_v28 = vld [vmem:[%s9583_s7] sm:$0xff]  ;;  %v1272_v29 = vld [vmem:[%s9583_s7 + $0x8] sm:$0xff]  ;;  %v1273_v30 = vld [vmem:[%s9583_s7 + $0x10] sm:$0xff]  ;;  %s11544_s1 = sld [smem:[#allocation25_spill]]  ;;  %s11553_s9 = sld [smem:[#allocation29_spill]] }
  0x74   : > { %v1274_v31 = vld [vmem:[%s9583_s7 + $0x18] sm:$0xff]  ;;  %v1275_v32 = vld [vmem:[%s9583_s7 + $0x20] sm:$0xff]  ;;  %v1276_v33 = vld [vmem:[%s9583_s7 + $0x28] sm:$0xff]  ;;  %s11557_s17 = sld [smem:[#allocation30_spill]]  ;;  %s11564_s26 = sld [smem:[#allocation35_spill]] }
  0x75   : > { %7814 = vmatpush3.bf16.msra.mxu1 %v8719_v11  ;;  %v1456_v20 = vpack.c.bf16 %v1452_v17, %v1452_v17  ;;  %v1455_v27 = vpack.c.bf16 %v1448_v26, %v1448_v26  ;;  %v1277_v43 = vld [vmem:[%s9583_s7 + $0x30] sm:$0xff]  ;;  %v1278_v44 = vld [vmem:[%s9583_s7 + $0x38] sm:$0xff]  ;;  %v7529_v1 = vld [vmem:[%s11541_s14] ss:$0 sm:$0xff]  ;;  %s11556_s14 = smov 112   ;;  %s11566_s16 = smov 32  }
  0x76   : > { %7815 = vmatprep.subr.bf16.mxu1 %v8720_v12  ;;  %v1395_v7 = vld [vmem:[%s11526_s3] sm:$0xff]  ;;  %v1398_v11 = vld [vmem:[%s11526_s3 + $0x18] sm:$0xff]  ;;  %s11569_s22 = sld [smem:[#allocation36_spill]]  ;;  %s11577_s4 = sld [smem:[#allocation40_spill]] }
  0x77   : > { %1586 = vmatprep.mubr.bf16.mxu1 %v1456_v20 }
  0x79   : > { %7816 = vmatpush3.bf16.msra.mxu1 %v8721_v14 }
  0x7a   : > { %7817 = vmatprep.subr.bf16.mxu1 %v8722_v15  ;;  %s11565_s2 = smov %s11564_s26 }
  0x7c   : > { %s11570_s29 = smov %s11569_s22 }
  0x7d   : > { %7818 = vmatpush3.bf16.msra.mxu1 %v8723_v19 }
  0x7e   : > { %7819 = vmatprep.subr.bf16.mxu1 %v8724_v21 }
  0x81   : > { %7820 = vmatpush3.bf16.msra.mxu1 %v8725_v22 }
  0x82   : > { %7821 = vmatprep.subr.bf16.mxu1 %v8726_v23 }
  0x85   : > { %7822 = vmatpush3.bf16.msra.mxu1 %v8727_v25  ;;  %v1401_v25 = vld [vmem:[%s11526_s3 + $0x30] sm:$0xff] }
  0x86   : > { %8076 = vmatprep.subr.bf16.mxu1 %v9278_v50 }
  0x88   : > { %1587 = vmatmul.mubr.bf16.vlgmr.msra.gmra.mrb[0].mxu1 %v1455_v27 }
  0x89   : > { %8080 = vmatprep.mubr.msk.bf16.mxu1 %vm9279_vm1, %v9278_v50 }
  0xf1   : > { %v1288_v34 = vpop.permute.xlu0 %1287 }
  0xf2   : > { %v1290_v35 = vmul.f32 %v1288_v34, %v1271_v28  ;;  %v1291_v36 = vmul.f32 %v1288_v34, %v1272_v29  ;;  %v1292_v37 = vmul.f32 %v1288_v34, %v1273_v30  ;;  %v1293_v38 = vmul.f32 %v1288_v34, %v1274_v31 }
  0xf3   : > { %v1294_v39 = vmul.f32 %v1288_v34, %v1275_v32  ;;  %v1295_v40 = vmul.f32 %v1288_v34, %v1276_v33  ;;  %v1296_v46 = vmul.f32 %v1288_v34, %v1277_v43  ;;  %v1297_v47 = vmul.f32 %v1288_v34, %v1278_v44  ;;  %v1399_v33 = vld [vmem:[%s11526_s3 + $0x20] sm:$0xff] }
  0xf4   : > { %v1300_v41 = vpack.c.bf16 %v1291_v36, %v1290_v35  ;;  %v1301_v42 = vpack.c.bf16 %v1293_v38, %v1292_v37  ;;  %v1402_v37 = vld [vmem:[%s11526_s3 + $0x38] sm:$0xff] }
  0xf5   : > { %v1302_v45 = vpack.c.bf16 %v1295_v40, %v1294_v39  ;;  %v1303_v48 = vpack.c.bf16 %v1297_v47, %v1296_v46  ;;  %v8731_v46 = vld [vmem:[%s11525_s12] ss:$8 sps:$4 sm:$0xff]  }
  0xf6   : > { %8052 = vmatprep.mubr.msk.bf16.mxu0 %vm1317_vm0, %v1300_v41  ;;  %v1400_v41 = vld [vmem:[%s11526_s3 + $0x28] sm:$0xff]  ;;  %v9653_v47 = vld [vmem:[%s9398_s25] sm:$0x3f]  ;;  %s7525_s3 = sshll.u32 %s9550_s18, 3 }
  0xf7   : > { %8053 = vmatmul.mubr.msk.bf16.vlgmr.msra.gmra.mrb[0].mxu0 %vm1317_vm0, %v1301_v42  ;;  %s1261_s5 = scalar_lea.vmem %s11543_s21, %s7525_s3  ;;  %s11547_s3 = sld [smem:[#allocation22_spill]] }
  0xf8   : > { %8056 = vmatprep.mubr.msk.bf16.mxu0 %vm1317_vm0, %v1302_v45  ;;  %8061 = vmatpush3.bf16.msra.mxu0 %v8729_v49  ;;  %v8733_v45 = vld [vmem:[%s11525_s12 + $0x4] ss:$8 sps:$4 sm:$0xff]   ;;  %v8734_v49 = vld [vmem:[%s11525_s12 + $0x10] ss:$8 sps:$4 sm:$0xff]   ;;  %s10048_s21 = scalar_lea.vmem %s11558_s19, %s9550_s18  ;;  %s11559_s19 = smov 96  }
  0xf9   : > { %8062 = vmatprep.subr.bf16.mxu0 %v9278_v50 }
  0xfc   : > { %8063 = vmatpush3.bf16.msra.mxu0 %v8730_v51  ;;  %v1899_v51 = vrot.slane %v9653_v47, 1 }
  0xfd   : > { %1710 = vmatprep.subr.bf16.mxu0 %v8733_v45 }
  0xff   : > { %8057 = vmatmul.mubr.msk.bf16.gmra.mrb[4].mxu0 %vm1317_vm0, %v1303_v48  ;;  %v8736_v48 = vld [vmem:[%s11525_s12 + $0x14] ss:$8 sps:$4 sm:$0xff]   ;;  %s11554_s12 = sld [smem:[#allocation28_spill]] }
 0x100   : > { %8064 = vmatprep.mubr.msk.bf16.mxu0 %vm9279_vm1, %v9278_v50 }
 0x15b   : > { %v7823_v52 = vpop.f32.mrb[0].mxu1 }
 0x15c   : > { %v7824_v54 = vpop.f32.mrb[1].mxu1 }
 0x15d   : > { %v7825_v55 = vadd.f32 %v7824_v54, %v7823_v52  ;;  %v7826_v56 = vpop.f32.mrb[2].mxu1  ;;  %v1606_v52 = vld [vmem:[%s11542_s6] sm:$0x1]  ;;  %s11546_s6 = sld [smem:[#allocation23_spill]] }
 0x15e   : > { %v7827_v57 = vpop.f32.mrb[3].mxu1 }
 0x15f   : > { %v1589_v58 = vadd.f32 %v7825_v55, %v1457_v53 }
 0x161   : > { %v7551_v59 = vmul.f32 -1.442695, %v1589_v58 }
 0x163   : > { %8783 = vpow2.f32 %v7551_v59  ;;  %v8741_v10 = vld [vmem:[%s11546_s6] sm:$0xff]  }
 0x164   : > { %8077 = vmatpush3.bf16.msra.mxu1 %v8741_v10 }
 0x165   : > { %8078 = vmatprep.subr.bf16.mxu1 %v9278_v50 }
 0x16d   : > { %v8784_v60 = vpop.eup %8783 }
 0x16e   : > { %v1597_v61 = vadd.f32 1.0, %v8784_v60 }
 0x170   : > { %8785 = vrcp.f32 %v1597_v61 }
 0x17a   : > { %v8786_v62 = vpop.eup %8785 }
 0x17b   : > { %v1600_v63 = vmul.f32 %v8786_v62, %v1589_v58 }
 0x17d   : > { %v1605_v0 = vpack.c.bf16 %v1600_v63, %v1600_v63 }
 0x17f   : > { %8065 = vmatmul.mubr.msk.bf16.vlgmr.msra.gmra.mrb[8].mxu0 %vm1619_vm2, %v1605_v0 }
 0x180   : > { %1742 = vmatprep.mubr.bf16.mxu0 %v9277_v2  ;;  %1711 = vmatpush1.bf16.msra.mxu0 %v8731_v46 }
 0x181   : > { %1712 = vmatprep.subr.bf16.mxu0 %v8736_v48 }
 0x184   : > { %1713 = vmatpush1.bf16.msra.mxu0 %v8734_v49 }
 0x185   : > { %8068 = vmatprep.subr.bf16.mxu0 %v9278_v50 }
 0x1ca   : > { %v8054_v3 = vpop.f32.mrb[0].mxu0 }
 0x1cb   : > { %v1373_v5 = vadd.f32 %v8054_v3, %v7529_v1  ;;  %v1364_v6 = vpop.f32.mrb[1].mxu0 }
 0x1cc   : > { %v1365_v8 = vadd.f32 %v7529_v1, %v1364_v6  ;;  %v8055_v9 = vpop.f32.mrb[2].mxu0 }
 0x1cd   : > { %v9613_v12 = vadd.f32 %v1397_v4, %v1373_v5  ;;  %v1376_v14 = vadd.f32 %v8055_v9, %v7529_v1  ;;  %v1367_v15 = vpop.f32.mrb[3].mxu0 }
 0x1ce   : > { %v9615_v16 = vadd.f32 %v1395_v7, %v1365_v8  ;;  %v1368_v17 = vadd.f32 %v7529_v1, %v1367_v15 }
 0x1cf   : > { %v9618_v19 = vadd.f32 %v1398_v11, %v1376_v14  ;;  %v1928_v2 = vsel %vm1619_vm2, %v9613_v12, 0.0 }
 0x1d0   : > { %1929 = vadd.xlane.f32.xlu1 %v1928_v2  ;;  %v1922_v20 = vsel %vm1619_vm2, %v9615_v16, 0.0  ;;  %v9624_v21 = vadd.f32 %v1396_v18, %v1368_v17 }
 0x1d1   : > { %1923 = vadd.xlane.f32.xlu0 %v1922_v20  ;;  %v1931_v22 = vsel %vm1619_vm2, %v9618_v19, 0.0 }
 0x1d2   : > { %v8058_v23 = vpop.f32.mrb[4].mxu0  ;;  %v1925_v30 = vsel %vm1619_vm2, %v9624_v21, 0.0 }
 0x1d3   : > { %v1389_v26 = vadd.f32 %v8058_v23, %v7529_v1  ;;  %v1380_v27 = vpop.f32.mrb[5].mxu0 }
 0x1d4   : > { %1932 = vadd.xlane.f32.xlu1 %v1931_v22  ;;  %v8059_v28 = vpop.f32.mrb[6].mxu0  ;;  %v1381_v31 = vadd.f32 %v7529_v1, %v1380_v27 }
 0x1d5   : > { %v9629_v29 = vadd.f32 %v1401_v25, %v1389_v26  ;;  %v1383_v32 = vpop.f32.mrb[7].mxu0  ;;  %v1392_v36 = vadd.f32 %v8059_v28, %v7529_v1 }
 0x1d6   : > { %v9634_v34 = vadd.f32 %v1399_v33, %v1381_v31  ;;  %v1384_v40 = vadd.f32 %v7529_v1, %v1383_v32 }
 0x1d7   : > { %v1940_v35 = vsel %vm1619_vm2, %v9629_v29, 0.0  ;;  %v9639_v38 = vadd.f32 %v1402_v37, %v1392_v36 }
 0x1d8   : > { %1926 = vadd.xlane.f32.xlu1 %v1925_v30  ;;  %v1934_v39 = vsel %vm1619_vm2, %v9634_v34, 0.0  ;;  %v9644_v42 = vadd.f32 %v1400_v41, %v1384_v40 }
 0x1d9   : > { %v1943_v43 = vsel %vm1619_vm2, %v9639_v38, 0.0 }
 0x1da   : > { %v1937_v44 = vsel %vm1619_vm2, %v9644_v42, 0.0 }
 0x1dc   : > { %1941 = vadd.xlane.f32.xlu1 %v1940_v35 }
 0x1e0   : > { %1935 = vadd.xlane.f32.xlu1 %v1934_v39 }
 0x1e4   : > { %1944 = vadd.xlane.f32.xlu1 %v1943_v43 }
 0x1e8   : > { %1938 = vadd.xlane.f32.xlu1 %v1937_v44 }
 0x1f9   : > { %1900 = vrot.lane.b32.xlu1 %v1899_v51, %s11453_s10  ;;  %s11545_s10 = sld [smem:[#allocation20_spill]] }
 0x252   : > { %v1657_v53 = vpop.f32.mrb[8].mxu0 }
 0x253   : > { %v9661_v54 = vadd.f32 %v1657_v53, %v1606_v52  ;;  %v8066_v55 = vpop.f32.mrb[9].mxu0  ;;  %v8737_v53 = vld [vmem:[%s11523_s27] sm:$0xff]  }
 0x254   : > { %v1660_v56 = vpop.f32.mrb[10].mxu0  ;;  %v8738_v55 = vld [vmem:[%s11523_s27 + $0x8] sm:$0xff]   ;;  %s11561_s27 = sld [smem:[#allocation33_spill]] }
 0x255   : > { %v7555_v57 = vmul.f32 -1.442695, %v9661_v54  ;;  %v8067_v58 = vpop.f32.mrb[11].mxu0  ;;  %v1751_v56 = vld [vmem:[%s1261_s5] sm:$0xff]  ;;  %s11456_s5 = smov 96  }
 0x256   : > { %v1756_v58 = vpack.c.bf16 %v1751_v56, %v1751_v56 }
 0x257   : > { %8787 = vpow2.f32 %v7555_v57  ;;  %v8739_v57 = vld [vmem:[%s11544_s1] sm:$0xff]  }
 0x25d   : > { %v1930_v59 = vpop.xlane.xlu1 %1929 }
 0x25e   : > { %v1949_v60 = vmul.f32 0.03125, %v1930_v59  ;;  %v1924_v61 = vpop.xlane.xlu0 %1923  ;;  %v1675_v59 = vld [vmem:[%s11545_s10] sm:$0x3]  ;;  %s11548_s10 = sld [smem:[#allocation26_spill]] }
 0x25f   : > { %v1947_v62 = vmul.f32 0.03125, %v1924_v61  ;;  %v1700_v61 = vrot.slane %v1675_v59, %v9575_v24 }
 0x260   : > { %v9665_v63 = vsub.f32 %v9613_v12, %v1949_v60  ;;  %v8740_v60 = vld [vmem:[%s11544_s1 + $0x8] sm:$0xff]  }
 0x261   : > { %v9668_v0 = vsub.f32 %v9615_v16, %v1947_v62  ;;  %v1933_v1 = vpop.xlane.xlu1 %1932  ;;  %v8788_v9 = vpop.eup %8787  ;;  %v1704_v62 = vrot.slane %v1675_v59, %v1451_v13  ;;  %v8742_v13 = vld [vmem:[%s11546_s6 + $0x8] sm:$0xff]   ;;  %s11467_s6 = smov 16  }
 0x262   : > { %v1950_v3 = vmul.f32 0.03125, %v1933_v1  ;;  %v1965_v4 = vmul.f32 %v9665_v63, %v9665_v63  ;;  %v1666_v15 = vadd.f32 1.0, %v8788_v9  ;;  %8079 = vmatpush3.bf16.msra.mxu1 %v8742_v13 }
 0x263   : > { %v1963_v7 = vmul.f32 %v9668_v0, %v9668_v0 }
 0x264   : > { %v9673_v5 = vsub.f32 %v9618_v19, %v1950_v3  ;;  %v1977_v6 = vsel %vm1619_vm2, %v1965_v4, 0.0  ;;  %8789 = vrcp.f32 %v1666_v15 }
 0x265   : > { %v1927_v8 = vpop.xlane.xlu1 %1926  ;;  %1978 = vadd.xlane.f32.xlu0 %v1977_v6  ;;  %v1971_v2 = vsel %vm1619_vm2, %v1963_v7, 0.0 }
 0x266   : > { %v1948_v11 = vmul.f32 0.03125, %v1927_v8  ;;  %v1966_v14 = vmul.f32 %v9673_v5, %v9673_v5 }
 0x268   : > { %v9681_v17 = vsub.f32 %v9624_v21, %v1948_v11  ;;  %v1980_v18 = vsel %vm1619_vm2, %v1966_v14, 0.0 }
 0x269   : > { %1981 = vadd.xlane.f32.xlu1 %v1980_v18  ;;  %v1942_v20 = vpop.xlane.xlu1 %1941  ;;  %1972 = vadd.xlane.f32.xlu0 %v1971_v2 }
 0x26a   : > { %v1953_v22 = vmul.f32 0.03125, %v1942_v20  ;;  %v1964_v23 = vmul.f32 %v9681_v17, %v9681_v17 }
 0x26c   : > { %v9688_v25 = vsub.f32 %v9629_v29, %v1953_v22  ;;  %v1974_v26 = vsel %vm1619_vm2, %v1964_v23, 0.0 }
 0x26d   : > { %v1936_v27 = vpop.xlane.xlu1 %1935  ;;  %1975 = vadd.xlane.f32.xlu0 %v1974_v26 }
 0x26e   : > { %v1951_v28 = vmul.f32 0.03125, %v1936_v27  ;;  %v1969_v30 = vmul.f32 %v9688_v25, %v9688_v25  ;;  %v8790_v37 = vpop.eup %8789 }
 0x26f   : > { %v1669_v39 = vmul.f32 %v8790_v37, %v9661_v54 }
 0x270   : > { %v9694_v31 = vsub.f32 %v9634_v34, %v1951_v28  ;;  %v1989_v32 = vsel %vm1619_vm2, %v1969_v30, 0.0 }
 0x271   : > { %v1945_v33 = vpop.xlane.xlu1 %1944  ;;  %1990 = vadd.xlane.f32.xlu0 %v1989_v32  ;;  %v1674_v44 = vpack.c.bf16 %v1669_v39, %v1669_v39 }
 0x272   : > { %v1954_v35 = vmul.f32 0.03125, %v1945_v33  ;;  %v1967_v36 = vmul.f32 %v9694_v31, %v9694_v31 }
 0x273   : > { %7560 = vmatmul.mubr.msk.bf16.vlgmr.msra.gmra.mrb[12].mxu0 %vm1619_vm2, %v1674_v44 }
 0x274   : > { %v9701_v40 = vsub.f32 %v9639_v38, %v1954_v35  ;;  %v1983_v41 = vsel %vm1619_vm2, %v1967_v36, 0.0  ;;  %8072 = vmatprep.mubr.msk.bf16.mxu0 %vm9279_vm1, %v9278_v50  ;;  %8069 = vmatpush3.bf16.msra.mxu0 %v8737_v53  ;;  %v7561_v35 = vld [vmem:[%s11547_s3] ss:$0 sm:$0xff]  ;;  %s11458_s3 = smov 64  }
 0x275   : > { %v1939_v43 = vpop.xlane.xlu1 %1938  ;;  %1984 = vadd.xlane.f32.xlu0 %v1983_v41  ;;  %8070 = vmatprep.subr.bf16.mxu0 %v9278_v50 }
 0x276   : > { %v1952_v45 = vmul.f32 0.03125, %v1939_v43  ;;  %v1970_v46 = vmul.f32 %v9701_v40, %v9701_v40 }
 0x278   : > { %v9707_v48 = vsub.f32 %v9644_v42, %v1952_v45  ;;  %v1992_v49 = vsel %vm1619_vm2, %v1970_v46, 0.0  ;;  %8071 = vmatpush3.bf16.msra.mxu0 %v8738_v55 }
 0x279   : > { %1993 = vadd.xlane.f32.xlu0 %v1992_v49  ;;  %8084 = vmatprep.subr.bf16.mxu0 %v8739_v57  ;;  %v1901_v6 = vpop.permute.xlu1 %1900 }
 0x27a   : > { %v1968_v51 = vmul.f32 %v9707_v48, %v9707_v48 }
 0x27b   : > { %8073 = vmatmul.mubr.msk.bf16.vlgmr.msra.gmra.mrb[16].mxu0 %vm1619_vm2, %v1756_v58 }
 0x27c   : > { %v1986_v52 = vsel %vm1619_vm2, %v1968_v51, 0.0  ;;  %8085 = vmatpush3.bf16.msra.mxu0 %v8739_v57 }
 0x27d   : > { %1987 = vadd.xlane.f32.xlu0 %v1986_v52  ;;  %8086 = vmatprep.subr.bf16.mxu0 %v8740_v60 }
 0x280   : > { %8087 = vmatpush3.bf16.msra.mxu0 %v8740_v60 }
 0x2f2   : > { %v1979_v18 = vpop.xlane.xlu0 %1978 }
 0x2f3   : > { %v1997_v28 = vmul.f32 0.03125, %v1979_v18 }
 0x2f5   : > { %v2005_v37 = vadd.f32 1e-06, %v1997_v28 }
 0x2f6   : > { %v1973_v2 = vpop.xlane.xlu0 %1972  ;;  %v1982_v27 = vpop.xlane.xlu1 %1981 }
 0x2f7   : > { %v1998_v30 = vmul.f32 0.03125, %v1982_v27  ;;  %v1995_v32 = vmul.f32 0.03125, %v1973_v2  ;;  %8791 = vrsqrt.f32 %v2005_v37 }
 0x2f9   : > { %v2006_v43 = vadd.f32 1e-06, %v1998_v30  ;;  %v2003_v49 = vadd.f32 1e-06, %v1995_v32 }
 0x2fa   : > { %v1976_v20 = vpop.xlane.xlu0 %1975 }
 0x2fb   : > { %v1996_v36 = vmul.f32 0.03125, %v1976_v20  ;;  %8793 = vrsqrt.f32 %v2006_v43 }
 0x2fc   : > { %8795 = vrsqrt.f32 %v2003_v49 }
 0x2fd   : > { %v2004_v52 = vadd.f32 1e-06, %v1996_v36 }
 0x2fe   : > { %v1991_v22 = vpop.xlane.xlu0 %1990 }
 0x2ff   : > { %v2001_v56 = vmul.f32 0.03125, %v1991_v22  ;;  %8797 = vrsqrt.f32 %v2004_v52 }
 0x302   : > { %v1985_v23 = vpop.xlane.xlu0 %1984 }
 0x303   : > { %v1999_v39 = vmul.f32 0.03125, %v1985_v23 }
 0x305   : > { %v2007_v57 = vadd.f32 1e-06, %v1999_v39 }
 0x306   : > { %v1994_v26 = vpop.xlane.xlu0 %1993 }
 0x307   : > { %v2002_v58 = vmul.f32 0.03125, %v1994_v26  ;;  %8799 = vrsqrt.f32 %v2007_v57 }
 0x30a   : > { %v1988_v33 = vpop.xlane.xlu0 %1987 }
 0x30b   : > { %v2000_v44 = vmul.f32 0.03125, %v1988_v33 }
 0x30d   : > { %v2008_v59 = vadd.f32 1e-06, %v2000_v44 }
 0x30f   : > { %8801 = vrsqrt.f32 %v2008_v59 }
 0x346   : > { %v1744_v1 = vpop.f32.mrb[12].mxu0 }
 0x347   : > { %v9728_v3 = vadd.f32 %v1744_v1, %v1700_v61  ;;  %v1746_v4 = vpop.f32.mrb[13].mxu0  ;;  %v2010_v1 = vadd.f32 1e-06, %v2002_v58 }
 0x348   : > { %v9730_v7 = vadd.f32 %v1746_v4, %v1704_v62  ;;  %v1748_v8 = vpop.f32.mrb[14].mxu0  ;;  %v2009_v62 = vadd.f32 1e-06, %v2001_v56 }
 0x349   : > { %v1749_v9 = vpop.f32.mrb[15].mxu0  ;;  %v1903_v11 = vadd.f32 %v1901_v6, %v9728_v3  ;;  %v8792_v8 = vpop.eup %8791  ;;  %v1897_v10 = vadd.f32 %v9653_v47, %v9728_v3 }
 0x34a   : > { %8803 = vrsqrt.f32 %v2009_v62  ;;  %v8794_v9 = vpop.eup %8793  ;;  %v2021_v18 = vmul.f32 %v8792_v8, %v9665_v63 }
 0x34b   : > { %v2027_v14 = vadd.f32 1.0, %v1903_v11  ;;  %8805 = vrsqrt.f32 %v2010_v1  ;;  %v8796_v11 = vpop.eup %8795  ;;  %v2022_v2 = vmul.f32 %v8794_v9, %v9673_v5  ;;  %v2047_v26 = vrot.slane %v1897_v10, %v9575_v24 }
 0x34c   : > { %v2019_v20 = vmul.f32 %v8796_v11, %v9668_v0 }
 0x34d   : > { %v2031_v15 = vrot.slane %v2027_v14, %v9575_v24  ;;  %v8798_v14 = vpop.eup %8797 }
 0x34e   : > { %v1813_v41 = vpop.f32.mrb[16].mxu0  ;;  %v2020_v22 = vmul.f32 %v8798_v14, %v9681_v17 }
 0x34f   : > { %2033 = vrot.lane.b32.xlu0 %v2031_v15, %s11456_s5  ;;  %v9739_v45 = vadd.f32 %v7561_v35, %v1813_v41  ;;  %v8074_v46 = vpop.f32.mrb[17].mxu0  ;;  %v8800_v15 = vpop.eup %8799 }
 0x350   : > { %v1816_v51 = vpop.f32.mrb[18].mxu0  ;;  %v8802_v13 = vpop.eup %8801  ;;  %v2023_v28 = vmul.f32 %v8800_v15, %v9694_v31 }
 0x351   : > { %v1819_v53 = vmul.f32 %v9739_v45, %v9739_v45  ;;  %v8075_v55 = vpop.f32.mrb[19].mxu0  ;;  %v2024_v30 = vmul.f32 %v8802_v13, %v9707_v48 }
 0x353   : > { %v1820_v60 = vmul.f32 %v1819_v53, %v9739_v45 }
 0x354   : > { %v8804_v23 = vpop.eup %8803 }
 0x355   : > { %v1821_v61 = vmul.f32 0.044715, %v1820_v60  ;;  %v8806_v32 = vpop.eup %8805  ;;  %v2025_v46 = vmul.f32 %v8804_v23, %v9688_v25 }
 0x356   : > { %v2026_v31 = vmul.f32 %v8806_v32, %v9701_v40 }
 0x357   : > { %v1822_v4 = vadd.f32 %v1821_v61, %v9739_v45  ;;  %v7569_v61 = vld [vmem:[%s11548_s10] ss:$0 sm:$0xff] }
 0x359   : > { %v1823_v6 = vmul.f32 0.7978846, %v1822_v4 }
 0x35b   : > { %8807 = vtanh.f32 %v1823_v6 }
 0x365   : > { %v8808_v63 = vpop.eup %8807 }
 0x366   : > { %v1825_v51 = vadd.f32 1.0, %v8808_v63 }
 0x368   : > { %v1826_v56 = vmul.f32 0.5, %v1825_v51 }
 0x36a   : > { %v1827_v57 = vmul.f32 %v1826_v56, %v9739_v45 }
 0x36c   : > { %v1832_v59 = vpack.c.bf16 %v1827_v57, %v1827_v57 }
 0x36e   : > { %8081 = vmatmul.mubr.msk.bf16.vlgmr.msra.gmra.mrb[4].mxu1 %vm1619_vm2, %v1832_v59 }
 0x3c1   : > { %v2034_v27 = vpop.permute.xlu0 %2033 }
 0x3c2   : > { %v2036_v33 = vmul.f32 %v2034_v27, %v2019_v20  ;;  %v2037_v47 = vmul.f32 %v2034_v27, %v2020_v22  ;;  %v2038_v35 = vmul.f32 %v2034_v27, %v2021_v18  ;;  %v2039_v36 = vmul.f32 %v2034_v27, %v2022_v2 }
 0x3c3   : > { %v2040_v37 = vmul.f32 %v2034_v27, %v2023_v28  ;;  %v2041_v5 = vmul.f32 %v2034_v27, %v2024_v30  ;;  %v2042_v52 = vmul.f32 %v2034_v27, %v2025_v46  ;;  %v2043_v53 = vmul.f32 %v2034_v27, %v2026_v31 }
 0x3c4   : > { %v2048_v39 = vadd.f32 %v2047_v26, %v2036_v33  ;;  %v2049_v0 = vadd.f32 %v2047_v26, %v2037_v47  ;;  %v2050_v41 = vadd.f32 %v2047_v26, %v2038_v35  ;;  %v2051_v17 = vadd.f32 %v2047_v26, %v2039_v36 }
 0x3c5   : > { %v2052_v43 = vadd.f32 %v2047_v26, %v2040_v37  ;;  %v2053_v44 = vadd.f32 %v2047_v26, %v2041_v5  ;;  %v2054_v58 = vadd.f32 %v2047_v26, %v2042_v52  ;;  %v2055_v25 = vadd.f32 %v2047_v26, %v2043_v53 }
 0x3c6   : > { %v2060_v49 = vpack.c.bf16 %v2049_v0, %v2048_v39  ;;  %v2061_v48 = vpack.c.bf16 %v2051_v17, %v2050_v41 }
 0x3c7   : > { %v2062_v55 = vpack.c.bf16 %v2053_v44, %v2052_v43  ;;  %v2063_v40 = vpack.c.bf16 %v2055_v25, %v2054_v58 }
 0x3c8   : > { %8088 = vmatprep.mubr.msk.bf16.mxu0 %vm1619_vm2, %v2060_v49 }
 0x3c9   : > { %8089 = vmatmul.mubr.msk.bf16.vlgmr.msra.gmra.mrb[20].mxu0 %vm1619_vm2, %v2061_v48 }
 0x3ca   : > { %8092 = vmatprep.mubr.msk.bf16.mxu0 %vm1619_vm2, %v2062_v55 }
 0x3d1   : > { %8093 = vmatmul.mubr.msk.bf16.gmra.mrb[24].mxu0 %vm1619_vm2, %v2063_v40 }
 0x441   : > { %v9781_v28 = vpop.f32.mrb[4].mxu1 }
 0x442   : > { %v8082_v30 = vpop.f32.mrb[5].mxu1 }
 0x443   : > { %v1892_v32 = vpop.f32.mrb[6].mxu1 }
 0x444   : > { %v8083_v33 = vpop.f32.mrb[7].mxu1 }
 0x49c   : > { %v8090_v60 = vpop.f32.mrb[20].mxu0 }
 0x49d   : > { %v2129_v62 = vpop.f32.mrb[21].mxu0  ;;  %v2138_v4 = vadd.f32 %v8090_v60, %v7569_v61 }
 0x49e   : > { %v8091_v1 = vpop.f32.mrb[22].mxu0  ;;  %v2130_v9 = vadd.f32 %v7569_v61, %v2129_v62 }
 0x49f   : > { %v2141_v6 = vadd.f32 %v8091_v1, %v7569_v61  ;;  %v2132_v8 = vpop.f32.mrb[23].mxu0 }
 0x4a0   : > { %v2133_v11 = vadd.f32 %v7569_v61, %v2132_v8 }
 0x4a1   : > { %v9763_v14 = vpack.c.bf16 %v2141_v6, %v2138_v4 }
 0x4a2   : > { %v9765_v45 = vpack.c.bf16 %v2133_v11, %v2130_v9 }
 0x4a3   : > { %2170 = vrot.lane.b32.xlu0 %v9763_v14, %s11456_s5 }
 0x4a4   : > { %v8094_v15 = vpop.f32.mrb[24].mxu0  ;;  %2168 = vrot.lane.b32.xlu1 %v9765_v45, %s11456_s5  ;;  %8104 = vmatprep.mubr.msk.bf16.mxu1 %vm1317_vm0, %v9765_v45 }
 0x4a5   : > { %v2145_v10 = vpop.f32.mrb[25].mxu0  ;;  %v2154_v18 = vadd.f32 %v8094_v15, %v7569_v61 }
 0x4a6   : > { %v8095_v13 = vpop.f32.mrb[26].mxu0  ;;  %v2146_v22 = vadd.f32 %v7569_v61, %v2145_v10 }
 0x4a7   : > { %v2157_v2 = vadd.f32 %v8095_v13, %v7569_v61  ;;  %v2148_v20 = vpop.f32.mrb[27].mxu0 }
 0x4a8   : > { %v2149_v23 = vadd.f32 %v7569_v61, %v2148_v20 }
 0x4a9   : > { %v9773_v26 = vpack.c.bf16 %v2157_v2, %v2154_v18 }
 0x4aa   : > { %v9775_v27 = vpack.c.bf16 %v2149_v23, %v2146_v22 }
 0x4ac   : > { %2172 = vrot.lane.b32.xlu0 %v9775_v27, %s11456_s5 }
 0x4b0   : > { %2174 = vrot.lane.b32.xlu0 %v9773_v26, %s11456_s5  ;;  %s11460_s5 = smov 80  }
 0x515   : > { %v2171_v36 = vpop.permute.xlu0 %2170 }
 0x516   : > { %v2169_v47 = vpop.permute.xlu1 %2168  ;;  %v2192_v63 = vsel %vm1317_vm0, %v2171_v36, 0 }
 0x517   : > { %8516 = vmatprep.subr.msk.bf16.mxu1 %vm1317_vm0, %v2169_v47  ;;  %v2189_v35 = vsel %vm1317_vm0, %v2169_v47, 0 }
 0x518   : > { %8097 = vmatpush3.bf16.xpose.msra.mxu1 %v2189_v35 }
 0x519   : > { %8517 = vmatprep.subr.msk.bf16.mxu1 %vm1317_vm0, %v2171_v36 }
 0x51e   : > { %v2173_v37 = vpop.permute.xlu0 %2172 }
 0x51f   : > { %v2195_v5 = vsel %vm1317_vm0, %v2173_v37, 0 }
 0x520   : > { %8099 = vmatpush3.bf16.xpose.msra.mxu1 %v2192_v63 }
 0x521   : > { %8518 = vmatprep.subr.msk.bf16.mxu1 %vm1317_vm0, %v2173_v37 }
 0x522   : > { %v2175_v39 = vpop.permute.xlu0 %2174 }
 0x523   : > { %v2198_v0 = vsel %vm1317_vm0, %v2175_v39, 0 }
 0x528   : > { %8101 = vmatpush3.bf16.xpose.msra.mxu1 %v2195_v5 }
 0x529   : > { %8519 = vmatprep.subr.msk.bf16.mxu1 %vm1317_vm0, %v2175_v39 }
 0x530   : > { %8103 = vmatpush3.bf16.xpose.msra.mxu1 %v2198_v0 }
 0x537   : > { %8105 = vmatmul.mubr.msk.bf16.vlgmr.msra.gmra.mrb[8].mxu1 %vm1317_vm0, %v9763_v14 }
 0x538   : > { %8108 = vmatprep.mubr.msk.bf16.mxu1 %vm1317_vm0, %v9775_v27 }
 0x53f   : > { %8109 = vmatmul.mubr.msk.bf16.gmra.mrb[12].mxu1 %vm1317_vm0, %v9773_v26 }
 0x60a   : > { %v8106_v41 = vpop.f32.mrb[8].mxu1 }
 0x60b   : > { %v2267_v17 = vmul.f32 0.25, %v8106_v41  ;;  %v2234_v43 = vpop.f32.mrb[9].mxu1 }
 0x60c   : > { %v8107_v44 = vpop.f32.mrb[10].mxu1  ;;  %v2265_v46 = vmul.f32 0.25, %v2234_v43 }
 0x60d   : > { %v2237_v31 = vpop.f32.mrb[11].mxu1  ;;  %v2280_v49 = vsel %vm2273_vm3, %v2267_v17, -inf  ;;  %v2268_v52 = vmul.f32 0.25, %v8107_v44 }
 0x60e   : > { %v2266_v48 = vmul.f32 0.25, %v2237_v31  ;;  %2281 = vmax.xlane.f32.xlu0 %v2280_v49  ;;  %v2274_v53 = vsel %vm2273_vm3, %v2265_v46, -inf }
 0x60f   : > { %v2283_v40 = vsel %vm2273_vm3, %v2268_v52, -inf }
 0x610   : > { %v2277_v51 = vsel %vm2273_vm3, %v2266_v48, -inf }
 0x611   : > { %2278 = vmax.xlane.f32.xlu1 %v2277_v51 }
 0x612   : > { %2275 = vmax.xlane.f32.xlu0 %v2274_v53  ;;  %v8110_v55 = vpop.f32.mrb[12].mxu1 }
 0x613   : > { %v2271_v56 = vmul.f32 0.25, %v8110_v55  ;;  %v2250_v57 = vpop.f32.mrb[13].mxu1 }
 0x614   : > { %v8111_v58 = vpop.f32.mrb[14].mxu1  ;;  %v2269_v25 = vmul.f32 0.25, %v2250_v57 }
 0x615   : > { %v2253_v59 = vpop.f32.mrb[15].mxu1  ;;  %v2292_v60 = vsel %vm2273_vm3, %v2271_v56, -inf  ;;  %v2272_v1 = vmul.f32 0.25, %v8111_v58 }
 0x616   : > { %v9802_v61 = vmul.f32 0.25, %v2253_v59  ;;  %2284 = vmax.xlane.f32.xlu0 %v2283_v40  ;;  %2293 = vmax.xlane.f32.xlu1 %v2292_v60  ;;  %v2286_v4 = vsel %vm2273_vm3, %v2269_v25, -inf }
 0x617   : > { %v2295_v6 = vsel %vm2273_vm3, %v2272_v1, -inf }
 0x618   : > { %v2289_v62 = vsel %vm2273_vm3, %v9802_v61, -inf }
 0x61a   : > { %2287 = vmax.xlane.f32.xlu1 %v2286_v4  ;;  %2290 = vmax.xlane.f32.xlu0 %v2289_v62 }
 0x61e   : > { %2296 = vmax.xlane.f32.xlu0 %v2295_v6 }
 0x62b   : > { %2366 = vrot.lane.b32.xlu1 %v9765_v45, %s11458_s3 }
 0x62f   : > { %2370 = vrot.lane.b32.xlu1 %v9775_v27, %s11458_s3 }
 0x633   : > { %2372 = vrot.lane.b32.xlu1 %v9773_v26, %s11458_s3 }
 0x634   : > { %2368 = vrot.lane.b32.xlu0 %v9763_v14, %s11458_s3  ;;  %s11462_s3 = smov 112  }
 0x637   : > { %2463 = vrot.lane.b32.xlu1 %v9765_v45, %s11460_s5 }
 0x69b   : > { %v2282_v8 = vpop.xlane.xlu0 %2281 }
 0x69c   : > { %v2300_v9 = vsub.f32 %v2267_v17, %v2282_v8 }
 0x69e   : > { %v2310_v11 = vmul.f32 1.442695, %v2300_v9  ;;  %v2279_v15 = vpop.xlane.xlu1 %2278 }
 0x69f   : > { %v2276_v10 = vpop.xlane.xlu0 %2275  ;;  %v2299_v18 = vsub.f32 %v2266_v48, %v2279_v15 }
 0x6a0   : > { %8809 = vpow2.f32 %v2310_v11  ;;  %v2298_v13 = vsub.f32 %v2265_v46, %v2276_v10 }
 0x6a1   : > { %v2308_v30 = vmul.f32 1.442695, %v2299_v18 }
 0x6a2   : > { %v2306_v2 = vmul.f32 1.442695, %v2298_v13 }
 0x6a3   : > { %v2285_v20 = vpop.xlane.xlu0 %2284  ;;  %v2294_v22 = vpop.xlane.xlu1 %2293 }
 0x6a4   : > { %8811 = vpow2.f32 %v2306_v2  ;;  %v2301_v23 = vsub.f32 %v2268_v52, %v2285_v20  ;;  %v2304_v33 = vsub.f32 %v2271_v56, %v2294_v22 }
 0x6a6   : > { %v2312_v32 = vmul.f32 1.442695, %v2301_v23  ;;  %v2318_v63 = vmul.f32 1.442695, %v2304_v33 }
 0x6a7   : > { %v2288_v47 = vpop.xlane.xlu1 %2287  ;;  %v2291_v35 = vpop.xlane.xlu0 %2290 }
 0x6a8   : > { %8813 = vpow2.f32 %v2312_v32  ;;  %v2302_v37 = vsub.f32 %v2269_v25, %v2288_v47  ;;  %v2303_v62 = vsub.f32 %v9802_v61, %v2291_v35 }
 0x6a9   : > { %8815 = vpow2.f32 %v2308_v30 }
 0x6aa   : > { %v9818_v36 = vpop.eup %8809  ;;  %8817 = vpow2.f32 %v2318_v63  ;;  %v2314_v17 = vmul.f32 1.442695, %v2302_v37 }
 0x6ab   : > { %v2367_v5 = vpop.permute.xlu1 %2366  ;;  %v2297_v39 = vpop.xlane.xlu0 %2296  ;;  %v2328_v0 = vsel %vm2273_vm3, %v9818_v36, 0.0 }
 0x6ac   : > { %2329 = vadd.xlane.f32.xlu1 %v2328_v0  ;;  %8112 = vmatprep.subr.bf16.mxu0 %v2367_v5  ;;  %v2305_v43 = vsub.f32 %v2272_v1, %v2297_v39  ;;  %8819 = vpow2.f32 %v2314_v17  ;;  %v2316_v1 = vmul.f32 1.442695, %v2303_v62 }
 0x6ad   : > { %8113 = vmatpush3.bf16.msra.mxu0 %v2367_v5 }
 0x6ae   : > { %v9822_v41 = vpop.eup %8811  ;;  %v2320_v48 = vmul.f32 1.442695, %v2305_v43 }
 0x6af   : > { %v2371_v44 = vpop.permute.xlu1 %2370  ;;  %v2369_v46 = vpop.permute.xlu0 %2368  ;;  %v2322_v31 = vsel %vm2273_vm3, %v9822_v41, 0.0 }
 0x6b0   : > { %2323 = vadd.xlane.f32.xlu1 %v2322_v31  ;;  %8114 = vmatprep.subr.bf16.mxu0 %v2369_v46  ;;  %8821 = vpow2.f32 %v2320_v48 }
 0x6b1   : > { %8115 = vmatpush3.bf16.msra.mxu0 %v2369_v46  ;;  %8823 = vpow2.f32 %v2316_v1 }
 0x6b2   : > { %v8814_v49 = vpop.eup %8813  ;;  %8116 = vmatprep.subr.bf16.mxu0 %v2371_v44 }
 0x6b3   : > { %v2373_v51 = vpop.permute.xlu1 %2372  ;;  %v2331_v52 = vsel %vm2273_vm3, %v8814_v49, 0.0  ;;  %v8816_v53 = vpop.eup %8815 }
 0x6b4   : > { %2332 = vadd.xlane.f32.xlu0 %v2331_v52  ;;  %v2325_v55 = vsel %vm2273_vm3, %v8816_v53, 0.0  ;;  %v9828_v56 = vpop.eup %8817 }
 0x6b5   : > { %8117 = vmatpush3.bf16.msra.mxu0 %v2371_v44  ;;  %v2340_v58 = vsel %vm2273_vm3, %v9828_v56, 0.0 }
 0x6b6   : > { %8118 = vmatprep.subr.bf16.mxu0 %v2373_v51  ;;  %v9833_v25 = vpop.eup %8819 }
 0x6b7   : > { %v2464_v57 = vpop.permute.xlu1 %2463  ;;  %v2334_v59 = vsel %vm2273_vm3, %v9833_v25, 0.0 }
 0x6b8   : > { %2326 = vadd.xlane.f32.xlu0 %v2325_v55  ;;  %v2484_v37 = vsel %vm1317_vm0, %v2464_v57, 0 }
 0x6b9   : > { %8119 = vmatpush3.bf16.msra.mxu0 %v2373_v51 }
 0x6ba   : > { %8520 = vmatprep.subr.msk.bf16.mxu0 %vm1317_vm0, %v2464_v57  ;;  %v9837_v40 = vpop.eup %8821 }
 0x6bb   : > { %v2343_v60 = vsel %vm2273_vm3, %v9837_v40, 0.0  ;;  %v8824_v4 = vpop.eup %8823 }
 0x6bc   : > { %2341 = vadd.xlane.f32.xlu0 %v2340_v58  ;;  %v2337_v6 = vsel %vm2273_vm3, %v8824_v4, 0.0 }
 0x6c0   : > { %2335 = vadd.xlane.f32.xlu0 %v2334_v59 }
 0x6c1   : > { %2467 = vrot.lane.b32.xlu1 %v9775_v27, %s11460_s5 }
 0x6c4   : > { %2344 = vadd.xlane.f32.xlu0 %v2343_v60 }
 0x6da   : > { %2465 = vrot.lane.b32.xlu0 %v9763_v14, %s11460_s5 }
 0x6de   : > { %2455 = vrot.lane.b32.xlu0 %v9765_v45, %s11462_s3 }
 0x6e2   : > { %2459 = vrot.lane.b32.xlu0 %v9775_v27, %s11462_s3 }
 0x6e5   : > { %2338 = vadd.xlane.f32.xlu1 %v2337_v6 }
 0x6f6   : > { %2469 = vrot.lane.b32.xlu1 %v9773_v26, %s11460_s5  ;;  %s11464_s5 = smov 48  }
 0x6fa   : > { %2457 = vrot.lane.b32.xlu1 %v9763_v14, %s11462_s3 }
 0x6fe   : > { %2461 = vrot.lane.b32.xlu1 %v9773_v26, %s11462_s3  ;;  %s11549_s3 = smov 64  }
 0x739   : > { %v2330_v61 = vpop.xlane.xlu1 %2329 }
 0x73d   : > { %v2324_v8 = vpop.xlane.xlu1 %2323 }
 0x741   : > { %v2333_v9 = vpop.xlane.xlu0 %2332  ;;  %v2468_v39 = vpop.permute.xlu1 %2467 }
 0x742   : > { %8825 = vrcp.f32 %v2333_v9 }
 0x743   : > { %8827 = vrcp.f32 %v2324_v8 }
 0x744   : > { %8829 = vrcp.f32 %v2330_v61 }
 0x745   : > { %v2327_v11 = vpop.xlane.xlu0 %2326 }
 0x746   : > { %8831 = vrcp.f32 %v2327_v11 }
 0x749   : > { %v2342_v15 = vpop.xlane.xlu0 %2341 }
 0x74c   : > { %v8826_v10 = vpop.eup %8825 }
 0x74d   : > { %v2336_v13 = vpop.xlane.xlu0 %2335  ;;  %v8828_v18 = vpop.eup %8827  ;;  %v2353_v22 = vmul.f32 %v8826_v10, %v8814_v49 }
 0x74e   : > { %v8830_v2 = vpop.eup %8829  ;;  %v2347_v30 = vmul.f32 %v8828_v18, %v9822_v41 }
 0x74f   : > { %v2351_v33 = vmul.f32 %v8830_v2, %v9818_v36  ;;  %v2490_v36 = vsel %vm1317_vm0, %v2468_v39, 0 }
 0x750   : > { %v8832_v20 = vpop.eup %8831 }
 0x751   : > { %v2345_v23 = vpop.xlane.xlu0 %2344  ;;  %v2349_v32 = vmul.f32 %v8832_v20, %v8816_v53  ;;  %v2363_v35 = vpack.c.bf16 %v2353_v22, %v2351_v33 }
 0x752   : > { %8833 = vrcp.f32 %v2345_v23 }
 0x753   : > { %v2362_v47 = vpack.c.bf16 %v2349_v32, %v2347_v30  ;;  %8835 = vrcp.f32 %v2336_v13 }
 0x754   : > { %8837 = vrcp.f32 %v2342_v15 }
 0x755   : > { %8120 = vmatprep.mubr.msk.bf16.mxu0 %vm2273_vm3, %v2362_v47  ;;  %v2466_v63 = vpop.permute.xlu0 %2465 }
 0x756   : > { %8121 = vmatmul.mubr.msk.bf16.vlgmr.msra.gmra.mrb[28].mxu0 %vm2273_vm3, %v2363_v35  ;;  %v2487_v5 = vsel %vm1317_vm0, %v2466_v63, 0 }
 0x757   : > { %8129 = vmatpush3.bf16.xpose.msra.mxu0 %v2484_v37 }
 0x758   : > { %8521 = vmatprep.subr.msk.bf16.mxu0 %vm1317_vm0, %v2466_v63 }
 0x759   : > { %v2456_v57 = vpop.permute.xlu0 %2455 }
 0x75c   : > { %v8834_v43 = vpop.eup %8833 }
 0x75d   : > { %v8836_v44 = vpop.eup %8835  ;;  %v2361_v49 = vmul.f32 %v8834_v43, %v9837_v40  ;;  %v2460_v59 = vpop.permute.xlu0 %2459 }
 0x75e   : > { %v8838_v46 = vpop.eup %8837  ;;  %v2355_v48 = vmul.f32 %v8836_v44, %v9833_v25 }
 0x75f   : > { %8131 = vmatpush3.bf16.xpose.msra.mxu0 %v2487_v5  ;;  %v2359_v52 = vmul.f32 %v8838_v46, %v9828_v56 }
 0x760   : > { %8522 = vmatprep.subr.msk.bf16.mxu0 %vm1317_vm0, %v2468_v39 }
 0x761   : > { %v2365_v55 = vpack.c.bf16 %v2361_v49, %v2359_v52 }
 0x767   : > { %8133 = vmatpush3.bf16.xpose.msra.mxu0 %v2490_v36 }
 0x772   : > { %v2339_v0 = vpop.xlane.xlu1 %2338 }
 0x773   : > { %8839 = vrcp.f32 %v2339_v0 }
 0x776   : > { %v2470_v41 = vpop.permute.xlu1 %2469 }
 0x777   : > { %8523 = vmatprep.subr.msk.bf16.mxu0 %vm1317_vm0, %v2470_v41  ;;  %v2493_v17 = vsel %vm1317_vm0, %v2470_v41, 0 }
 0x778   : > { %8135 = vmatpush3.bf16.xpose.msra.mxu0 %v2493_v17 }
 0x77a   : > { %v2458_v58 = vpop.permute.xlu1 %2457 }
 0x77d   : > { %v8840_v31 = vpop.eup %8839 }
 0x77e   : > { %v2357_v51 = vmul.f32 %v8840_v31, %v8824_v4  ;;  %v2462_v40 = vpop.permute.xlu1 %2461 }
 0x780   : > { %v2364_v53 = vpack.c.bf16 %v2357_v51, %v2355_v48 }
 0x782   : > { %8124 = vmatprep.mubr.msk.bf16.mxu0 %vm2273_vm3, %v2364_v53 }
 0x783   : > { %8125 = vmatmul.mubr.msk.bf16.gmra.mrb[32].mxu0 %vm2273_vm3, %v2365_v55 }
 0x784   : > { %8136 = vmatprep.mubr.msk.bf16.mxu0 %vm1317_vm0, %v2456_v57 }
 0x78b   : > { %8137 = vmatmul.mubr.msk.bf16.vlgmr.msra.gmra.mrb[36].mxu0 %vm1317_vm0, %v2458_v58 }
 0x78c   : > { %8140 = vmatprep.mubr.msk.bf16.mxu0 %vm1317_vm0, %v2460_v59 }
 0x793   : > { %8141 = vmatmul.mubr.msk.bf16.gmra.mrb[40].mxu0 %vm1317_vm0, %v2462_v40 }
 0x829   : > { %v9877_v25 = vpop.f32.mrb[28].mxu0 }
 0x82a   : > { %v9879_v56 = vpop.f32.mrb[29].mxu0 }
 0x82b   : > { %v9881_v60 = vpop.f32.mrb[30].mxu0 }
 0x82c   : > { %v9883_v62 = vpop.f32.mrb[31].mxu0 }
 0x856   : > { %v9885_v1 = vpop.f32.mrb[32].mxu0 }
 0x857   : > { %v9887_v4 = vpop.f32.mrb[33].mxu0 }
 0x858   : > { %v9889_v6 = vpop.f32.mrb[34].mxu0 }
 0x859   : > { %v9891_v61 = vpop.f32.mrb[35].mxu0 }
 0x85e   : > { %v8138_v8 = vpop.f32.mrb[36].mxu0 }
 0x85f   : > { %v2529_v9 = vpop.f32.mrb[37].mxu0  ;;  %v2562_v13 = vmul.f32 0.25, %v8138_v8 }
 0x860   : > { %v2560_v11 = vmul.f32 0.25, %v2529_v9  ;;  %v8139_v15 = vpop.f32.mrb[38].mxu0 }
 0x861   : > { %v2532_v10 = vpop.f32.mrb[39].mxu0  ;;  %v2563_v22 = vmul.f32 0.25, %v8139_v15  ;;  %v2574_v30 = vsel %vm2273_vm3, %v2562_v13, -inf }
 0x862   : > { %v2561_v18 = vmul.f32 0.25, %v2532_v10  ;;  %v2568_v2 = vsel %vm2273_vm3, %v2560_v11, -inf }
 0x863   : > { %2569 = vmax.xlane.f32.xlu0 %v2568_v2  ;;  %v2577_v5 = vsel %vm2273_vm3, %v2563_v22, -inf }
 0x864   : > { %v2571_v20 = vsel %vm2273_vm3, %v2561_v18, -inf }
 0x865   : > { %2572 = vmax.xlane.f32.xlu1 %v2571_v20 }
 0x866   : > { %v8142_v23 = vpop.f32.mrb[40].mxu0 }
 0x867   : > { %2575 = vmax.xlane.f32.xlu0 %v2574_v30  ;;  %v2545_v32 = vpop.f32.mrb[41].mxu0  ;;  %v2566_v63 = vmul.f32 0.25, %v8142_v23 }
 0x868   : > { %v2564_v33 = vmul.f32 0.25, %v2545_v32  ;;  %v8143_v47 = vpop.f32.mrb[42].mxu0 }
 0x869   : > { %v2548_v35 = vpop.f32.mrb[43].mxu0  ;;  %v2567_v36 = vmul.f32 0.25, %v8143_v47  ;;  %v2586_v0 = vsel %vm2273_vm3, %v2566_v63, -inf }
 0x86a   : > { %v2565_v37 = vmul.f32 0.25, %v2548_v35  ;;  %v2580_v39 = vsel %vm2273_vm3, %v2564_v33, -inf }
 0x86b   : > { %2578 = vmax.xlane.f32.xlu0 %v2577_v5  ;;  %2581 = vmax.xlane.f32.xlu1 %v2580_v39  ;;  %v2589_v17 = vsel %vm2273_vm3, %v2567_v36, -inf }
 0x86c   : > { %v2583_v41 = vsel %vm2273_vm3, %v2565_v37, -inf }
 0x86f   : > { %2587 = vmax.xlane.f32.xlu1 %v2586_v0  ;;  %2584 = vmax.xlane.f32.xlu0 %v2583_v41 }
 0x873   : > { %2590 = vmax.xlane.f32.xlu0 %v2589_v17 }
 0x880   : > { %2660 = vrot.lane.b32.xlu1 %v9765_v45, %s11464_s5 }
 0x884   : > { %2662 = vrot.lane.b32.xlu1 %v9763_v14, %s11464_s5 }
 0x8f0   : > { %v2570_v43 = vpop.xlane.xlu0 %2569 }
 0x8f1   : > { %v2592_v44 = vsub.f32 %v2560_v11, %v2570_v43 }
 0x8f2   : > { %v2573_v46 = vpop.xlane.xlu1 %2572 }
 0x8f3   : > { %v2600_v48 = vmul.f32 1.442695, %v2592_v44  ;;  %v2593_v52 = vsub.f32 %v2561_v18, %v2573_v46  ;;  %v9161_v46 = vld [vmem:[%s9398_s25] sm:$0x3f] }
 0x8f4   : > { %v2576_v31 = vpop.xlane.xlu0 %2575 }
 0x8f5   : > { %v2594_v49 = vsub.f32 %v2562_v13, %v2576_v31  ;;  %v2602_v59 = vmul.f32 1.442695, %v2593_v52  ;;  %v1904_v31 = vrot.slane %v9161_v46, 2 }
 0x8f7   : > { %v2604_v51 = vmul.f32 1.442695, %v2594_v49 }
 0x8f8   : > { %v2582_v53 = vpop.xlane.xlu1 %2581  ;;  %v2579_v55 = vpop.xlane.xlu0 %2578 }
 0x8f9   : > { %8841 = vpow2.f32 %v2604_v51  ;;  %v2595_v57 = vsub.f32 %v2563_v22, %v2579_v55  ;;  %v2596_v14 = vsub.f32 %v2564_v33, %v2582_v53 }
 0x8fa   : > { %8843 = vpow2.f32 %v2600_v48 }
 0x8fb   : > { %v2606_v58 = vmul.f32 1.442695, %v2595_v57  ;;  %v2608_v13 = vmul.f32 1.442695, %v2596_v14 }
 0x8fc   : > { %v2588_v40 = vpop.xlane.xlu1 %2587  ;;  %v2585_v45 = vpop.xlane.xlu0 %2584 }
 0x8fd   : > { %v2598_v8 = vsub.f32 %v2566_v63, %v2588_v40  ;;  %8845 = vpow2.f32 %v2606_v58  ;;  %v2597_v30 = vsub.f32 %v2565_v37, %v2585_v45 }
 0x8fe   : > { %8847 = vpow2.f32 %v2602_v59 }
 0x8ff   : > { %v2612_v9 = vmul.f32 1.442695, %v2598_v8  ;;  %v2610_v63 = vmul.f32 1.442695, %v2597_v30 }
 0x900   : > { %v2661_v11 = vpop.permute.xlu1 %2660  ;;  %v2591_v15 = vpop.xlane.xlu0 %2590 }
 0x901   : > { %8144 = vmatprep.subr.bf16.mxu1 %v2661_v11  ;;  %8849 = vpow2.f32 %v2612_v9  ;;  %v2599_v18 = vsub.f32 %v2567_v36, %v2591_v15 }
 0x902   : > { %8145 = vmatpush3.bf16.msra.mxu1 %v2661_v11  ;;  %8851 = vpow2.f32 %v2608_v13 }
 0x903   : > { %v9905_v10 = vpop.eup %8841  ;;  %v2614_v32 = vmul.f32 1.442695, %v2599_v18 }
 0x904   : > { %v2663_v2 = vpop.permute.xlu1 %2662  ;;  %v2622_v20 = vsel %vm2273_vm3, %v9905_v10, 0.0  ;;  %v8844_v22 = vpop.eup %8843 }
 0x905   : > { %8146 = vmatprep.subr.bf16.mxu1 %v2663_v2  ;;  %2623 = vadd.xlane.f32.xlu1 %v2622_v20  ;;  %v2616_v33 = vsel %vm2273_vm3, %v8844_v22, 0.0  ;;  %8853 = vpow2.f32 %v2614_v32 }
 0x906   : > { %8147 = vmatpush3.bf16.msra.mxu1 %v2663_v2  ;;  %8855 = vpow2.f32 %v2610_v63 }
 0x907   : > { %v8846_v23 = vpop.eup %8845 }
 0x908   : > { %v2625_v47 = vsel %vm2273_vm3, %v8846_v23, 0.0  ;;  %v8848_v35 = vpop.eup %8847 }
 0x909   : > { %2617 = vadd.xlane.f32.xlu1 %v2616_v33  ;;  %2626 = vadd.xlane.f32.xlu0 %v2625_v47  ;;  %v2619_v5 = vsel %vm2273_vm3, %v8848_v35, 0.0 }
 0x90b   : > { %v8850_v39 = vpop.eup %8849 }
 0x90c   : > { %v2634_v36 = vsel %vm2273_vm3, %v8850_v39, 0.0  ;;  %v8852_v0 = vpop.eup %8851 }
 0x90d   : > { %2620 = vadd.xlane.f32.xlu0 %v2619_v5  ;;  %v2628_v37 = vsel %vm2273_vm3, %v8852_v0, 0.0 }
 0x90f   : > { %v8854_v41 = vpop.eup %8853 }
 0x910   : > { %v2637_v17 = vsel %vm2273_vm3, %v8854_v41, 0.0  ;;  %v8856_v43 = vpop.eup %8855 }
 0x911   : > { %2635 = vadd.xlane.f32.xlu0 %v2634_v36  ;;  %v2631_v44 = vsel %vm2273_vm3, %v8856_v43, 0.0 }
 0x915   : > { %2629 = vadd.xlane.f32.xlu0 %v2628_v37 }
 0x919   : > { %2638 = vadd.xlane.f32.xlu0 %v2637_v17 }
 0x91a   : > { %2666 = vrot.lane.b32.xlu1 %v9773_v26, %s11464_s5 }
 0x91d   : > { %2632 = vadd.xlane.f32.xlu0 %v2631_v44 }
 0x933   : > { %2664 = vrot.lane.b32.xlu0 %v9775_v27, %s11464_s5  ;;  %s11550_s5 = sld [smem:[#allocation27_spill]] }
 0x937   : > { %1905 = vrot.lane.b32.xlu0 %v1904_v31, %s11549_s3 }
 0x939   : > { %v8743_v5 = vld [vmem:[%s11550_s5] sm:$0xff]  }
 0x992   : > { %v2624_v49 = vpop.xlane.xlu1 %2623 }
 0x996   : > { %v2618_v48 = vpop.xlane.xlu1 %2617  ;;  %v2627_v51 = vpop.xlane.xlu0 %2626 }
 0x997   : > { %8857 = vrcp.f32 %v2618_v48 }
 0x99a   : > { %v2621_v52 = vpop.xlane.xlu0 %2620  ;;  %v2667_v11 = vpop.permute.xlu1 %2666 }
 0x99b   : > { %8859 = vrcp.f32 %v2621_v52 }
 0x99c   : > { %8861 = vrcp.f32 %v2627_v51 }
 0x99d   : > { %8863 = vrcp.f32 %v2624_v49 }
 0x99e   : > { %v2636_v53 = vpop.xlane.xlu0 %2635 }
 0x9a1   : > { %v8858_v57 = vpop.eup %8857 }
 0x9a2   : > { %v2630_v55 = vpop.xlane.xlu0 %2629  ;;  %v2641_v59 = vmul.f32 %v8858_v57, %v8844_v22 }
 0x9a3   : > { %8865 = vrcp.f32 %v2630_v55 }
 0x9a5   : > { %v8860_v26 = vpop.eup %8859 }
 0x9a6   : > { %v2639_v58 = vpop.xlane.xlu0 %2638  ;;  %v2643_v40 = vmul.f32 %v8860_v26, %v8848_v35  ;;  %v8862_v8 = vpop.eup %8861 }
 0x9a7   : > { %v8864_v9 = vpop.eup %8863  ;;  %v2647_v15 = vmul.f32 %v8862_v8, %v8846_v23  ;;  %v8745_v8 = vld [vmem:[%s11551_s8] sm:$0xff]  }
 0x9a8   : > { %v2656_v27 = vpack.c.bf16 %v2643_v40, %v2641_v59  ;;  %v2645_v18 = vmul.f32 %v8864_v9, %v9905_v10  ;;  %v8744_v10 = vld [vmem:[%s11550_s5 + $0x8] sm:$0xff]  }
 0x9aa   : > { %8152 = vmatprep.mubr.msk.bf16.mxu1 %vm2273_vm3, %v2656_v27  ;;  %v2633_v45 = vpop.xlane.xlu0 %2632  ;;  %v2657_v20 = vpack.c.bf16 %v2647_v15, %v2645_v18 }
 0x9ab   : > { %8867 = vrcp.f32 %v2633_v45 }
 0x9ac   : > { %8869 = vrcp.f32 %v2639_v58 }
 0x9ad   : > { %8871 = vrcp.f32 %v2636_v53  ;;  %v8866_v13 = vpop.eup %8865 }
 0x9ae   : > { %v2665_v14 = vpop.permute.xlu0 %2664  ;;  %v2649_v30 = vmul.f32 %v8866_v13, %v8852_v0  ;;  %v8746_v13 = vld [vmem:[%s11551_s8 + $0x8] sm:$0xff]  }
 0x9af   : > { %8148 = vmatprep.subr.bf16.mxu1 %v2665_v14 }
 0x9b0   : > { %8149 = vmatpush3.bf16.msra.mxu1 %v2665_v14 }
 0x9b1   : > { %8150 = vmatprep.subr.bf16.mxu1 %v2667_v11 }
 0x9b4   : > { %8151 = vmatpush3.bf16.msra.mxu1 %v2667_v11 }
 0x9b5   : > { %v8868_v2 = vpop.eup %8867  ;;  %8160 = vmatprep.subr.bf16.mxu1 %v8743_v5 }
 0x9b6   : > { %v8870_v22 = vpop.eup %8869  ;;  %v2651_v32 = vmul.f32 %v8868_v2, %v8856_v43 }
 0x9b7   : > { %8153 = vmatmul.mubr.msk.bf16.vlgmr.msra.gmra.mrb[16].mxu1 %vm2273_vm3, %v2657_v20  ;;  %v8872_v33 = vpop.eup %8871  ;;  %v2655_v35 = vmul.f32 %v8870_v22, %v8854_v41 }
 0x9b8   : > { %v2658_v47 = vpack.c.bf16 %v2651_v32, %v2649_v30  ;;  %v2653_v23 = vmul.f32 %v8872_v33, %v8850_v39  ;;  %8161 = vmatpush3.bf16.msra.mxu1 %v8743_v5  ;;  %v8748_v33 = vld [vmem:[%s11553_s9 + $0x8] sm:$0xff]  }
 0x9b9   : > { %8162 = vmatprep.subr.bf16.mxu1 %v8744_v10 }
 0x9ba   : > { %8156 = vmatprep.mubr.msk.bf16.mxu1 %vm2273_vm3, %v2658_v47  ;;  %v2659_v63 = vpack.c.bf16 %v2655_v35, %v2653_v23 }
 0x9bc   : > { %8163 = vmatpush3.bf16.msra.mxu1 %v8744_v10 }
 0x9bd   : > { %8184 = vmatprep.subr.bf16.mxu1 %v9278_v50 }
 0x9bf   : > { %8157 = vmatmul.mubr.msk.bf16.gmra.mrb[20].mxu1 %vm2273_vm3, %v2659_v63 }
 0xa8a   : > { %v8154_v36 = vpop.f32.mrb[16].mxu1 }
 0xa8b   : > { %v2718_v0 = vpop.f32.mrb[17].mxu1 }
 0xa8c   : > { %v8155_v37 = vpop.f32.mrb[18].mxu1 }
 0xa8d   : > { %v8636_v17 = vpack.i.bf16 %v8155_v37, %v8154_v36  ;;  %v2721_v43 = vpop.f32.mrb[19].mxu1 }
 0xa8e   : > { %v8631_v41 = vpack.i.bf16 %v2721_v43, %v2718_v0 }
 0xa90   : > { %8632 = vrot.lane.b32.xlu1 %v8631_v41, %s11467_s6 }
 0xa92   : > { %v8158_v39 = vpop.f32.mrb[20].mxu1 }
 0xa93   : > { %v2734_v44 = vpop.f32.mrb[21].mxu1 }
 0xa94   : > { %8637 = vrot.lane.b32.xlu1 %v8636_v17, %s11467_s6  ;;  %v8159_v46 = vpop.f32.mrb[22].mxu1 }
 0xa95   : > { %v8646_v31 = vpack.i.bf16 %v8159_v46, %v8158_v39  ;;  %v2737_v49 = vpop.f32.mrb[23].mxu1 }
 0xa96   : > { %v8641_v48 = vpack.i.bf16 %v2737_v49, %v2734_v44 }
 0xa98   : > { %8642 = vrot.lane.b32.xlu1 %v8641_v48, %s11467_s6 }
 0xa9c   : > { %8647 = vrot.lane.b32.xlu1 %v8646_v31, %s11467_s6  ;;  %s11552_s6 = sld [smem:[#allocation24_spill]] }
 0xaa2   : > { %v7565_v22 = vld [vmem:[%s11552_s6] ss:$0 sm:$0xff]  ;;  %s11555_s6 = sld [smem:[#allocation32_spill]] }
 0xaa3   : > { %v1890_v30 = vadd.f32 %v7565_v22, %v9781_v28 }
 0xaa5   : > { %v9961_v32 = vpack.c.bf16 %v1890_v30, %v1890_v30 }
 0xaa8   : > { %v7606_v46 = vld [vmem:[%s11555_s6] ss:$0 sm:$0xff] }
 0xb02   : > { %v8633_v51 = vpop.permute.xlu1 %8632 }
 0xb03   : > { %v8635_v52 = vunpack.i.h.bf16 %v8633_v51  ;;  %v8634_v53 = vunpack.i.l.bf16 %v8633_v51 }
 0xb05   : > { %v2782_v55 = vsel %vm1317_vm0, %v9883_v62, %v8635_v52  ;;  %v2781_v57 = vsel %vm1317_vm0, %v9879_v56, %v8634_v53 }
 0xb06   : > { %v8638_v26 = vpop.permute.xlu1 %8637  ;;  %v2793_v58 = vpack.c.bf16 %v2782_v55, %v2781_v57  ;;  %v1906_v57 = vpop.permute.xlu0 %1905 }
 0xb07   : > { %v8640_v59 = vunpack.i.h.bf16 %v8638_v26  ;;  %v8639_v40 = vunpack.i.l.bf16 %v8638_v26  ;;  %v1908_v26 = vadd.f32 %v1906_v57, %v9728_v3 }
 0xb08   : > { %8164 = vmatprep.mubr.msk.bf16.mxu1 %vm1619_vm2, %v2793_v58 }
 0xb09   : > { %v2784_v27 = vsel %vm1317_vm0, %v9881_v60, %v8640_v59  ;;  %v2783_v45 = vsel %vm1317_vm0, %v9877_v25, %v8639_v40  ;;  %v2896_v58 = vrot.slane %v1908_v26, %v9575_v24 }
 0xb0a   : > { %v2794_v14 = vpack.c.bf16 %v2784_v27, %v2783_v45  ;;  %v8643_v9 = vpop.permute.xlu1 %8642 }
 0xb0b   : > { %v8645_v62 = vunpack.i.h.bf16 %v8643_v9  ;;  %v8644_v11 = vunpack.i.l.bf16 %v8643_v9 }
 0xb0c   : > { %8165 = vmatmul.mubr.msk.bf16.vlgmr.msra.gmra.mrb[24].mxu1 %vm1619_vm2, %v2794_v14 }
 0xb0d   : > { %v2786_v56 = vsel %vm1317_vm0, %v9891_v61, %v8645_v62  ;;  %v2785_v15 = vsel %vm1317_vm0, %v9887_v4, %v8644_v11  ;;  %8185 = vmatpush3.bf16.msra.mxu1 %v8745_v8 }
 0xb0e   : > { %v8648_v60 = vpop.permute.xlu1 %8647  ;;  %v2795_v18 = vpack.c.bf16 %v2786_v56, %v2785_v15  ;;  %8186 = vmatprep.subr.bf16.mxu1 %v9278_v50 }
 0xb0f   : > { %v8650_v25 = vunpack.i.h.bf16 %v8648_v60  ;;  %v8649_v2 = vunpack.i.l.bf16 %v8648_v60 }
 0xb10   : > { %8168 = vmatprep.mubr.msk.bf16.mxu1 %vm1619_vm2, %v2795_v18 }
 0xb11   : > { %v2788_v20 = vsel %vm1317_vm0, %v9889_v6, %v8650_v25  ;;  %v2787_v61 = vsel %vm1317_vm0, %v9885_v1, %v8649_v2  ;;  %8187 = vmatpush3.bf16.msra.mxu1 %v8746_v13  ;;  %v8747_v6 = vld [vmem:[%s11553_s9] sm:$0xff]  }
 0xb12   : > { %v2796_v4 = vpack.c.bf16 %v2788_v20, %v2787_v61  ;;  %8172 = vmatprep.subr.bf16.mxu0 %v8747_v6  ;;  %v7592_v1 = vld [vmem:[%s11554_s12] ss:$0 sm:$0xff] }
 0xb13   : > { %8173 = vmatpush3.bf16.msra.mxu0 %v8747_v6 }
 0xb14   : > { %8169 = vmatmul.mubr.msk.bf16.gmra.mrb[28].mxu1 %vm1619_vm2, %v2796_v4  ;;  %8174 = vmatprep.subr.bf16.mxu0 %v8748_v33 }
 0xb15   : > { %8188 = vmatprep.mubr.msk.bf16.mxu1 %vm9279_vm1, %v9278_v50 }
 0xb17   : > { %8175 = vmatpush3.bf16.msra.mxu0 %v8748_v33 }
 0xb1c   : > { %8189 = vmatmul.mubr.msk.bf16.vlgmr.msra.gmra.mrb[32].mxu1 %vm1619_vm2, %v9961_v32 }
 0xbdf   : > { %v8166_v47 = vpop.f32.mrb[24].mxu1 }
 0xbe0   : > { %v2862_v35 = vpop.f32.mrb[25].mxu1  ;;  %v2871_v28 = vadd.f32 %v8166_v47, %v7592_v1 }
 0xbe1   : > { %v2863_v23 = vadd.f32 %v7592_v1, %v2862_v35  ;;  %v8167_v63 = vpop.f32.mrb[26].mxu1 }
 0xbe2   : > { %v2865_v5 = vpop.f32.mrb[27].mxu1  ;;  %v2874_v36 = vadd.f32 %v8167_v63, %v7592_v1 }
 0xbe3   : > { %v2866_v10 = vadd.f32 %v7592_v1, %v2865_v5  ;;  %2905 = vrot.lane.b32.xlu1 %v2863_v23, %s11549_s3 }
 0xbe5   : > { %2907 = vrot.lane.b32.xlu0 %v2866_v10, %s11549_s3 }
 0xbe7   : > { %v8170_v0 = vpop.f32.mrb[28].mxu1  ;;  %2909 = vrot.lane.b32.xlu1 %v2871_v28, %s11549_s3 }
 0xbe8   : > { %v2878_v37 = vpop.f32.mrb[29].mxu1  ;;  %v2887_v44 = vadd.f32 %v8170_v0, %v7592_v1 }
 0xbe9   : > { %v2879_v17 = vadd.f32 %v7592_v1, %v2878_v37  ;;  %v8171_v43 = vpop.f32.mrb[30].mxu1  ;;  %2911 = vrot.lane.b32.xlu0 %v2874_v36, %s11549_s3  ;;  %v7599_v37 = vld [vmem:[%s11557_s17] ss:$0 sm:$0xff] }
 0xbea   : > { %v2881_v41 = vpop.f32.mrb[31].mxu1  ;;  %v2890_v31 = vadd.f32 %v8171_v43, %v7592_v1 }
 0xbeb   : > { %v2882_v39 = vadd.f32 %v7592_v1, %v2881_v41  ;;  %2913 = vrot.lane.b32.xlu1 %v2879_v17, %s11549_s3 }
 0xbed   : > { %2915 = vrot.lane.b32.xlu0 %v2882_v39, %s11549_s3 }
 0xbef   : > { %v3142_v49 = vpop.f32.mrb[32].mxu1  ;;  %2917 = vrot.lane.b32.xlu1 %v2887_v44, %s11549_s3 }
 0xbf0   : > { %v3143_v48 = vadd.f32 %v7606_v46, %v3142_v49  ;;  %v8190_v51 = vpop.f32.mrb[33].mxu1 }
 0xbf1   : > { %v3145_v52 = vpop.f32.mrb[34].mxu1  ;;  %2919 = vrot.lane.b32.xlu0 %v2890_v31, %s11549_s3 }
 0xbf2   : > { %v9977_v53 = vpack.c.bf16 %v3143_v48, %v3143_v48  ;;  %v8191_v55 = vpop.f32.mrb[35].mxu1 }
 0xbf4   : > { %8524 = vmatprep.subr.msk.bf16.mxu0 %vm1317_vm0, %v9977_v53 }
 0xc55   : > { %v2906_v59 = vpop.permute.xlu1 %2905 }
 0xc56   : > { %v2929_v40 = vmul.f32 %v2906_v59, %v2896_v58 }
 0xc57   : > { %v2908_v27 = vpop.permute.xlu0 %2907 }
 0xc58   : > { %v2930_v45 = vmul.f32 %v2908_v27, %v2896_v58  ;;  %2945 = vrot.lane.b32.xlu1 %v2929_v40, %s11549_s3 }
 0xc59   : > { %v2910_v8 = vpop.permute.xlu1 %2909 }
 0xc5a   : > { %v2931_v14 = vmul.f32 %v2910_v8, %v2896_v58  ;;  %2947 = vrot.lane.b32.xlu0 %v2930_v45, %s11549_s3 }
 0xc5b   : > { %v2912_v9 = vpop.permute.xlu0 %2911 }
 0xc5c   : > { %v2932_v62 = vmul.f32 %v2912_v9, %v2896_v58  ;;  %2949 = vrot.lane.b32.xlu1 %v2931_v14, %s11549_s3 }
 0xc5d   : > { %v2914_v11 = vpop.permute.xlu1 %2913 }
 0xc5e   : > { %v2933_v56 = vmul.f32 %v2914_v11, %v2896_v58  ;;  %2951 = vrot.lane.b32.xlu0 %v2932_v62, %s11549_s3  ;;  %v10051_v11 = vld [vmem:[%s10048_s21] ss:$0 sm:$0xff] }
 0xc5f   : > { %v2916_v15 = vpop.permute.xlu0 %2915 }
 0xc60   : > { %v2934_v13 = vmul.f32 %v2916_v15, %v2896_v58  ;;  %2953 = vrot.lane.b32.xlu1 %v2933_v56, %s11549_s3 }
 0xc61   : > { %v2918_v60 = vpop.permute.xlu1 %2917 }
 0xc62   : > { %v2935_v18 = vmul.f32 %v2918_v60, %v2896_v58  ;;  %2955 = vrot.lane.b32.xlu0 %v2934_v13, %s11549_s3 }
 0xc63   : > { %v2920_v25 = vpop.permute.xlu0 %2919 }
 0xc64   : > { %v2936_v2 = vmul.f32 %v2920_v25, %v2896_v58  ;;  %2957 = vrot.lane.b32.xlu1 %v2935_v18, %s11549_s3 }
 0xc66   : > { %2959 = vrot.lane.b32.xlu0 %v2936_v2, %s11549_s3 }
 0xc68   : > { %3444 = vrot.lane.b32.xlu1 %v9977_v53, %s11556_s14 }
 0xcca   : > { %v2946_v20 = vpop.permute.xlu1 %2945 }
 0xccb   : > { %v9994_v4 = vadd.f32 %v2946_v20, %v9615_v16 }
 0xccc   : > { %v2948_v61 = vpop.permute.xlu0 %2947 }
 0xccd   : > { %v9997_v22 = vadd.f32 %v2948_v61, %v9624_v21 }
 0xcce   : > { %v2950_v30 = vpop.permute.xlu1 %2949 }
 0xccf   : > { %v2981_v6 = vpack.c.bf16 %v9997_v22, %v9994_v4  ;;  %v10002_v1 = vadd.f32 %v2950_v30, %v9613_v12  ;;  %v3166_v12 = vsel %vm1317_vm0, %v9977_v53, 0 }
 0xcd0   : > { %v2952_v33 = vpop.permute.xlu0 %2951 }
 0xcd1   : > { %v10005_v47 = vadd.f32 %v2952_v33, %v9618_v19  ;;  %8176 = vmatprep.mubr.msk.bf16.mxu0 %vm1619_vm2, %v2981_v6 }
 0xcd2   : > { %v2954_v35 = vpop.permute.xlu1 %2953 }
 0xcd3   : > { %v2982_v16 = vpack.c.bf16 %v10005_v47, %v10002_v1  ;;  %v10011_v21 = vadd.f32 %v2954_v35, %v9634_v34 }
 0xcd4   : > { %v2956_v23 = vpop.permute.xlu0 %2955 }
 0xcd5   : > { %v10014_v63 = vadd.f32 %v2956_v23, %v9644_v42  ;;  %8177 = vmatmul.mubr.msk.bf16.vlgmr.msra.gmra.mrb[44].mxu0 %vm1619_vm2, %v2982_v16 }
 0xcd6   : > { %8193 = vmatpush3.bf16.xpose.msra.mxu0 %v3166_v12  ;;  %v2958_v19 = vpop.permute.xlu1 %2957 }
 0xcd7   : > { %v2983_v5 = vpack.c.bf16 %v10014_v63, %v10011_v21  ;;  %v10022_v28 = vadd.f32 %v2958_v19, %v9629_v29 }
 0xcd8   : > { %v2960_v10 = vpop.permute.xlu0 %2959 }
 0xcd9   : > { %v10025_v34 = vadd.f32 %v2960_v10, %v9639_v38  ;;  %8180 = vmatprep.mubr.msk.bf16.mxu0 %vm1619_vm2, %v2983_v5 }
 0xcda   : > { %v3445_v42 = vpop.permute.xlu1 %3444 }
 0xcdb   : > { %v2984_v36 = vpack.c.bf16 %v10025_v34, %v10022_v28  ;;  %8526 = vmatprep.subr.msk.bf16.mxu0 %vm1317_vm0, %v3445_v42  ;;  %v3459_v51 = vsel %vm1317_vm0, %v3445_v42, 0 }
 0xcdd   : > { %8181 = vmatmul.mubr.msk.bf16.gmra.mrb[48].mxu0 %vm1619_vm2, %v2984_v36 }
 0xda8   : > { %v8178_v0 = vpop.f32.mrb[44].mxu0 }
 0xda9   : > { %v3050_v17 = vpop.f32.mrb[45].mxu0  ;;  %v3059_v41 = vadd.f32 %v8178_v0, %v7599_v37 }
 0xdaa   : > { %v8179_v43 = vpop.f32.mrb[46].mxu0  ;;  %v3051_v44 = vadd.f32 %v7599_v37, %v3050_v17 }
 0xdab   : > { %v3062_v29 = vadd.f32 %v8179_v43, %v7599_v37  ;;  %v3053_v39 = vpop.f32.mrb[47].mxu0 }
 0xdac   : > { %v3054_v38 = vadd.f32 %v7599_v37, %v3053_v39 }
 0xdad   : > { %v3149_v46 = vpack.c.bf16 %v3062_v29, %v3059_v41 }
 0xdae   : > { %v3148_v31 = vpack.c.bf16 %v3054_v38, %v3051_v44 }
 0xdaf   : > { %3438 = vrot.lane.b32.xlu1 %v3149_v46, %s11556_s14 }
 0xdb0   : > { %3436 = vrot.lane.b32.xlu0 %v3148_v31, %s11556_s14  ;;  %v8182_v49 = vpop.f32.mrb[48].mxu0  ;;  %8194 = vmatprep.mubr.msk.bf16.mxu0 %vm1317_vm0, %v3148_v31 }
 0xdb1   : > { %v3066_v48 = vpop.f32.mrb[49].mxu0  ;;  %8195 = vmatmul.mubr.msk.bf16.vlgmr.msra.gmra.mrb[52].mxu0 %vm1317_vm0, %v3149_v46  ;;  %v3075_v55 = vadd.f32 %v8182_v49, %v7599_v37 }
 0xdb2   : > { %8213 = vmatpush3.bf16.xpose.msra.mxu0 %v3459_v51  ;;  %v8183_v52 = vpop.f32.mrb[50].mxu0  ;;  %v3067_v58 = vadd.f32 %v7599_v37, %v3066_v48 }
 0xdb3   : > { %v3078_v57 = vadd.f32 %v8183_v52, %v7599_v37  ;;  %v3069_v26 = vpop.f32.mrb[51].mxu0 }
 0xdb4   : > { %v3070_v59 = vadd.f32 %v7599_v37, %v3069_v26 }
 0xdb5   : > { %v3151_v40 = vpack.c.bf16 %v3078_v57, %v3075_v55 }
 0xdb6   : > { %v3150_v27 = vpack.c.bf16 %v3070_v59, %v3067_v58 }
 0xdb7   : > { %3442 = vrot.lane.b32.xlu1 %v3151_v40, %s11556_s14 }
 0xdb8   : > { %3440 = vrot.lane.b32.xlu0 %v3150_v27, %s11556_s14  ;;  %8198 = vmatprep.mubr.msk.bf16.mxu0 %vm1317_vm0, %v3150_v27 }
 0xdb9   : > { %8199 = vmatmul.mubr.msk.bf16.gmra.mrb[56].mxu0 %vm1317_vm0, %v3151_v40 }
 0xe21   : > { %v3439_v8 = vpop.permute.xlu1 %3438 }
 0xe22   : > { %v3437_v45 = vpop.permute.xlu0 %3436 }
 0xe23   : > { %8214 = vmatprep.mubr.msk.bf16.mxu0 %vm1317_vm0, %v3437_v45 }
 0xe24   : > { %8215 = vmatmul.mubr.msk.bf16.vlgmr.msra.gmra.mrb[60].mxu0 %vm1317_vm0, %v3439_v8 }
 0xe29   : > { %v3443_v9 = vpop.permute.xlu1 %3442 }
 0xe2a   : > { %v3441_v14 = vpop.permute.xlu0 %3440 }
 0xe2b   : > { %8218 = vmatprep.mubr.msk.bf16.mxu0 %vm1317_vm0, %v3441_v14 }
 0xe2c   : > { %8219 = vmatmul.mubr.msk.bf16.gmra.mrb[64].mxu0 %vm1317_vm0, %v3443_v9 }
 0xe84   : > { %v8196_v62 = vpop.f32.mrb[52].mxu0 }
 0xe85   : > { %v3202_v56 = vpop.f32.mrb[53].mxu0  ;;  %v3235_v15 = vmul.f32 0.25, %v8196_v62 }
 0xe86   : > { %v3233_v13 = vmul.f32 0.25, %v3202_v56  ;;  %v8197_v60 = vpop.f32.mrb[54].mxu0 }
 0xe87   : > { %v3205_v18 = vpop.f32.mrb[55].mxu0  ;;  %v3236_v20 = vmul.f32 0.25, %v8197_v60  ;;  %v10057_v61 = vadd.f32 %v10051_v11, %v3235_v15 }
 0xe88   : > { %v10054_v25 = vadd.f32 %v10051_v11, %v3233_v13  ;;  %v3234_v2 = vmul.f32 0.25, %v3205_v18 }
 0xe89   : > { %v10067_v16 = vadd.f32 %v10051_v11, %v3236_v20  ;;  %v3262_v10 = vsel %vm3255_vm4, %v10057_v61, -inf }
 0xe8a   : > { %v3256_v30 = vsel %vm3255_vm4, %v10054_v25, -inf  ;;  %v10062_v6 = vadd.f32 %v10051_v11, %v3234_v2 }
 0xe8b   : > { %3257 = vmax.xlane.f32.xlu0 %v3256_v30  ;;  %v3265_v37 = vsel %vm3255_vm4, %v10067_v16, -inf }
 0xe8c   : > { %v8200_v33 = vpop.f32.mrb[56].mxu0  ;;  %v3259_v35 = vsel %vm3255_vm4, %v10062_v6, -inf }
 0xe8d   : > { %3260 = vmax.xlane.f32.xlu1 %v3259_v35  ;;  %v3218_v23 = vpop.f32.mrb[57].mxu0  ;;  %v3239_v12 = vmul.f32 0.25, %v8200_v33 }
 0xe8e   : > { %v3237_v19 = vmul.f32 0.25, %v3218_v23  ;;  %v8201_v5 = vpop.f32.mrb[58].mxu0 }
 0xe8f   : > { %3263 = vmax.xlane.f32.xlu0 %v3262_v10  ;;  %v3221_v42 = vpop.f32.mrb[59].mxu0  ;;  %v10077_v17 = vadd.f32 %v10051_v11, %v3239_v12  ;;  %v3240_v43 = vmul.f32 0.25, %v8201_v5 }
 0xe90   : > { %v3238_v36 = vmul.f32 0.25, %v3221_v42  ;;  %v10072_v0 = vadd.f32 %v10051_v11, %v3237_v19 }
 0xe91   : > { %v10085_v39 = vadd.f32 %v10051_v11, %v3240_v43  ;;  %v3274_v44 = vsel %vm3255_vm4, %v10077_v17, -inf }
 0xe92   : > { %v10080_v41 = vadd.f32 %v10051_v11, %v3238_v36  ;;  %v3268_v29 = vsel %vm3255_vm4, %v10072_v0, -inf }
 0xe93   : > { %3266 = vmax.xlane.f32.xlu0 %v3265_v37  ;;  %3269 = vmax.xlane.f32.xlu1 %v3268_v29  ;;  %v3277_v46 = vsel %vm3255_vm4, %v10085_v39, -inf }
 0xe94   : > { %v3271_v38 = vsel %vm3255_vm4, %v10080_v41, -inf }
 0xe97   : > { %3275 = vmax.xlane.f32.xlu1 %v3274_v44  ;;  %3272 = vmax.xlane.f32.xlu0 %v3271_v38 }
 0xe9b   : > { %3278 = vmax.xlane.f32.xlu0 %v3277_v46 }
 0xef7   : > { %v8216_v31 = vpop.f32.mrb[60].mxu0 }
 0xef8   : > { %v3495_v49 = vpop.f32.mrb[61].mxu0  ;;  %v3528_v48 = vmul.f32 0.25, %v8216_v31 }
 0xef9   : > { %v3526_v51 = vmul.f32 0.25, %v3495_v49  ;;  %v8217_v52 = vpop.f32.mrb[62].mxu0 }
 0xefa   : > { %v3498_v55 = vpop.f32.mrb[63].mxu0  ;;  %v3529_v26 = vmul.f32 0.25, %v8217_v52  ;;  %v10097_v59 = vadd.f32 %v10051_v11, %v3528_v48 }
 0xefb   : > { %v10094_v57 = vadd.f32 %v10051_v11, %v3526_v51  ;;  %v3527_v58 = vmul.f32 0.25, %v3498_v55 }
 0xefc   : > { %v10105_v45 = vadd.f32 %v10051_v11, %v3529_v26  ;;  %v3548_v13 = vsel %vm3255_vm4, %v10097_v59, -inf }
 0xefd   : > { %v10100_v40 = vadd.f32 %v10051_v11, %v3527_v58  ;;  %v3542_v27 = vsel %vm3255_vm4, %v10094_v57, -inf }
 0xefe   : > { %3543 = vmax.xlane.f32.xlu1 %v3542_v27  ;;  %v3551_v30 = vsel %vm3255_vm4, %v10105_v45, -inf }
 0xeff   : > { %v8220_v8 = vpop.f32.mrb[64].mxu0  ;;  %v3545_v14 = vsel %vm3255_vm4, %v10100_v40, -inf }
 0xf00   : > { %3546 = vmax.xlane.f32.xlu0 %v3545_v14  ;;  %v3511_v9 = vpop.f32.mrb[65].mxu0  ;;  %v3532_v62 = vmul.f32 0.25, %v8220_v8 }
 0xf01   : > { %v3530_v56 = vmul.f32 0.25, %v3511_v9  ;;  %v8221_v15 = vpop.f32.mrb[66].mxu0 }
 0xf02   : > { %3549 = vmax.xlane.f32.xlu1 %v3548_v13  ;;  %v3514_v60 = vpop.f32.mrb[67].mxu0  ;;  %v3533_v2 = vmul.f32 0.25, %v8221_v15  ;;  %v10117_v33 = vadd.f32 %v10051_v11, %v3532_v62 }
 0xf03   : > { %v10112_v18 = vadd.f32 %v10051_v11, %v3530_v56  ;;  %v3531_v20 = vmul.f32 0.25, %v3514_v60 }
 0xf04   : > { %3552 = vmax.xlane.f32.xlu0 %v3551_v30  ;;  %v10125_v12 = vadd.f32 %v10051_v11, %v3533_v2  ;;  %v3560_v5 = vsel %vm3255_vm4, %v10117_v33, -inf }
 0xf05   : > { %v10120_v35 = vadd.f32 %v10051_v11, %v3531_v20  ;;  %v3554_v23 = vsel %vm3255_vm4, %v10112_v18, -inf }
 0xf06   : > { %3555 = vmax.xlane.f32.xlu1 %v3554_v23  ;;  %v3563_v10 = vsel %vm3255_vm4, %v10125_v12, -inf }
 0xf07   : > { %v3557_v19 = vsel %vm3255_vm4, %v10120_v35, -inf }
 0xf08   : > { %3558 = vmax.xlane.f32.xlu0 %v3557_v19 }
 0xf0a   : > { %3561 = vmax.xlane.f32.xlu1 %v3560_v5 }
 0xf0c   : > { %3564 = vmax.xlane.f32.xlu0 %v3563_v10 }
 0xf18   : > { %v3258_v42 = vpop.xlane.xlu0 %3257 }
 0xf19   : > { %v3280_v37 = vsub.f32 %v10054_v25, %v3258_v42 }
 0xf1a   : > { %v3261_v36 = vpop.xlane.xlu1 %3260 }
 0xf1b   : > { %v3281_v43 = vsub.f32 %v10062_v6, %v3261_v36  ;;  %v3288_v38 = vmul.f32 1.442695, %v3280_v37 }
 0xf1c   : > { %v3264_v11 = vpop.xlane.xlu0 %3263 }
 0xf1d   : > { %v3290_v29 = vmul.f32 1.442695, %v3281_v43  ;;  %v3282_v44 = vsub.f32 %v10057_v61, %v3264_v11 }
 0xf1f   : > { %8873 = vpow2.f32 %v3290_v29  ;;  %v3292_v46 = vmul.f32 1.442695, %v3282_v44 }
 0xf20   : > { %v3270_v31 = vpop.xlane.xlu1 %3269  ;;  %v3267_v49 = vpop.xlane.xlu0 %3266 }
 0xf21   : > { %8875 = vpow2.f32 %v3292_v46  ;;  %v3283_v48 = vsub.f32 %v10067_v16, %v3267_v49  ;;  %v3284_v51 = vsub.f32 %v10072_v0, %v3270_v31 }
 0xf22   : > { %8877 = vpow2.f32 %v3288_v38 }
 0xf23   : > { %v3294_v52 = vmul.f32 1.442695, %v3283_v48  ;;  %v3296_v61 = vmul.f32 1.442695, %v3284_v51 }
 0xf24   : > { %v3276_v55 = vpop.xlane.xlu1 %3275  ;;  %v3273_v25 = vpop.xlane.xlu0 %3272 }
 0xf25   : > { %v3286_v6 = vsub.f32 %v10077_v17, %v3276_v55  ;;  %v3285_v26 = vsub.f32 %v10080_v41, %v3273_v25  ;;  %8879 = vpow2.f32 %v3294_v52 }
 0xf27   : > { %v3300_v58 = vmul.f32 1.442695, %v3286_v6  ;;  %v3298_v27 = vmul.f32 1.442695, %v3285_v26 }
 0xf28   : > { %v3279_v8 = vpop.xlane.xlu0 %3278 }
 0xf29   : > { %v10140_v14 = vpop.eup %8873  ;;  %8881 = vpow2.f32 %v3300_v58  ;;  %v3287_v16 = vsub.f32 %v10085_v39, %v3279_v8 }
 0xf2a   : > { %8883 = vpow2.f32 %v3298_v27  ;;  %v3307_v0 = vsel %vm3255_vm4, %v10140_v14, 0.0 }
 0xf2b   : > { %v10145_v9 = vpop.eup %8875  ;;  %8885 = vpow2.f32 %v3296_v61  ;;  %v3302_v17 = vmul.f32 1.442695, %v3287_v16  ;;  %3308 = vadd.xlane.f32.xlu0 %v3307_v0 }
 0xf2c   : > { %v3310_v41 = vsel %vm3255_vm4, %v10145_v9, 0.0  ;;  %v10149_v62 = vpop.eup %8877 }
 0xf2d   : > { %8887 = vpow2.f32 %v3302_v17  ;;  %3311 = vadd.xlane.f32.xlu1 %v3310_v41  ;;  %v3304_v39 = vsel %vm3255_vm4, %v10149_v62, 0.0 }
 0xf2f   : > { %v10151_v56 = vpop.eup %8879 }
 0xf30   : > { %v3313_v15 = vsel %vm3255_vm4, %v10151_v56, 0.0 }
 0xf31   : > { %3305 = vadd.xlane.f32.xlu1 %v3304_v39  ;;  %3314 = vadd.xlane.f32.xlu0 %v3313_v15 }
 0xf33   : > { %v10157_v13 = vpop.eup %8881 }
 0xf34   : > { %v10159_v60 = vpop.eup %8883  ;;  %v3322_v2 = vsel %vm3255_vm4, %v10157_v13, 0.0 }
 0xf35   : > { %v10163_v20 = vpop.eup %8885  ;;  %3323 = vadd.xlane.f32.xlu1 %v3322_v2  ;;  %v3319_v30 = vsel %vm3255_vm4, %v10159_v60, 0.0 }
 0xf36   : > { %3320 = vadd.xlane.f32.xlu0 %v3319_v30  ;;  %v3316_v19 = vsel %vm3255_vm4, %v10163_v20, 0.0 }
 0xf37   : > { %v10167_v23 = vpop.eup %8887 }
 0xf38   : > { %v3325_v5 = vsel %vm3255_vm4, %v10167_v23, 0.0 }
 0xf39   : > { %3317 = vadd.xlane.f32.xlu1 %v3316_v19 }
 0xf3a   : > { %3326 = vadd.xlane.f32.xlu0 %v3325_v5 }
 0xf8b   : > { %v3544_v10 = vpop.xlane.xlu1 %3543 }
 0xf8c   : > { %v3566_v42 = vsub.f32 %v10094_v57, %v3544_v10 }
 0xf8d   : > { %v3547_v36 = vpop.xlane.xlu0 %3546 }
 0xf8e   : > { %v3567_v37 = vsub.f32 %v10100_v40, %v3547_v36  ;;  %v3574_v44 = vmul.f32 1.442695, %v3566_v42 }
 0xf8f   : > { %v3550_v43 = vpop.xlane.xlu1 %3549 }
 0xf90   : > { %v3576_v11 = vmul.f32 1.442695, %v3567_v37  ;;  %v3568_v29 = vsub.f32 %v10097_v59, %v3550_v43 }
 0xf91   : > { %v3553_v38 = vpop.xlane.xlu0 %3552 }
 0xf92   : > { %8889 = vpow2.f32 %v3576_v11  ;;  %v3578_v46 = vmul.f32 1.442695, %v3568_v29  ;;  %v3569_v31 = vsub.f32 %v10105_v45, %v3553_v38 }
 0xf93   : > { %v3556_v49 = vpop.xlane.xlu1 %3555 }
 0xf94   : > { %8891 = vpow2.f32 %v3578_v46  ;;  %v3580_v48 = vmul.f32 1.442695, %v3569_v31  ;;  %v3570_v57 = vsub.f32 %v10112_v18, %v3556_v49 }
 0xf95   : > { %8893 = vpow2.f32 %v3574_v44  ;;  %v3559_v51 = vpop.xlane.xlu0 %3558 }
 0xf96   : > { %8895 = vpow2.f32 %v3580_v48  ;;  %v3582_v55 = vmul.f32 1.442695, %v3570_v57  ;;  %v3571_v59 = vsub.f32 %v10120_v35, %v3559_v51 }
 0xf97   : > { %v3562_v52 = vpop.xlane.xlu1 %3561 }
 0xf98   : > { %v3572_v40 = vsub.f32 %v10117_v33, %v3562_v52  ;;  %v3584_v58 = vmul.f32 1.442695, %v3571_v59 }
 0xf99   : > { %v3565_v6 = vpop.xlane.xlu0 %3564 }
 0xf9a   : > { %v3586_v25 = vmul.f32 1.442695, %v3572_v40  ;;  %v3573_v18 = vsub.f32 %v10125_v12, %v3565_v6 }
 0xf9c   : > { %v10180_v26 = vpop.eup %8889  ;;  %8897 = vpow2.f32 %v3586_v25  ;;  %v3588_v16 = vmul.f32 1.442695, %v3573_v18 }
 0xf9d   : > { %v3593_v45 = vsel %vm3255_vm4, %v10180_v26, 0.0  ;;  %8899 = vpow2.f32 %v3582_v55 }
 0xf9e   : > { %v10184_v61 = vpop.eup %8891  ;;  %3594 = vadd.xlane.f32.xlu0 %v3593_v45  ;;  %8901 = vpow2.f32 %v3584_v58 }
 0xf9f   : > { %v10187_v27 = vpop.eup %8893  ;;  %v3596_v33 = vsel %vm3255_vm4, %v10184_v61, 0.0  ;;  %8903 = vpow2.f32 %v3588_v16 }
 0xfa0   : > { %v10191_v35 = vpop.eup %8895  ;;  %3597 = vadd.xlane.f32.xlu1 %v3596_v33  ;;  %v3590_v0 = vsel %vm3255_vm4, %v10187_v27, 0.0 }
 0xfa1   : > { %v3599_v8 = vsel %vm3255_vm4, %v10191_v35, 0.0 }
 0xfa2   : > { %3600 = vadd.xlane.f32.xlu0 %v3599_v8 }
 0xfa4   : > { %3591 = vadd.xlane.f32.xlu1 %v3590_v0 }
 0xfa6   : > { %v10197_v12 = vpop.eup %8897 }
 0xfa7   : > { %v3608_v17 = vsel %vm3255_vm4, %v10197_v12, 0.0  ;;  %v10201_v41 = vpop.eup %8899 }
 0xfa8   : > { %3609 = vadd.xlane.f32.xlu0 %v3608_v17  ;;  %v3602_v39 = vsel %vm3255_vm4, %v10201_v41, 0.0  ;;  %v10205_v15 = vpop.eup %8901 }
 0xfa9   : > { %v3605_v2 = vsel %vm3255_vm4, %v10205_v15, 0.0  ;;  %v10209_v30 = vpop.eup %8903 }
 0xfaa   : > { %v3611_v19 = vsel %vm3255_vm4, %v10209_v30, 0.0 }
 0xfac   : > { %3603 = vadd.xlane.f32.xlu0 %v3602_v39 }
 0xfb0   : > { %3606 = vadd.xlane.f32.xlu0 %v3605_v2 }
 0xfb4   : > { %3612 = vadd.xlane.f32.xlu0 %v3611_v19 }
 0xfb5   : > { %3349 = vrot.lane.b32.xlu1 %v9977_v53, %s11559_s19 }
 0xfb8   : > { %v3309_v5 = vpop.xlane.xlu0 %3308 }
 0xfb9   : > { %3634 = vrot.lane.b32.xlu1 %v9977_v53, %s11560_s24  ;;  %8905 = vrcp.f32 %v3309_v5 }
 0xfba   : > { %v3312_v10 = vpop.xlane.xlu1 %3311 }
 0xfbe   : > { %v3306_v42 = vpop.xlane.xlu1 %3305  ;;  %v3315_v44 = vpop.xlane.xlu0 %3314 }
 0xfbf   : > { %8907 = vrcp.f32 %v3306_v42 }
 0xfc0   : > { %8909 = vrcp.f32 %v3315_v44 }
 0xfc2   : > { %v3324_v38 = vpop.xlane.xlu1 %3323 }
 0xfc3   : > { %v8906_v36 = vpop.eup %8905  ;;  %v3321_v46 = vpop.xlane.xlu0 %3320 }
 0xfc4   : > { %v3331_v11 = vmul.f32 %v8906_v36, %v10140_v14 }
 0xfc6   : > { %v3318_v31 = vpop.xlane.xlu1 %3317 }
 0xfc7   : > { %v3327_v53 = vpop.xlane.xlu0 %3326  ;;  %8911 = vrcp.f32 %v3318_v31 }
 0xfc8   : > { %8913 = vrcp.f32 %v3312_v10 }
 0xfc9   : > { %v8908_v37 = vpop.eup %8907  ;;  %8915 = vrcp.f32 %v3321_v46 }
 0xfca   : > { %v3329_v43 = vmul.f32 %v8908_v37, %v10149_v62  ;;  %8917 = vrcp.f32 %v3327_v53  ;;  %v8910_v51 = vpop.eup %8909 }
 0xfcb   : > { %8919 = vrcp.f32 %v3324_v38  ;;  %v3335_v55 = vmul.f32 %v8910_v51, %v10151_v56 }
 0xfcc   : > { %v3344_v29 = vpack.c.bf16 %v3331_v11, %v3329_v43 }
 0xfce   : > { %8204 = vmatprep.mubr.msk.bf16.mxu1 %vm3255_vm4, %v3344_v29 }
 0xfd1   : > { %v8912_v57 = vpop.eup %8911 }
 0xfd2   : > { %v8914_v52 = vpop.eup %8913  ;;  %v3337_v6 = vmul.f32 %v8912_v57, %v10163_v20 }
 0xfd3   : > { %v8916_v40 = vpop.eup %8915  ;;  %v3333_v45 = vmul.f32 %v8914_v52, %v10145_v9 }
 0xfd4   : > { %v3339_v18 = vmul.f32 %v8916_v40, %v10159_v60  ;;  %v8918_v8 = vpop.eup %8917  ;;  %v8750_v40 = vld [vmem:[%s11561_s27 + $0x8] sm:$0xff]  }
 0xfd5   : > { %v3345_v33 = vpack.c.bf16 %v3335_v55, %v3333_v45  ;;  %v8920_v17 = vpop.eup %8919  ;;  %v3343_v60 = vmul.f32 %v8918_v8, %v10167_v23 }
 0xfd6   : > { %v3346_v56 = vpack.c.bf16 %v3339_v18, %v3337_v6  ;;  %v3341_v5 = vmul.f32 %v8920_v17, %v10157_v13 }
 0xfd8   : > { %v3347_v42 = vpack.c.bf16 %v3343_v60, %v3341_v5 }
0x102b   : > { %v3595_v49 = vpop.xlane.xlu0 %3594 }
0x102c   : > { %8921 = vrcp.f32 %v3595_v49 }
0x102d   : > { %v3598_v48 = vpop.xlane.xlu1 %3597 }
0x102f   : > { %v3601_v62 = vpop.xlane.xlu0 %3600 }
0x1031   : > { %v3592_v14 = vpop.xlane.xlu1 %3591 }
0x1032   : > { %8923 = vrcp.f32 %v3592_v14 }
0x1033   : > { %8925 = vrcp.f32 %v3601_v62 }
0x1034   : > { %8927 = vrcp.f32 %v3598_v48 }
0x1035   : > { %v3350_v59 = vpop.permute.xlu1 %3349  ;;  %v3610_v25 = vpop.xlane.xlu0 %3609 }
0x1036   : > { %8525 = vmatprep.subr.msk.bf16.mxu1 %vm3363_vm5, %v3350_v59  ;;  %v3365_v58 = vsel %vm3363_vm5, %v3350_v59, 0  ;;  %v8922_v20 = vpop.eup %8921 }
0x1037   : > { %8203 = vmatpush3.bf16.msra.mxu1 %v3365_v58  ;;  %v3617_v10 = vmul.f32 %v8922_v20, %v10180_v26 }
0x1039   : > { %v3635_v16 = vpop.permute.xlu1 %3634  ;;  %v3604_v0 = vpop.xlane.xlu0 %3603 }
0x103a   : > { %8205 = vmatmul.mubr.msk.bf16.vlgmr.msra.gmra.mrb[36].mxu1 %vm3255_vm4, %v3345_v33  ;;  %8527 = vmatprep.subr.msk.bf16.mxu1 %vm3363_vm5, %v3635_v16  ;;  %v3649_v9 = vsel %vm3363_vm5, %v3635_v16, 0  ;;  %8929 = vrcp.f32 %v3604_v0 }
0x103b   : > { %8208 = vmatprep.mubr.msk.bf16.mxu1 %vm3255_vm4, %v3346_v56  ;;  %8223 = vmatpush3.bf16.msra.mxu1 %v3649_v9 }
0x103c   : > { %v8924_v39 = vpop.eup %8923 }
0x103d   : > { %v3607_v2 = vpop.xlane.xlu0 %3606  ;;  %v3615_v19 = vmul.f32 %v8924_v39, %v10187_v27  ;;  %v8926_v36 = vpop.eup %8925 }
0x103e   : > { %8931 = vrcp.f32 %v3607_v2  ;;  %v8928_v11 = vpop.eup %8927  ;;  %v3621_v23 = vmul.f32 %v8926_v36, %v10191_v35 }
0x103f   : > { %8933 = vrcp.f32 %v3610_v25  ;;  %v3630_v43 = vpack.c.bf16 %v3617_v10, %v3615_v19  ;;  %v3619_v29 = vmul.f32 %v8928_v11, %v10184_v61  ;;  %v8749_v61 = vld [vmem:[%s11561_s27] sm:$0xff]  }
0x1040   : > { %8232 = vmatprep.subr.bf16.mxu0 %v8749_v61 }
0x1041   : > { %v3613_v37 = vpop.xlane.xlu0 %3612  ;;  %v3631_v44 = vpack.c.bf16 %v3621_v23, %v3619_v29  ;;  %8233 = vmatpush3.bf16.msra.mxu0 %v8749_v61 }
0x1042   : > { %8935 = vrcp.f32 %v3613_v37  ;;  %8209 = vmatmul.mubr.msk.bf16.gmra.mrb[40].mxu1 %vm3255_vm4, %v3347_v42  ;;  %8234 = vmatprep.subr.bf16.mxu0 %v8750_v40 }
0x1043   : > { %8224 = vmatprep.mubr.msk.bf16.mxu1 %vm3255_vm4, %v3630_v43 }
0x1044   : > { %v8930_v27 = vpop.eup %8929 }
0x1045   : > { %v3623_v26 = vmul.f32 %v8930_v27, %v10201_v41  ;;  %8235 = vmatpush3.bf16.msra.mxu0 %v8750_v40 }
0x1048   : > { %v8932_v13 = vpop.eup %8931 }
0x1049   : > { %v3625_v38 = vmul.f32 %v8932_v13, %v10205_v15  ;;  %v8934_v46 = vpop.eup %8933 }
0x104a   : > { %8225 = vmatmul.mubr.msk.bf16.vlgmr.msra.gmra.mrb[44].mxu1 %vm3255_vm4, %v3631_v44  ;;  %v3627_v35 = vmul.f32 %v8934_v46, %v10197_v12 }
0x104b   : > { %v3632_v31 = vpack.c.bf16 %v3625_v38, %v3623_v26 }
0x104c   : > { %v8936_v53 = vpop.eup %8935 }
0x104d   : > { %8228 = vmatprep.mubr.msk.bf16.mxu1 %vm3255_vm4, %v3632_v31  ;;  %v3629_v49 = vmul.f32 %v8936_v53, %v10209_v30  ;;  %v7627_v53 = vld [vmem:[%s11563_s11] ss:$0 sm:$0xff] }
0x104f   : > { %v3633_v48 = vpack.c.bf16 %v3629_v49, %v3627_v35 }
0x1052   : > { %8229 = vmatmul.mubr.msk.bf16.gmra.mrb[48].mxu1 %vm3255_vm4, %v3633_v48 }
0x110d   : > { %v8206_v41 = vpop.f32.mrb[36].mxu1 }
0x110e   : > { %v3401_v15 = vpop.f32.mrb[37].mxu1 }
0x110f   : > { %v8207_v51 = vpop.f32.mrb[38].mxu1 }
0x1110   : > { %v3404_v62 = vpop.f32.mrb[39].mxu1 }
0x1115   : > { %v8210_v14 = vpop.f32.mrb[40].mxu1 }
0x1116   : > { %v3417_v57 = vpop.f32.mrb[41].mxu1 }
0x1117   : > { %v8211_v52 = vpop.f32.mrb[42].mxu1 }
0x1118   : > { %v3420_v55 = vpop.f32.mrb[43].mxu1 }
0x111d   : > { %v8226_v12 = vpop.f32.mrb[44].mxu1 }
0x111e   : > { %v3685_v59 = vpop.f32.mrb[45].mxu1 }
0x111f   : > { %v8227_v30 = vpop.f32.mrb[46].mxu1 }
0x1120   : > { %v8656_v25 = vpack.i.bf16 %v8227_v30, %v8226_v12  ;;  %v3688_v6 = vpop.f32.mrb[47].mxu1 }
0x1121   : > { %v8651_v45 = vpack.i.bf16 %v3688_v6, %v3685_v59 }
0x1122   : > { %8657 = vrot.lane.b32.xlu1 %v8656_v25, %s11562_s30 }
0x1123   : > { %8652 = vrot.lane.b32.xlu0 %v8651_v45, %s11562_s30 }
0x1125   : > { %v8230_v58 = vpop.f32.mrb[48].mxu1 }
0x1126   : > { %v3701_v18 = vpop.f32.mrb[49].mxu1 }
0x1127   : > { %v8231_v33 = vpop.f32.mrb[50].mxu1 }
0x1128   : > { %v8666_v8 = vpack.i.bf16 %v8231_v33, %v8230_v58  ;;  %v3704_v16 = vpop.f32.mrb[51].mxu1 }
0x1129   : > { %v8661_v0 = vpack.i.bf16 %v3704_v16, %v3701_v18 }
0x112b   : > { %8662 = vrot.lane.b32.xlu1 %v8661_v0, %s11562_s30 }
0x112f   : > { %8667 = vrot.lane.b32.xlu1 %v8666_v8, %s11562_s30 }
0x1194   : > { %v8658_v56 = vpop.permute.xlu1 %8657 }
0x1195   : > { %v8660_v17 = vunpack.i.h.bf16 %v8658_v56  ;;  %v8659_v9 = vunpack.i.l.bf16 %v8658_v56  ;;  %v8653_v20 = vpop.permute.xlu0 %8652 }
0x1196   : > { %v8655_v39 = vunpack.i.h.bf16 %v8653_v20  ;;  %v8654_v60 = vunpack.i.l.bf16 %v8653_v20 }
0x1197   : > { %v3751_v2 = vsel %vm1317_vm0, %v8207_v51, %v8660_v17  ;;  %v3750_v19 = vsel %vm1317_vm0, %v8206_v41, %v8659_v9  ;;  %v10305_v17 = vld [vmem:[%s9398_s25] sm:$0x3f] }
0x1198   : > { %v3761_v5 = vpack.c.bf16 %v3751_v2, %v3750_v19  ;;  %v3749_v10 = vsel %vm1317_vm0, %v3404_v62, %v8655_v39  ;;  %v3748_v42 = vsel %vm1317_vm0, %v3401_v15, %v8654_v60 }
0x1199   : > { %v3760_v36 = vpack.c.bf16 %v3749_v10, %v3748_v42 }
0x119b   : > { %8236 = vmatprep.mubr.msk.bf16.mxu0 %vm1619_vm2, %v3760_v36 }
0x119c   : > { %8237 = vmatmul.mubr.msk.bf16.vlgmr.msra.gmra.mrb[68].mxu0 %vm1619_vm2, %v3761_v5 }
0x119d   : > { %v8663_v37 = vpop.permute.xlu1 %8662 }
0x119e   : > { %v8665_v43 = vunpack.i.h.bf16 %v8663_v37  ;;  %v8664_v11 = vunpack.i.l.bf16 %v8663_v37 }
0x11a0   : > { %v3753_v23 = vsel %vm1317_vm0, %v3420_v55, %v8665_v43  ;;  %v3752_v27 = vsel %vm1317_vm0, %v3417_v57, %v8664_v11 }
0x11a1   : > { %v8668_v29 = vpop.permute.xlu1 %8667  ;;  %v3762_v13 = vpack.c.bf16 %v3753_v23, %v3752_v27 }
0x11a2   : > { %v8670_v44 = vunpack.i.h.bf16 %v8668_v29  ;;  %v8669_v26 = vunpack.i.l.bf16 %v8668_v29 }
0x11a3   : > { %8240 = vmatprep.mubr.msk.bf16.mxu0 %vm1619_vm2, %v3762_v13 }
0x11a4   : > { %v3755_v38 = vsel %vm1317_vm0, %v8211_v52, %v8670_v44  ;;  %v3754_v46 = vsel %vm1317_vm0, %v8210_v14, %v8669_v26 }
0x11a5   : > { %v3763_v31 = vpack.c.bf16 %v3755_v38, %v3754_v46 }
0x11a7   : > { %8241 = vmatmul.mubr.msk.bf16.gmra.mrb[72].mxu0 %vm1619_vm2, %v3763_v31 }
0x126f   : > { %v8238_v35 = vpop.f32.mrb[68].mxu0 }
0x1270   : > { %v3829_v49 = vpop.f32.mrb[69].mxu0  ;;  %v3838_v48 = vadd.f32 %v8238_v35, %v7627_v53 }
0x1271   : > { %v3830_v61 = vadd.f32 %v7627_v53, %v3829_v49  ;;  %v8239_v41 = vpop.f32.mrb[70].mxu0 }
0x1272   : > { %v3832_v15 = vpop.f32.mrb[71].mxu0  ;;  %v3841_v62 = vadd.f32 %v8239_v41, %v7627_v53  ;;  %v10268_v40 = vadd.f32 %v3838_v48, %v10002_v1 }
0x1273   : > { %v10265_v51 = vadd.f32 %v3830_v61, %v9994_v4  ;;  %v3833_v57 = vadd.f32 %v7627_v53, %v3832_v15 }
0x1274   : > { %v10276_v55 = vadd.f32 %v3841_v62, %v10005_v47  ;;  %v3874_v4 = vsel %vm1619_vm2, %v10268_v40, 0.0 }
0x1275   : > { %v10271_v14 = vadd.f32 %v3833_v57, %v9997_v22  ;;  %v3868_v52 = vsel %vm1619_vm2, %v10265_v51, 0.0 }
0x1276   : > { %3869 = vadd.xlane.f32.xlu1 %v3868_v52  ;;  %v3877_v22 = vsel %vm1619_vm2, %v10276_v55, 0.0 }
0x1277   : > { %v3871_v12 = vsel %vm1619_vm2, %v10271_v14, 0.0 }
0x1278   : > { %3872 = vadd.xlane.f32.xlu0 %v3871_v12 }
0x127a   : > { %v8242_v59 = vpop.f32.mrb[72].mxu0  ;;  %3875 = vadd.xlane.f32.xlu1 %v3874_v4 }
0x127b   : > { %v3854_v1 = vadd.f32 %v8242_v59, %v7627_v53  ;;  %v3845_v30 = vpop.f32.mrb[73].mxu0 }
0x127c   : > { %v3846_v25 = vadd.f32 %v7627_v53, %v3845_v30  ;;  %v8243_v6 = vpop.f32.mrb[74].mxu0  ;;  %3878 = vadd.xlane.f32.xlu0 %v3877_v22 }
0x127d   : > { %v10285_v47 = vadd.f32 %v3854_v1, %v10022_v28  ;;  %v3848_v45 = vpop.f32.mrb[75].mxu0  ;;  %v3857_v58 = vadd.f32 %v8243_v6, %v7627_v53 }
0x127e   : > { %v3849_v18 = vadd.f32 %v7627_v53, %v3848_v45  ;;  %v10288_v33 = vadd.f32 %v3846_v25, %v10011_v21 }
0x127f   : > { %v3886_v8 = vsel %vm1619_vm2, %v10285_v47, 0.0  ;;  %v10296_v0 = vadd.f32 %v3857_v58, %v10025_v34  ;;  %v8751_v58 = vld [vmem:[%s11564_s26] sm:$0xff]   ;;  %s11567_s26 = sld [smem:[#allocation37_spill]] }
0x1280   : > { %v10293_v16 = vadd.f32 %v3849_v18, %v10014_v63  ;;  %3887 = vadd.xlane.f32.xlu1 %v3886_v8  ;;  %v3880_v56 = vsel %vm1619_vm2, %v10288_v33, 0.0  ;;  %v1909_v63 = vrot.slane %v10305_v17, 3  ;;  %8244 = vmatprep.subr.bf16.mxu1 %v8751_v58  ;;  %v8752_v8 = vld [vmem:[%s11565_s2 + $0x8] sm:$0xff]  }
0x1281   : > { %v3889_v21 = vsel %vm1619_vm2, %v10296_v0, 0.0  ;;  %8245 = vmatpush3.bf16.msra.mxu1 %v8751_v58 }
0x1282   : > { %v3883_v28 = vsel %vm1619_vm2, %v10293_v16, 0.0  ;;  %8246 = vmatprep.subr.bf16.mxu1 %v8752_v8 }
0x1283   : > { %3884 = vadd.xlane.f32.xlu0 %v3883_v28  ;;  %v1917_v28 = vrot.slane %v10305_v17, 5 }
0x1284   : > { %3881 = vadd.xlane.f32.xlu1 %v3880_v56 }
0x1285   : > { %8247 = vmatpush3.bf16.msra.mxu1 %v8752_v8  ;;  %s11568_s15 = smov %s11567_s26 }
0x1287   : > { %3890 = vadd.xlane.f32.xlu0 %v3889_v21 }
0x1295   : > { %1910 = vrot.lane.b32.xlu1 %v1909_v63, %s11559_s19 }
0x1303   : > { %v3870_v34 = vpop.xlane.xlu1 %3869 }
0x1304   : > { %v3892_v20 = vmul.f32 0.03125, %v3870_v34 }
0x1305   : > { %v3873_v9 = vpop.xlane.xlu0 %3872 }
0x1306   : > { %v10310_v19 = vsub.f32 %v10265_v51, %v3892_v20  ;;  %v3893_v36 = vmul.f32 0.03125, %v3873_v9 }
0x1307   : > { %v3876_v39 = vpop.xlane.xlu1 %3875 }
0x1308   : > { %v3894_v60 = vmul.f32 0.03125, %v3876_v39  ;;  %v3908_v23 = vmul.f32 %v10310_v19, %v10310_v19  ;;  %v10324_v29 = vsub.f32 %v10271_v14, %v3893_v36  ;;  %v1914_v36 = vrot.slane %v10305_v17, 4 }
0x1309   : > { %v3879_v2 = vpop.xlane.xlu0 %3878 }
0x130a   : > { %v10313_v5 = vsub.f32 %v10268_v40, %v3894_v60  ;;  %v3895_v10 = vmul.f32 0.03125, %v3879_v2  ;;  %v3916_v38 = vsel %vm1619_vm2, %v3908_v23, 0.0  ;;  %v3909_v35 = vmul.f32 %v10324_v29, %v10324_v29 }
0x130c   : > { %v3910_v42 = vmul.f32 %v10313_v5, %v10313_v5  ;;  %v10318_v43 = vsub.f32 %v10276_v55, %v3895_v10  ;;  %v3919_v52 = vsel %vm1619_vm2, %v3909_v35, 0.0 }
0x130d   : > { %v3888_v37 = vpop.xlane.xlu1 %3887 }
0x130e   : > { %v3922_v11 = vsel %vm1619_vm2, %v3910_v42, 0.0  ;;  %v3898_v44 = vmul.f32 0.03125, %v3888_v37  ;;  %v3911_v46 = vmul.f32 %v10318_v43, %v10318_v43 }
0x130f   : > { %3923 = vadd.xlane.f32.xlu0 %v3922_v11 }
0x1310   : > { %v3885_v27 = vpop.xlane.xlu0 %3884  ;;  %v10335_v49 = vsub.f32 %v10285_v47, %v3898_v44  ;;  %v3925_v61 = vsel %vm1619_vm2, %v3911_v46, 0.0 }
0x1311   : > { %v3882_v13 = vpop.xlane.xlu1 %3881  ;;  %v3897_v62 = vmul.f32 0.03125, %v3885_v27 }
0x1312   : > { %v3896_v26 = vmul.f32 0.03125, %v3882_v13  ;;  %v3914_v12 = vmul.f32 %v10335_v49, %v10335_v49  ;;  %v1916_v13 = vadd.f32 %v1914_v36, %v9730_v7 }
0x1313   : > { %3917 = vadd.xlane.f32.xlu0 %v3916_v38  ;;  %v10348_v4 = vsub.f32 %v10293_v16, %v3897_v62 }
0x1314   : > { %v10330_v31 = vsub.f32 %v10288_v33, %v3896_v26  ;;  %v3891_v53 = vpop.xlane.xlu0 %3890  ;;  %v3934_v59 = vsel %vm1619_vm2, %v3914_v12, 0.0  ;;  %v3972_v35 = vadd.f32 1.0, %v1916_v13 }
0x1315   : > { %v3899_v48 = vmul.f32 0.03125, %v3891_v53  ;;  %v3913_v22 = vmul.f32 %v10348_v4, %v10348_v4  ;;  %v1911_v6 = vpop.permute.xlu1 %1910 }
0x1316   : > { %v3912_v41 = vmul.f32 %v10330_v31, %v10330_v31  ;;  %v1913_v45 = vadd.f32 %v1911_v6, %v9728_v3 }
0x1317   : > { %3926 = vadd.xlane.f32.xlu0 %v3925_v61  ;;  %v10342_v57 = vsub.f32 %v10296_v0, %v3899_v48  ;;  %v3931_v25 = vsel %vm1619_vm2, %v3913_v22, 0.0 }
0x1318   : > { %v3928_v15 = vsel %vm1619_vm2, %v3912_v41, 0.0  ;;  %v3988_v18 = vrot.slane %v1913_v45, %v9575_v24 }
0x1319   : > { %3929 = vadd.xlane.f32.xlu1 %v3928_v15  ;;  %v3915_v1 = vmul.f32 %v10342_v57, %v10342_v57 }
0x131b   : > { %3920 = vadd.xlane.f32.xlu0 %v3919_v52  ;;  %v3937_v30 = vsel %vm1619_vm2, %v3915_v1, 0.0  ;;  %v3976_v52 = vrot.slane %v3972_v35, %v9575_v24  ;;  %v8760_v35 = vld [vmem:[%s11568_s15 + $0x38] sm:$0xff]  }
0x131f   : > { %3935 = vadd.xlane.f32.xlu0 %v3934_v59 }
0x1323   : > { %3938 = vadd.xlane.f32.xlu0 %v3937_v30 }
0x1327   : > { %3932 = vadd.xlane.f32.xlu0 %v3931_v25 }
0x133d   : > { %3990 = vrot.lane.b32.xlu0 %v3988_v18, %s11566_s16 }
0x1341   : > { %1918 = vrot.lane.b32.xlu0 %v1917_v28, %s11566_s16 }
0x139c   : > { %v3924_v56 = vpop.xlane.xlu0 %3923 }
0x139d   : > { %v3942_v21 = vmul.f32 0.03125, %v3924_v56 }
0x139f   : > { %v3950_v9 = vadd.f32 1e-06, %v3942_v21 }
0x13a0   : > { %v3918_v63 = vpop.xlane.xlu0 %3917 }
0x13a1   : > { %v3940_v34 = vmul.f32 0.03125, %v3918_v63  ;;  %8937 = vrsqrt.f32 %v3950_v9 }
0x13a3   : > { %v3948_v20 = vadd.f32 1e-06, %v3940_v34 }
0x13a4   : > { %v3927_v39 = vpop.xlane.xlu0 %3926 }
0x13a5   : > { %v3943_v60 = vmul.f32 0.03125, %v3927_v39  ;;  %8939 = vrsqrt.f32 %v3948_v20 }
0x13a6   : > { %v3930_v10 = vpop.xlane.xlu1 %3929 }
0x13a7   : > { %v3951_v2 = vadd.f32 1e-06, %v3943_v60  ;;  %v3944_v11 = vmul.f32 0.03125, %v3930_v10 }
0x13a8   : > { %v3921_v42 = vpop.xlane.xlu0 %3920 }
0x13a9   : > { %8941 = vrsqrt.f32 %v3951_v2  ;;  %v3941_v37 = vmul.f32 0.03125, %v3921_v42  ;;  %v3952_v26 = vadd.f32 1e-06, %v3944_v11 }
0x13ab   : > { %v3949_v23 = vadd.f32 1e-06, %v3941_v37  ;;  %v8938_v53 = vpop.eup %8937 }
0x13ac   : > { %v3936_v27 = vpop.xlane.xlu0 %3935  ;;  %v3966_v12 = vmul.f32 %v8938_v53, %v10313_v5  ;;  %v8759_v53 = vld [vmem:[%s11568_s15 + $0x30] sm:$0xff]  }
0x13ad   : > { %8943 = vrsqrt.f32 %v3949_v23  ;;  %v3946_v44 = vmul.f32 0.03125, %v3936_v27 }
0x13ae   : > { %8945 = vrsqrt.f32 %v3952_v26  ;;  %v3979_v58 = vmul.f32 %v3976_v52, %v3966_v12  ;;  %v8756_v26 = vld [vmem:[%s11568_s15 + $0x18] sm:$0xff]  }
0x13af   : > { %v3954_v38 = vadd.f32 1e-06, %v3946_v44  ;;  %v8940_v61 = vpop.eup %8939  ;;  %v8755_v44 = vld [vmem:[%s11568_s15 + $0x10] sm:$0xff]  }
0x13b0   : > { %v3939_v46 = vpop.xlane.xlu0 %3938  ;;  %v3964_v1 = vmul.f32 %v8940_v61, %v10310_v19 }
0x13b1   : > { %v3947_v48 = vmul.f32 0.03125, %v3939_v46  ;;  %8947 = vrsqrt.f32 %v3954_v38  ;;  %v8757_v38 = vld [vmem:[%s11568_s15 + $0x20] sm:$0xff]   ;;  %v8758_v46 = vld [vmem:[%s11568_s15 + $0x28] sm:$0xff]  }
0x13b2   : > { %v3977_v18 = vmul.f32 %v3976_v52, %v3964_v1 }
0x13b3   : > { %v8942_v41 = vpop.eup %8941  ;;  %v3955_v15 = vadd.f32 1e-06, %v3947_v48  ;;  %v7634_v48 = vld [vmem:[%s11569_s22] ss:$0 sm:$0xff]  ;;  %s11571_s22 = sld [smem:[#allocation38_spill]] }
0x13b4   : > { %v3967_v17 = vmul.f32 %v8942_v41, %v10318_v43  ;;  %v3933_v62 = vpop.xlane.xlu0 %3932 }
0x13b5   : > { %8949 = vrsqrt.f32 %v3955_v15  ;;  %v3945_v59 = vmul.f32 0.03125, %v3933_v62 }
0x13b6   : > { %v3980_v22 = vmul.f32 %v3976_v52, %v3967_v17 }
0x13b7   : > { %v8944_v30 = vpop.eup %8943  ;;  %v3953_v25 = vadd.f32 1e-06, %v3945_v59 }
0x13b8   : > { %v3991_v6 = vpop.permute.xlu0 %3990  ;;  %v3965_v45 = vmul.f32 %v8944_v30, %v10324_v29  ;;  %v8946_v63 = vpop.eup %8945 }
0x13b9   : > { %8951 = vrsqrt.f32 %v3953_v25  ;;  %v3995_v8 = vadd.f32 %v3991_v6, %v3979_v58  ;;  %v3996_v28 = vadd.f32 %v3991_v6, %v3980_v22  ;;  %v3993_v56 = vadd.f32 %v3991_v6, %v3977_v18  ;;  %s11572_s0 = smov %s11571_s22 }
0x13ba   : > { %v3978_v43 = vmul.f32 %v3976_v52, %v3965_v45  ;;  %v3968_v19 = vmul.f32 %v8946_v63, %v10330_v31 }
0x13bb   : > { %v8948_v5 = vpop.eup %8947  ;;  %v4006_v20 = vpack.c.bf16 %v3996_v28, %v3995_v8 }
0x13bc   : > { %v3994_v21 = vadd.f32 %v3991_v6, %v3978_v43  ;;  %v3970_v29 = vmul.f32 %v8948_v5, %v10335_v49  ;;  %v3981_v42 = vmul.f32 %v3976_v52, %v3968_v19  ;;  %v8753_v49 = vld [vmem:[%s11567_s26] sm:$0xff]   ;;  %s11573_s26 = smov 48  }
0x13bd   : > { %8256 = vmatprep.subr.bf16.mxu0 %v8753_v49 }
0x13be   : > { %v4005_v34 = vpack.c.bf16 %v3994_v21, %v3993_v56  ;;  %v3983_v36 = vmul.f32 %v3976_v52, %v3970_v29  ;;  %v3997_v23 = vadd.f32 %v3991_v6, %v3981_v42  ;;  %8257 = vmatpush3.bf16.msra.mxu0 %v8753_v49 }
0x13bf   : > { %v8950_v9 = vpop.eup %8949 }
0x13c0   : > { %8248 = vmatprep.mubr.msk.bf16.mxu1 %vm1619_vm2, %v4005_v34  ;;  %v3971_v39 = vmul.f32 %v8950_v9, %v10342_v57  ;;  %v3999_v27 = vadd.f32 %v3991_v6, %v3983_v36 }
0x13c1   : > { %8249 = vmatmul.mubr.msk.bf16.vlgmr.msra.gmra.mrb[52].mxu1 %vm1619_vm2, %v4006_v20 }
0x13c2   : > { %v3984_v2 = vmul.f32 %v3976_v52, %v3971_v39 }
0x13c3   : > { %v8952_v60 = vpop.eup %8951 }
0x13c4   : > { %v3969_v10 = vmul.f32 %v8952_v60, %v10348_v4  ;;  %v4000_v11 = vadd.f32 %v3991_v6, %v3984_v2  ;;  %v8754_v4 = vld [vmem:[%s11568_s15 + $0x8] sm:$0xff]  }
0x13c5   : > { %8258 = vmatprep.subr.bf16.mxu0 %v8754_v4 }
0x13c6   : > { %v3982_v37 = vmul.f32 %v3976_v52, %v3969_v10  ;;  %v4008_v13 = vpack.c.bf16 %v4000_v11, %v3999_v27  ;;  %8259 = vmatpush3.bf16.msra.mxu0 %v8754_v4 }
0x13c7   : > { %8260 = vmatprep.subr.bf16.mxu0 %v8755_v44 }
0x13c8   : > { %v3998_v31 = vadd.f32 %v3991_v6, %v3982_v37 }
0x13ca   : > { %v4007_v57 = vpack.c.bf16 %v3998_v31, %v3997_v23  ;;  %8261 = vmatpush3.bf16.msra.mxu0 %v8755_v44 }
0x13cb   : > { %8262 = vmatprep.subr.bf16.mxu0 %v8756_v26 }
0x13cc   : > { %8252 = vmatprep.mubr.msk.bf16.mxu1 %vm1619_vm2, %v4007_v57 }
0x13cd   : > { %8253 = vmatmul.mubr.msk.bf16.gmra.mrb[56].mxu1 %vm1619_vm2, %v4008_v13 }
0x13ce   : > { %8263 = vmatpush3.bf16.msra.mxu0 %v8756_v26 }
0x13cf   : > { %8264 = vmatprep.subr.bf16.mxu0 %v8757_v38 }
0x13d2   : > { %8265 = vmatpush3.bf16.msra.mxu0 %v8757_v38 }
0x13d3   : > { %8266 = vmatprep.subr.bf16.mxu0 %v8758_v46 }
0x13d6   : > { %8267 = vmatpush3.bf16.msra.mxu0 %v8758_v46 }
0x13d7   : > { %8268 = vmatprep.subr.bf16.mxu0 %v8759_v53 }
0x13da   : > { %8269 = vmatpush3.bf16.msra.mxu0 %v8759_v53 }
0x13db   : > { %8270 = vmatprep.subr.bf16.mxu0 %v8760_v35 }
0x13de   : > { %8271 = vmatpush3.bf16.msra.mxu0 %v8760_v35 }
0x1494   : > { %v8250_v61 = vpop.f32.mrb[52].mxu1 }
0x1495   : > { %v10388_v41 = vadd.f32 %v8250_v61, %v7634_v48  ;;  %v4074_v15 = vpop.f32.mrb[53].mxu1 }
0x1496   : > { %v10390_v17 = vadd.f32 %v7634_v48, %v4074_v15  ;;  %v8251_v62 = vpop.f32.mrb[54].mxu1 }
0x1497   : > { %v4107_v52 = vmul.f32 %v10388_v41, %v10388_v41  ;;  %v10394_v12 = vadd.f32 %v8251_v62, %v7634_v48  ;;  %v4077_v59 = vpop.f32.mrb[55].mxu1 }
0x1498   : > { %v4105_v1 = vmul.f32 %v10390_v17, %v10390_v17  ;;  %v10398_v30 = vadd.f32 %v7634_v48, %v4077_v59 }
0x1499   : > { %v4115_v22 = vmul.f32 %v4107_v52, %v10388_v41  ;;  %v4108_v25 = vmul.f32 %v10394_v12, %v10394_v12 }
0x149a   : > { %v4113_v6 = vmul.f32 %v4105_v1, %v10390_v17  ;;  %v4106_v45 = vmul.f32 %v10398_v30, %v10398_v30 }
0x149b   : > { %v4123_v58 = vmul.f32 0.044715, %v4115_v22  ;;  %v4116_v18 = vmul.f32 %v4108_v25, %v10394_v12 }
0x149c   : > { %v4121_v43 = vmul.f32 0.044715, %v4113_v6  ;;  %v4114_v8 = vmul.f32 %v4106_v45, %v10398_v30 }
0x149d   : > { %v4131_v28 = vadd.f32 %v4123_v58, %v10388_v41  ;;  %v4124_v56 = vmul.f32 0.044715, %v4116_v18 }
0x149e   : > { %v4129_v21 = vadd.f32 %v4121_v43, %v10390_v17  ;;  %v4122_v63 = vmul.f32 0.044715, %v4114_v8 }
0x149f   : > { %v4139_v5 = vmul.f32 0.7978846, %v4131_v28  ;;  %v4132_v34 = vadd.f32 %v4124_v56, %v10394_v12 }
0x14a0   : > { %v4137_v9 = vmul.f32 0.7978846, %v4129_v21  ;;  %v4130_v20 = vadd.f32 %v4122_v63, %v10398_v30  ;;  %v8254_v19 = vpop.f32.mrb[56].mxu1 }
0x14a1   : > { %8953 = vtanh.f32 %v4139_v5  ;;  %v4140_v39 = vmul.f32 0.7978846, %v4132_v34  ;;  %v10412_v29 = vadd.f32 %v8254_v19, %v7634_v48  ;;  %v4090_v60 = vpop.f32.mrb[57].mxu1 }
0x14a2   : > { %8955 = vtanh.f32 %v4137_v9  ;;  %v4138_v2 = vmul.f32 0.7978846, %v4130_v20  ;;  %v10414_v10 = vadd.f32 %v7634_v48, %v4090_v60  ;;  %v8255_v42 = vpop.f32.mrb[58].mxu1 }
0x14a3   : > { %8957 = vtanh.f32 %v4140_v39  ;;  %v4111_v36 = vmul.f32 %v10412_v29, %v10412_v29  ;;  %v4102_v37 = vadd.f32 %v8255_v42, %v7634_v48  ;;  %v4093_v11 = vpop.f32.mrb[59].mxu1 }
0x14a4   : > { %8959 = vtanh.f32 %v4138_v2  ;;  %v4109_v23 = vmul.f32 %v10414_v10, %v10414_v10  ;;  %v4094_v31 = vadd.f32 %v7634_v48, %v4093_v11 }
0x14a5   : > { %v4119_v27 = vmul.f32 %v4111_v36, %v10412_v29  ;;  %v4112_v57 = vmul.f32 %v4102_v37, %v4102_v37 }
0x14a6   : > { %v4117_v13 = vmul.f32 %v4109_v23, %v10414_v10  ;;  %v4110_v49 = vmul.f32 %v4094_v31, %v4094_v31 }
0x14a7   : > { %v4127_v4 = vmul.f32 0.044715, %v4119_v27  ;;  %v4120_v44 = vmul.f32 %v4112_v57, %v4102_v37 }
0x14a8   : > { %v4125_v26 = vmul.f32 0.044715, %v4117_v13  ;;  %v4118_v38 = vmul.f32 %v4110_v49, %v4094_v31 }
0x14a9   : > { %v4135_v46 = vadd.f32 %v4127_v4, %v10412_v29  ;;  %v4128_v53 = vmul.f32 0.044715, %v4120_v44 }
0x14aa   : > { %v4133_v35 = vadd.f32 %v4125_v26, %v10414_v10  ;;  %v4126_v61 = vmul.f32 0.044715, %v4118_v38 }
0x14ab   : > { %v8954_v15 = vpop.eup %8953  ;;  %v4143_v62 = vmul.f32 0.7978846, %v4135_v46  ;;  %v4136_v52 = vadd.f32 %v4128_v53, %v4102_v37  ;;  %v7641_v46 = vld [vmem:[%s11571_s22] ss:$0 sm:$0xff]  ;;  %s11578_s22 = sshll.u32 %s9550_s18, 6 }
0x14ac   : > { %v8956_v48 = vpop.eup %8955  ;;  %v4155_v59 = vadd.f32 1.0, %v8954_v15  ;;  %v4141_v1 = vmul.f32 0.7978846, %v4133_v35  ;;  %v4134_v22 = vadd.f32 %v4126_v61, %v4094_v31 }
0x14ad   : > { %v8958_v25 = vpop.eup %8957  ;;  %8961 = vtanh.f32 %v4143_v62  ;;  %v4144_v6 = vmul.f32 0.7978846, %v4136_v52  ;;  %v4153_v45 = vadd.f32 1.0, %v8956_v48 }
0x14ae   : > { %v8960_v58 = vpop.eup %8959  ;;  %v4163_v18 = vmul.f32 0.5, %v4155_v59  ;;  %v4156_v43 = vadd.f32 1.0, %v8958_v25  ;;  %8963 = vtanh.f32 %v4141_v1  ;;  %v4142_v8 = vmul.f32 0.7978846, %v4134_v22 }
0x14af   : > { %8965 = vtanh.f32 %v4144_v6  ;;  %v4154_v28 = vadd.f32 1.0, %v8960_v58  ;;  %v4161_v56 = vmul.f32 0.5, %v4153_v45  ;;  %v1919_v45 = vpop.permute.xlu0 %1918 }
0x14b0   : > { %v4164_v21 = vmul.f32 0.5, %v4156_v43  ;;  %8967 = vtanh.f32 %v4142_v8  ;;  %v4171_v5 = vmul.f32 %v4163_v18, %v10388_v41  ;;  %v1921_v58 = vadd.f32 %v1919_v45, %v9730_v7 }
0x14b1   : > { %v4162_v63 = vmul.f32 0.5, %v4154_v28  ;;  %v4169_v9 = vmul.f32 %v4161_v56, %v10390_v17 }
0x14b2   : > { %v4172_v34 = vmul.f32 %v4164_v21, %v10394_v12  ;;  %v4320_v18 = vrot.slane %v1921_v58, %v9575_v24 }
0x14b3   : > { %v4170_v20 = vmul.f32 %v4162_v63, %v10398_v30 }
0x14b4   : > { %v4194_v19 = vpack.c.bf16 %v4172_v34, %v4171_v5 }
0x14b5   : > { %v4193_v39 = vpack.c.bf16 %v4170_v20, %v4169_v9 }
0x14b7   : > { %v8962_v60 = vpop.eup %8961  ;;  %8272 = vmatprep.mubr.bf16.mxu0 %v4193_v39 }
0x14b8   : > { %v8964_v2 = vpop.eup %8963  ;;  %8273 = vmatmul.mubr.bf16.vlgmr.msra.gmra.mrb[76].mxu0 %v4194_v19  ;;  %v4159_v42 = vadd.f32 1.0, %v8962_v60 }
0x14b9   : > { %v8966_v36 = vpop.eup %8965  ;;  %v4157_v11 = vadd.f32 1.0, %v8964_v2 }
0x14ba   : > { %v8968_v23 = vpop.eup %8967  ;;  %v4160_v27 = vadd.f32 1.0, %v8966_v36  ;;  %v4167_v57 = vmul.f32 0.5, %v4159_v42 }
0x14bb   : > { %v4158_v41 = vadd.f32 1.0, %v8968_v23  ;;  %v4165_v13 = vmul.f32 0.5, %v4157_v11 }
0x14bc   : > { %v4168_v12 = vmul.f32 0.5, %v4160_v27  ;;  %v4175_v17 = vmul.f32 %v4167_v57, %v10412_v29 }
0x14bd   : > { %v4166_v49 = vmul.f32 0.5, %v4158_v41  ;;  %v4173_v4 = vmul.f32 %v4165_v13, %v10414_v10 }
0x14be   : > { %v4176_v30 = vmul.f32 %v4168_v12, %v4102_v37 }
0x14bf   : > { %v4174_v44 = vmul.f32 %v4166_v49, %v4094_v31 }
0x14c0   : > { %v4196_v26 = vpack.c.bf16 %v4176_v30, %v4175_v17 }
0x14c1   : > { %v4195_v38 = vpack.c.bf16 %v4174_v44, %v4173_v4 }
0x14c3   : > { %8276 = vmatprep.mubr.bf16.mxu0 %v4195_v38 }
0x14c4   : > { %8277 = vmatmul.mubr.bf16.gmra.mrb[80].mxu0 %v4196_v26 }
0x158b   : > { %v8274_v53 = vpop.f32.mrb[76].mxu0 }
0x158c   : > { %v4295_v35 = vadd.f32 %v8274_v53, %v7641_v46  ;;  %v4286_v61 = vpop.f32.mrb[77].mxu0 }
0x158d   : > { %v4287_v15 = vadd.f32 %v7641_v46, %v4286_v61  ;;  %v8275_v62 = vpop.f32.mrb[78].mxu0 }
0x158e   : > { %4333 = vrot.lane.b32.xlu0 %v4295_v35, %s11566_s16  ;;  %v4289_v52 = vpop.f32.mrb[79].mxu0  ;;  %v4298_v29 = vadd.f32 %v8275_v62, %v7641_v46 }
0x158f   : > { %v4290_v48 = vadd.f32 %v7641_v46, %v4289_v52  ;;  %4329 = vrot.lane.b32.xlu1 %v4287_v15, %s11566_s16  ;;  %v10490_v15 = vld [vmem:[%s9398_s25 + $0x8] sm:$0x3f] }
0x1592   : > { %4331 = vrot.lane.b32.xlu0 %v4290_v48, %s11566_s16 }
0x1596   : > { %4335 = vrot.lane.b32.xlu0 %v4298_v29, %s11566_s16 }
0x1597   : > { %v8278_v10 = vpop.f32.mrb[80].mxu0 }
0x1598   : > { %v4302_v37 = vpop.f32.mrb[81].mxu0  ;;  %v4311_v25 = vadd.f32 %v8278_v10, %v7641_v46 }
0x1599   : > { %v4303_v31 = vadd.f32 %v7641_v46, %v4302_v37  ;;  %v8279_v59 = vpop.f32.mrb[82].mxu0 }
0x159a   : > { %v4305_v1 = vpop.f32.mrb[83].mxu0  ;;  %v4314_v6 = vadd.f32 %v8279_v59, %v7641_v46 }
0x159b   : > { %v4306_v22 = vadd.f32 %v7641_v46, %v4305_v1  ;;  %4337 = vrot.lane.b32.xlu0 %v4303_v31, %s11566_s16 }
0x159d   : > { %4339 = vrot.lane.b32.xlu1 %v4306_v22, %s11566_s16 }
0x159f   : > { %4341 = vrot.lane.b32.xlu0 %v4311_v25, %s11566_s16 }
0x15a1   : > { %4343 = vrot.lane.b32.xlu1 %v4314_v6, %s11566_s16 }
0x1600   : > { %v4334_v43 = vpop.permute.xlu0 %4333 }
0x1601   : > { %v4330_v8 = vpop.permute.xlu1 %4329  ;;  %v4355_v63 = vmul.f32 %v4334_v43, %v4320_v18 }
0x1602   : > { %v4353_v28 = vmul.f32 %v4330_v8, %v4320_v18 }
0x1604   : > { %v4332_v56 = vpop.permute.xlu0 %4331  ;;  %4369 = vrot.lane.b32.xlu0 %v4353_v28, %s11559_s19 }
0x1605   : > { %v4354_v21 = vmul.f32 %v4332_v56, %v4320_v18 }
0x1607   : > { %4371 = vrot.lane.b32.xlu1 %v4354_v21, %s11559_s19 }
0x1608   : > { %v4336_v5 = vpop.permute.xlu0 %4335  ;;  %4373 = vrot.lane.b32.xlu0 %v4355_v63, %s11559_s19 }
0x1609   : > { %v4356_v34 = vmul.f32 %v4336_v5, %v4320_v18 }
0x160b   : > { %4375 = vrot.lane.b32.xlu1 %v4356_v34, %s11559_s19 }
0x160d   : > { %v4338_v9 = vpop.permute.xlu0 %4337 }
0x160e   : > { %v4357_v20 = vmul.f32 %v4338_v9, %v4320_v18 }
0x160f   : > { %v4340_v19 = vpop.permute.xlu1 %4339 }
0x1610   : > { %v4358_v39 = vmul.f32 %v4340_v19, %v4320_v18  ;;  %4377 = vrot.lane.b32.xlu0 %v4357_v20, %s11559_s19 }
0x1611   : > { %v4342_v60 = vpop.permute.xlu0 %4341 }
0x1612   : > { %v4359_v2 = vmul.f32 %v4342_v60, %v4320_v18  ;;  %4379 = vrot.lane.b32.xlu1 %v4358_v39, %s11559_s19 }
0x1613   : > { %v4344_v42 = vpop.permute.xlu1 %4343 }
0x1614   : > { %v4360_v36 = vmul.f32 %v4344_v42, %v4320_v18  ;;  %4381 = vrot.lane.b32.xlu0 %v4359_v2, %s11559_s19 }
0x1616   : > { %4383 = vrot.lane.b32.xlu1 %v4360_v36, %s11559_s19 }
0x1676   : > { %v4370_v11 = vpop.permute.xlu0 %4369 }
0x1677   : > { %v10450_v23 = vadd.f32 %v4370_v11, %v10265_v51 }
0x1679   : > { %v4372_v27 = vpop.permute.xlu1 %4371  ;;  %v4428_v57 = vsel %vm1619_vm2, %v10450_v23, 0.0 }
0x167a   : > { %v10455_v41 = vadd.f32 %v4372_v27, %v10271_v14  ;;  %4429 = vadd.xlane.f32.xlu0 %v4428_v57  ;;  %v4374_v13 = vpop.permute.xlu0 %4373 }
0x167b   : > { %v10458_v12 = vadd.f32 %v4374_v13, %v10268_v40 }
0x167c   : > { %v4431_v49 = vsel %vm1619_vm2, %v10455_v41, 0.0 }
0x167d   : > { %4432 = vadd.xlane.f32.xlu1 %v4431_v49  ;;  %v4376_v17 = vpop.permute.xlu1 %4375  ;;  %v4434_v51 = vsel %vm1619_vm2, %v10458_v12, 0.0 }
0x167e   : > { %v10465_v30 = vadd.f32 %v4376_v17, %v10276_v55  ;;  %4435 = vadd.xlane.f32.xlu0 %v4434_v51 }
0x1680   : > { %v4437_v14 = vsel %vm1619_vm2, %v10465_v30, 0.0 }
0x1682   : > { %v4378_v4 = vpop.permute.xlu0 %4377  ;;  %4438 = vadd.xlane.f32.xlu0 %v4437_v14 }
0x1683   : > { %v10478_v53 = vadd.f32 %v4378_v4, %v10288_v33  ;;  %v4405_v33 = vrot.slane %v10490_v15, 1 }
0x1684   : > { %v4380_v40 = vpop.permute.xlu1 %4379 }
0x1685   : > { %v10470_v44 = vadd.f32 %v4380_v40, %v10293_v16 }
0x1686   : > { %v4382_v26 = vpop.permute.xlu0 %4381 }
0x1687   : > { %v10473_v38 = vadd.f32 %v4382_v26, %v10285_v47  ;;  %v4443_v46 = vsel %vm1619_vm2, %v10470_v44, 0.0  ;;  %v4440_v47 = vsel %vm1619_vm2, %v10478_v53, 0.0 }
0x1688   : > { %4444 = vadd.xlane.f32.xlu0 %v4443_v46  ;;  %v4384_v55 = vpop.permute.xlu1 %4383  ;;  %v8761_v46 = vld [vmem:[%s11544_s1 + $0x10] sm:$0xff]  }
0x1689   : > { %v10481_v35 = vadd.f32 %v4384_v55, %v10296_v0  ;;  %v4446_v61 = vsel %vm1619_vm2, %v10473_v38, 0.0  ;;  %v8762_v55 = vld [vmem:[%s11544_s1 + $0x18] sm:$0xff]   ;;  %8280 = vmatprep.subr.bf16.mxu1 %v8761_v46  ;;  %s9287_s1 = smov [#allocation2]  }
0x168a   : > { %4447 = vadd.xlane.f32.xlu1 %v4446_v61  ;;  %8281 = vmatpush3.bf16.msra.mxu1 %v8761_v46 }
0x168b   : > { %v4449_v16 = vsel %vm1619_vm2, %v10481_v35, 0.0  ;;  %8282 = vmatprep.subr.bf16.mxu1 %v8762_v55 }
0x168c   : > { %4450 = vadd.xlane.f32.xlu0 %v4449_v16 }
0x168e   : > { %4441 = vadd.xlane.f32.xlu1 %v4440_v47  ;;  %8283 = vmatpush3.bf16.msra.mxu1 %v8762_v55 }
0x169f   : > { %4406 = vrot.lane.b32.xlu1 %v4405_v33, %s11566_s16 }
0x1707   : > { %v4430_v0 = vpop.xlane.xlu0 %4429 }
0x1708   : > { %v4452_v62 = vmul.f32 0.03125, %v4430_v0 }
0x170a   : > { %v10495_v29 = vsub.f32 %v10450_v23, %v4452_v62  ;;  %v4433_v37 = vpop.xlane.xlu1 %4432 }
0x170b   : > { %v4436_v52 = vpop.xlane.xlu0 %4435  ;;  %v4453_v22 = vmul.f32 0.03125, %v4433_v37 }
0x170c   : > { %v4454_v48 = vmul.f32 0.03125, %v4436_v52  ;;  %v4468_v45 = vmul.f32 %v10495_v29, %v10495_v29 }
0x170d   : > { %v10509_v18 = vsub.f32 %v10455_v41, %v4453_v22 }
0x170e   : > { %v10498_v10 = vsub.f32 %v10458_v12, %v4454_v48  ;;  %v4476_v8 = vsel %vm1619_vm2, %v4468_v45, 0.0 }
0x170f   : > { %v4439_v31 = vpop.xlane.xlu0 %4438  ;;  %v4469_v9 = vmul.f32 %v10509_v18, %v10509_v18 }
0x1710   : > { %v4455_v59 = vmul.f32 0.03125, %v4439_v31  ;;  %v4470_v1 = vmul.f32 %v10498_v10, %v10498_v10 }
0x1711   : > { %v4479_v11 = vsel %vm1619_vm2, %v4469_v9, 0.0 }
0x1712   : > { %v10503_v25 = vsub.f32 %v10465_v30, %v4455_v59  ;;  %v4482_v6 = vsel %vm1619_vm2, %v4470_v1, 0.0 }
0x1713   : > { %4483 = vadd.xlane.f32.xlu0 %v4482_v6 }
0x1714   : > { %v4471_v28 = vmul.f32 %v10503_v25, %v10503_v25 }
0x1715   : > { %v4445_v58 = vpop.xlane.xlu0 %4444 }
0x1716   : > { %v4457_v43 = vmul.f32 0.03125, %v4445_v58  ;;  %v4485_v5 = vsel %vm1619_vm2, %v4471_v28, 0.0 }
0x1717   : > { %4477 = vadd.xlane.f32.xlu0 %v4476_v8  ;;  %v4448_v56 = vpop.xlane.xlu1 %4447 }
0x1718   : > { %v10515_v21 = vsub.f32 %v10470_v44, %v4457_v43  ;;  %v4458_v63 = vmul.f32 0.03125, %v4448_v56 }
0x1719   : > { %v4451_v20 = vpop.xlane.xlu0 %4450 }
0x171a   : > { %v4473_v34 = vmul.f32 %v10515_v21, %v10515_v21  ;;  %v10524_v2 = vsub.f32 %v10473_v38, %v4458_v63  ;;  %v4459_v42 = vmul.f32 0.03125, %v4451_v20 }
0x171b   : > { %4486 = vadd.xlane.f32.xlu0 %v4485_v5  ;;  %v4442_v19 = vpop.xlane.xlu1 %4441 }
0x171c   : > { %v4456_v39 = vmul.f32 0.03125, %v4442_v19  ;;  %v4491_v60 = vsel %vm1619_vm2, %v4473_v34, 0.0  ;;  %v10533_v57 = vsub.f32 %v10481_v35, %v4459_v42  ;;  %v4474_v49 = vmul.f32 %v10524_v2, %v10524_v2 }
0x171d   : > { %4492 = vadd.xlane.f32.xlu1 %v4491_v60  ;;  %v4403_v19 = vadd.f32 %v10490_v15, %v9728_v3 }
0x171e   : > { %v10527_v36 = vsub.f32 %v10478_v53, %v4456_v39  ;;  %v4494_v17 = vsel %vm1619_vm2, %v4474_v49, 0.0  ;;  %v4475_v51 = vmul.f32 %v10533_v57, %v10533_v57 }
0x171f   : > { %4480 = vadd.xlane.f32.xlu0 %v4479_v11  ;;  %v4407_v4 = vpop.permute.xlu1 %4406 }
0x1720   : > { %v4472_v27 = vmul.f32 %v10527_v36, %v10527_v36  ;;  %v4497_v14 = vsel %vm1619_vm2, %v4475_v51, 0.0  ;;  %v4409_v40 = vadd.f32 %v4407_v4, %v9728_v3  ;;  %v4552_v51 = vrot.slane %v4403_v19, %v9575_v24 }
0x1722   : > { %v4488_v13 = vsel %vm1619_vm2, %v4472_v27, 0.0  ;;  %v4532_v26 = vadd.f32 1.0, %v4409_v40 }
0x1723   : > { %4489 = vadd.xlane.f32.xlu0 %v4488_v13 }
0x1724   : > { %v4536_v61 = vrot.slane %v4532_v26, %v9575_v24 }
0x1727   : > { %4495 = vadd.xlane.f32.xlu0 %v4494_v17 }
0x172b   : > { %4498 = vadd.xlane.f32.xlu0 %v4497_v14 }
0x1741   : > { %4538 = vrot.lane.b32.xlu0 %v4536_v61, %s11559_s19 }
0x17a0   : > { %v4484_v16 = vpop.xlane.xlu0 %4483 }
0x17a1   : > { %v4502_v47 = vmul.f32 0.03125, %v4484_v16 }
0x17a3   : > { %v4510_v62 = vadd.f32 1e-06, %v4502_v47 }
0x17a4   : > { %v4478_v33 = vpop.xlane.xlu0 %4477 }
0x17a5   : > { %v4500_v0 = vmul.f32 0.03125, %v4478_v33  ;;  %8969 = vrsqrt.f32 %v4510_v62 }
0x17a7   : > { %v4508_v48 = vadd.f32 1e-06, %v4500_v0 }
0x17a8   : > { %v4487_v52 = vpop.xlane.xlu0 %4486 }
0x17a9   : > { %v4503_v37 = vmul.f32 0.03125, %v4487_v52  ;;  %8971 = vrsqrt.f32 %v4508_v48 }
0x17aa   : > { %v4493_v31 = vpop.xlane.xlu1 %4492 }
0x17ab   : > { %v4511_v59 = vadd.f32 1e-06, %v4503_v37  ;;  %v4505_v1 = vmul.f32 0.03125, %v4493_v31 }
0x17ac   : > { %v4481_v22 = vpop.xlane.xlu0 %4480 }
0x17ad   : > { %v4513_v6 = vadd.f32 1e-06, %v4505_v1  ;;  %v4501_v45 = vmul.f32 0.03125, %v4481_v22  ;;  %8973 = vrsqrt.f32 %v4511_v59 }
0x17af   : > { %8975 = vrsqrt.f32 %v4513_v6  ;;  %v4509_v58 = vadd.f32 1e-06, %v4501_v45  ;;  %v8970_v5 = vpop.eup %8969 }
0x17b0   : > { %v4490_v43 = vpop.xlane.xlu0 %4489  ;;  %v4526_v27 = vmul.f32 %v8970_v5, %v10498_v10 }
0x17b1   : > { %8977 = vrsqrt.f32 %v4509_v58  ;;  %v4504_v8 = vmul.f32 0.03125, %v4490_v43 }
0x17b3   : > { %v4512_v28 = vadd.f32 1e-06, %v4504_v8  ;;  %v8972_v34 = vpop.eup %8971  ;;  %v7656_v8 = vld [vmem:[%s11548_s10 + $0x1] ss:$0 sm:$0xff] }
0x17b4   : > { %v4496_v56 = vpop.xlane.xlu0 %4495  ;;  %v4524_v17 = vmul.f32 %v8972_v34, %v10495_v29 }
0x17b5   : > { %8979 = vrsqrt.f32 %v4512_v28  ;;  %v4506_v63 = vmul.f32 0.03125, %v4496_v56 }
0x17b7   : > { %v4514_v9 = vadd.f32 1e-06, %v4506_v63  ;;  %v8974_v20 = vpop.eup %8973 }
0x17b8   : > { %v4499_v39 = vpop.xlane.xlu0 %4498  ;;  %v4527_v13 = vmul.f32 %v8974_v20, %v10503_v25 }
0x17b9   : > { %v8976_v60 = vpop.eup %8975  ;;  %8981 = vrsqrt.f32 %v4514_v9  ;;  %v4507_v42 = vmul.f32 0.03125, %v4499_v39 }
0x17ba   : > { %v4529_v40 = vmul.f32 %v8976_v60, %v10515_v21 }
0x17bb   : > { %v8978_v11 = vpop.eup %8977  ;;  %v4515_v49 = vadd.f32 1e-06, %v4507_v42 }
0x17bc   : > { %v4539_v14 = vpop.permute.xlu0 %4538  ;;  %v4525_v4 = vmul.f32 %v8978_v11, %v10509_v18 }
0x17bd   : > { %8983 = vrsqrt.f32 %v4515_v49  ;;  %v4541_v15 = vmul.f32 %v4539_v14, %v4524_v17  ;;  %v4543_v26 = vmul.f32 %v4539_v14, %v4526_v27  ;;  %v4544_v46 = vmul.f32 %v4539_v14, %v4527_v13 }
0x17be   : > { %v4542_v55 = vmul.f32 %v4539_v14, %v4525_v4  ;;  %v4546_v29 = vmul.f32 %v4539_v14, %v4529_v40 }
0x17bf   : > { %v8980_v61 = vpop.eup %8979  ;;  %v4553_v16 = vadd.f32 %v4552_v51, %v4541_v15  ;;  %v4555_v10 = vadd.f32 %v4552_v51, %v4543_v26  ;;  %v4556_v47 = vadd.f32 %v4552_v51, %v4544_v46 }
0x17c0   : > { %v4554_v25 = vadd.f32 %v4552_v51, %v4542_v55  ;;  %v4528_v33 = vmul.f32 %v8980_v61, %v10527_v36  ;;  %v4558_v21 = vadd.f32 %v4552_v51, %v4546_v29 }
0x17c1   : > { %v4567_v48 = vpack.c.bf16 %v4556_v47, %v4555_v10 }
0x17c2   : > { %v4566_v0 = vpack.c.bf16 %v4554_v25, %v4553_v16  ;;  %v4545_v62 = vmul.f32 %v4539_v14, %v4528_v33 }
0x17c3   : > { %v8982_v52 = vpop.eup %8981 }
0x17c4   : > { %8284 = vmatprep.mubr.msk.bf16.mxu1 %vm1619_vm2, %v4566_v0  ;;  %v4557_v18 = vadd.f32 %v4552_v51, %v4545_v62  ;;  %v4530_v37 = vmul.f32 %v8982_v52, %v10524_v2 }
0x17c5   : > { %8285 = vmatmul.mubr.msk.bf16.vlgmr.msra.gmra.mrb[60].mxu1 %vm1619_vm2, %v4567_v48 }
0x17c6   : > { %v4568_v31 = vpack.c.bf16 %v4558_v21, %v4557_v18  ;;  %v4547_v1 = vmul.f32 %v4539_v14, %v4530_v37 }
0x17c7   : > { %v8984_v59 = vpop.eup %8983 }
0x17c8   : > { %8288 = vmatprep.mubr.msk.bf16.mxu1 %vm1619_vm2, %v4568_v31  ;;  %v4531_v36 = vmul.f32 %v8984_v59, %v10533_v57  ;;  %v4559_v6 = vadd.f32 %v4552_v51, %v4547_v1 }
0x17ca   : > { %v4548_v22 = vmul.f32 %v4539_v14, %v4531_v36 }
0x17cc   : > { %v4560_v45 = vadd.f32 %v4552_v51, %v4548_v22 }
0x17ce   : > { %v4569_v58 = vpack.c.bf16 %v4560_v45, %v4559_v6 }
0x17d0   : > { %8289 = vmatmul.mubr.msk.bf16.gmra.mrb[64].mxu1 %vm1619_vm2, %v4569_v58 }
0x1898   : > { %v8286_v43 = vpop.f32.mrb[60].mxu1 }
0x1899   : > { %v4636_v28 = vpop.f32.mrb[61].mxu1  ;;  %v4645_v2 = vadd.f32 %v8286_v43, %v7656_v8 }
0x189a   : > { %v8287_v56 = vpop.f32.mrb[62].mxu1  ;;  %v4637_v34 = vadd.f32 %v7656_v8, %v4636_v28 }
0x189b   : > { %v4648_v63 = vadd.f32 %v8287_v56, %v7656_v8  ;;  %v4639_v5 = vpop.f32.mrb[63].mxu1 }
0x189c   : > { %v4640_v9 = vadd.f32 %v7656_v8, %v4639_v5 }
0x189d   : > { %v10563_v20 = vpack.c.bf16 %v4648_v63, %v4645_v2 }
0x189e   : > { %v10565_v19 = vpack.c.bf16 %v4640_v9, %v4637_v34 }
0x189f   : > { %4677 = vrot.lane.b32.xlu1 %v10563_v20, %s11559_s19 }
0x18a0   : > { %4675 = vrot.lane.b32.xlu0 %v10565_v19, %s11559_s19  ;;  %8300 = vmatprep.mubr.msk.bf16.mxu1 %vm1317_vm0, %v10565_v19 }
0x18a3   : > { %v8290_v57 = vpop.f32.mrb[64].mxu1 }
0x18a4   : > { %v4652_v39 = vpop.f32.mrb[65].mxu1  ;;  %v4661_v42 = vadd.f32 %v8290_v57, %v7656_v8 }
0x18a5   : > { %v8291_v60 = vpop.f32.mrb[66].mxu1  ;;  %v4653_v13 = vadd.f32 %v7656_v8, %v4652_v39 }
0x18a6   : > { %v4664_v11 = vadd.f32 %v8291_v60, %v7656_v8  ;;  %v4655_v27 = vpop.f32.mrb[67].mxu1 }
0x18a7   : > { %v4656_v49 = vadd.f32 %v7656_v8, %v4655_v27 }
0x18a8   : > { %v10573_v17 = vpack.c.bf16 %v4664_v11, %v4661_v42 }
0x18a9   : > { %v10575_v51 = vpack.c.bf16 %v4656_v49, %v4653_v13 }
0x18ab   : > { %4679 = vrot.lane.b32.xlu0 %v10575_v51, %s11559_s19 }
0x18af   : > { %4681 = vrot.lane.b32.xlu0 %v10573_v17, %s11559_s19 }
0x1911   : > { %v4678_v40 = vpop.permute.xlu1 %4677 }
0x1912   : > { %v4676_v14 = vpop.permute.xlu0 %4675  ;;  %v4699_v15 = vsel %vm1317_vm0, %v4678_v40, 0 }
0x1913   : > { %8528 = vmatprep.subr.msk.bf16.mxu1 %vm1317_vm0, %v4676_v14  ;;  %v4696_v4 = vsel %vm1317_vm0, %v4676_v14, 0 }
0x1914   : > { %8293 = vmatpush3.bf16.xpose.msra.mxu1 %v4696_v4 }
0x1915   : > { %8529 = vmatprep.subr.msk.bf16.mxu1 %vm1317_vm0, %v4678_v40 }
0x191c   : > { %8295 = vmatpush3.bf16.xpose.msra.mxu1 %v4699_v15 }
0x191d   : > { %v4680_v26 = vpop.permute.xlu0 %4679 }
0x191e   : > { %8530 = vmatprep.subr.msk.bf16.mxu1 %vm1317_vm0, %v4680_v26  ;;  %v4702_v46 = vsel %vm1317_vm0, %v4680_v26, 0 }
0x1921   : > { %v4682_v55 = vpop.permute.xlu0 %4681 }
0x1922   : > { %v4705_v61 = vsel %vm1317_vm0, %v4682_v55, 0 }
0x1924   : > { %8297 = vmatpush3.bf16.xpose.msra.mxu1 %v4702_v46 }
0x1925   : > { %8531 = vmatprep.subr.msk.bf16.mxu1 %vm1317_vm0, %v4682_v55 }
0x192c   : > { %8299 = vmatpush3.bf16.xpose.msra.mxu1 %v4705_v61 }
0x1933   : > { %8301 = vmatmul.mubr.msk.bf16.vlgmr.msra.gmra.mrb[68].mxu1 %vm1317_vm0, %v10563_v20 }
0x1934   : > { %8304 = vmatprep.mubr.msk.bf16.mxu1 %vm1317_vm0, %v10575_v51 }
0x193b   : > { %8305 = vmatmul.mubr.msk.bf16.gmra.mrb[72].mxu1 %vm1317_vm0, %v10573_v17 }
0x1a06   : > { %v8302_v16 = vpop.f32.mrb[68].mxu1 }
0x1a07   : > { %v4774_v10 = vmul.f32 0.25, %v8302_v16  ;;  %v4741_v47 = vpop.f32.mrb[69].mxu1 }
0x1a08   : > { %v8303_v25 = vpop.f32.mrb[70].mxu1  ;;  %v4772_v33 = vmul.f32 0.25, %v4741_v47 }
0x1a09   : > { %v4744_v29 = vpop.f32.mrb[71].mxu1  ;;  %v4786_v0 = vsel %vm2273_vm3, %v4774_v10, -inf  ;;  %v4775_v48 = vmul.f32 0.25, %v8303_v25 }
0x1a0a   : > { %v4773_v62 = vmul.f32 0.25, %v4744_v29  ;;  %4787 = vmax.xlane.f32.xlu0 %v4786_v0  ;;  %v4780_v18 = vsel %vm2273_vm3, %v4772_v33, -inf }
0x1a0b   : > { %v4789_v22 = vsel %vm2273_vm3, %v4775_v48, -inf }
0x1a0c   : > { %v4783_v52 = vsel %vm2273_vm3, %v4773_v62, -inf }
0x1a0d   : > { %4784 = vmax.xlane.f32.xlu1 %v4783_v52 }
0x1a0e   : > { %4781 = vmax.xlane.f32.xlu0 %v4780_v18  ;;  %v8306_v21 = vpop.f32.mrb[72].mxu1 }
0x1a0f   : > { %v4778_v37 = vmul.f32 0.25, %v8306_v21  ;;  %v4757_v31 = vpop.f32.mrb[73].mxu1 }
0x1a10   : > { %v8307_v59 = vpop.f32.mrb[74].mxu1  ;;  %v10598_v36 = vmul.f32 0.25, %v4757_v31 }
0x1a11   : > { %v4760_v1 = vpop.f32.mrb[75].mxu1  ;;  %v4798_v6 = vsel %vm2273_vm3, %v4778_v37, -inf  ;;  %v4779_v43 = vmul.f32 0.25, %v8307_v59 }
0x1a12   : > { %4790 = vmax.xlane.f32.xlu0 %v4789_v22  ;;  %4799 = vmax.xlane.f32.xlu1 %v4798_v6  ;;  %v4777_v45 = vmul.f32 0.25, %v4760_v1  ;;  %v4792_v58 = vsel %vm2273_vm3, %v10598_v36, -inf }
0x1a13   : > { %v4801_v28 = vsel %vm2273_vm3, %v4779_v43, -inf }
0x1a14   : > { %v4795_v8 = vsel %vm2273_vm3, %v4777_v45, -inf }
0x1a16   : > { %4793 = vmax.xlane.f32.xlu0 %v4792_v58 }
0x1a1a   : > { %4796 = vmax.xlane.f32.xlu0 %v4795_v8 }
0x1a1e   : > { %4802 = vmax.xlane.f32.xlu0 %v4801_v28 }
0x1a23   : > { %4872 = vrot.lane.b32.xlu1 %v10565_v19, %s11549_s3 }
0x1a27   : > { %4876 = vrot.lane.b32.xlu1 %v10575_v51, %s11549_s3 }
0x1a2b   : > { %4878 = vrot.lane.b32.xlu1 %v10573_v17, %s11549_s3 }
0x1a34   : > { %4874 = vrot.lane.b32.xlu0 %v10563_v20, %s11549_s3 }
0x1a97   : > { %v4788_v56 = vpop.xlane.xlu0 %4787 }
0x1a98   : > { %v4806_v2 = vsub.f32 %v4774_v10, %v4788_v56 }
0x1a9a   : > { %v4816_v63 = vmul.f32 1.442695, %v4806_v2  ;;  %v4785_v5 = vpop.xlane.xlu1 %4784 }
0x1a9b   : > { %v4782_v34 = vpop.xlane.xlu0 %4781  ;;  %v4805_v57 = vsub.f32 %v4773_v62, %v4785_v5 }
0x1a9c   : > { %8985 = vpow2.f32 %v4816_v63  ;;  %v4804_v9 = vsub.f32 %v4772_v33, %v4782_v34 }
0x1a9d   : > { %v4814_v27 = vmul.f32 1.442695, %v4805_v57 }
0x1a9e   : > { %v4812_v39 = vmul.f32 1.442695, %v4804_v9 }
0x1a9f   : > { %v4791_v60 = vpop.xlane.xlu0 %4790  ;;  %v4800_v42 = vpop.xlane.xlu1 %4799 }
0x1aa0   : > { %8987 = vpow2.f32 %v4812_v39  ;;  %v4807_v11 = vsub.f32 %v4775_v48, %v4791_v60  ;;  %v4810_v49 = vsub.f32 %v4778_v37, %v4800_v42 }
0x1aa2   : > { %v4818_v13 = vmul.f32 1.442695, %v4807_v11  ;;  %v4824_v15 = vmul.f32 1.442695, %v4810_v49 }
0x1aa3   : > { %v4873_v14 = vpop.permute.xlu1 %4872  ;;  %v4794_v4 = vpop.xlane.xlu0 %4793 }
0x1aa4   : > { %8989 = vpow2.f32 %v4818_v13  ;;  %8308 = vmatprep.subr.bf16.mxu0 %v4873_v14 }
0x1aa5   : > { %8309 = vmatpush3.bf16.msra.mxu0 %v4873_v14  ;;  %8991 = vpow2.f32 %v4814_v27 }
0x1aa6   : > { %v10614_v40 = vpop.eup %8985  ;;  %8993 = vpow2.f32 %v4824_v15 }
0x1aa7   : > { %v4797_v26 = vpop.xlane.xlu0 %4796  ;;  %v4834_v46 = vsel %vm2273_vm3, %v10614_v40, 0.0  ;;  %v4877_v0 = vpop.permute.xlu1 %4876 }
0x1aa8   : > { %4835 = vadd.xlane.f32.xlu1 %v4834_v46  ;;  %v4809_v61 = vsub.f32 %v4777_v45, %v4797_v26  ;;  %v4808_v45 = vsub.f32 %v10598_v36, %v4794_v4 }
0x1aaa   : > { %v10618_v55 = vpop.eup %8987  ;;  %v4822_v33 = vmul.f32 1.442695, %v4809_v61  ;;  %v4820_v58 = vmul.f32 1.442695, %v4808_v45 }
0x1aab   : > { %v4803_v16 = vpop.xlane.xlu0 %4802  ;;  %v4828_v10 = vsel %vm2273_vm3, %v10618_v55, 0.0  ;;  %v4879_v37 = vpop.permute.xlu1 %4878 }
0x1aac   : > { %v4811_v47 = vsub.f32 %v4779_v43, %v4803_v16  ;;  %4829 = vadd.xlane.f32.xlu1 %v4828_v10 }
0x1aae   : > { %v8990_v25 = vpop.eup %8989  ;;  %v4826_v29 = vmul.f32 1.442695, %v4811_v47 }
0x1aaf   : > { %v4875_v62 = vpop.permute.xlu0 %4874  ;;  %v4837_v52 = vsel %vm2273_vm3, %v8990_v25, 0.0  ;;  %v8992_v48 = vpop.eup %8991 }
0x1ab0   : > { %8995 = vpow2.f32 %v4826_v29  ;;  %4838 = vadd.xlane.f32.xlu0 %v4837_v52  ;;  %8310 = vmatprep.subr.bf16.mxu0 %v4875_v62  ;;  %v4831_v18 = vsel %vm2273_vm3, %v8992_v48, 0.0  ;;  %v10624_v21 = vpop.eup %8993 }
0x1ab1   : > { %8311 = vmatpush3.bf16.msra.mxu0 %v4875_v62  ;;  %8997 = vpow2.f32 %v4822_v33  ;;  %v4846_v31 = vsel %vm2273_vm3, %v10624_v21, 0.0 }
0x1ab2   : > { %8312 = vmatprep.subr.bf16.mxu0 %v4877_v0  ;;  %8999 = vpow2.f32 %v4820_v58 }
0x1ab4   : > { %4832 = vadd.xlane.f32.xlu0 %v4831_v18 }
0x1ab5   : > { %8313 = vmatpush3.bf16.msra.mxu0 %v4877_v0 }
0x1ab6   : > { %8314 = vmatprep.subr.bf16.mxu0 %v4879_v37 }
0x1ab8   : > { %4847 = vadd.xlane.f32.xlu0 %v4846_v31 }
0x1ab9   : > { %8315 = vmatpush3.bf16.msra.mxu0 %v4879_v37 }
0x1aba   : > { %v10628_v59 = vpop.eup %8995 }
0x1abb   : > { %v4849_v1 = vsel %vm2273_vm3, %v10628_v59, 0.0  ;;  %v10632_v22 = vpop.eup %8997 }
0x1abc   : > { %4850 = vadd.xlane.f32.xlu0 %v4849_v1  ;;  %v4843_v6 = vsel %vm2273_vm3, %v10632_v22, 0.0  ;;  %v9000_v43 = vpop.eup %8999 }
0x1abd   : > { %4969 = vrot.lane.b32.xlu1 %v10565_v19, %s11560_s24  ;;  %v4840_v8 = vsel %vm2273_vm3, %v9000_v43, 0.0 }
0x1ac0   : > { %4844 = vadd.xlane.f32.xlu0 %v4843_v6 }
0x1ad6   : > { %4971 = vrot.lane.b32.xlu0 %v10563_v20, %s11560_s24 }
0x1ada   : > { %4963 = vrot.lane.b32.xlu0 %v10563_v20, %s11556_s14 }
0x1ade   : > { %4967 = vrot.lane.b32.xlu0 %v10573_v17, %s11556_s14 }
0x1ae1   : > { %4841 = vadd.xlane.f32.xlu1 %v4840_v8 }
0x1af2   : > { %4973 = vrot.lane.b32.xlu1 %v10575_v51, %s11560_s24 }
0x1af6   : > { %4975 = vrot.lane.b32.xlu1 %v10573_v17, %s11560_s24 }
0x1afa   : > { %4961 = vrot.lane.b32.xlu1 %v10565_v19, %s11556_s14 }
0x1afe   : > { %4965 = vrot.lane.b32.xlu1 %v10575_v51, %s11556_s14 }
0x1b35   : > { %v4836_v36 = vpop.xlane.xlu1 %4835 }
0x1b39   : > { %v4830_v28 = vpop.xlane.xlu1 %4829 }
0x1b3d   : > { %v4970_v56 = vpop.permute.xlu1 %4969  ;;  %v4839_v2 = vpop.xlane.xlu0 %4838 }
0x1b3e   : > { %8532 = vmatprep.subr.msk.bf16.mxu0 %vm1317_vm0, %v4970_v56  ;;  %9001 = vrcp.f32 %v4839_v2  ;;  %v4990_v26 = vsel %vm1317_vm0, %v4970_v56, 0 }
0x1b3f   : > { %9003 = vrcp.f32 %v4830_v28 }
0x1b40   : > { %9005 = vrcp.f32 %v4836_v36 }
0x1b41   : > { %v4833_v63 = vpop.xlane.xlu0 %4832 }
0x1b42   : > { %9007 = vrcp.f32 %v4833_v63 }
0x1b45   : > { %v4848_v5 = vpop.xlane.xlu0 %4847 }
0x1b48   : > { %v9002_v34 = vpop.eup %9001 }
0x1b49   : > { %v4851_v9 = vpop.xlane.xlu0 %4850  ;;  %v9004_v57 = vpop.eup %9003  ;;  %v4859_v42 = vmul.f32 %v9002_v34, %v8990_v25 }
0x1b4a   : > { %v9006_v39 = vpop.eup %9005  ;;  %v4853_v27 = vmul.f32 %v9004_v57, %v10618_v55  ;;  %9009 = vrcp.f32 %v4851_v9 }
0x1b4b   : > { %v4857_v49 = vmul.f32 %v9006_v39, %v10614_v40 }
0x1b4c   : > { %v9008_v60 = vpop.eup %9007 }
0x1b4d   : > { %v4845_v11 = vpop.xlane.xlu0 %4844  ;;  %v4855_v13 = vmul.f32 %v9008_v60, %v8992_v48  ;;  %v4869_v4 = vpack.c.bf16 %v4859_v42, %v4857_v49 }
0x1b4e   : > { %9011 = vrcp.f32 %v4845_v11 }
0x1b4f   : > { %v4868_v14 = vpack.c.bf16 %v4855_v13, %v4853_v27  ;;  %9013 = vrcp.f32 %v4848_v5 }
0x1b51   : > { %8316 = vmatprep.mubr.msk.bf16.mxu0 %vm2273_vm3, %v4868_v14  ;;  %v4972_v15 = vpop.permute.xlu0 %4971 }
0x1b52   : > { %8317 = vmatmul.mubr.msk.bf16.vlgmr.msra.gmra.mrb[84].mxu0 %vm2273_vm3, %v4869_v4  ;;  %v4993_v46 = vsel %vm1317_vm0, %v4972_v15, 0 }
0x1b53   : > { %8325 = vmatpush3.bf16.xpose.msra.mxu0 %v4990_v26 }
0x1b54   : > { %8533 = vmatprep.subr.msk.bf16.mxu0 %vm1317_vm0, %v4972_v15  ;;  %v9010_v16 = vpop.eup %9009 }
0x1b55   : > { %v4867_v29 = vmul.f32 %v9010_v16, %v10628_v59  ;;  %v4964_v1 = vpop.permute.xlu0 %4963 }
0x1b58   : > { %v9012_v47 = vpop.eup %9011 }
0x1b59   : > { %v9014_v25 = vpop.eup %9013  ;;  %v4863_v62 = vmul.f32 %v9012_v47, %v10632_v22  ;;  %v4968_v59 = vpop.permute.xlu0 %4967 }
0x1b5a   : > { %v4865_v48 = vmul.f32 %v9014_v25, %v10624_v21 }
0x1b5b   : > { %8327 = vmatpush3.bf16.xpose.msra.mxu0 %v4993_v46 }
0x1b5c   : > { %v4871_v37 = vpack.c.bf16 %v4867_v29, %v4865_v48 }
0x1b6e   : > { %v4842_v55 = vpop.xlane.xlu1 %4841 }
0x1b6f   : > { %9015 = vrcp.f32 %v4842_v55 }
0x1b72   : > { %v4974_v40 = vpop.permute.xlu1 %4973 }
0x1b73   : > { %8534 = vmatprep.subr.msk.bf16.mxu0 %vm1317_vm0, %v4974_v40  ;;  %v4996_v61 = vsel %vm1317_vm0, %v4974_v40, 0 }
0x1b74   : > { %8329 = vmatpush3.bf16.xpose.msra.mxu0 %v4996_v61 }
0x1b76   : > { %v4976_v10 = vpop.permute.xlu1 %4975 }
0x1b77   : > { %8535 = vmatprep.subr.msk.bf16.mxu0 %vm1317_vm0, %v4976_v10  ;;  %v4999_v52 = vsel %vm1317_vm0, %v4976_v10, 0 }
0x1b79   : > { %v9016_v33 = vpop.eup %9015 }
0x1b7a   : > { %v4861_v0 = vmul.f32 %v9016_v33, %v9000_v43  ;;  %v4962_v31 = vpop.permute.xlu1 %4961 }
0x1b7c   : > { %8331 = vmatpush3.bf16.xpose.msra.mxu0 %v4999_v52  ;;  %v4870_v18 = vpack.c.bf16 %v4863_v62, %v4861_v0 }
0x1b7e   : > { %8320 = vmatprep.mubr.msk.bf16.mxu0 %vm2273_vm3, %v4870_v18  ;;  %v4966_v6 = vpop.permute.xlu1 %4965 }
0x1b7f   : > { %8321 = vmatmul.mubr.msk.bf16.gmra.mrb[88].mxu0 %vm2273_vm3, %v4871_v37 }
0x1b80   : > { %8332 = vmatprep.mubr.msk.bf16.mxu0 %vm1317_vm0, %v4962_v31 }
0x1b87   : > { %8333 = vmatmul.mubr.msk.bf16.vlgmr.msra.gmra.mrb[92].mxu0 %vm1317_vm0, %v4964_v1 }
0x1b88   : > { %8336 = vmatprep.mubr.msk.bf16.mxu0 %vm1317_vm0, %v4966_v6 }
0x1b8f   : > { %8337 = vmatmul.mubr.msk.bf16.gmra.mrb[96].mxu0 %vm1317_vm0, %v4968_v59 }
0x1c25   : > { %v10675_v21 = vpop.f32.mrb[84].mxu0 }
0x1c26   : > { %v10677_v22 = vpop.f32.mrb[85].mxu0 }
0x1c27   : > { %v10679_v45 = vpop.f32.mrb[86].mxu0 }
0x1c28   : > { %v10681_v58 = vpop.f32.mrb[87].mxu0 }
0x1c52   : > { %v10683_v43 = vpop.f32.mrb[88].mxu0 }
0x1c53   : > { %v10685_v8 = vpop.f32.mrb[89].mxu0 }
0x1c54   : > { %v10687_v36 = vpop.f32.mrb[90].mxu0 }
0x1c55   : > { %v10689_v28 = vpop.f32.mrb[91].mxu0 }
0x1c5a   : > { %v8334_v56 = vpop.f32.mrb[92].mxu0 }
0x1c5b   : > { %v5068_v2 = vmul.f32 0.25, %v8334_v56  ;;  %v5035_v63 = vpop.f32.mrb[93].mxu0 }
0x1c5c   : > { %v5066_v5 = vmul.f32 0.25, %v5035_v63  ;;  %v8335_v34 = vpop.f32.mrb[94].mxu0 }
0x1c5d   : > { %v5038_v9 = vpop.f32.mrb[95].mxu0  ;;  %v5080_v57 = vsel %vm2273_vm3, %v5068_v2, -inf  ;;  %v5069_v11 = vmul.f32 0.25, %v8335_v34 }
0x1c5e   : > { %v5067_v39 = vmul.f32 0.25, %v5038_v9  ;;  %5081 = vmax.xlane.f32.xlu0 %v5080_v57  ;;  %v5074_v60 = vsel %vm2273_vm3, %v5066_v5, -inf }
0x1c5f   : > { %5075 = vmax.xlane.f32.xlu1 %v5074_v60  ;;  %v5083_v15 = vsel %vm2273_vm3, %v5069_v11, -inf }
0x1c60   : > { %v5077_v42 = vsel %vm2273_vm3, %v5067_v39, -inf }
0x1c62   : > { %5078 = vmax.xlane.f32.xlu0 %v5077_v42  ;;  %v8338_v27 = vpop.f32.mrb[96].mxu0 }
0x1c63   : > { %v5051_v13 = vpop.f32.mrb[97].mxu0  ;;  %v5072_v26 = vmul.f32 0.25, %v8338_v27 }
0x1c64   : > { %v5070_v49 = vmul.f32 0.25, %v5051_v13  ;;  %v8339_v14 = vpop.f32.mrb[98].mxu0 }
0x1c65   : > { %v5054_v4 = vpop.f32.mrb[99].mxu0  ;;  %v5073_v61 = vmul.f32 0.25, %v8339_v14  ;;  %v5092_v16 = vsel %vm2273_vm3, %v5072_v26, -inf }
0x1c66   : > { %v5071_v46 = vmul.f32 0.25, %v5054_v4  ;;  %5084 = vmax.xlane.f32.xlu0 %v5083_v15  ;;  %v5086_v55 = vsel %vm2273_vm3, %v5070_v49, -inf }
0x1c67   : > { %5087 = vmax.xlane.f32.xlu1 %v5086_v55  ;;  %v5095_v10 = vsel %vm2273_vm3, %v5073_v61, -inf }
0x1c68   : > { %v5089_v40 = vsel %vm2273_vm3, %v5071_v46, -inf }
0x1c6a   : > { %5090 = vmax.xlane.f32.xlu0 %v5089_v40 }
0x1c6b   : > { %5093 = vmax.xlane.f32.xlu1 %v5092_v16 }
0x1c6e   : > { %5096 = vmax.xlane.f32.xlu0 %v5095_v10 }
0x1c7c   : > { %5166 = vrot.lane.b32.xlu1 %v10565_v19, %s11573_s26 }
0x1ceb   : > { %v5082_v47 = vpop.xlane.xlu0 %5081 }
0x1cec   : > { %v5100_v25 = vsub.f32 %v5068_v2, %v5082_v47  ;;  %v5076_v33 = vpop.xlane.xlu1 %5075 }
0x1ced   : > { %v5098_v29 = vsub.f32 %v5066_v5, %v5076_v33 }
0x1cee   : > { %v5110_v0 = vmul.f32 1.442695, %v5100_v25 }
0x1cef   : > { %v5106_v62 = vmul.f32 1.442695, %v5098_v29  ;;  %v5079_v52 = vpop.xlane.xlu0 %5078 }
0x1cf0   : > { %9017 = vpow2.f32 %v5110_v0  ;;  %v5099_v48 = vsub.f32 %v5067_v39, %v5079_v52 }
0x1cf1   : > { %9019 = vpow2.f32 %v5106_v62 }
0x1cf2   : > { %v5108_v1 = vmul.f32 1.442695, %v5099_v48 }
0x1cf3   : > { %v5085_v18 = vpop.xlane.xlu0 %5084 }
0x1cf4   : > { %v5101_v37 = vsub.f32 %v5069_v11, %v5085_v18  ;;  %v5088_v31 = vpop.xlane.xlu1 %5087 }
0x1cf5   : > { %v5102_v59 = vsub.f32 %v5070_v49, %v5088_v31 }
0x1cf6   : > { %v5112_v6 = vmul.f32 1.442695, %v5101_v37 }
0x1cf7   : > { %v5091_v56 = vpop.xlane.xlu0 %5090  ;;  %v5114_v5 = vmul.f32 1.442695, %v5102_v59 }
0x1cf8   : > { %9021 = vpow2.f32 %v5112_v6  ;;  %v5094_v63 = vpop.xlane.xlu1 %5093  ;;  %v5103_v2 = vsub.f32 %v5071_v46, %v5091_v56 }
0x1cf9   : > { %v5104_v19 = vsub.f32 %v5072_v26, %v5094_v63  ;;  %9023 = vpow2.f32 %v5108_v1 }
0x1cfa   : > { %v10701_v34 = vpop.eup %9017  ;;  %v5116_v27 = vmul.f32 1.442695, %v5103_v2 }
0x1cfb   : > { %v5118_v9 = vmul.f32 1.442695, %v5104_v19  ;;  %v5097_v57 = vpop.xlane.xlu0 %5096  ;;  %v5128_v39 = vsel %vm2273_vm3, %v10701_v34, 0.0  ;;  %v9020_v60 = vpop.eup %9019 }
0x1cfc   : > { %v5105_v42 = vsub.f32 %v5073_v61, %v5097_v57  ;;  %v5167_v11 = vpop.permute.xlu1 %5166  ;;  %5129 = vadd.xlane.f32.xlu1 %v5128_v39  ;;  %v5122_v49 = vsel %vm2273_vm3, %v9020_v60, 0.0 }
0x1cfd   : > { %9025 = vpow2.f32 %v5118_v9  ;;  %8340 = vmatprep.subr.bf16.mxu1 %v5167_v11 }
0x1cfe   : > { %v5120_v13 = vmul.f32 1.442695, %v5105_v42  ;;  %8341 = vmatpush3.bf16.msra.mxu1 %v5167_v11  ;;  %9027 = vpow2.f32 %v5114_v5 }
0x1d00   : > { %9029 = vpow2.f32 %v5120_v13  ;;  %5123 = vadd.xlane.f32.xlu1 %v5122_v49 }
0x1d01   : > { %9031 = vpow2.f32 %v5116_v27 }
0x1d02   : > { %v9022_v14 = vpop.eup %9021 }
0x1d03   : > { %v5131_v4 = vsel %vm2273_vm3, %v9022_v14, 0.0  ;;  %v9024_v15 = vpop.eup %9023 }
0x1d04   : > { %5132 = vadd.xlane.f32.xlu0 %v5131_v4  ;;  %v5125_v46 = vsel %vm2273_vm3, %v9024_v15, 0.0 }
0x1d07   : > { %v10707_v26 = vpop.eup %9025 }
0x1d08   : > { %5126 = vadd.xlane.f32.xlu0 %v5125_v46  ;;  %v5140_v55 = vsel %vm2273_vm3, %v10707_v26, 0.0  ;;  %v9028_v40 = vpop.eup %9027 }
0x1d09   : > { %5141 = vadd.xlane.f32.xlu1 %v5140_v55  ;;  %v5134_v47 = vsel %vm2273_vm3, %v9028_v40, 0.0 }
0x1d0a   : > { %v9030_v61 = vpop.eup %9029 }
0x1d0b   : > { %v5143_v16 = vsel %vm2273_vm3, %v9030_v61, 0.0  ;;  %v9032_v10 = vpop.eup %9031 }
0x1d0c   : > { %5144 = vadd.xlane.f32.xlu0 %v5143_v16  ;;  %v5137_v25 = vsel %vm2273_vm3, %v9032_v10, 0.0 }
0x1d0d   : > { %5135 = vadd.xlane.f32.xlu1 %v5134_v47 }
0x1d10   : > { %5138 = vadd.xlane.f32.xlu0 %v5137_v25 }
0x1d1e   : > { %5170 = vrot.lane.b32.xlu1 %v10575_v51, %s11573_s26 }
0x1d22   : > { %5172 = vrot.lane.b32.xlu1 %v10573_v17, %s11573_s26 }
0x1d26   : > { %5168 = vrot.lane.b32.xlu0 %v10563_v20, %s11573_s26  ;;  %s11348_s26 = scalar_lea.vmem %s9488_s13, %s11578_s22 }
0x1d89   : > { %v5130_v33 = vpop.xlane.xlu1 %5129 }
0x1d8d   : > { %v5124_v29 = vpop.xlane.xlu1 %5123 }
0x1d8e   : > { %9033 = vrcp.f32 %v5124_v29 }
0x1d91   : > { %v5133_v0 = vpop.xlane.xlu0 %5132 }
0x1d95   : > { %v5127_v62 = vpop.xlane.xlu0 %5126 }
0x1d96   : > { %9035 = vrcp.f32 %v5127_v62  ;;  %v5142_v52 = vpop.xlane.xlu1 %5141  ;;  %v9163_v62 = vld [vmem:[%s9398_s25 + $0x8] sm:$0x3f] }
0x1d97   : > { %9037 = vrcp.f32 %v5133_v0 }
0x1d98   : > { %9039 = vrcp.f32 %v5130_v33  ;;  %v9034_v51 = vpop.eup %9033 }
0x1d99   : > { %v5145_v48 = vpop.xlane.xlu0 %5144  ;;  %v5147_v6 = vmul.f32 %v9034_v51, %v9020_v60 }
0x1d9a   : > { %v5136_v18 = vpop.xlane.xlu1 %5135 }
0x1d9b   : > { %9041 = vrcp.f32 %v5136_v18 }
0x1d9d   : > { %v5139_v37 = vpop.xlane.xlu0 %5138 }
0x1d9e   : > { %9043 = vrcp.f32 %v5139_v37  ;;  %v5171_v17 = vpop.permute.xlu1 %5170 }
0x1d9f   : > { %9045 = vrcp.f32 %v5145_v48 }
0x1da0   : > { %v9036_v31 = vpop.eup %9035  ;;  %9047 = vrcp.f32 %v5142_v52  ;;  %v4410_v52 = vrot.slane %v9163_v62, 2 }
0x1da1   : > { %v5169_v1 = vpop.permute.xlu0 %5168  ;;  %v5149_v20 = vmul.f32 %v9036_v31, %v9024_v15  ;;  %v9038_v56 = vpop.eup %9037  ;;  %v8763_v15 = vld [vmem:[%s11550_s5 + $0x10] sm:$0xff]  }
0x1da2   : > { %8342 = vmatprep.subr.bf16.mxu1 %v5169_v1  ;;  %v9040_v63 = vpop.eup %9039  ;;  %v5173_v2 = vpop.permute.xlu1 %5172  ;;  %v5153_v9 = vmul.f32 %v9038_v56, %v9022_v14 }
0x1da3   : > { %8343 = vmatpush3.bf16.msra.mxu1 %v5169_v1  ;;  %v5162_v59 = vpack.c.bf16 %v5149_v20, %v5147_v6  ;;  %v5151_v39 = vmul.f32 %v9040_v63, %v10701_v34  ;;  %v8764_v34 = vld [vmem:[%s11550_s5 + $0x18] sm:$0xff]  }
0x1da4   : > { %8344 = vmatprep.subr.bf16.mxu1 %v5171_v17 }
0x1da5   : > { %8348 = vmatprep.mubr.msk.bf16.mxu1 %vm2273_vm3, %v5162_v59  ;;  %v9042_v19 = vpop.eup %9041  ;;  %v5163_v42 = vpack.c.bf16 %v5153_v9, %v5151_v39 }
0x1da6   : > { %v5155_v60 = vmul.f32 %v9042_v19, %v9028_v40  ;;  %v8765_v19 = vld [vmem:[%s11551_s8 + $0x10] sm:$0xff]  }
0x1da7   : > { %8345 = vmatpush3.bf16.msra.mxu1 %v5171_v17 }
0x1da8   : > { %v9044_v5 = vpop.eup %9043  ;;  %8346 = vmatprep.subr.bf16.mxu1 %v5173_v2 }
0x1da9   : > { %v5157_v57 = vmul.f32 %v9044_v5, %v9032_v10  ;;  %v9046_v11 = vpop.eup %9045 }
0x1daa   : > { %v9048_v13 = vpop.eup %9047  ;;  %v5161_v49 = vmul.f32 %v9046_v11, %v9030_v61 }
0x1dab   : > { %8347 = vmatpush3.bf16.msra.mxu1 %v5173_v2  ;;  %v5164_v27 = vpack.c.bf16 %v5157_v57, %v5155_v60  ;;  %v5159_v4 = vmul.f32 %v9048_v13, %v10707_v26 }
0x1dac   : > { %8356 = vmatprep.subr.bf16.mxu1 %v8763_v15 }
0x1dad   : > { %v5165_v14 = vpack.c.bf16 %v5161_v49, %v5159_v4 }
0x1dae   : > { %8349 = vmatmul.mubr.msk.bf16.vlgmr.msra.gmra.mrb[76].mxu1 %vm2273_vm3, %v5163_v42 }
0x1daf   : > { %8352 = vmatprep.mubr.msk.bf16.mxu1 %vm2273_vm3, %v5164_v27  ;;  %8357 = vmatpush3.bf16.msra.mxu1 %v8763_v15 }
0x1db0   : > { %8358 = vmatprep.subr.bf16.mxu1 %v8764_v34 }
0x1db3   : > { %8359 = vmatpush3.bf16.msra.mxu1 %v8764_v34 }
0x1db4   : > { %8380 = vmatprep.subr.bf16.mxu1 %v9278_v50 }
0x1db6   : > { %8353 = vmatmul.mubr.msk.bf16.gmra.mrb[80].mxu1 %vm2273_vm3, %v5165_v14 }
0x1e81   : > { %v8350_v46 = vpop.f32.mrb[76].mxu1 }
0x1e82   : > { %v5224_v55 = vpop.f32.mrb[77].mxu1 }
0x1e83   : > { %v8351_v40 = vpop.f32.mrb[78].mxu1 }
0x1e84   : > { %v8676_v16 = vpack.i.bf16 %v8351_v40, %v8350_v46  ;;  %v5227_v10 = vpop.f32.mrb[79].mxu1 }
0x1e85   : > { %v8671_v61 = vpack.i.bf16 %v5227_v10, %v5224_v55  ;;  %v7708_v10 = vld [vmem:[%s11555_s6 + $0x1] ss:$0 sm:$0xff] }
0x1e86   : > { %8677 = vrot.lane.b32.xlu0 %v8676_v16, %s11562_s30 }
0x1e87   : > { %8672 = vrot.lane.b32.xlu1 %v8671_v61, %s11562_s30 }
0x1e89   : > { %v8354_v26 = vpop.f32.mrb[80].mxu1 }
0x1e8a   : > { %v5240_v47 = vpop.f32.mrb[81].mxu1 }
0x1e8b   : > { %v8355_v25 = vpop.f32.mrb[82].mxu1 }
0x1e8c   : > { %v8686_v33 = vpack.i.bf16 %v8355_v25, %v8354_v26  ;;  %v5243_v29 = vpop.f32.mrb[83].mxu1 }
0x1e8d   : > { %v8681_v0 = vpack.i.bf16 %v5243_v29, %v5240_v47 }
0x1e8e   : > { %8687 = vrot.lane.b32.xlu0 %v8686_v33, %s11562_s30 }
0x1e8f   : > { %8682 = vrot.lane.b32.xlu1 %v8681_v0, %s11562_s30 }
0x1e93   : > { %4411 = vrot.lane.b32.xlu1 %v4410_v52, %s11549_s3  ;;  %v8767_v52 = vld [vmem:[%s11553_s9 + $0x10] sm:$0xff]  }
0x1e94   : > { %8368 = vmatprep.subr.bf16.mxu0 %v8767_v52 }
0x1e95   : > { %8369 = vmatpush3.bf16.msra.mxu0 %v8767_v52 }
0x1ef8   : > { %v8678_v48 = vpop.permute.xlu0 %8677 }
0x1ef9   : > { %v8680_v18 = vunpack.i.h.bf16 %v8678_v48  ;;  %v8679_v37 = vunpack.i.l.bf16 %v8678_v48  ;;  %v8673_v51 = vpop.permute.xlu1 %8672 }
0x1efa   : > { %v8675_v31 = vunpack.i.h.bf16 %v8673_v51  ;;  %v8674_v17 = vunpack.i.l.bf16 %v8673_v51 }
0x1efb   : > { %v5290_v1 = vsel %vm1317_vm0, %v10679_v45, %v8680_v18  ;;  %v5289_v6 = vsel %vm1317_vm0, %v10675_v21, %v8679_v37  ;;  %v8766_v21 = vld [vmem:[%s11551_s8 + $0x18] sm:$0xff]  }
0x1efc   : > { %v5301_v20 = vpack.c.bf16 %v5290_v1, %v5289_v6  ;;  %v5288_v59 = vsel %vm1317_vm0, %v10681_v58, %v8675_v31  ;;  %v5287_v56 = vsel %vm1317_vm0, %v10677_v22, %v8674_v17  ;;  %v8768_v37 = vld [vmem:[%s11553_s9 + $0x18] sm:$0xff]  }
0x1efd   : > { %v5300_v63 = vpack.c.bf16 %v5288_v59, %v5287_v56  ;;  %8370 = vmatprep.subr.bf16.mxu0 %v8768_v37 }
0x1efe   : > { %8371 = vmatpush3.bf16.msra.mxu0 %v8768_v37 }
0x1eff   : > { %8360 = vmatprep.mubr.msk.bf16.mxu1 %vm1619_vm2, %v5300_v63 }
0x1f00   : > { %8361 = vmatmul.mubr.msk.bf16.vlgmr.msra.gmra.mrb[84].mxu1 %vm1619_vm2, %v5301_v20  ;;  %v8688_v2 = vpop.permute.xlu0 %8687 }
0x1f01   : > { %v8690_v5 = vunpack.i.h.bf16 %v8688_v2  ;;  %v8689_v9 = vunpack.i.l.bf16 %v8688_v2  ;;  %v8683_v45 = vpop.permute.xlu1 %8682  ;;  %8381 = vmatpush3.bf16.msra.mxu1 %v8765_v19 }
0x1f02   : > { %v8685_v57 = vunpack.i.h.bf16 %v8683_v45  ;;  %v8684_v39 = vunpack.i.l.bf16 %v8683_v45  ;;  %8382 = vmatprep.subr.bf16.mxu1 %v9278_v50 }
0x1f03   : > { %v5294_v22 = vsel %vm1317_vm0, %v10687_v36, %v8690_v5  ;;  %v5293_v58 = vsel %vm1317_vm0, %v10683_v43, %v8689_v9  ;;  %v7684_v43 = vld [vmem:[%s11554_s12 + $0x1] ss:$0 sm:$0xff] }
0x1f04   : > { %v5292_v60 = vsel %vm1317_vm0, %v10689_v28, %v8685_v57  ;;  %v5291_v42 = vsel %vm1317_vm0, %v10685_v8, %v8684_v39  ;;  %v5303_v11 = vpack.c.bf16 %v5294_v22, %v5293_v58 }
0x1f05   : > { %v5302_v27 = vpack.c.bf16 %v5292_v60, %v5291_v42  ;;  %8383 = vmatpush3.bf16.msra.mxu1 %v8766_v21  ;;  %v4412_v48 = vpop.permute.xlu1 %4411 }
0x1f06   : > { %v4414_v18 = vadd.f32 %v4412_v48, %v9728_v3 }
0x1f07   : > { %8364 = vmatprep.mubr.msk.bf16.mxu1 %vm1619_vm2, %v5302_v27 }
0x1f08   : > { %8365 = vmatmul.mubr.msk.bf16.gmra.mrb[88].mxu1 %vm1619_vm2, %v5303_v11  ;;  %v5404_v51 = vrot.slane %v4414_v18, %v9575_v24 }
0x1f09   : > { %8384 = vmatprep.mubr.msk.bf16.mxu1 %vm9279_vm1, %v9278_v50 }
0x1f10   : > { %8385 = vmatmul.mubr.msk.bf16.vlgmr.msra.gmra.mrb[92].mxu1 %vm1619_vm2, %v9961_v32 }
0x1fd3   : > { %v8362_v36 = vpop.f32.mrb[84].mxu1 }
0x1fd4   : > { %v5370_v13 = vpop.f32.mrb[85].mxu1  ;;  %v5379_v14 = vadd.f32 %v8362_v36, %v7684_v43 }
0x1fd5   : > { %v5371_v28 = vadd.f32 %v7684_v43, %v5370_v13  ;;  %v8363_v49 = vpop.f32.mrb[86].mxu1 }
0x1fd6   : > { %v5373_v4 = vpop.f32.mrb[87].mxu1  ;;  %v5382_v15 = vadd.f32 %v8363_v49, %v7684_v43 }
0x1fd7   : > { %v5374_v8 = vadd.f32 %v7684_v43, %v5373_v4  ;;  %5413 = vrot.lane.b32.xlu0 %v5371_v28, %s11549_s3 }
0x1fd9   : > { %5415 = vrot.lane.b32.xlu1 %v5374_v8, %s11549_s3 }
0x1fdb   : > { %v8366_v34 = vpop.f32.mrb[88].mxu1  ;;  %5417 = vrot.lane.b32.xlu0 %v5379_v14, %s11549_s3 }
0x1fdc   : > { %v5386_v50 = vpop.f32.mrb[89].mxu1  ;;  %v5395_v16 = vadd.f32 %v8366_v34, %v7684_v43 }
0x1fdd   : > { %v5387_v46 = vadd.f32 %v7684_v43, %v5386_v50  ;;  %v8367_v32 = vpop.f32.mrb[90].mxu1  ;;  %5419 = vrot.lane.b32.xlu1 %v5382_v15, %s11549_s3  ;;  %v7696_v50 = vld [vmem:[%s11557_s17 + $0x1] ss:$0 sm:$0xff] }
0x1fde   : > { %v5389_v55 = vpop.f32.mrb[91].mxu1  ;;  %v5398_v61 = vadd.f32 %v8367_v32, %v7684_v43 }
0x1fdf   : > { %v5390_v40 = vadd.f32 %v7684_v43, %v5389_v55  ;;  %5421 = vrot.lane.b32.xlu0 %v5387_v46, %s11549_s3 }
0x1fe1   : > { %5423 = vrot.lane.b32.xlu1 %v5390_v40, %s11549_s3 }
0x1fe3   : > { %v5650_v26 = vpop.f32.mrb[92].mxu1  ;;  %5425 = vrot.lane.b32.xlu0 %v5395_v16, %s11549_s3 }
0x1fe4   : > { %v5651_v47 = vadd.f32 %v7708_v10, %v5650_v26  ;;  %v8386_v25 = vpop.f32.mrb[93].mxu1 }
0x1fe5   : > { %v5653_v33 = vpop.f32.mrb[94].mxu1  ;;  %5427 = vrot.lane.b32.xlu1 %v5398_v61, %s11549_s3 }
0x1fe6   : > { %v10773_v29 = vpack.c.bf16 %v5651_v47, %v5651_v47  ;;  %v8387_v0 = vpop.f32.mrb[95].mxu1 }
0x1fe8   : > { %8536 = vmatprep.subr.msk.bf16.mxu1 %vm1317_vm0, %v10773_v29  ;;  %v5674_v62 = vsel %vm1317_vm0, %v10773_v29, 0 }
0x1fe9   : > { %8389 = vmatpush3.bf16.xpose.msra.mxu1 %v5674_v62 }
0x2049   : > { %v5414_v31 = vpop.permute.xlu0 %5413 }
0x204a   : > { %v5437_v17 = vmul.f32 %v5414_v31, %v5404_v51 }
0x204b   : > { %v5416_v1 = vpop.permute.xlu1 %5415 }
0x204c   : > { %v5438_v6 = vmul.f32 %v5416_v1, %v5404_v51  ;;  %5453 = vrot.lane.b32.xlu0 %v5437_v17, %s11549_s3 }
0x204d   : > { %v5418_v20 = vpop.permute.xlu0 %5417 }
0x204e   : > { %v5439_v59 = vmul.f32 %v5418_v20, %v5404_v51  ;;  %5455 = vrot.lane.b32.xlu1 %v5438_v6, %s11549_s3 }
0x204f   : > { %v5420_v56 = vpop.permute.xlu1 %5419 }
0x2050   : > { %v5440_v63 = vmul.f32 %v5420_v56, %v5404_v51  ;;  %5457 = vrot.lane.b32.xlu0 %v5439_v59, %s11549_s3 }
0x2051   : > { %v5422_v19 = vpop.permute.xlu0 %5421 }
0x2052   : > { %v5441_v2 = vmul.f32 %v5422_v19, %v5404_v51  ;;  %5459 = vrot.lane.b32.xlu1 %v5440_v63, %s11549_s3 }
0x2053   : > { %v5424_v5 = vpop.permute.xlu1 %5423 }
0x2054   : > { %v5442_v9 = vmul.f32 %v5424_v5, %v5404_v51  ;;  %5461 = vrot.lane.b32.xlu0 %v5441_v2, %s11549_s3  ;;  %v10845_v2 = vld [vmem:[%s10048_s21] ss:$0 sm:$0xff]  ;;  %s11574_s21 = sld [smem:[#allocation11_spill]] }
0x2055   : > { %v5426_v45 = vpop.permute.xlu0 %5425 }
0x2056   : > { %v5443_v21 = vmul.f32 %v5426_v45, %v5404_v51  ;;  %5463 = vrot.lane.b32.xlu1 %v5442_v9, %s11549_s3 }
0x2057   : > { %v5428_v57 = vpop.permute.xlu1 %5427 }
0x2058   : > { %v5444_v39 = vmul.f32 %v5428_v57, %v5404_v51  ;;  %5465 = vrot.lane.b32.xlu0 %v5443_v21, %s11549_s3 }
0x205a   : > { %5467 = vrot.lane.b32.xlu1 %v5444_v39, %s11549_s3 }
0x205c   : > { %5944 = vrot.lane.b32.xlu0 %v10773_v29, %s11556_s14 }
0x20be   : > { %v5454_v22 = vpop.permute.xlu0 %5453 }
0x20bf   : > { %v10794_v60 = vadd.f32 %v5454_v22, %v10450_v23 }
0x20c0   : > { %v5456_v58 = vpop.permute.xlu1 %5455 }
0x20c1   : > { %v10797_v42 = vadd.f32 %v5456_v58, %v10455_v41 }
0x20c2   : > { %v5458_v11 = vpop.permute.xlu0 %5457 }
0x20c3   : > { %v5490_v27 = vpack.c.bf16 %v10797_v42, %v10794_v60  ;;  %v10802_v36 = vadd.f32 %v5458_v11, %v10458_v12 }
0x20c4   : > { %v5460_v43 = vpop.permute.xlu1 %5459 }
0x20c5   : > { %v10805_v13 = vadd.f32 %v5460_v43, %v10465_v30  ;;  %8372 = vmatprep.mubr.msk.bf16.mxu0 %vm1619_vm2, %v5490_v27 }
0x20c6   : > { %v5462_v28 = vpop.permute.xlu0 %5461 }
0x20c7   : > { %v5491_v23 = vpack.c.bf16 %v10805_v13, %v10802_v36  ;;  %v10811_v49 = vadd.f32 %v5462_v28, %v10478_v53 }
0x20c8   : > { %v5464_v41 = vpop.permute.xlu1 %5463 }
0x20c9   : > { %v10814_v4 = vadd.f32 %v5464_v41, %v10470_v44  ;;  %8373 = vmatmul.mubr.msk.bf16.vlgmr.msra.gmra.mrb[100].mxu0 %vm1619_vm2, %v5491_v23 }
0x20ca   : > { %v5466_v12 = vpop.permute.xlu0 %5465 }
0x20cb   : > { %v5492_v30 = vpack.c.bf16 %v10814_v4, %v10811_v49  ;;  %v10820_v14 = vadd.f32 %v5466_v12, %v10473_v38 }
0x20cc   : > { %v5468_v8 = vpop.permute.xlu1 %5467 }
0x20cd   : > { %v10823_v15 = vadd.f32 %v5468_v8, %v10481_v35  ;;  %8376 = vmatprep.mubr.msk.bf16.mxu0 %vm1619_vm2, %v5492_v30 }
0x20ce   : > { %v5945_v53 = vpop.permute.xlu0 %5944 }
0x20cf   : > { %v5493_v44 = vpack.c.bf16 %v10823_v15, %v10820_v14  ;;  %8538 = vmatprep.subr.msk.bf16.mxu1 %vm1317_vm0, %v5945_v53  ;;  %v5959_v25 = vsel %vm1317_vm0, %v5945_v53, 0 }
0x20d1   : > { %8377 = vmatmul.mubr.msk.bf16.gmra.mrb[104].mxu0 %vm1619_vm2, %v5493_v44 }
0x219c   : > { %v8374_v34 = vpop.f32.mrb[100].mxu0 }
0x219d   : > { %v5560_v46 = vpop.f32.mrb[101].mxu0  ;;  %v5569_v55 = vadd.f32 %v8374_v34, %v7696_v50 }
0x219e   : > { %v8375_v32 = vpop.f32.mrb[102].mxu0  ;;  %v5561_v16 = vadd.f32 %v7696_v50, %v5560_v46 }
0x219f   : > { %v5572_v38 = vadd.f32 %v8375_v32, %v7696_v50  ;;  %v5563_v40 = vpop.f32.mrb[103].mxu0 }
0x21a0   : > { %v5564_v35 = vadd.f32 %v7696_v50, %v5563_v40 }
0x21a1   : > { %v5657_v10 = vpack.c.bf16 %v5572_v38, %v5569_v55 }
0x21a2   : > { %v5656_v61 = vpack.c.bf16 %v5564_v35, %v5561_v16 }
0x21a3   : > { %5938 = vrot.lane.b32.xlu0 %v5657_v10, %s11556_s14 }
0x21a4   : > { %5936 = vrot.lane.b32.xlu1 %v5656_v61, %s11556_s14  ;;  %v8378_v26 = vpop.f32.mrb[104].mxu0  ;;  %8390 = vmatprep.mubr.msk.bf16.mxu1 %vm1317_vm0, %v5656_v61 }
0x21a5   : > { %v5576_v47 = vpop.f32.mrb[105].mxu0  ;;  %8391 = vmatmul.mubr.msk.bf16.vlgmr.msra.gmra.mrb[96].mxu1 %vm1317_vm0, %v5657_v10  ;;  %v5585_v0 = vadd.f32 %v8378_v26, %v7696_v50 }
0x21a6   : > { %8409 = vmatpush3.bf16.xpose.msra.mxu1 %v5959_v25  ;;  %v8379_v33 = vpop.f32.mrb[106].mxu0  ;;  %v5577_v48 = vadd.f32 %v7696_v50, %v5576_v47 }
0x21a7   : > { %v5588_v62 = vadd.f32 %v8379_v33, %v7696_v50  ;;  %v5579_v52 = vpop.f32.mrb[107].mxu0 }
0x21a8   : > { %v5580_v18 = vadd.f32 %v7696_v50, %v5579_v52 }
0x21a9   : > { %v5659_v37 = vpack.c.bf16 %v5588_v62, %v5585_v0 }
0x21aa   : > { %v5658_v51 = vpack.c.bf16 %v5580_v18, %v5577_v48 }
0x21ab   : > { %5942 = vrot.lane.b32.xlu0 %v5659_v37, %s11556_s14 }
0x21ac   : > { %5940 = vrot.lane.b32.xlu1 %v5658_v51, %s11556_s14  ;;  %8394 = vmatprep.mubr.msk.bf16.mxu1 %vm1317_vm0, %v5658_v51  ;;  %s11575_s14 = sld [smem:[#allocation39_spill]] }
0x21ad   : > { %8395 = vmatmul.mubr.msk.bf16.gmra.mrb[100].mxu1 %vm1317_vm0, %v5659_v37 }
0x2215   : > { %v5939_v17 = vpop.permute.xlu0 %5938 }
0x2216   : > { %v5937_v31 = vpop.permute.xlu1 %5936 }
0x2217   : > { %8410 = vmatprep.mubr.msk.bf16.mxu1 %vm1317_vm0, %v5937_v31 }
0x2218   : > { %8411 = vmatmul.mubr.msk.bf16.vlgmr.msra.gmra.mrb[104].mxu1 %vm1317_vm0, %v5939_v17 }
0x221d   : > { %v5943_v6 = vpop.permute.xlu0 %5942 }
0x221e   : > { %v5941_v1 = vpop.permute.xlu1 %5940 }
0x221f   : > { %8414 = vmatprep.mubr.msk.bf16.mxu1 %vm1317_vm0, %v5941_v1 }
0x2220   : > { %8415 = vmatmul.mubr.msk.bf16.gmra.mrb[108].mxu1 %vm1317_vm0, %v5943_v6 }
0x2278   : > { %v8392_v20 = vpop.f32.mrb[96].mxu1 }
0x2279   : > { %v5743_v59 = vmul.f32 0.25, %v8392_v20  ;;  %v5710_v56 = vpop.f32.mrb[97].mxu1 }
0x227a   : > { %v5741_v63 = vmul.f32 0.25, %v5710_v56  ;;  %v8393_v19 = vpop.f32.mrb[98].mxu1 }
0x227b   : > { %v10848_v5 = vadd.f32 %v10845_v2, %v5743_v59  ;;  %v5713_v9 = vpop.f32.mrb[99].mxu1  ;;  %v5744_v57 = vmul.f32 0.25, %v8393_v19 }
0x227c   : > { %v10851_v45 = vadd.f32 %v10845_v2, %v5741_v63  ;;  %v5742_v21 = vmul.f32 0.25, %v5713_v9 }
0x227d   : > { %v5763_v39 = vsel %vm3255_vm4, %v10848_v5, -inf  ;;  %v10863_v43 = vadd.f32 %v10845_v2, %v5744_v57 }
0x227e   : > { %v10856_v22 = vadd.f32 %v10845_v2, %v5742_v21  ;;  %5764 = vmax.xlane.f32.xlu0 %v5763_v39  ;;  %v5757_v58 = vsel %vm3255_vm4, %v10851_v45, -inf }
0x227f   : > { %5758 = vmax.xlane.f32.xlu1 %v5757_v58  ;;  %v5766_v34 = vsel %vm3255_vm4, %v10863_v43, -inf }
0x2280   : > { %v8396_v11 = vpop.f32.mrb[100].mxu1  ;;  %v5760_v27 = vsel %vm3255_vm4, %v10856_v22, -inf }
0x2281   : > { %v5726_v28 = vpop.f32.mrb[101].mxu1  ;;  %v5747_v23 = vmul.f32 0.25, %v8396_v11 }
0x2282   : > { %v5745_v41 = vmul.f32 0.25, %v5726_v28  ;;  %5761 = vmax.xlane.f32.xlu0 %v5760_v27  ;;  %v8397_v12 = vpop.f32.mrb[102].mxu1 }
0x2283   : > { %v5729_v30 = vpop.f32.mrb[103].mxu1  ;;  %v5748_v44 = vmul.f32 0.25, %v8397_v12  ;;  %v10871_v50 = vadd.f32 %v10845_v2, %v5747_v23 }
0x2284   : > { %v10866_v8 = vadd.f32 %v10845_v2, %v5745_v41  ;;  %v5746_v53 = vmul.f32 0.25, %v5729_v30 }
0x2285   : > { %v10881_v38 = vadd.f32 %v10845_v2, %v5748_v44  ;;  %v5775_v40 = vsel %vm3255_vm4, %v10871_v50, -inf }
0x2286   : > { %v10874_v46 = vadd.f32 %v10845_v2, %v5746_v53  ;;  %5767 = vmax.xlane.f32.xlu0 %v5766_v34  ;;  %v5769_v32 = vsel %vm3255_vm4, %v10866_v8, -inf }
0x2287   : > { %5770 = vmax.xlane.f32.xlu1 %v5769_v32  ;;  %v5778_v16 = vsel %vm3255_vm4, %v10881_v38, -inf }
0x2288   : > { %v5772_v55 = vsel %vm3255_vm4, %v10874_v46, -inf }
0x228a   : > { %5773 = vmax.xlane.f32.xlu0 %v5772_v55 }
0x228b   : > { %5776 = vmax.xlane.f32.xlu1 %v5775_v40 }
0x228e   : > { %5779 = vmax.xlane.f32.xlu0 %v5778_v16 }
0x22eb   : > { %v8412_v35 = vpop.f32.mrb[104].mxu1 }
0x22ec   : > { %v5995_v10 = vpop.f32.mrb[105].mxu1  ;;  %v6028_v61 = vmul.f32 0.25, %v8412_v35 }
0x22ed   : > { %v6026_v26 = vmul.f32 0.25, %v5995_v10  ;;  %v8413_v47 = vpop.f32.mrb[106].mxu1 }
0x22ee   : > { %v5998_v25 = vpop.f32.mrb[107].mxu1  ;;  %v6029_v0 = vmul.f32 0.25, %v8413_v47  ;;  %v10891_v52 = vadd.f32 %v10845_v2, %v6028_v61 }
0x22ef   : > { %v10888_v33 = vadd.f32 %v10845_v2, %v6026_v26  ;;  %v6027_v62 = vmul.f32 0.25, %v5998_v25 }
0x22f0   : > { %v10899_v37 = vadd.f32 %v10845_v2, %v6029_v0  ;;  %v6048_v59 = vsel %vm3255_vm4, %v10891_v52, -inf }
0x22f1   : > { %v10894_v48 = vadd.f32 %v10845_v2, %v6027_v62  ;;  %v6042_v18 = vsel %vm3255_vm4, %v10888_v33, -inf }
0x22f2   : > { %6043 = vmax.xlane.f32.xlu1 %v6042_v18  ;;  %v6051_v21 = vsel %vm3255_vm4, %v10899_v37, -inf }
0x22f3   : > { %v8416_v51 = vpop.f32.mrb[108].mxu1  ;;  %v6045_v31 = vsel %vm3255_vm4, %v10894_v48, -inf }
0x22f4   : > { %6046 = vmax.xlane.f32.xlu0 %v6045_v31  ;;  %v6011_v17 = vpop.f32.mrb[109].mxu1  ;;  %v6032_v1 = vmul.f32 0.25, %v8416_v51 }
0x22f5   : > { %v6030_v6 = vmul.f32 0.25, %v6011_v17  ;;  %v8417_v20 = vpop.f32.mrb[110].mxu1 }
0x22f6   : > { %6049 = vmax.xlane.f32.xlu1 %v6048_v59  ;;  %v6014_v56 = vpop.f32.mrb[111].mxu1  ;;  %v6033_v19 = vmul.f32 0.25, %v8417_v20  ;;  %v10911_v57 = vadd.f32 %v10845_v2, %v6032_v1 }
0x22f7   : > { %v10906_v63 = vadd.f32 %v10845_v2, %v6030_v6  ;;  %v6031_v9 = vmul.f32 0.25, %v6014_v56 }
0x22f8   : > { %6052 = vmax.xlane.f32.xlu0 %v6051_v21  ;;  %v10919_v11 = vadd.f32 %v10845_v2, %v6033_v19  ;;  %v6060_v28 = vsel %vm3255_vm4, %v10911_v57, -inf }
0x22f9   : > { %v10914_v39 = vadd.f32 %v10845_v2, %v6031_v9  ;;  %v6054_v58 = vsel %vm3255_vm4, %v10906_v63, -inf }
0x22fa   : > { %6055 = vmax.xlane.f32.xlu1 %v6054_v58  ;;  %v6063_v23 = vsel %vm3255_vm4, %v10919_v11, -inf }
0x22fb   : > { %v6057_v27 = vsel %vm3255_vm4, %v10914_v39, -inf }
0x22fc   : > { %6058 = vmax.xlane.f32.xlu0 %v6057_v27 }
0x22fe   : > { %6061 = vmax.xlane.f32.xlu1 %v6060_v28 }
0x2300   : > { %6064 = vmax.xlane.f32.xlu0 %v6063_v23 }
0x230b   : > { %v5765_v41 = vpop.xlane.xlu0 %5764 }
0x230c   : > { %v5783_v12 = vsub.f32 %v10848_v5, %v5765_v41  ;;  %v5759_v30 = vpop.xlane.xlu1 %5758 }
0x230d   : > { %v5781_v53 = vsub.f32 %v10851_v45, %v5759_v30 }
0x230e   : > { %v5793_v2 = vmul.f32 1.442695, %v5783_v12 }
0x230f   : > { %v5789_v44 = vmul.f32 1.442695, %v5781_v53  ;;  %v5762_v34 = vpop.xlane.xlu0 %5761 }
0x2310   : > { %9049 = vpow2.f32 %v5793_v2  ;;  %v5782_v32 = vsub.f32 %v10856_v22, %v5762_v34 }
0x2311   : > { %9051 = vpow2.f32 %v5789_v44 }
0x2312   : > { %v5791_v35 = vmul.f32 1.442695, %v5782_v32 }
0x2313   : > { %v5768_v55 = vpop.xlane.xlu0 %5767 }
0x2314   : > { %v5784_v40 = vsub.f32 %v10863_v43, %v5768_v55  ;;  %v5771_v16 = vpop.xlane.xlu1 %5770 }
0x2315   : > { %v5785_v61 = vsub.f32 %v10866_v8, %v5771_v16 }
0x2316   : > { %v5795_v10 = vmul.f32 1.442695, %v5784_v40 }
0x2317   : > { %v5774_v26 = vpop.xlane.xlu0 %5773  ;;  %v5797_v0 = vmul.f32 1.442695, %v5785_v61 }
0x2318   : > { %9053 = vpow2.f32 %v5795_v10  ;;  %v5777_v5 = vpop.xlane.xlu1 %5776  ;;  %v5786_v25 = vsub.f32 %v10874_v46, %v5774_v26 }
0x2319   : > { %v5787_v45 = vsub.f32 %v10871_v50, %v5777_v5  ;;  %9055 = vpow2.f32 %v5791_v35 }
0x231a   : > { %v10933_v47 = vpop.eup %9049  ;;  %v5799_v51 = vmul.f32 1.442695, %v5786_v25 }
0x231b   : > { %v5801_v22 = vmul.f32 1.442695, %v5787_v45  ;;  %v5780_v62 = vpop.xlane.xlu0 %5779  ;;  %v5811_v43 = vsel %vm3255_vm4, %v10933_v47, 0.0  ;;  %v10938_v18 = vpop.eup %9051 }
0x231c   : > { %v5788_v8 = vsub.f32 %v10881_v38, %v5780_v62  ;;  %5812 = vadd.xlane.f32.xlu1 %v5811_v43  ;;  %v5805_v50 = vsel %vm3255_vm4, %v10938_v18, 0.0 }
0x231d   : > { %9057 = vpow2.f32 %v5801_v22 }
0x231e   : > { %v5803_v31 = vmul.f32 1.442695, %v5788_v8  ;;  %9059 = vpow2.f32 %v5797_v0 }
0x2320   : > { %9061 = vpow2.f32 %v5803_v31  ;;  %5806 = vadd.xlane.f32.xlu1 %v5805_v50 }
0x2321   : > { %9063 = vpow2.f32 %v5799_v51 }
0x2322   : > { %v10943_v46 = vpop.eup %9053 }
0x2323   : > { %v5814_v17 = vsel %vm3255_vm4, %v10943_v46, 0.0  ;;  %v10947_v1 = vpop.eup %9055 }
0x2324   : > { %5815 = vadd.xlane.f32.xlu0 %v5814_v17  ;;  %v5808_v6 = vsel %vm3255_vm4, %v10947_v1, 0.0 }
0x2327   : > { %v10949_v38 = vpop.eup %9057 }
0x2328   : > { %5809 = vadd.xlane.f32.xlu0 %v5808_v6  ;;  %v5823_v20 = vsel %vm3255_vm4, %v10949_v38, 0.0  ;;  %v10955_v59 = vpop.eup %9059 }
0x2329   : > { %5824 = vadd.xlane.f32.xlu1 %v5823_v20  ;;  %v5817_v21 = vsel %vm3255_vm4, %v10955_v59, 0.0 }
0x232a   : > { %v10957_v56 = vpop.eup %9061 }
0x232b   : > { %v5826_v19 = vsel %vm3255_vm4, %v10957_v56, 0.0  ;;  %v10961_v9 = vpop.eup %9063 }
0x232c   : > { %5827 = vadd.xlane.f32.xlu0 %v5826_v19  ;;  %v5820_v58 = vsel %vm3255_vm4, %v10961_v9, 0.0 }
0x232d   : > { %5818 = vadd.xlane.f32.xlu1 %v5817_v21 }
0x2330   : > { %5821 = vadd.xlane.f32.xlu0 %v5820_v58 }
0x237f   : > { %v6044_v27 = vpop.xlane.xlu1 %6043 }
0x2380   : > { %v6066_v28 = vsub.f32 %v10888_v33, %v6044_v27 }
0x2381   : > { %v6047_v23 = vpop.xlane.xlu0 %6046 }
0x2382   : > { %v6067_v12 = vsub.f32 %v10894_v48, %v6047_v23  ;;  %v6074_v53 = vmul.f32 1.442695, %v6066_v28 }
0x2383   : > { %v6050_v41 = vpop.xlane.xlu1 %6049 }
0x2384   : > { %v6068_v30 = vsub.f32 %v10891_v52, %v6050_v41  ;;  %v6076_v55 = vmul.f32 1.442695, %v6067_v12 }
0x2385   : > { %v6053_v2 = vpop.xlane.xlu0 %6052 }
0x2386   : > { %v6078_v44 = vmul.f32 1.442695, %v6068_v30  ;;  %v6069_v34 = vsub.f32 %v10899_v37, %v6053_v2 }
0x2387   : > { %v6056_v32 = vpop.xlane.xlu1 %6055 }
0x2388   : > { %9065 = vpow2.f32 %v6078_v44  ;;  %v6080_v40 = vmul.f32 1.442695, %v6069_v34  ;;  %v6070_v16 = vsub.f32 %v10906_v63, %v6056_v32 }
0x2389   : > { %9067 = vpow2.f32 %v6074_v53  ;;  %v6059_v35 = vpop.xlane.xlu0 %6058 }
0x238a   : > { %9069 = vpow2.f32 %v6080_v40  ;;  %v6071_v48 = vsub.f32 %v10914_v39, %v6059_v35  ;;  %v6082_v10 = vmul.f32 1.442695, %v6070_v16 }
0x238b   : > { %v6062_v33 = vpop.xlane.xlu1 %6061  ;;  %9071 = vpow2.f32 %v6076_v55 }
0x238c   : > { %v6072_v52 = vsub.f32 %v10911_v57, %v6062_v33  ;;  %v6084_v5 = vmul.f32 1.442695, %v6071_v48 }
0x238d   : > { %v6065_v61 = vpop.xlane.xlu0 %6064 }
0x238e   : > { %v6086_v26 = vmul.f32 1.442695, %v6072_v52  ;;  %v6073_v37 = vsub.f32 %v10919_v11, %v6065_v61 }
0x2390   : > { %9073 = vpow2.f32 %v6086_v26  ;;  %v6088_v45 = vmul.f32 1.442695, %v6073_v37 }
0x2391   : > { %9075 = vpow2.f32 %v6082_v10 }
0x2392   : > { %v10975_v25 = vpop.eup %9065  ;;  %9077 = vpow2.f32 %v6088_v45 }
0x2393   : > { %v10977_v63 = vpop.eup %9067  ;;  %v6096_v0 = vsel %vm3255_vm4, %v10975_v25, 0.0  ;;  %9079 = vpow2.f32 %v6084_v5 }
0x2394   : > { %v10981_v39 = vpop.eup %9069  ;;  %6097 = vadd.xlane.f32.xlu1 %v6096_v0  ;;  %v6090_v22 = vsel %vm3255_vm4, %v10977_v63, 0.0 }
0x2395   : > { %v6099_v57 = vsel %vm3255_vm4, %v10981_v39, 0.0  ;;  %v10985_v11 = vpop.eup %9071 }
0x2396   : > { %6100 = vadd.xlane.f32.xlu0 %v6099_v57  ;;  %v6093_v62 = vsel %vm3255_vm4, %v10985_v11, 0.0 }
0x2398   : > { %6091 = vadd.xlane.f32.xlu1 %v6090_v22 }
0x239a   : > { %v10991_v43 = vpop.eup %9073  ;;  %6094 = vadd.xlane.f32.xlu0 %v6093_v62 }
0x239b   : > { %v10993_v8 = vpop.eup %9075  ;;  %v6108_v51 = vsel %vm3255_vm4, %v10991_v43, 0.0 }
0x239c   : > { %v10997_v31 = vpop.eup %9077  ;;  %6109 = vadd.xlane.f32.xlu1 %v6108_v51  ;;  %v6102_v6 = vsel %vm3255_vm4, %v10993_v8, 0.0 }
0x239d   : > { %v6111_v50 = vsel %vm3255_vm4, %v10997_v31, 0.0  ;;  %v11001_v17 = vpop.eup %9079 }
0x239e   : > { %6112 = vadd.xlane.f32.xlu0 %v6111_v50  ;;  %v6105_v20 = vsel %vm3255_vm4, %v11001_v17, 0.0 }
0x23a0   : > { %6103 = vadd.xlane.f32.xlu1 %v6102_v6 }
0x23a2   : > { %6106 = vadd.xlane.f32.xlu0 %v6105_v20 }
0x23a9   : > { %v5813_v19 = vpop.xlane.xlu1 %5812 }
0x23aa   : > { %9081 = vrcp.f32 %v5813_v19 }
0x23ad   : > { %v5807_v21 = vpop.xlane.xlu1 %5806 }
0x23b1   : > { %5850 = vrot.lane.b32.xlu1 %v10773_v29, %s11559_s19  ;;  %v5816_v58 = vpop.xlane.xlu0 %5815 }
0x23b2   : > { %9083 = vrcp.f32 %v5816_v58 }
0x23b3   : > { %9085 = vrcp.f32 %v5807_v21 }
0x23b4   : > { %v9082_v28 = vpop.eup %9081 }
0x23b5   : > { %v5810_v27 = vpop.xlane.xlu0 %5809  ;;  %v5834_v41 = vmul.f32 %v9082_v28, %v10933_v47 }
0x23b6   : > { %9087 = vrcp.f32 %v5810_v27  ;;  %v5825_v55 = vpop.xlane.xlu1 %5824 }
0x23b8   : > { %6134 = vrot.lane.b32.xlu0 %v10773_v29, %s11560_s24  ;;  %s11576_s24 = sld [smem:[#allocation7_spill]] }
0x23b9   : > { %v5828_v40 = vpop.xlane.xlu0 %5827 }
0x23ba   : > { %v5819_v16 = vpop.xlane.xlu1 %5818 }
0x23bc   : > { %v9084_v23 = vpop.eup %9083 }
0x23bd   : > { %v5836_v12 = vmul.f32 %v9084_v23, %v10943_v46  ;;  %v9086_v30 = vpop.eup %9085  ;;  %v5822_v29 = vpop.xlane.xlu0 %5821 }
0x23be   : > { %v5830_v44 = vmul.f32 %v9086_v30, %v10938_v18  ;;  %9089 = vrcp.f32 %v5822_v29 }
0x23bf   : > { %v5846_v53 = vpack.c.bf16 %v5836_v12, %v5834_v41  ;;  %9091 = vrcp.f32 %v5819_v16  ;;  %v8769_v16 = vld [vmem:[%s11561_s27 + $0x10] sm:$0xff]  }
0x23c0   : > { %v9088_v2 = vpop.eup %9087  ;;  %9093 = vrcp.f32 %v5828_v40  ;;  %8428 = vmatprep.subr.bf16.mxu1 %v8769_v16 }
0x23c1   : > { %v5832_v34 = vmul.f32 %v9088_v2, %v10947_v1  ;;  %8429 = vmatpush3.bf16.msra.mxu1 %v8769_v16 }
0x23c3   : > { %v5845_v32 = vpack.c.bf16 %v5832_v34, %v5830_v44 }
0x23c5   : > { %8400 = vmatprep.mubr.msk.bf16.mxu0 %vm3255_vm4, %v5845_v32 }
0x23c8   : > { %v9090_v1 = vpop.eup %9089 }
0x23c9   : > { %v9092_v61 = vpop.eup %9091  ;;  %v5840_v37 = vmul.f32 %v9090_v1, %v10961_v9 }
0x23ca   : > { %v5838_v0 = vmul.f32 %v9092_v61, %v10955_v59  ;;  %v9094_v57 = vpop.eup %9093 }
0x23cb   : > { %v5844_v6 = vmul.f32 %v9094_v57, %v10957_v56 }
0x23cc   : > { %v5847_v22 = vpack.c.bf16 %v5840_v37, %v5838_v0 }
0x2421   : > { %v6098_v35 = vpop.xlane.xlu1 %6097 }
0x2423   : > { %v6101_v33 = vpop.xlane.xlu0 %6100 }
0x2425   : > { %v6092_v47 = vpop.xlane.xlu1 %6091 }
0x2427   : > { %v6095_v46 = vpop.xlane.xlu0 %6094 }
0x2428   : > { %9095 = vrcp.f32 %v6095_v46 }
0x2429   : > { %v6110_v48 = vpop.xlane.xlu1 %6109  ;;  %9097 = vrcp.f32 %v5825_v55 }
0x242a   : > { %9099 = vrcp.f32 %v6092_v47 }
0x242b   : > { %v6113_v52 = vpop.xlane.xlu0 %6112  ;;  %9101 = vrcp.f32 %v6101_v33  ;;  %v8770_v33 = vld [vmem:[%s11561_s27 + $0x18] sm:$0xff]  }
0x242c   : > { %8430 = vmatprep.subr.bf16.mxu1 %v8770_v33 }
0x242d   : > { %v6104_v18 = vpop.xlane.xlu1 %6103  ;;  %8431 = vmatpush3.bf16.msra.mxu1 %v8770_v33 }
0x242f   : > { %v6107_v10 = vpop.xlane.xlu0 %6106 }
0x2430   : > { %9103 = vrcp.f32 %v6107_v10 }
0x2431   : > { %v5851_v26 = vpop.permute.xlu1 %5850  ;;  %9105 = vrcp.f32 %v6098_v35 }
0x2432   : > { %v5865_v5 = vsel %vm3363_vm5, %v5851_v26, 0  ;;  %8537 = vmatprep.subr.msk.bf16.mxu0 %vm3363_vm5, %v5851_v26  ;;  %v9096_v62 = vpop.eup %9095  ;;  %9107 = vrcp.f32 %v6104_v18 }
0x2433   : > { %8399 = vmatpush3.bf16.msra.mxu0 %v5865_v5  ;;  %v6135_v45 = vpop.permute.xlu0 %6134  ;;  %v9098_v9 = vpop.eup %9097  ;;  %v6117_v59 = vmul.f32 %v9096_v62, %v10985_v11  ;;  %9109 = vrcp.f32 %v6113_v52 }
0x2434   : > { %8539 = vmatprep.subr.msk.bf16.mxu0 %vm3363_vm5, %v6135_v45  ;;  %v6149_v51 = vsel %vm3363_vm5, %v6135_v45, 0  ;;  %v9100_v50 = vpop.eup %9099  ;;  %v5842_v20 = vmul.f32 %v9098_v9, %v10949_v38  ;;  %9111 = vrcp.f32 %v6110_v48 }
0x2435   : > { %v6115_v19 = vmul.f32 %v9100_v50, %v10977_v63  ;;  %v9102_v58 = vpop.eup %9101 }
0x2436   : > { %8401 = vmatmul.mubr.msk.bf16.vlgmr.msra.gmra.mrb[108].mxu0 %vm3255_vm4, %v5846_v53  ;;  %v5848_v21 = vpack.c.bf16 %v5844_v6, %v5842_v20  ;;  %v6121_v56 = vmul.f32 %v9102_v58, %v10981_v39 }
0x2437   : > { %8404 = vmatprep.mubr.msk.bf16.mxu0 %vm3255_vm4, %v5847_v22  ;;  %8419 = vmatpush3.bf16.msra.mxu0 %v6149_v51  ;;  %v6130_v27 = vpack.c.bf16 %v6117_v59, %v6115_v19 }
0x243a   : > { %v9104_v28 = vpop.eup %9103 }
0x243b   : > { %v9106_v23 = vpop.eup %9105  ;;  %v6125_v11 = vmul.f32 %v9104_v28, %v11001_v17 }
0x243c   : > { %v9108_v41 = vpop.eup %9107  ;;  %v6119_v38 = vmul.f32 %v9106_v23, %v10975_v25 }
0x243d   : > { %v6123_v12 = vmul.f32 %v9108_v41, %v10993_v8  ;;  %v9110_v30 = vpop.eup %9109 }
0x243e   : > { %8405 = vmatmul.mubr.msk.bf16.gmra.mrb[112].mxu0 %vm3255_vm4, %v5848_v21  ;;  %v6131_v63 = vpack.c.bf16 %v6121_v56, %v6119_v38  ;;  %v9112_v2 = vpop.eup %9111  ;;  %v6129_v44 = vmul.f32 %v9110_v30, %v10997_v31  ;;  %v7733_v30 = vld [vmem:[%s11563_s11 + $0x1] ss:$0 sm:$0xff] }
0x243f   : > { %8420 = vmatprep.mubr.msk.bf16.mxu0 %vm3255_vm4, %v6130_v27  ;;  %v6132_v53 = vpack.c.bf16 %v6125_v11, %v6123_v12  ;;  %v6127_v39 = vmul.f32 %v9112_v2, %v10991_v43 }
0x2441   : > { %v6133_v34 = vpack.c.bf16 %v6129_v44, %v6127_v39 }
0x2446   : > { %8421 = vmatmul.mubr.msk.bf16.vlgmr.msra.gmra.mrb[116].mxu0 %vm3255_vm4, %v6131_v63 }
0x2447   : > { %8424 = vmatprep.mubr.msk.bf16.mxu0 %vm3255_vm4, %v6132_v53 }
0x244e   : > { %8425 = vmatmul.mubr.msk.bf16.gmra.mrb[120].mxu0 %vm3255_vm4, %v6133_v34 }
0x2509   : > { %v8402_v25 = vpop.f32.mrb[108].mxu0 }
0x250a   : > { %v5901_v17 = vpop.f32.mrb[109].mxu0 }
0x250b   : > { %v8403_v8 = vpop.f32.mrb[110].mxu0 }
0x250c   : > { %v5904_v32 = vpop.f32.mrb[111].mxu0 }
0x2511   : > { %v8406_v55 = vpop.f32.mrb[112].mxu0 }
0x2512   : > { %v5917_v40 = vpop.f32.mrb[113].mxu0 }
0x2513   : > { %v8407_v29 = vpop.f32.mrb[114].mxu0 }
0x2514   : > { %v5920_v35 = vpop.f32.mrb[115].mxu0 }
0x2519   : > { %v8422_v47 = vpop.f32.mrb[116].mxu0 }
0x251a   : > { %v6185_v31 = vpop.f32.mrb[117].mxu0 }
0x251b   : > { %v8423_v43 = vpop.f32.mrb[118].mxu0 }
0x251c   : > { %v8696_v46 = vpack.i.bf16 %v8423_v43, %v8422_v47  ;;  %v6188_v48 = vpop.f32.mrb[119].mxu0 }
0x251d   : > { %v8691_v52 = vpack.i.bf16 %v6188_v48, %v6185_v31 }
0x251f   : > { %8692 = vrot.lane.b32.xlu1 %v8691_v52, %s11562_s30 }
0x2521   : > { %v8426_v18 = vpop.f32.mrb[120].mxu0 }
0x2522   : > { %v6201_v1 = vpop.f32.mrb[121].mxu0 }
0x2523   : > { %8697 = vrot.lane.b32.xlu1 %v8696_v46, %s11562_s30  ;;  %v8427_v10 = vpop.f32.mrb[122].mxu0 }
0x2524   : > { %v8706_v61 = vpack.i.bf16 %v8427_v10, %v8426_v18  ;;  %v6204_v26 = vpop.f32.mrb[123].mxu0 }
0x2525   : > { %v8701_v37 = vpack.i.bf16 %v6204_v26, %v6201_v1 }
0x2526   : > { %8707 = vrot.lane.b32.xlu0 %v8706_v61, %s11562_s30 }
0x2527   : > { %8702 = vrot.lane.b32.xlu1 %v8701_v37, %s11562_s30  ;;  %s1253_s30 = scalar_lea.vmem %s11576_s24, %s9550_s18  ;;  %s11579_s24 = sld [smem:[#allocation44_spill]] }
0x2528   : > { %s11580_s18 = sld [smem:[#allocation41_spill]] }
0x2591   : > { %v8693_v5 = vpop.permute.xlu1 %8692 }
0x2592   : > { %v8695_v45 = vunpack.i.h.bf16 %v8693_v5  ;;  %v8694_v0 = vunpack.i.l.bf16 %v8693_v5 }
0x2594   : > { %v6249_v57 = vsel %vm1317_vm0, %v5904_v32, %v8695_v45  ;;  %v6248_v22 = vsel %vm1317_vm0, %v5901_v17, %v8694_v0 }
0x2595   : > { %v6261_v62 = vpack.c.bf16 %v6249_v57, %v6248_v22  ;;  %v8698_v51 = vpop.permute.xlu1 %8697 }
0x2596   : > { %v8700_v9 = vunpack.i.h.bf16 %v8698_v51  ;;  %v8699_v50 = vunpack.i.l.bf16 %v8698_v51 }
0x2597   : > { %8432 = vmatprep.mubr.msk.bf16.mxu1 %vm1619_vm2, %v6261_v62 }
0x2598   : > { %v6251_v6 = vsel %vm1317_vm0, %v8403_v8, %v8700_v9  ;;  %v6250_v59 = vsel %vm1317_vm0, %v8402_v25, %v8699_v50  ;;  %v8708_v20 = vpop.permute.xlu0 %8707 }
0x2599   : > { %v6262_v19 = vpack.c.bf16 %v6251_v6, %v6250_v59  ;;  %v8710_v21 = vunpack.i.h.bf16 %v8708_v20  ;;  %v8709_v58 = vunpack.i.l.bf16 %v8708_v20  ;;  %v8703_v27 = vpop.permute.xlu1 %8702 }
0x259a   : > { %v8705_v28 = vunpack.i.h.bf16 %v8703_v27  ;;  %v8704_v23 = vunpack.i.l.bf16 %v8703_v27 }
0x259b   : > { %v6255_v41 = vsel %vm1317_vm0, %v8407_v29, %v8710_v21  ;;  %v6254_v56 = vsel %vm1317_vm0, %v8406_v55, %v8709_v58  ;;  %8433 = vmatmul.mubr.msk.bf16.vlgmr.msra.gmra.mrb[112].mxu1 %vm1619_vm2, %v6262_v19 }
0x259c   : > { %v6264_v11 = vpack.c.bf16 %v6255_v41, %v6254_v56  ;;  %v6253_v38 = vsel %vm1317_vm0, %v5920_v35, %v8705_v28  ;;  %v6252_v12 = vsel %vm1317_vm0, %v5917_v40, %v8704_v23 }
0x259d   : > { %v6263_v63 = vpack.c.bf16 %v6253_v38, %v6252_v12 }
0x259f   : > { %8436 = vmatprep.mubr.msk.bf16.mxu1 %vm1619_vm2, %v6263_v63 }
0x25a3   : > { %8437 = vmatmul.mubr.msk.bf16.gmra.mrb[116].mxu1 %vm1619_vm2, %v6264_v11 }
0x266e   : > { %v8434_v53 = vpop.f32.mrb[112].mxu1 }
0x266f   : > { %v6340_v2 = vadd.f32 %v8434_v53, %v7733_v30  ;;  %v6331_v44 = vpop.f32.mrb[113].mxu1 }
0x2670   : > { %v6332_v39 = vadd.f32 %v7733_v30, %v6331_v44  ;;  %v8435_v34 = vpop.f32.mrb[114].mxu1 }
0x2671   : > { %v11059_v25 = vadd.f32 %v6340_v2, %v10802_v36  ;;  %v6334_v17 = vpop.f32.mrb[115].mxu1  ;;  %v6343_v55 = vadd.f32 %v8435_v34, %v7733_v30 }
0x2672   : > { %v11062_v8 = vadd.f32 %v6332_v39, %v10794_v60  ;;  %v6335_v32 = vadd.f32 %v7733_v30, %v6334_v17 }
0x2673   : > { %v6376_v40 = vsel %vm1619_vm2, %v11059_v25, 0.0  ;;  %v11074_v60 = vadd.f32 %v6343_v55, %v10805_v13 }
0x2674   : > { %v11067_v16 = vadd.f32 %v6335_v32, %v10797_v42  ;;  %6377 = vadd.xlane.f32.xlu0 %v6376_v40  ;;  %v6370_v29 = vsel %vm1619_vm2, %v11062_v8, 0.0 }
0x2675   : > { %6371 = vadd.xlane.f32.xlu1 %v6370_v29  ;;  %v6379_v18 = vsel %vm1619_vm2, %v11074_v60, 0.0 }
0x2676   : > { %v8438_v35 = vpop.f32.mrb[116].mxu1  ;;  %v6373_v36 = vsel %vm1619_vm2, %v11067_v16, 0.0 }
0x2677   : > { %v6347_v33 = vpop.f32.mrb[117].mxu1  ;;  %v6356_v47 = vadd.f32 %v8438_v35, %v7733_v30 }
0x2678   : > { %v6348_v31 = vadd.f32 %v7733_v30, %v6347_v33  ;;  %6374 = vadd.xlane.f32.xlu0 %v6373_v36  ;;  %v8439_v43 = vpop.f32.mrb[118].mxu1 }
0x2679   : > { %v6350_v46 = vpop.f32.mrb[119].mxu1  ;;  %v6359_v52 = vadd.f32 %v8439_v43, %v7733_v30  ;;  %v11082_v1 = vadd.f32 %v6356_v47, %v10820_v14  ;;  %v11099_v14 = vld [vmem:[%s9398_s25 + $0x8] sm:$0x3f] }
0x267a   : > { %v11077_v42 = vadd.f32 %v6348_v31, %v10811_v49  ;;  %v6351_v48 = vadd.f32 %v7733_v30, %v6350_v46  ;;  %v4415_v37 = vrot.slane %v11099_v14, 3  ;;  %v4423_v47 = vrot.slane %v11099_v14, 5 }
0x267b   : > { %v11092_v61 = vadd.f32 %v6359_v52, %v10823_v15  ;;  %v6388_v26 = vsel %vm1619_vm2, %v11082_v1, 0.0 }
0x267c   : > { %v11085_v13 = vadd.f32 %v6351_v48, %v10814_v4  ;;  %6380 = vadd.xlane.f32.xlu0 %v6379_v18  ;;  %v6382_v10 = vsel %vm1619_vm2, %v11077_v42, 0.0  ;;  %v8771_v48 = vld [vmem:[%s11565_s2 + $0x10] sm:$0xff]   ;;  %v8772_v18 = vld [vmem:[%s11565_s2 + $0x18] sm:$0xff]   ;;  %s9178_s2 = sshll.u32 %s9287_s1, 4  ;;  %s9179_s2 = int_to_ptr.vmem [resolvable:$false] %s9178_s2 }
0x267d   : > { %6383 = vadd.xlane.f32.xlu1 %v6382_v10  ;;  %v6391_v4 = vsel %vm1619_vm2, %v11092_v61, 0.0  ;;  %8440 = vmatprep.subr.bf16.mxu0 %v8771_v48 }
0x267e   : > { %v6385_v49 = vsel %vm1619_vm2, %v11085_v13, 0.0  ;;  %8441 = vmatpush3.bf16.msra.mxu0 %v8771_v48 }
0x267f   : > { %8442 = vmatprep.subr.bf16.mxu0 %v8772_v18 }
0x2680   : > { %6386 = vadd.xlane.f32.xlu0 %v6385_v49 }
0x2681   : > { %6389 = vadd.xlane.f32.xlu1 %v6388_v26 }
0x2682   : > { %8443 = vmatpush3.bf16.msra.mxu0 %v8772_v18 }
0x2684   : > { %6392 = vadd.xlane.f32.xlu0 %v6391_v4 }
0x2692   : > { %4416 = vrot.lane.b32.xlu1 %v4415_v37, %s11559_s19 }
0x2701   : > { %v6378_v5 = vpop.xlane.xlu0 %6377 }
0x2702   : > { %v6396_v45 = vmul.f32 0.03125, %v6378_v5  ;;  %v6372_v0 = vpop.xlane.xlu1 %6371 }
0x2703   : > { %v6394_v15 = vmul.f32 0.03125, %v6372_v0 }
0x2704   : > { %v11104_v57 = vsub.f32 %v11059_v25, %v6396_v45 }
0x2705   : > { %v11107_v22 = vsub.f32 %v11062_v8, %v6394_v15  ;;  %v6375_v62 = vpop.xlane.xlu0 %6374 }
0x2706   : > { %v6412_v51 = vmul.f32 %v11104_v57, %v11104_v57  ;;  %v6395_v9 = vmul.f32 0.03125, %v6375_v62 }
0x2707   : > { %v6410_v6 = vmul.f32 %v11107_v22, %v11107_v22 }
0x2708   : > { %v6424_v50 = vsel %vm1619_vm2, %v6412_v51, 0.0  ;;  %v11115_v58 = vsub.f32 %v11067_v16, %v6395_v9  ;;  %v4420_v51 = vrot.slane %v11099_v14, 4 }
0x2709   : > { %v6381_v59 = vpop.xlane.xlu0 %6380  ;;  %6425 = vadd.xlane.f32.xlu0 %v6424_v50  ;;  %v6418_v28 = vsel %vm1619_vm2, %v6410_v6, 0.0 }
0x270a   : > { %v6397_v20 = vmul.f32 0.03125, %v6381_v59  ;;  %v6384_v19 = vpop.xlane.xlu1 %6383  ;;  %v6411_v30 = vmul.f32 %v11115_v58, %v11115_v58 }
0x270b   : > { %v6398_v21 = vmul.f32 0.03125, %v6384_v19 }
0x270c   : > { %v11118_v27 = vsub.f32 %v11074_v60, %v6397_v20  ;;  %v6421_v32 = vsel %vm1619_vm2, %v6411_v30, 0.0  ;;  %v4422_v20 = vadd.f32 %v4420_v51, %v9730_v7 }
0x270d   : > { %v11122_v23 = vsub.f32 %v11077_v42, %v6398_v21  ;;  %6419 = vadd.xlane.f32.xlu0 %v6418_v28  ;;  %v6387_v41 = vpop.xlane.xlu0 %6386 }
0x270e   : > { %v6390_v56 = vpop.xlane.xlu1 %6389  ;;  %v6413_v11 = vmul.f32 %v11118_v27, %v11118_v27  ;;  %v6399_v34 = vmul.f32 0.03125, %v6387_v41 }
0x270f   : > { %v6400_v38 = vmul.f32 0.03125, %v6390_v56  ;;  %v6414_v12 = vmul.f32 %v11122_v23, %v11122_v23 }
0x2710   : > { %v6427_v63 = vsel %vm1619_vm2, %v6413_v11, 0.0  ;;  %v11142_v40 = vsub.f32 %v11085_v13, %v6399_v34  ;;  %v6474_v11 = vadd.f32 1.0, %v4422_v20  ;;  %v8777_v20 = vld [vmem:[%s11568_s15 + $0x60] sm:$0xff]  }
0x2711   : > { %v11132_v53 = vsub.f32 %v11082_v1, %v6400_v38  ;;  %6428 = vadd.xlane.f32.xlu0 %v6427_v63  ;;  %v6393_v2 = vpop.xlane.xlu0 %6392  ;;  %v6430_v44 = vsel %vm1619_vm2, %v6414_v12, 0.0 }
0x2712   : > { %v6401_v39 = vmul.f32 0.03125, %v6393_v2  ;;  %6431 = vadd.xlane.f32.xlu1 %v6430_v44  ;;  %v6415_v33 = vmul.f32 %v11142_v40, %v11142_v40  ;;  %v4417_v43 = vpop.permute.xlu1 %4416  ;;  %v6478_v44 = vrot.slane %v6474_v11, %v9575_v24 }
0x2713   : > { %v6416_v55 = vmul.f32 %v11132_v53, %v11132_v53  ;;  %v4419_v46 = vadd.f32 %v4417_v43, %v9728_v3 }
0x2714   : > { %v11136_v17 = vsub.f32 %v11092_v61, %v6401_v39  ;;  %v6433_v31 = vsel %vm1619_vm2, %v6415_v33, 0.0 }
0x2715   : > { %6422 = vadd.xlane.f32.xlu0 %v6421_v32  ;;  %v6436_v29 = vsel %vm1619_vm2, %v6416_v55, 0.0  ;;  %v6490_v52 = vrot.slane %v4419_v46, %v9575_v24 }
0x2716   : > { %v6417_v35 = vmul.f32 %v11136_v17, %v11136_v17 }
0x2718   : > { %v6439_v36 = vsel %vm1619_vm2, %v6417_v35, 0.0 }
0x2719   : > { %6437 = vadd.xlane.f32.xlu0 %v6436_v29 }
0x271d   : > { %6440 = vadd.xlane.f32.xlu0 %v6439_v36 }
0x2721   : > { %6434 = vadd.xlane.f32.xlu0 %v6433_v31 }
0x2723   : > { %4424 = vrot.lane.b32.xlu1 %v4423_v47, %s11566_s16 }
0x2737   : > { %6492 = vrot.lane.b32.xlu0 %v6490_v52, %s11566_s16 }
0x2796   : > { %v6426_v10 = vpop.xlane.xlu0 %6425 }
0x2797   : > { %v6444_v49 = vmul.f32 0.03125, %v6426_v10 }
0x2799   : > { %v6452_v37 = vadd.f32 1e-06, %v6444_v49 }
0x279a   : > { %v6420_v26 = vpop.xlane.xlu0 %6419 }
0x279b   : > { %v6442_v4 = vmul.f32 0.03125, %v6420_v26  ;;  %9113 = vrsqrt.f32 %v6452_v37 }
0x279d   : > { %v6450_v5 = vadd.f32 1e-06, %v6442_v4 }
0x279e   : > { %v6429_v45 = vpop.xlane.xlu0 %6428 }
0x279f   : > { %v6445_v0 = vmul.f32 0.03125, %v6429_v45  ;;  %9115 = vrsqrt.f32 %v6450_v5  ;;  %v6432_v15 = vpop.xlane.xlu1 %6431 }
0x27a0   : > { %v6446_v50 = vmul.f32 0.03125, %v6432_v15 }
0x27a1   : > { %v6453_v3 = vadd.f32 1e-06, %v6445_v0 }
0x27a2   : > { %v6423_v62 = vpop.xlane.xlu0 %6422  ;;  %v6454_v21 = vadd.f32 1e-06, %v6446_v50  ;;  %v8773_v50 = vld [vmem:[%s11568_s15 + $0x40] sm:$0xff]  }
0x27a3   : > { %9117 = vrsqrt.f32 %v6453_v3  ;;  %v6443_v9 = vmul.f32 0.03125, %v6423_v62  ;;  %8452 = vmatprep.subr.bf16.mxu1 %v8773_v50 }
0x27a4   : > { %8453 = vmatpush3.bf16.msra.mxu1 %v8773_v50 }
0x27a5   : > { %v6451_v6 = vadd.f32 1e-06, %v6443_v9  ;;  %v9114_v56 = vpop.eup %9113 }
0x27a6   : > { %v6438_v59 = vpop.xlane.xlu0 %6437  ;;  %v6468_v39 = vmul.f32 %v9114_v56, %v11104_v57 }
0x27a7   : > { %9119 = vrsqrt.f32 %v6451_v6  ;;  %v6448_v19 = vmul.f32 0.03125, %v6438_v59  ;;  %v8775_v6 = vld [vmem:[%s11568_s15 + $0x50] sm:$0xff]   ;;  %v8776_v59 = vld [vmem:[%s11568_s15 + $0x58] sm:$0xff]  }
0x27a8   : > { %9121 = vrsqrt.f32 %v6454_v21  ;;  %v6481_v47 = vmul.f32 %v6478_v44, %v6468_v39  ;;  %v8779_v21 = vld [vmem:[%s11568_s15 + $0x70] sm:$0xff]  }
0x27a9   : > { %v6456_v28 = vadd.f32 1e-06, %v6448_v19  ;;  %v9116_v12 = vpop.eup %9115  ;;  %v8778_v19 = vld [vmem:[%s11568_s15 + $0x68] sm:$0xff]  }
0x27aa   : > { %v6441_v41 = vpop.xlane.xlu0 %6440  ;;  %v6466_v32 = vmul.f32 %v9116_v12, %v11107_v22 }
0x27ab   : > { %v6449_v38 = vmul.f32 0.03125, %v6441_v41  ;;  %9123 = vrsqrt.f32 %v6456_v28  ;;  %v8780_v28 = vld [vmem:[%s11568_s15 + $0x78] sm:$0xff]   ;;  %v7745_v41 = vld [vmem:[%s11570_s29 + $0x1] ss:$0 sm:$0xff] }
0x27ac   : > { %v6479_v31 = vmul.f32 %v6478_v44, %v6466_v32 }
0x27ad   : > { %v9118_v63 = vpop.eup %9117  ;;  %v6457_v30 = vadd.f32 1e-06, %v6449_v38 }
0x27ae   : > { %v6469_v14 = vmul.f32 %v9118_v63, %v11118_v27  ;;  %v6435_v2 = vpop.xlane.xlu0 %6434 }
0x27af   : > { %9125 = vrsqrt.f32 %v6457_v30  ;;  %v6447_v34 = vmul.f32 0.03125, %v6435_v2 }
0x27b0   : > { %v6482_v29 = vmul.f32 %v6478_v44, %v6469_v14 }
0x27b1   : > { %v9120_v55 = vpop.eup %9119  ;;  %v6455_v35 = vadd.f32 1e-06, %v6447_v34 }
0x27b2   : > { %v6467_v36 = vmul.f32 %v9120_v55, %v11115_v58  ;;  %v6493_v33 = vpop.permute.xlu0 %6492  ;;  %v9122_v18 = vpop.eup %9121 }
0x27b3   : > { %9127 = vrsqrt.f32 %v6455_v35  ;;  %v6497_v43 = vadd.f32 %v6493_v33, %v6481_v47  ;;  %v6498_v46 = vadd.f32 %v6493_v33, %v6482_v29  ;;  %v6495_v48 = vadd.f32 %v6493_v33, %v6479_v31 }
0x27b4   : > { %v6480_v27 = vmul.f32 %v6478_v44, %v6467_v36  ;;  %v6470_v22 = vmul.f32 %v9122_v18, %v11122_v23 }
0x27b5   : > { %v9124_v57 = vpop.eup %9123  ;;  %v6509_v26 = vpack.c.bf16 %v6498_v46, %v6497_v43 }
0x27b6   : > { %v6496_v52 = vadd.f32 %v6493_v33, %v6480_v27  ;;  %v6472_v58 = vmul.f32 %v9124_v57, %v11132_v53  ;;  %v6483_v0 = vmul.f32 %v6478_v44, %v6470_v22 }
0x27b8   : > { %v6508_v10 = vpack.c.bf16 %v6496_v52, %v6495_v48  ;;  %v6485_v3 = vmul.f32 %v6478_v44, %v6472_v58  ;;  %v6499_v23 = vadd.f32 %v6493_v33, %v6483_v0 }
0x27b9   : > { %v9126_v49 = vpop.eup %9125 }
0x27ba   : > { %v6473_v4 = vmul.f32 %v9126_v49, %v11136_v17  ;;  %8444 = vmatprep.mubr.msk.bf16.mxu0 %vm1619_vm2, %v6508_v10  ;;  %v6501_v51 = vadd.f32 %v6493_v33, %v6485_v3 }
0x27bb   : > { %8445 = vmatmul.mubr.msk.bf16.vlgmr.msra.gmra.mrb[124].mxu0 %vm1619_vm2, %v6509_v26 }
0x27bc   : > { %v6486_v5 = vmul.f32 %v6478_v44, %v6473_v4 }
0x27bd   : > { %v9128_v37 = vpop.eup %9127 }
0x27be   : > { %v6471_v45 = vmul.f32 %v9128_v37, %v11142_v40  ;;  %v6502_v62 = vadd.f32 %v6493_v33, %v6486_v5  ;;  %v8774_v40 = vld [vmem:[%s11568_s15 + $0x48] sm:$0xff]  }
0x27bf   : > { %8454 = vmatprep.subr.bf16.mxu1 %v8774_v40 }
0x27c0   : > { %v6484_v15 = vmul.f32 %v6478_v44, %v6471_v45  ;;  %v6511_v53 = vpack.c.bf16 %v6502_v62, %v6501_v51  ;;  %8455 = vmatpush3.bf16.msra.mxu1 %v8774_v40 }
0x27c1   : > { %8456 = vmatprep.subr.bf16.mxu1 %v8775_v6 }
0x27c2   : > { %v6500_v17 = vadd.f32 %v6493_v33, %v6484_v15 }
0x27c4   : > { %v6510_v9 = vpack.c.bf16 %v6500_v17, %v6499_v23  ;;  %8457 = vmatpush3.bf16.msra.mxu1 %v8775_v6 }
0x27c5   : > { %8458 = vmatprep.subr.bf16.mxu1 %v8776_v59 }
0x27c6   : > { %8448 = vmatprep.mubr.msk.bf16.mxu0 %vm1619_vm2, %v6510_v9 }
0x27c7   : > { %8449 = vmatmul.mubr.msk.bf16.gmra.mrb[128].mxu0 %vm1619_vm2, %v6511_v53 }
0x27c8   : > { %8459 = vmatpush3.bf16.msra.mxu1 %v8776_v59 }
0x27c9   : > { %8460 = vmatprep.subr.bf16.mxu1 %v8777_v20 }
0x27cc   : > { %8461 = vmatpush3.bf16.msra.mxu1 %v8777_v20 }
0x27cd   : > { %8462 = vmatprep.subr.bf16.mxu1 %v8778_v19 }
0x27d0   : > { %8463 = vmatpush3.bf16.msra.mxu1 %v8778_v19 }
0x27d1   : > { %8464 = vmatprep.subr.bf16.mxu1 %v8779_v21 }
0x27d4   : > { %8465 = vmatpush3.bf16.msra.mxu1 %v8779_v21 }
0x27d5   : > { %8466 = vmatprep.subr.bf16.mxu1 %v8780_v28 }
0x27d8   : > { %8467 = vmatpush3.bf16.msra.mxu1 %v8780_v28 }
0x288e   : > { %v8446_v56 = vpop.f32.mrb[124].mxu0 }
0x288f   : > { %v11182_v11 = vadd.f32 %v8446_v56, %v7745_v41  ;;  %v6578_v38 = vpop.f32.mrb[125].mxu0 }
0x2890   : > { %v11184_v12 = vadd.f32 %v7745_v41, %v6578_v38  ;;  %v8447_v63 = vpop.f32.mrb[126].mxu0 }
0x2891   : > { %v6611_v30 = vmul.f32 %v11182_v11, %v11182_v11  ;;  %v11188_v14 = vadd.f32 %v8447_v63, %v7745_v41  ;;  %v6581_v2 = vpop.f32.mrb[127].mxu0 }
0x2892   : > { %v6609_v44 = vmul.f32 %v11184_v12, %v11184_v12  ;;  %v11192_v39 = vadd.f32 %v7745_v41, %v6581_v2 }
0x2893   : > { %v6619_v34 = vmul.f32 %v6611_v30, %v11182_v11  ;;  %v6612_v32 = vmul.f32 %v11188_v14, %v11188_v14 }
0x2894   : > { %v6617_v55 = vmul.f32 %v6609_v44, %v11184_v12  ;;  %v6610_v29 = vmul.f32 %v11192_v39, %v11192_v39 }
0x2895   : > { %v6627_v35 = vmul.f32 0.044715, %v6619_v34  ;;  %v6620_v36 = vmul.f32 %v6612_v32, %v11188_v14 }
0x2896   : > { %v6625_v33 = vmul.f32 0.044715, %v6617_v55  ;;  %v6618_v47 = vmul.f32 %v6610_v29, %v11192_v39 }
0x2897   : > { %v6635_v31 = vadd.f32 %v6627_v35, %v11182_v11  ;;  %v6628_v27 = vmul.f32 0.044715, %v6620_v36 }
0x2898   : > { %v6633_v43 = vadd.f32 %v6625_v33, %v11184_v12  ;;  %v6626_v46 = vmul.f32 0.044715, %v6618_v47 }
0x2899   : > { %v6643_v48 = vmul.f32 0.7978846, %v6635_v31  ;;  %v6636_v52 = vadd.f32 %v6628_v27, %v11188_v14 }
0x289a   : > { %v6641_v18 = vmul.f32 0.7978846, %v6633_v43  ;;  %v6634_v57 = vadd.f32 %v6626_v46, %v11192_v39  ;;  %v8450_v10 = vpop.f32.mrb[128].mxu0 }
0x289b   : > { %9129 = vtanh.f32 %v6643_v48  ;;  %v6644_v49 = vmul.f32 0.7978846, %v6636_v52  ;;  %v11206_v26 = vadd.f32 %v8450_v10, %v7745_v41  ;;  %v6594_v22 = vpop.f32.mrb[129].mxu0 }
0x289c   : > { %9131 = vtanh.f32 %v6641_v18  ;;  %v6642_v4 = vmul.f32 0.7978846, %v6634_v57  ;;  %v11208_v58 = vadd.f32 %v7745_v41, %v6594_v22  ;;  %v8451_v37 = vpop.f32.mrb[130].mxu0 }
0x289d   : > { %9133 = vtanh.f32 %v6644_v49  ;;  %v6615_v5 = vmul.f32 %v11206_v26, %v11206_v26  ;;  %v6606_v45 = vadd.f32 %v8451_v37, %v7745_v41  ;;  %v6597_v0 = vpop.f32.mrb[131].mxu0 }
0x289e   : > { %9135 = vtanh.f32 %v6642_v4  ;;  %v6613_v3 = vmul.f32 %v11208_v58, %v11208_v58  ;;  %v6598_v15 = vadd.f32 %v7745_v41, %v6597_v0 }
0x289f   : > { %v6623_v62 = vmul.f32 %v6615_v5, %v11206_v26  ;;  %v6616_v23 = vmul.f32 %v6606_v45, %v6606_v45 }
0x28a0   : > { %v6621_v17 = vmul.f32 %v6613_v3, %v11208_v58  ;;  %v6614_v51 = vmul.f32 %v6598_v15, %v6598_v15 }
0x28a1   : > { %v6631_v9 = vmul.f32 0.044715, %v6623_v62  ;;  %v6624_v53 = vmul.f32 %v6616_v23, %v6606_v45 }
0x28a2   : > { %v6629_v50 = vmul.f32 0.044715, %v6621_v17  ;;  %v6622_v40 = vmul.f32 %v6614_v51, %v6598_v15 }
0x28a3   : > { %v6639_v6 = vadd.f32 %v6631_v9, %v11206_v26  ;;  %v6632_v59 = vmul.f32 0.044715, %v6624_v53  ;;  %v7769_v53 = vld [vmem:[%s11572_s0 + $0x1] ss:$0 sm:$0xff] }
0x28a4   : > { %v6637_v20 = vadd.f32 %v6629_v50, %v11208_v58  ;;  %v6630_v19 = vmul.f32 0.044715, %v6622_v40 }
0x28a5   : > { %v9130_v21 = vpop.eup %9129  ;;  %v6647_v28 = vmul.f32 0.7978846, %v6639_v6  ;;  %v6640_v56 = vadd.f32 %v6632_v59, %v6606_v45 }
0x28a6   : > { %v9132_v41 = vpop.eup %9131  ;;  %v6659_v38 = vadd.f32 1.0, %v9130_v21  ;;  %v6645_v63 = vmul.f32 0.7978846, %v6637_v20  ;;  %v6638_v30 = vadd.f32 %v6630_v19, %v6598_v15 }
0x28a7   : > { %v9134_v2 = vpop.eup %9133  ;;  %9137 = vtanh.f32 %v6647_v28  ;;  %v6648_v44 = vmul.f32 0.7978846, %v6640_v56  ;;  %v6657_v34 = vadd.f32 1.0, %v9132_v41 }
0x28a8   : > { %v9136_v32 = vpop.eup %9135  ;;  %v6667_v55 = vmul.f32 0.5, %v6659_v38  ;;  %v6660_v29 = vadd.f32 1.0, %v9134_v2  ;;  %9139 = vtanh.f32 %v6645_v63  ;;  %v6646_v35 = vmul.f32 0.7978846, %v6638_v30  ;;  %v4425_v30 = vpop.permute.xlu1 %4424 }
0x28a9   : > { %9141 = vtanh.f32 %v6648_v44  ;;  %v6658_v36 = vadd.f32 1.0, %v9136_v32  ;;  %v6665_v33 = vmul.f32 0.5, %v6657_v34  ;;  %v4427_v2 = vadd.f32 %v4425_v30, %v9730_v7 }
0x28aa   : > { %v6668_v47 = vmul.f32 0.5, %v6660_v29  ;;  %9143 = vtanh.f32 %v6646_v35  ;;  %v6675_v27 = vmul.f32 %v6667_v55, %v11182_v11 }
0x28ab   : > { %v6666_v31 = vmul.f32 0.5, %v6658_v36  ;;  %v6673_v46 = vmul.f32 %v6665_v33, %v11184_v12  ;;  %v6826_v34 = vrot.slane %v4427_v2, %v9575_v24 }
0x28ac   : > { %v6676_v43 = vmul.f32 %v6668_v47, %v11188_v14 }
0x28ad   : > { %v6674_v48 = vmul.f32 %v6666_v31, %v11192_v39 }
0x28ae   : > { %v6699_v52 = vpack.c.bf16 %v6676_v43, %v6675_v27 }
0x28af   : > { %v6698_v18 = vpack.c.bf16 %v6674_v48, %v6673_v46 }
0x28b1   : > { %v9138_v57 = vpop.eup %9137  ;;  %8468 = vmatprep.mubr.bf16.mxu1 %v6698_v18 }
0x28b2   : > { %v9140_v10 = vpop.eup %9139  ;;  %8469 = vmatmul.mubr.bf16.vlgmr.msra.gmra.mrb[120].mxu1 %v6699_v52  ;;  %v6663_v49 = vadd.f32 1.0, %v9138_v57 }
0x28b3   : > { %v9142_v22 = vpop.eup %9141  ;;  %v6661_v4 = vadd.f32 1.0, %v9140_v10 }
0x28b4   : > { %v9144_v37 = vpop.eup %9143  ;;  %v6664_v5 = vadd.f32 1.0, %v9142_v22  ;;  %v6671_v0 = vmul.f32 0.5, %v6663_v49 }
0x28b5   : > { %v6662_v11 = vadd.f32 1.0, %v9144_v37  ;;  %v6669_v3 = vmul.f32 0.5, %v6661_v4 }
0x28b6   : > { %v6672_v14 = vmul.f32 0.5, %v6664_v5  ;;  %v6679_v12 = vmul.f32 %v6671_v0, %v11206_v26 }
0x28b7   : > { %v6670_v62 = vmul.f32 0.5, %v6662_v11  ;;  %v6677_v23 = vmul.f32 %v6669_v3, %v11208_v58 }
0x28b8   : > { %v6680_v39 = vmul.f32 %v6672_v14, %v6606_v45 }
0x28b9   : > { %v6678_v17 = vmul.f32 %v6670_v62, %v6598_v15 }
0x28ba   : > { %v6701_v51 = vpack.c.bf16 %v6680_v39, %v6679_v12 }
0x28bb   : > { %v6700_v9 = vpack.c.bf16 %v6678_v17, %v6677_v23 }
0x28bd   : > { %8472 = vmatprep.mubr.bf16.mxu1 %v6700_v9 }
0x28be   : > { %8473 = vmatmul.mubr.bf16.gmra.mrb[124].mxu1 %v6701_v51 }
0x2985   : > { %v8470_v50 = vpop.f32.mrb[120].mxu1 }
0x2986   : > { %v6801_v40 = vadd.f32 %v8470_v50, %v7769_v53  ;;  %v6792_v6 = vpop.f32.mrb[121].mxu1 }
0x2987   : > { %v8471_v59 = vpop.f32.mrb[122].mxu1  ;;  %v6793_v19 = vadd.f32 %v7769_v53, %v6792_v6 }
0x2988   : > { %6839 = vrot.lane.b32.xlu0 %v6801_v40, %s11566_s16  ;;  %v6795_v20 = vpop.f32.mrb[123].mxu1  ;;  %v6804_v45 = vadd.f32 %v8471_v59, %v7769_v53 }
0x2989   : > { %v6796_v26 = vadd.f32 %v7769_v53, %v6795_v20 }
0x298c   : > { %6835 = vrot.lane.b32.xlu0 %v6793_v19, %s11566_s16 }
0x2990   : > { %6837 = vrot.lane.b32.xlu0 %v6796_v26, %s11566_s16 }
0x2991   : > { %v8474_v58 = vpop.f32.mrb[124].mxu1 }
0x2992   : > { %v6808_v15 = vpop.f32.mrb[125].mxu1  ;;  %v6817_v63 = vadd.f32 %v8474_v58, %v7769_v53 }
0x2993   : > { %v8475_v21 = vpop.f32.mrb[126].mxu1  ;;  %v6809_v41 = vadd.f32 %v7769_v53, %v6808_v15 }
0x2994   : > { %6841 = vrot.lane.b32.xlu0 %v6804_v45, %s11566_s16  ;;  %v6811_v28 = vpop.f32.mrb[127].mxu1  ;;  %v6820_v38 = vadd.f32 %v8475_v21, %v7769_v53 }
0x2995   : > { %v6812_v56 = vadd.f32 %v7769_v53, %v6811_v28 }
0x2997   : > { %6845 = vrot.lane.b32.xlu1 %v6812_v56, %s11566_s16 }
0x2998   : > { %6843 = vrot.lane.b32.xlu0 %v6809_v41, %s11566_s16 }
0x299b   : > { %6849 = vrot.lane.b32.xlu1 %v6820_v38, %s11566_s16 }
0x299c   : > { %6847 = vrot.lane.b32.xlu0 %v6817_v63, %s11566_s16  ;;  %s1240_s16 = sand.u32 1, %s9228_s23  }
0x299d   : > { %s7521_s3 = sshll.u32 %s1240_s16, 6 }
0x29fa   : > { %v6840_v44 = vpop.permute.xlu0 %6839 }
0x29fb   : > { %v6861_v35 = vmul.f32 %v6840_v44, %v6826_v34 }
0x29fe   : > { %v6836_v32 = vpop.permute.xlu0 %6835 }
0x29ff   : > { %v6859_v55 = vmul.f32 %v6836_v32, %v6826_v34 }
0x2a01   : > { %6875 = vrot.lane.b32.xlu0 %v6859_v55, %s11559_s19 }
0x2a02   : > { %v6838_v29 = vpop.permute.xlu0 %6837 }
0x2a03   : > { %v6860_v36 = vmul.f32 %v6838_v29, %v6826_v34 }
0x2a05   : > { %6877 = vrot.lane.b32.xlu1 %v6860_v36, %s11559_s19  ;;  %6879 = vrot.lane.b32.xlu0 %v6861_v35, %s11559_s19 }
0x2a06   : > { %v6842_v33 = vpop.permute.xlu0 %6841 }
0x2a07   : > { %v6862_v47 = vmul.f32 %v6842_v33, %v6826_v34 }
0x2a09   : > { %6881 = vrot.lane.b32.xlu1 %v6862_v47, %s11559_s19  ;;  %v6846_v31 = vpop.permute.xlu1 %6845 }
0x2a0a   : > { %v6864_v7 = vmul.f32 %v6846_v31, %v6826_v34  ;;  %v6844_v27 = vpop.permute.xlu0 %6843 }
0x2a0b   : > { %v6863_v43 = vmul.f32 %v6844_v27, %v6826_v34 }
0x2a0d   : > { %6883 = vrot.lane.b32.xlu0 %v6863_v43, %s11559_s19  ;;  %6885 = vrot.lane.b32.xlu1 %v6864_v7, %s11559_s19  ;;  %v6850_v46 = vpop.permute.xlu1 %6849 }
0x2a0e   : > { %v6866_v48 = vmul.f32 %v6850_v46, %v6826_v34  ;;  %v6848_v52 = vpop.permute.xlu0 %6847 }
0x2a0f   : > { %v6865_v18 = vmul.f32 %v6848_v52, %v6826_v34 }
0x2a11   : > { %6887 = vrot.lane.b32.xlu0 %v6865_v18, %s11559_s19  ;;  %6889 = vrot.lane.b32.xlu1 %v6866_v48, %s11559_s19  ;;  %s11341_s19 = scalar_lea.vmem [#allocation2], %s7521_s3 }
0x2a12   : > { %s7340_s3 = sshll.u32 %s11341_s19, 4  ;;  %s11378_s3 = int_to_ptr.vmem [resolvable:$true] %s7340_s3 }
0x2a13   : > { %s9174_s0 = scalar_lea.vmem %s11378_s3, 1024  ;;  %p9181_p0 = scmp.lt.s32.totalorder %s11378_s3, %s9179_s2 }
0x2a14   : > { %p9175_p11 = scmp.ne.s32.totalorder %s11378_s3, %s9174_s0 }
0x2a16   : > { %p9176_p12 = pnand %p9175_p11, %p9533_p5 }
0x2a18   : > { %p9177_p13 = pneg %p9176_p12 }
0x2a73   : > { %v6876_v57 = vpop.permute.xlu0 %6875 }
0x2a74   : > { %v6899_v10 = vadd.f32 %v6876_v57, %v11062_v8 }
0x2a76   : > { %v6911_v49 = vsel %vm1619_vm2, %v6899_v10, 0.0 }
0x2a77   : > { %6912 = vadd.xlane.f32.xlu0 %v6911_v49  ;;  %v6880_v22 = vpop.permute.xlu0 %6879  ;;  %v6878_v4 = vpop.permute.xlu1 %6877  ;;  %v8781_v49 = vld [vmem:[%s9478_s20] sm:$0xff]  }
0x2a78   : > { %v6901_v37 = vadd.f32 %v6880_v22, %v11059_v25  ;;  %v6900_v5 = vadd.f32 %v6878_v4, %v11067_v16  ;;  %8476 = vmatprep.subr.bf16.mxu0 %v8781_v49  ;;  %v8782_v22 = vld [vmem:[%s9478_s20 + $0x8] sm:$0xff]   ;;  %v7144_v4 = vld [vmem:[%s11574_s21] sm:$0xff] }
0x2a79   : > { %8477 = vmatpush3.bf16.msra.mxu0 %v8781_v49 }
0x2a7a   : > { %v6917_v0 = vsel %vm1619_vm2, %v6901_v37, 0.0  ;;  %v6914_v11 = vsel %vm1619_vm2, %v6900_v5, 0.0  ;;  %8478 = vmatprep.subr.bf16.mxu0 %v8782_v22 }
0x2a7b   : > { %6918 = vadd.xlane.f32.xlu0 %v6917_v0  ;;  %6915 = vadd.xlane.f32.xlu1 %v6914_v11  ;;  %v6882_v3 = vpop.permute.xlu1 %6881 }
0x2a7c   : > { %v6902_v14 = vadd.f32 %v6882_v3, %v11074_v60 }
0x2a7d   : > { %8479 = vmatpush3.bf16.msra.mxu0 %v8782_v22 }
0x2a7e   : > { %v6920_v8 = vsel %vm1619_vm2, %v6902_v14, 0.0 }
0x2a7f   : > { %v6884_v62 = vpop.permute.xlu0 %6883  ;;  %6921 = vadd.xlane.f32.xlu0 %v6920_v8  ;;  %v6886_v12 = vpop.permute.xlu1 %6885 }
0x2a80   : > { %v6903_v39 = vadd.f32 %v6884_v62, %v11077_v42  ;;  %v6904_v25 = vadd.f32 %v6886_v12, %v11085_v13 }
0x2a82   : > { %v6923_v16 = vsel %vm1619_vm2, %v6903_v39, 0.0  ;;  %v6926_v23 = vsel %vm1619_vm2, %v6904_v25, 0.0 }
0x2a83   : > { %v6888_v17 = vpop.permute.xlu0 %6887  ;;  %6924 = vadd.xlane.f32.xlu1 %v6923_v16  ;;  %6927 = vadd.xlane.f32.xlu0 %v6926_v23  ;;  %v6890_v51 = vpop.permute.xlu1 %6889 }
0x2a84   : > { %v6905_v9 = vadd.f32 %v6888_v17, %v11082_v1  ;;  %v6906_v60 = vadd.f32 %v6890_v51, %v11092_v61 }
0x2a86   : > { %v6929_v53 = vsel %vm1619_vm2, %v6905_v9, 0.0  ;;  %v6932_v50 = vsel %vm1619_vm2, %v6906_v60, 0.0 }
0x2a87   : > { %6930 = vadd.xlane.f32.xlu1 %v6929_v53  ;;  %6933 = vadd.xlane.f32.xlu0 %v6932_v50 }
0x2b04   : > { %v6913_v42 = vpop.xlane.xlu0 %6912 }
0x2b05   : > { %v6935_v13 = vmul.f32 0.03125, %v6913_v42 }
0x2b07   : > { %v11259_v40 = vsub.f32 %v6899_v10, %v6935_v13 }
0x2b08   : > { %v6919_v6 = vpop.xlane.xlu0 %6918  ;;  %v6916_v59 = vpop.xlane.xlu1 %6915 }
0x2b09   : > { %v6937_v20 = vmul.f32 0.03125, %v6919_v6  ;;  %v6936_v19 = vmul.f32 0.03125, %v6916_v59  ;;  %v6951_v26 = vmul.f32 %v11259_v40, %v11259_v40  ;;  %v6907_v59 = vld [vmem:[%s11575_s14] sm:$0x1] }
0x2b0b   : > { %v11263_v1 = vsub.f32 %v6901_v37, %v6937_v20  ;;  %v11265_v61 = vsub.f32 %v6900_v5, %v6936_v19  ;;  %v6959_v58 = vsel %vm1619_vm2, %v6951_v26, 0.0  ;;  %v7145_v37 = vld [vmem:[%s11574_s21 + $0x8] sm:$0xff] }
0x2b0c   : > { %6960 = vadd.xlane.f32.xlu1 %v6959_v58  ;;  %v6922_v45 = vpop.xlane.xlu0 %6921  ;;  %v11303_v5 = vpack.c.bf16 %v7145_v37, %v7144_v4 }
0x2b0d   : > { %v6938_v15 = vmul.f32 0.03125, %v6922_v45  ;;  %v6953_v21 = vmul.f32 %v11263_v1, %v11263_v1  ;;  %v6952_v28 = vmul.f32 %v11265_v61, %v11265_v61 }
0x2b0e   : > { %8509 = vmatprep.subr.bf16.mxu0 %v11303_v5 }
0x2b0f   : > { %v11272_v56 = vsub.f32 %v6902_v14, %v6938_v15  ;;  %v6965_v41 = vsel %vm1619_vm2, %v6953_v21, 0.0  ;;  %v6962_v38 = vsel %vm1619_vm2, %v6952_v28, 0.0  ;;  %v6908_v28 = vadd.f32 %v6907_v59, %v9661_v54 }
0x2b10   : > { %6966 = vadd.xlane.f32.xlu1 %v6965_v41  ;;  %v6928_v63 = vpop.xlane.xlu0 %6927  ;;  %6963 = vadd.xlane.f32.xlu0 %v6962_v38  ;;  %v6925_v30 = vpop.xlane.xlu1 %6924 }
0x2b11   : > { %v6940_v2 = vmul.f32 0.03125, %v6928_v63  ;;  %v6939_v44 = vmul.f32 0.03125, %v6925_v30  ;;  %v6954_v34 = vmul.f32 %v11272_v56, %v11272_v56 }
0x2b13   : > { %v11278_v32 = vsub.f32 %v6904_v25, %v6940_v2  ;;  %v11280_v55 = vsub.f32 %v6903_v39, %v6939_v44  ;;  %v6968_v29 = vsel %vm1619_vm2, %v6954_v34, 0.0  ;;  %v6909_v39 = vld [vmem:[%s11575_s14 + $0x1] sm:$0x1] }
0x2b14   : > { %v6934_v35 = vpop.xlane.xlu0 %6933  ;;  %6969 = vadd.xlane.f32.xlu0 %v6968_v29  ;;  %v6931_v36 = vpop.xlane.xlu1 %6930  ;;  %v6910_v51 = vadd.f32 %v6909_v39, %v9661_v54 }
0x2b15   : > { %v6942_v33 = vmul.f32 0.03125, %v6934_v35  ;;  %v6941_v47 = vmul.f32 0.03125, %v6931_v36  ;;  %v6956_v31 = vmul.f32 %v11278_v32, %v11278_v32  ;;  %v6955_v7 = vmul.f32 %v11280_v55, %v11280_v55 }
0x2b16   : > { %v7015_v13 = vadd.f32 1.0, %v6910_v51 }
0x2b17   : > { %v11287_v27 = vsub.f32 %v6906_v60, %v6942_v33  ;;  %v11289_v43 = vsub.f32 %v6905_v9, %v6941_v47  ;;  %v6974_v46 = vsel %vm1619_vm2, %v6956_v31, 0.0  ;;  %v6971_v48 = vsel %vm1619_vm2, %v6955_v7, 0.0 }
0x2b18   : > { %6975 = vadd.xlane.f32.xlu0 %v6974_v46  ;;  %6972 = vadd.xlane.f32.xlu1 %v6971_v48  ;;  %v7019_v41 = vrot.slane %v7015_v13, %v9575_v24 }
0x2b19   : > { %v6958_v52 = vmul.f32 %v11287_v27, %v11287_v27  ;;  %v6957_v18 = vmul.f32 %v11289_v43, %v11289_v43 }
0x2b1b   : > { %v6980_v57 = vsel %vm1619_vm2, %v6958_v52, 0.0  ;;  %v6977_v10 = vsel %vm1619_vm2, %v6957_v18, 0.0 }
0x2b1c   : > { %6981 = vadd.xlane.f32.xlu0 %v6980_v57  ;;  %6978 = vadd.xlane.f32.xlu1 %v6977_v10 }
0x2b99   : > { %v6961_v0 = vpop.xlane.xlu1 %6960 }
0x2b9a   : > { %v6983_v11 = vmul.f32 0.03125, %v6961_v0 }
0x2b9c   : > { %v6991_v3 = vadd.f32 1e-06, %v6983_v11 }
0x2b9d   : > { %v6964_v14 = vpop.xlane.xlu0 %6963  ;;  %v6967_v8 = vpop.xlane.xlu1 %6966 }
0x2b9e   : > { %9145 = vrsqrt.f32 %v6991_v3  ;;  %v6984_v62 = vmul.f32 0.03125, %v6964_v14  ;;  %v6985_v12 = vmul.f32 0.03125, %v6967_v8 }
0x2ba0   : > { %v6992_v25 = vadd.f32 1e-06, %v6984_v62  ;;  %v6993_v16 = vadd.f32 1e-06, %v6985_v12  ;;  %v7147_v12 = vld [vmem:[%s11574_s21 + $0x18] sm:$0xff] }
0x2ba1   : > { %v6970_v23 = vpop.xlane.xlu0 %6969 }
0x2ba2   : > { %9147 = vrsqrt.f32 %v6992_v25  ;;  %v6986_v17 = vmul.f32 0.03125, %v6970_v23 }
0x2ba3   : > { %9149 = vrsqrt.f32 %v6993_v16 }
0x2ba4   : > { %v6994_v9 = vadd.f32 1e-06, %v6986_v17 }
0x2ba5   : > { %v6976_v60 = vpop.xlane.xlu0 %6975  ;;  %v6973_v53 = vpop.xlane.xlu1 %6972 }
0x2ba6   : > { %9151 = vrsqrt.f32 %v6994_v9  ;;  %v6988_v50 = vmul.f32 0.03125, %v6976_v60  ;;  %v6987_v42 = vmul.f32 0.03125, %v6973_v53 }
0x2ba8   : > { %v9146_v6 = vpop.eup %9145  ;;  %v6996_v20 = vadd.f32 1e-06, %v6988_v50  ;;  %v6995_v19 = vadd.f32 1e-06, %v6987_v42 }
0x2ba9   : > { %v7007_v26 = vmul.f32 %v9146_v6, %v11259_v40  ;;  %v6982_v58 = vpop.xlane.xlu0 %6981  ;;  %v6979_v45 = vpop.xlane.xlu1 %6978  ;;  %v7031_v40 = vrot.slane %v6908_v28, %v9575_v24 }
0x2baa   : > { %9153 = vrsqrt.f32 %v6996_v20  ;;  %v6990_v15 = vmul.f32 0.03125, %v6982_v58  ;;  %v6989_v21 = vmul.f32 0.03125, %v6979_v45 }
0x2bab   : > { %9155 = vrsqrt.f32 %v6995_v19  ;;  %v7020_v34 = vmul.f32 %v7019_v41, %v7007_v26 }
0x2bac   : > { %v9148_v38 = vpop.eup %9147  ;;  %v6998_v63 = vadd.f32 1e-06, %v6990_v15  ;;  %v6997_v30 = vadd.f32 1e-06, %v6989_v21 }
0x2bad   : > { %v9150_v2 = vpop.eup %9149  ;;  %v7008_v44 = vmul.f32 %v9148_v38, %v11265_v61  ;;  %v7032_v47 = vadd.f32 %v7031_v40, %v7020_v34 }
0x2bae   : > { %v7009_v29 = vmul.f32 %v9150_v2, %v11263_v1  ;;  %9157 = vrsqrt.f32 %v6998_v63  ;;  %v9167_v63 = vld [vmem:[%s9583_s7] sm:$0xff] }
0x2baf   : > { %9159 = vrsqrt.f32 %v6997_v30  ;;  %v7021_v35 = vmul.f32 %v7019_v41, %v7008_v44 }
0x2bb0   : > { %v9152_v36 = vpop.eup %9151  ;;  %v7022_v33 = vmul.f32 %v7019_v41, %v7009_v29 }
0x2bb1   : > { %v7010_v54 = vmul.f32 %v9152_v36, %v11272_v56  ;;  %v7033_v31 = vadd.f32 %v7031_v40, %v7021_v35  ;;  %v9169_v36 = vld [vmem:[%s9583_s7 + $0x10] sm:$0xff] }
0x2bb2   : > { %v7034_v18 = vadd.f32 %v7031_v40, %v7022_v33 }
0x2bb3   : > { %v7023_v7 = vmul.f32 %v7019_v41, %v7010_v54  ;;  %v7044_v46 = vpack.c.bf16 %v7033_v31, %v7032_v47 }
0x2bb4   : > { %v9154_v48 = vpop.eup %9153 }
0x2bb5   : > { %v9156_v52 = vpop.eup %9155  ;;  %v7035_v61 = vadd.f32 %v7031_v40, %v7023_v7  ;;  %v7012_v57 = vmul.f32 %v9154_v48, %v11278_v32  ;;  %8480 = vmatprep.mubr.msk.bf16.mxu0 %vm1619_vm2, %v7044_v46  ;;  %v9170_v46 = vld [vmem:[%s9583_s7 + $0x28] sm:$0xff] }
0x2bb6   : > { %v7011_v24 = vmul.f32 %v9156_v52, %v11280_v55  ;;  %v9171_v52 = vld [vmem:[%s9583_s7 + $0x20] sm:$0xff] }
0x2bb7   : > { %v7045_v1 = vpack.c.bf16 %v7035_v61, %v7034_v18  ;;  %v7025_v10 = vmul.f32 %v7019_v41, %v7012_v57 }
0x2bb8   : > { %v9158_v49 = vpop.eup %9157  ;;  %v7024_v22 = vmul.f32 %v7019_v41, %v7011_v24 }
0x2bb9   : > { %v9160_v56 = vpop.eup %9159  ;;  %v7014_v4 = vmul.f32 %v9158_v49, %v11287_v27  ;;  %8481 = vmatmul.mubr.msk.bf16.vlgmr.msra.gmra.mrb[132].mxu0 %vm1619_vm2, %v7045_v1  ;;  %v7037_v37 = vadd.f32 %v7031_v40, %v7025_v10  ;;  %v7146_v27 = vld [vmem:[%s11574_s21 + $0x10] sm:$0xff]  ;;  %v9172_v10 = vld [vmem:[%s9583_s7 + $0x38] sm:$0xff] }
0x2bba   : > { %v7013_v0 = vmul.f32 %v9160_v56, %v11289_v43  ;;  %v7036_v32 = vadd.f32 %v7031_v40, %v7024_v22  ;;  %8511 = vmatpush3.bf16.msra.mxu0 %v11303_v5  ;;  %v8512_v39 = vpack.c.bf16 %v7147_v12, %v7146_v27  ;;  %v7793_v43 = vld [vmem:[%s1253_s30] ss:$0 sm:$0xff]  ;;  %s7801_s30 = sshll.u32 %s11579_s24, 10 }
0x2bbb   : > { %v7027_v55 = vmul.f32 %v7019_v41, %v7014_v4  ;;  %7291 = vperm.xlu1 %8711, %v7793_v43   ;;  %v7778_v5 = vld [vmem:[%s11577_s4] ss:$0 sm:$0xff]  ;;  %s11376_s22 = scalar_lea.hbm %s11580_s18, %s7801_s30  ;;  %s11392_s30 = scalar_lea.sflag [#allocation3], %s1240_s16 }
0x2bbc   : > { %v7046_v11 = vpack.c.bf16 %v7037_v37, %v7036_v32  ;;  %v7026_v3 = vmul.f32 %v7019_v41, %v7013_v0  ;;  %8513 = vmatprep.subr.bf16.mxu0 %v8512_v39  ;;  %v9166_v41 = vld [vmem:[%s9583_s7 + $0x8] sm:$0xff]  ;;  %s9180_s4 = scalar_lea.vmem %s9179_s2, 2048 }
0x2bbd   : > { %v7039_v14 = vadd.f32 %v7031_v40, %v7027_v55  ;;  %p9182_p1 = scmp.lt.s32.totalorder %s9180_s4, %s9174_s0 }
0x2bbe   : > { %8484 = vmatprep.mubr.msk.bf16.mxu0 %vm1619_vm2, %v7046_v11  ;;  %v7038_v8 = vadd.f32 %v7031_v40, %v7026_v3  ;;  %8515 = vmatpush3.bf16.msra.mxu0 %v8512_v39  ;;  %v9168_v40 = vld [vmem:[%s9583_s7 + $0x18] sm:$0xff] }
0x2bbf   : > { %p9183_p2 = por %p9182_p1, %p9181_p0 }
0x2bc0   : > { %v7047_v62 = vpack.c.bf16 %v7039_v14, %v7038_v8 }
0x2bc1   : > { %p9184_p3 = pnand %p9183_p2, %p9177_p13 }
0x2bc2   : > { %8485 = vmatmul.mubr.msk.bf16.gmra.mrb[136].mxu0 %vm1619_vm2, %v7047_v62 }
0x2c3a   : > { %v7292_v58 = vpop.permute.xlu1 %7291 }
0x2c8c   : > { %v8482_v25 = vpop.f32.mrb[132].mxu0 }
0x2c8d   : > { %v7113_v16 = vpop.f32.mrb[133].mxu0  ;;  %v7122_v60 = vadd.f32 %v8482_v25, %v7778_v5 }
0x2c8e   : > { %v7114_v23 = vadd.f32 %v7778_v5, %v7113_v16  ;;  %v8483_v17 = vpop.f32.mrb[134].mxu0 }
0x2c8f   : > { %v7116_v51 = vpop.f32.mrb[135].mxu0  ;;  %v7125_v53 = vadd.f32 %v8483_v17, %v7778_v5 }
0x2c90   : > { %v7117_v9 = vadd.f32 %v7778_v5, %v7116_v51  ;;  %8496 = vmatprep.mubr.msk.f32.mxu0 %vm1619_vm2, %v7114_v23 }
0x2c92   : > { %8497 = vmatmul.mubr.msk.f32.vlgmr.msra.gmra.mrb[140].mxu0 %vm1619_vm2, %v7117_v9 }
0x2c93   : > { %8499 = vmatprep.mubr.msk.f32.mxu0 %vm1619_vm2, %v7122_v60 }
0x2c95   : > { %v8486_v50 = vpop.f32.mrb[136].mxu0 }
0x2c96   : > { %v7129_v42 = vpop.f32.mrb[137].mxu0  ;;  %8500 = vmatmul.mubr.msk.f32.gmra.mrb[142].mxu0 %vm1619_vm2, %v7125_v53  ;;  %v7138_v19 = vadd.f32 %v8486_v50, %v7778_v5 }
0x2c97   : > { %v7130_v13 = vadd.f32 %v7778_v5, %v7129_v42  ;;  %v8487_v6 = vpop.f32.mrb[138].mxu0 }
0x2c98   : > { %v7132_v59 = vpop.f32.mrb[139].mxu0  ;;  %v7141_v26 = vadd.f32 %v8487_v6, %v7778_v5 }
0x2c99   : > { %v7133_v20 = vadd.f32 %v7778_v5, %v7132_v59  ;;  %8502 = vmatprep.mubr.msk.f32.mxu0 %vm1619_vm2, %v7130_v13 }
0x2c9b   : > { %8503 = vmatmul.mubr.msk.f32.gmra.mrb[144].mxu0 %vm1619_vm2, %v7133_v20 }
0x2c9c   : > { %8505 = vmatprep.mubr.msk.f32.mxu0 %vm1619_vm2, %v7138_v19 }
0x2c9f   : > { %8506 = vmatmul.mubr.msk.f32.gmra.mrb[146].mxu0 %vm1619_vm2, %v7141_v26 }
0x2d65   : > { %v8498_v45 = vpop.f32.mrb[140].mxu0 }
0x2d66   : > { %7278 = vst.msk [vmem:[%s11341_s19 + $0x8] sm:$0xff] %vm1317_vm0, %v8498_v45  ;;  %v7295_v15 = vmul.f32 %v8498_v45, %v7292_v58  ;;  %v7238_v21 = vpop.f32.mrb[141].mxu0 }
0x2d67   : > { %7277 = vst.msk [vmem:[%s11341_s19] sm:$0xff] %vm1317_vm0, %v7238_v21  ;;  %v7294_v28 = vmul.f32 %v7292_v58, %v7238_v21 }
0x2d68   : > { %v7303_v38 = vadd.f32 %v9166_v41, %v7295_v15 }
0x2d69   : > { %v7302_v30 = vadd.f32 %v9167_v63, %v7294_v28  ;;  %v8501_v2 = vpop.f32.mrb[142].mxu0 }
0x2d6a   : > { %7311 = vst.msk [vmem:[%s11348_s26 + $0x8] sm:$0xff] %vm1317_vm0, %v7303_v38  ;;  %7280 = vst.msk [vmem:[%s11341_s19 + $0x18] sm:$0xff] %vm1317_vm0, %v8501_v2  ;;  %v7297_v44 = vmul.f32 %v8501_v2, %v7292_v58  ;;  %v7248_v34 = vpop.f32.mrb[143].mxu0 }
0x2d6b   : > { %7310 = vst.msk [vmem:[%s11348_s26] sm:$0xff] %vm1317_vm0, %v7302_v30  ;;  %7279 = vst.msk [vmem:[%s11341_s19 + $0x10] sm:$0xff] %vm1317_vm0, %v7248_v34  ;;  %v7296_v29 = vmul.f32 %v7292_v58, %v7248_v34 }
0x2d6c   : > { %v7305_v35 = vadd.f32 %v9168_v40, %v7297_v44 }
0x2d6d   : > { %v7304_v33 = vadd.f32 %v9169_v36, %v7296_v29 }
0x2d6e   : > { %7313 = vst.msk [vmem:[%s11348_s26 + $0x18] sm:$0xff] %vm1317_vm0, %v7305_v35  ;;  %v8504_v54 = vpop.f32.mrb[144].mxu0 }
0x2d6f   : > { %7312 = vst.msk [vmem:[%s11348_s26 + $0x10] sm:$0xff] %vm1317_vm0, %v7304_v33  ;;  %7282 = vst.msk [vmem:[%s11341_s19 + $0x28] sm:$0xff] %vm1317_vm0, %v8504_v54  ;;  %v7299_v47 = vmul.f32 %v8504_v54, %v7292_v58  ;;  %v7258_v31 = vpop.f32.mrb[145].mxu0 }
0x2d70   : > { %7281 = vst.msk [vmem:[%s11341_s19 + $0x20] sm:$0xff] %vm1317_vm0, %v7258_v31  ;;  %v7298_v7 = vmul.f32 %v7292_v58, %v7258_v31 }
0x2d71   : > { %v7307_v48 = vadd.f32 %v9170_v46, %v7299_v47 }
0x2d72   : > { %v7306_v18 = vadd.f32 %v9171_v52, %v7298_v7  ;;  %v8507_v61 = vpop.f32.mrb[146].mxu0 }
0x2d73   : > { %7315 = vst.msk [vmem:[%s11348_s26 + $0x28] sm:$0xff] %vm1317_vm0, %v7307_v48  ;;  %7284 = vst.msk [vmem:[%s11341_s19 + $0x38] sm:$0xff] %vm1317_vm0, %v8507_v61  ;;  %v7301_v57 = vmul.f32 %v8507_v61, %v7292_v58  ;;  %v7268_v24 = vpop.f32.mrb[147].mxu0 }
0x2d74   : > { %7314 = vst.msk [vmem:[%s11348_s26 + $0x20] sm:$0xff] %vm1317_vm0, %v7306_v18  ;;  %7283 = vst.msk [vmem:[%s11341_s19 + $0x30] sm:$0xff] %vm1317_vm0, %v7268_v24  ;;  %v7300_v1 = vmul.f32 %v7292_v58, %v7268_v24 }
0x2d75   : > { %v7309_v49 = vadd.f32 %v9172_v10, %v7301_v57 }
0x2d76   : > { %9187 = shalt.err (!%p9184_p3)
}
0x2d77   : > { %s9188_s16 = scalar_lea.hbm %s11376_s22, 1024  ;;  %s9192_s1 = scalar_lea.hbm %s11580_s18, 2048 }
0x2d78   : > { %p9189_p4 = scmp.ne.s32.totalorder %s11376_s22, %s9188_s16  ;;  %p9193_p9 = scmp.lt.u32.totalorder %s11376_s22, %s11580_s18 }
0x2d79   : > { %p9194_p10 = scmp.lt.u32.totalorder %s9192_s1, %s9188_s16  ;;  %p9196_p12 = scmp.lt.u32.totalorder %s9188_s16, %s11376_s22 }
0x2d7a   : > { %p9190_p7 = pnand %p9189_p4, %p9533_p5 }
0x2d7b   : > { %p9195_p11 = por %p9194_p10, %p9193_p9 }
0x2d7c   : > { %p9191_p8 = pneg %p9190_p7 }
0x2d7d   : > { %p9197_p0 = por %p9196_p12, %p9195_p11 }
0x2d7f   : > { %p9198_p13 = pnand %p9197_p0, %p9191_p8 }
0x2d81   : > { %9201 = shalt.err (!%p9198_p13)
}
0x2d82   : > { %s9288_s4 = smov 128   ;;  %s9289_s0 = smov 8   ;;  %v9173_v22 = vld [vmem:[%s9583_s7 + $0x30] sm:$0xff]  ;;  %7317 = vst.msk [vmem:[%s11348_s26 + $0x38] sm:$0xff] %vm1317_vm0, %v7309_v49 }
0x2d83   : > { %8540 = dma.vmem_to_hbm [thread:$0]  (%p9533_p5), %s11378_s3, 1024, %s11376_s22, %s11392_s30, %s9288_s4, %s9288_s4, %s9289_s0   ;;  %v7308_v56 = vadd.f32 %v9173_v22, %v7300_v1 }
0x2d85   : > { %7316 = vst.msk [vmem:[%s11348_s26 + $0x30] sm:$0xff] %vm1317_vm0, %v7308_v56 }
0x2d86 PF: > { %s11582_s2 = sld [smem:[#allocation42_spill]]  ;;  %p8546_p1 = scmp.ge.s32.totalorder %s9236_s28, 2 }
0x2d88   : > { %p8543_p2 = pnand %p8546_p1, %p9537_p6 }
0x2d8c   : > { %s7363_s16 = sand.u32 1, %s11582_s2  }
0x2d8d   : > { %s7364_s1 = scalar_lea.sflag [#allocation3], %s7363_s16 }
0x2d8e   : > { %9219 = dma.done.wait (!%p8543_p2), %s7364_s1, 1024  }
0x2d8f   : > { %9221 = vsyncadd (!%p8543_p2), %s7364_s1, 4294966272  ;;  %s11584_s28 = sld [smem:[#allocation45_spill]]  ;;  %s11585_s3 = sld [smem:[#allocation43_spill]] }
0x2d90   : > { %s11586_s26 = sld [smem:[#allocation46_spill]]  ;;  %s11587_s22 = smov %s9228_s23 }
0x2d95   : > { %p90_p5 = scmp.ge.s32.totalorder %s11584_s28, 4   ;;  %s11588_s23 = smov %s11585_s3 }
0x2d97   :  { %92 = sbr.rel (!%p90_p5) target bundleno = 86 (0x56), region = 288 }
0x2d9e   :  { %7369 = vsyncpa [#allocation3], 1 }
0x2d9f   :  { %7371 = vsyncpa [#allocation3 + $0x1], 1 }

</bundles_post_ra>
